<compile_context>
chip_gen: v7x
topology: tpu7x:2x2x1
jax: 0.10.0
libtpu: 0.0.40
codegen_flags: <defaults>
</compile_context>

<pallas_src>
import functools

import numpy as np
import jax
import jax.numpy as jnp
from jax import lax
from jax.experimental import pallas as pl
from jax.experimental.pallas import tpu as pltpu


_COMPILER_PARAMS = pltpu.CompilerParams(vmem_limit_bytes=32 * 1024 * 1024)


# ---------------------------------------------------------------------------
# Fused Pallas kernels (one call per network layer)
# ---------------------------------------------------------------------------

def _fused_conv_kernel(*refs, act, use_bn, has_bias, has_res, eps):
    """Fused conv layer:  acc = sum_t W_t @ X_t ; (+bias) (+BN) (+act) (+residual).

    Channel-major (lane-dense) layout:
      x_ref : (T, Cin, M)  bf16   shifted-window patch taps, M = N*H*W on lanes
      w_ref : (T, Cout, Cin) bf16
      bias  : (Cout, 1) f32       [optional]
      gamma : (Cout, 1) f32, beta: (Cout, 1) f32   [optional, BatchNorm]
      res   : (Cout, M) f32       [optional, residual added after (no-)activation]
      out   : (Cout, M) f32
    """
    refs = list(refs)
    x_ref = refs.pop(0)
    w_ref = refs.pop(0)
    bias_ref = refs.pop(0) if has_bias else None
    gamma_ref = refs.pop(0) if use_bn else None
    beta_ref = refs.pop(0) if use_bn else None
    res_ref = refs.pop(0) if has_res else None
    o_ref = refs.pop(0)

    cout, m = o_ref.shape
    acc = jnp.zeros((cout, m), jnp.float32)
    for t in range(w_ref.shape[0]):              # static unroll over kernel taps
        acc = acc + jnp.dot(w_ref[t], x_ref[t],
                            preferred_element_type=jnp.float32)

    if use_bn:
        # PyTorch training-mode BN: biased batch stats; two-pass (stable) variance.
        mean = jnp.mean(acc, axis=1, keepdims=True)
        xc = acc - mean
        var = jnp.mean(xc * xc, axis=1, keepdims=True)
        y = xc * (gamma_ref[...] * lax.rsqrt(var + eps)) + beta_ref[...]
    else:
        y = acc
    if has_bias:
        y = y + bias_ref[...]
    if act == "relu":
        y = jnp.maximum(y, 0.0)
    elif act == "tanh":
        y = jnp.tanh(y)
    if has_res:
        y = y + res_ref[...]
    o_ref[...] = y.astype(o_ref.dtype)


def _fused_convT_kernel(s_ref, w_ref, gamma_ref, beta_ref, o_ref, *, eps):
    """Fused ConvTranspose2d(k=3, s=2, p=1, op=1) + BN + ReLU via sub-pixel decomposition.

      s_ref : (4, Cin, M) bf16   shifted input slices [S(0,0), S(0,1), S(1,0), S(1,1)]
                                 of x zero-padded by 1 at bottom/right; M = N*h*w
      w_ref : (9, Cout, Cin) bf16  tap ky*3+kx of the PyTorch (Cin,Cout,3,3) weight
      o_ref : (4, Cout, M) f32     output phases, index = py*2 + px
    BN statistics are computed jointly over all 4 phases (= the full 2h x 2w output).
    """
    m = o_ref.shape[2]

    def mm(si, t):
        return jnp.dot(w_ref[t], s_ref[si], preferred_element_type=jnp.float32)

    acc00 = mm(0, 4)                               # even rows, even cols
    acc01 = mm(1, 3) + mm(0, 5)                    # even rows, odd cols
    acc10 = mm(2, 1) + mm(0, 7)                    # odd rows,  even cols
    acc11 = mm(3, 0) + mm(2, 2) + mm(1, 6) + mm(0, 8)   # odd rows, odd cols

    cnt = 4.0 * m
    mean = jnp.sum(acc00 + acc01 + acc10 + acc11, axis=1, keepdims=True) / cnt
    c00 = acc00 - mean
    c01 = acc01 - mean
    c10 = acc10 - mean
    c11 = acc11 - mean
    var = (jnp.sum(c00 * c00, axis=1, keepdims=True)
           + jnp.sum(c01 * c01, axis=1, keepdims=True)
           + jnp.sum(c10 * c10, axis=1, keepdims=True)
           + jnp.sum(c11 * c11, axis=1, keepdims=True)) / cnt
    scale = gamma_ref[...] * lax.rsqrt(var + eps)
    shift = beta_ref[...]
    o_ref[0] = jnp.maximum(c00 * scale + shift, 0.0).astype(o_ref.dtype)
    o_ref[1] = jnp.maximum(c01 * scale + shift, 0.0).astype(o_ref.dtype)
    o_ref[2] = jnp.maximum(c10 * scale + shift, 0.0).astype(o_ref.dtype)
    o_ref[3] = jnp.maximum(c11 * scale + shift, 0.0).astype(o_ref.dtype)


# ---------------------------------------------------------------------------
# Thin wrappers: layout plumbing in plain JAX, one pallas_call per layer
# ---------------------------------------------------------------------------

def _conv_w_taps(w):
    # PyTorch Conv2d weight (Cout, Cin, K, K) -> (K*K, Cout, Cin) bf16 (tap-major)
    cout, cin, k, _ = w.shape
    return jnp.transpose(w, (2, 3, 0, 1)).reshape(k * k, cout, cin).astype(jnp.bfloat16)


def _convT_w_taps(w):
    # PyTorch ConvTranspose2d weight (Cin, Cout, K, K) -> (K*K, Cout, Cin) bf16
    cin, cout, k, _ = w.shape
    return jnp.transpose(w, (2, 3, 1, 0)).reshape(k * k, cout, cin).astype(jnp.bfloat16)


def _extract_taps(xp, k, stride, hout, wout):
    """Shifted-window patch taps, channel-major (K*K, Cin, M).  Wrapper-side XLA glue."""
    n = xp.shape[0]
    cin = xp.shape[3]
    m = n * hout * wout
    cols = []
    for ky in range(k):
        for kx in range(k):
            win = xp[:, ky:ky + (hout - 1) * stride + 1:stride,
                      kx:kx + (wout - 1) * stride + 1:stride, :]
            cols.append(win.reshape(m, cin))
    taps = jnp.stack(cols, axis=0)                                # (K*K, M, Cin)
    return jnp.transpose(taps, (0, 2, 1)).astype(jnp.bfloat16)    # (K*K, Cin, M)


def fused_conv_bn_act(x, w, *, stride=1, padding=0, pad_mode="zero",
                      gamma=None, beta=None, bias=None, residual=None,
                      act="none", eps=1e-5):
    """Conv2d (+bias) (+BatchNorm) (+act) (+residual) as ONE fused Pallas kernel."""
    n, _, _, _ = x.shape
    cout, _, k, _ = w.shape
    if padding > 0:
        mode = "reflect" if pad_mode == "reflect" else "constant"
        xp = jnp.pad(x, ((0, 0), (padding, padding), (padding, padding), (0, 0)),
                     mode=mode)
    else:
        xp = x
    hout = (xp.shape[1] - k) // stride + 1
    wout = (xp.shape[2] - k) // stride + 1
    m = n * hout * wout

    x_taps = _extract_taps(xp, k, stride, hout, wout)    # (K*K, Cin, M) bf16
    w_taps = _conv_w_taps(w)                             # (K*K, Cout, Cin) bf16

    use_bn = gamma is not None
    has_bias = bias is not None
    has_res = residual is not None
    args = [x_taps, w_taps]
    if has_bias:
        args.append(bias.astype(jnp.float32).reshape(cout, 1))
    if use_bn:
        args.append(gamma.astype(jnp.float32).reshape(cout, 1))
        args.append(beta.astype(jnp.float32).reshape(cout, 1))
    if has_res:
        args.append(jnp.transpose(residual.reshape(m, cout)))    # (Cout, M) f32

    kern = functools.partial(_fused_conv_kernel, act=act, use_bn=use_bn,
                             has_bias=has_bias, has_res=has_res, eps=eps)
    out = pl.pallas_call(
        kern,
        out_shape=jax.ShapeDtypeStruct((cout, m), jnp.float32),
        compiler_params=_COMPILER_PARAMS,
    )(*args)
    return jnp.transpose(out).reshape(n, hout, wout, cout)


def fused_conv_transpose_bn_relu(x, w, gamma, beta, eps=1e-5):
    """ConvTranspose2d(k=3, s=2, p=1, op=1, no bias) + BN + ReLU in ONE fused kernel."""
    n, h, wd, cin = x.shape
    cout = w.shape[1]
    m = n * h * wd
    xp = jnp.pad(x, ((0, 0), (0, 1), (0, 1), (0, 0)))    # zero pad bottom/right by 1

    def shifted(dy, dx):
        return jnp.transpose(xp[:, dy:dy + h, dx:dx + wd, :].reshape(m, cin))

    s = jnp.stack([shifted(0, 0), shifted(0, 1), shifted(1, 0), shifted(1, 1)],
                  axis=0).astype(jnp.bfloat16)           # (4, Cin, M)
    w_taps = _convT_w_taps(w)                            # (9, Cout, Cin)

    kern = functools.partial(_fused_convT_kernel, eps=eps)
    ph = pl.pallas_call(
        kern,
        out_shape=jax.ShapeDtypeStruct((4, cout, m), jnp.float32),
        compiler_params=_COMPILER_PARAMS,
    )(s, w_taps, gamma.astype(jnp.float32).reshape(cout, 1),
      beta.astype(jnp.float32).reshape(cout, 1))

    # interleave the 4 sub-pixel phases: (py, px, Cout, N, h, w) -> (N, 2h, 2w, Cout)
    ph = ph.reshape(2, 2, cout, n, h, wd)
    return jnp.transpose(ph, (3, 4, 0, 5, 1, 2)).reshape(n, 2 * h, 2 * wd, cout)


# ---------------------------------------------------------------------------
# Parameter init (deterministic, mimics init_weights(init_type='orthogonal'))
# ---------------------------------------------------------------------------

def _orthogonal(key, shape, gain=0.02):
    rows = shape[0]
    cols = int(np.prod(shape[1:]))
    n, m = (rows, cols) if rows >= cols else (cols, rows)
    a = jax.random.normal(key, (n, m), jnp.float32)
    q, r = jnp.linalg.qr(a)
    d = jnp.diagonal(r)
    q = q * jnp.where(d >= 0, 1.0, -1.0)
    if rows < cols:
        q = q.T
    return (gain * q[:rows, :cols]).reshape(shape)


def _bn_params(key, c):
    return {"gamma": 1.0 + 0.02 * jax.random.normal(key, (c,), jnp.float32),
            "beta": jnp.zeros((c,), jnp.float32)}


def init_params(key, input_nc, output_nc, ngf=8, n_blocks=2):
    keys = iter(jax.random.split(key, 128))
    p = {}
    p["conv_in_w"] = _orthogonal(next(keys), (ngf, input_nc, 7, 7))
    p["bn_in"] = _bn_params(next(keys), ngf)
    p["down"] = []
    for i in range(2):
        cin = ngf * (2 ** i)
        cout = cin * 2
        p["down"].append({"w": _orthogonal(next(keys), (cout, cin, 3, 3)),
                          "bn": _bn_params(next(keys), cout)})
    d = ngf * 4
    p["blocks"] = []
    for _ in range(n_blocks):
        p["blocks"].append({"w1": _orthogonal(next(keys), (d, d, 3, 3)),
                            "bn1": _bn_params(next(keys), d),
                            "w2": _orthogonal(next(keys), (d, d, 3, 3)),
                            "bn2": _bn_params(next(keys), d)})
    p["up"] = []
    for i in range(2):
        cin = ngf * (2 ** (2 - i))
        cout = cin // 2
        p["up"].append({"w": _orthogonal(next(keys), (cin, cout, 3, 3)),
                        "bn": _bn_params(next(keys), cout)})
    p["conv_out_w"] = _orthogonal(next(keys), (output_nc, ngf, 7, 7))
    p["conv_out_b"] = jnp.zeros((output_nc,), jnp.float32)   # init.constant_(bias, 0)
    return p


# ---------------------------------------------------------------------------
# ResnetGenerator forward (norm_layer=BatchNorm2d -> use_bias=False on inner convs,
# padding_type='reflect', use_dropout=False)
# ---------------------------------------------------------------------------

def resnet_generator_forward(params, x_nchw):
    p = params
    x = jnp.transpose(x_nchw, (0, 2, 3, 1)).astype(jnp.float32)   # NCHW -> NHWC

    # stem: ReflectionPad2d(3) + Conv7x7 + BN + ReLU          [1 fused kernel]
    h = fused_conv_bn_act(x, p["conv_in_w"], stride=1, padding=3, pad_mode="reflect",
                          gamma=p["bn_in"]["gamma"], beta=p["bn_in"]["beta"],
                          act="relu")

    # 2x downsampling: Conv3x3 s2 p1 + BN + ReLU               [1 fused kernel each]
    for dn in p["down"]:
        h = fused_conv_bn_act(h, dn["w"], stride=2, padding=1, pad_mode="zero",
                              gamma=dn["bn"]["gamma"], beta=dn["bn"]["beta"],
                              act="relu")

    # resnet blocks: (reflect pad1 Conv3 BN ReLU) + (reflect pad1 Conv3 BN) + skip
    for blk in p["blocks"]:
        y = fused_conv_bn_act(h, blk["w1"], stride=1, padding=1, pad_mode="reflect",
                              gamma=blk["bn1"]["gamma"], beta=blk["bn1"]["beta"],
                              act="relu")
        h = fused_conv_bn_act(y, blk["w2"], stride=1, padding=1, pad_mode="reflect",
                              gamma=blk["bn2"]["gamma"], beta=blk["bn2"]["beta"],
                              act="none", residual=h)

    # 2x upsampling: ConvTranspose3 s2 p1 op1 + BN + ReLU      [1 fused kernel each]
    for up in p["up"]:
        h = fused_conv_transpose_bn_relu(h, up["w"], up["bn"]["gamma"], up["bn"]["beta"])

    # head: ReflectionPad2d(3) + Conv7x7 (with bias) + Tanh    [1 fused kernel]
    h = fused_conv_bn_act(h, p["conv_out_w"], stride=1, padding=3, pad_mode="reflect",
                          bias=p["conv_out_b"], act="tanh")

    return jnp.transpose(h, (0, 3, 1, 2))   # NHWC -> NCHW


# ---------------------------------------------------------------------------
if __name__ == "__main__":
    input_nc, output_nc, ngf, n_blocks = 4, 3, 8, 2
    key = jax.random.PRNGKey(0)
    x = jax.random.normal(key, (2, input_nc, 16, 16), jnp.float32)   # NCHW input

    params = init_params(jax.random.PRNGKey(1), input_nc, output_nc,
                         ngf=ngf, n_blocks=n_blocks)

    fwd = jax.jit(resnet_generator_forward)
    y = fwd(params, x)
    jax.block_until_ready(y)

    assert y.shape == (2, output_nc, 16, 16), y.shape
    assert bool(jnp.all(jnp.isfinite(y)))
    assert bool(jnp.all(jnp.abs(y) <= 1.0 + 1e-5))   # tanh output range
    print("KERNEL_OK")
</pallas_src>

<mosaic_0001>
module attributes {stable_mosaic.version = 11 : i64} {
  func.func @_fused_conv_kernel(%arg0: memref<49x4x512xbf16, #tpu.memory_space<vmem>>, %arg1: memref<49x8x4xbf16, #tpu.memory_space<vmem>>, %arg2: memref<8x1xf32, #tpu.memory_space<vmem>>, %arg3: memref<8x1xf32, #tpu.memory_space<vmem>>, %arg4: memref<8x512xf32, #tpu.memory_space<vmem>>) attributes {dimension_semantics = [], scalar_prefetch = 0 : i64, scratch_operands = 0 : i64, tpu.core_type = #tpu.core_type<tc>} {
    %cst = arith.constant 0.000000e+00 : f32
    %0 = vector.broadcast %cst : f32 to vector<8x512xf32>
    %c0 = arith.constant 0 : index
    %c0_0 = arith.constant 0 : index
    %c0_1 = arith.constant 0 : index
    %1 = vector.load %arg1[%c0, %c0_0, %c0_1] : memref<49x8x4xbf16, #tpu.memory_space<vmem>>, vector<1x8x4xbf16>
    %2 = vector.shape_cast %1 : vector<1x8x4xbf16> to vector<8x4xbf16>
    %c0_2 = arith.constant 0 : index
    %c0_3 = arith.constant 0 : index
    %c0_4 = arith.constant 0 : index
    %3 = vector.load %arg0[%c0_2, %c0_3, %c0_4] : memref<49x4x512xbf16, #tpu.memory_space<vmem>>, vector<1x4x512xbf16>
    %4 = vector.shape_cast %3 : vector<1x4x512xbf16> to vector<4x512xbf16>
    %cst_5 = arith.constant dense<0.000000e+00> : vector<8x512xf32>
    %5 = tpu.matmul %2, %4, %cst_5 {dimension_numbers = #tpu.dot_dimension_numbers<[1], [0], [0], [1], [0, 0, 1, 1], [], []>} : vector<8x4xbf16>, vector<4x512xbf16>, vector<8x512xf32> -> vector<8x512xf32>
    %6 = arith.addf %0, %5 : vector<8x512xf32>
    %c1 = arith.constant 1 : index
    %c0_6 = arith.constant 0 : index
    %c0_7 = arith.constant 0 : index
    %7 = vector.load %arg1[%c1, %c0_6, %c0_7] : memref<49x8x4xbf16, #tpu.memory_space<vmem>>, vector<1x8x4xbf16>
    %8 = vector.shape_cast %7 : vector<1x8x4xbf16> to vector<8x4xbf16>
    %c1_8 = arith.constant 1 : index
    %c0_9 = arith.constant 0 : index
    %c0_10 = arith.constant 0 : index
    %9 = vector.load %arg0[%c1_8, %c0_9, %c0_10] : memref<49x4x512xbf16, #tpu.memory_space<vmem>>, vector<1x4x512xbf16>
    %10 = vector.shape_cast %9 : vector<1x4x512xbf16> to vector<4x512xbf16>
    %cst_11 = arith.constant dense<0.000000e+00> : vector<8x512xf32>
    %11 = tpu.matmul %8, %10, %cst_11 {dimension_numbers = #tpu.dot_dimension_numbers<[1], [0], [0], [1], [0, 0, 1, 1], [], []>} : vector<8x4xbf16>, vector<4x512xbf16>, vector<8x512xf32> -> vector<8x512xf32>
    %12 = arith.addf %6, %11 : vector<8x512xf32>
    %c2 = arith.constant 2 : index
    %c0_12 = arith.constant 0 : index
    %c0_13 = arith.constant 0 : index
    %13 = vector.load %arg1[%c2, %c0_12, %c0_13] : memref<49x8x4xbf16, #tpu.memory_space<vmem>>, vector<1x8x4xbf16>
    %14 = vector.shape_cast %13 : vector<1x8x4xbf16> to vector<8x4xbf16>
    %c2_14 = arith.constant 2 : index
    %c0_15 = arith.constant 0 : index
    %c0_16 = arith.constant 0 : index
    %15 = vector.load %arg0[%c2_14, %c0_15, %c0_16] : memref<49x4x512xbf16, #tpu.memory_space<vmem>>, vector<1x4x512xbf16>
    %16 = vector.shape_cast %15 : vector<1x4x512xbf16> to vector<4x512xbf16>
    %cst_17 = arith.constant dense<0.000000e+00> : vector<8x512xf32>
    %17 = tpu.matmul %14, %16, %cst_17 {dimension_numbers = #tpu.dot_dimension_numbers<[1], [0], [0], [1], [0, 0, 1, 1], [], []>} : vector<8x4xbf16>, vector<4x512xbf16>, vector<8x512xf32> -> vector<8x512xf32>
    %18 = arith.addf %12, %17 : vector<8x512xf32>
    %c3 = arith.constant 3 : index
    %c0_18 = arith.constant 0 : index
    %c0_19 = arith.constant 0 : index
    %19 = vector.load %arg1[%c3, %c0_18, %c0_19] : memref<49x8x4xbf16, #tpu.memory_space<vmem>>, vector<1x8x4xbf16>
    %20 = vector.shape_cast %19 : vector<1x8x4xbf16> to vector<8x4xbf16>
    %c3_20 = arith.constant 3 : index
    %c0_21 = arith.constant 0 : index
    %c0_22 = arith.constant 0 : index
    %21 = vector.load %arg0[%c3_20, %c0_21, %c0_22] : memref<49x4x512xbf16, #tpu.memory_space<vmem>>, vector<1x4x512xbf16>
    %22 = vector.shape_cast %21 : vector<1x4x512xbf16> to vector<4x512xbf16>
    %cst_23 = arith.constant dense<0.000000e+00> : vector<8x512xf32>
    %23 = tpu.matmul %20, %22, %cst_23 {dimension_numbers = #tpu.dot_dimension_numbers<[1], [0], [0], [1], [0, 0, 1, 1], [], []>} : vector<8x4xbf16>, vector<4x512xbf16>, vector<8x512xf32> -> vector<8x512xf32>
    %24 = arith.addf %18, %23 : vector<8x512xf32>
    %c4 = arith.constant 4 : index
    %c0_24 = arith.constant 0 : index
    %c0_25 = arith.constant 0 : index
    %25 = vector.load %arg1[%c4, %c0_24, %c0_25] : memref<49x8x4xbf16, #tpu.memory_space<vmem>>, vector<1x8x4xbf16>
    %26 = vector.shape_cast %25 : vector<1x8x4xbf16> to vector<8x4xbf16>
    %c4_26 = arith.constant 4 : index
    %c0_27 = arith.constant 0 : index
    %c0_28 = arith.constant 0 : index
    %27 = vector.load %arg0[%c4_26, %c0_27, %c0_28] : memref<49x4x512xbf16, #tpu.memory_space<vmem>>, vector<1x4x512xbf16>
    %28 = vector.shape_cast %27 : vector<1x4x512xbf16> to vector<4x512xbf16>
    %cst_29 = arith.constant dense<0.000000e+00> : vector<8x512xf32>
    %29 = tpu.matmul %26, %28, %cst_29 {dimension_numbers = #tpu.dot_dimension_numbers<[1], [0], [0], [1], [0, 0, 1, 1], [], []>} : vector<8x4xbf16>, vector<4x512xbf16>, vector<8x512xf32> -> vector<8x512xf32>
    %30 = arith.addf %24, %29 : vector<8x512xf32>
    %c5 = arith.constant 5 : index
    %c0_30 = arith.constant 0 : index
    %c0_31 = arith.constant 0 : index
    %31 = vector.load %arg1[%c5, %c0_30, %c0_31] : memref<49x8x4xbf16, #tpu.memory_space<vmem>>, vector<1x8x4xbf16>
    %32 = vector.shape_cast %31 : vector<1x8x4xbf16> to vector<8x4xbf16>
    %c5_32 = arith.constant 5 : index
    %c0_33 = arith.constant 0 : index
    %c0_34 = arith.constant 0 : index
    %33 = vector.load %arg0[%c5_32, %c0_33, %c0_34] : memref<49x4x512xbf16, #tpu.memory_space<vmem>>, vector<1x4x512xbf16>
    %34 = vector.shape_cast %33 : vector<1x4x512xbf16> to vector<4x512xbf16>
    %cst_35 = arith.constant dense<0.000000e+00> : vector<8x512xf32>
    %35 = tpu.matmul %32, %34, %cst_35 {dimension_numbers = #tpu.dot_dimension_numbers<[1], [0], [0], [1], [0, 0, 1, 1], [], []>} : vector<8x4xbf16>, vector<4x512xbf16>, vector<8x512xf32> -> vector<8x512xf32>
    %36 = arith.addf %30, %35 : vector<8x512xf32>
    %c6 = arith.constant 6 : index
    %c0_36 = arith.constant 0 : index
    %c0_37 = arith.constant 0 : index
    %37 = vector.load %arg1[%c6, %c0_36, %c0_37] : memref<49x8x4xbf16, #tpu.memory_space<vmem>>, vector<1x8x4xbf16>
    %38 = vector.shape_cast %37 : vector<1x8x4xbf16> to vector<8x4xbf16>
    %c6_38 = arith.constant 6 : index
    %c0_39 = arith.constant 0 : index
    %c0_40 = arith.constant 0 : index
    %39 = vector.load %arg0[%c6_38, %c0_39, %c0_40] : memref<49x4x512xbf16, #tpu.memory_space<vmem>>, vector<1x4x512xbf16>
    %40 = vector.shape_cast %39 : vector<1x4x512xbf16> to vector<4x512xbf16>
    %cst_41 = arith.constant dense<0.000000e+00> : vector<8x512xf32>
    %41 = tpu.matmul %38, %40, %cst_41 {dimension_numbers = #tpu.dot_dimension_numbers<[1], [0], [0], [1], [0, 0, 1, 1], [], []>} : vector<8x4xbf16>, vector<4x512xbf16>, vector<8x512xf32> -> vector<8x512xf32>
    %42 = arith.addf %36, %41 : vector<8x512xf32>
    %c7 = arith.constant 7 : index
    %c0_42 = arith.constant 0 : index
    %c0_43 = arith.constant 0 : index
    %43 = vector.load %arg1[%c7, %c0_42, %c0_43] : memref<49x8x4xbf16, #tpu.memory_space<vmem>>, vector<1x8x4xbf16>
    %44 = vector.shape_cast %43 : vector<1x8x4xbf16> to vector<8x4xbf16>
    %c7_44 = arith.constant 7 : index
    %c0_45 = arith.constant 0 : index
    %c0_46 = arith.constant 0 : index
    %45 = vector.load %arg0[%c7_44, %c0_45, %c0_46] : memref<49x4x512xbf16, #tpu.memory_space<vmem>>, vector<1x4x512xbf16>
    %46 = vector.shape_cast %45 : vector<1x4x512xbf16> to vector<4x512xbf16>
    %cst_47 = arith.constant dense<0.000000e+00> : vector<8x512xf32>
    %47 = tpu.matmul %44, %46, %cst_47 {dimension_numbers = #tpu.dot_dimension_numbers<[1], [0], [0], [1], [0, 0, 1, 1], [], []>} : vector<8x4xbf16>, vector<4x512xbf16>, vector<8x512xf32> -> vector<8x512xf32>
    %48 = arith.addf %42, %47 : vector<8x512xf32>
    %c8 = arith.constant 8 : index
    %c0_48 = arith.constant 0 : index
    %c0_49 = arith.constant 0 : index
    %49 = vector.load %arg1[%c8, %c0_48, %c0_49] : memref<49x8x4xbf16, #tpu.memory_space<vmem>>, vector<1x8x4xbf16>
    %50 = vector.shape_cast %49 : vector<1x8x4xbf16> to vector<8x4xbf16>
    %c8_50 = arith.constant 8 : index
    %c0_51 = arith.constant 0 : index
    %c0_52 = arith.constant 0 : index
    %51 = vector.load %arg0[%c8_50, %c0_51, %c0_52] : memref<49x4x512xbf16, #tpu.memory_space<vmem>>, vector<1x4x512xbf16>
    %52 = vector.shape_cast %51 : vector<1x4x512xbf16> to vector<4x512xbf16>
    %cst_53 = arith.constant dense<0.000000e+00> : vector<8x512xf32>
    %53 = tpu.matmul %50, %52, %cst_53 {dimension_numbers = #tpu.dot_dimension_numbers<[1], [0], [0], [1], [0, 0, 1, 1], [], []>} : vector<8x4xbf16>, vector<4x512xbf16>, vector<8x512xf32> -> vector<8x512xf32>
    %54 = arith.addf %48, %53 : vector<8x512xf32>
    %c9 = arith.constant 9 : index
    %c0_54 = arith.constant 0 : index
    %c0_55 = arith.constant 0 : index
    %55 = vector.load %arg1[%c9, %c0_54, %c0_55] : memref<49x8x4xbf16, #tpu.memory_space<vmem>>, vector<1x8x4xbf16>
    %56 = vector.shape_cast %55 : vector<1x8x4xbf16> to vector<8x4xbf16>
    %c9_56 = arith.constant 9 : index
    %c0_57 = arith.constant 0 : index
    %c0_58 = arith.constant 0 : index
    %57 = vector.load %arg0[%c9_56, %c0_57, %c0_58] : memref<49x4x512xbf16, #tpu.memory_space<vmem>>, vector<1x4x512xbf16>
    %58 = vector.shape_cast %57 : vector<1x4x512xbf16> to vector<4x512xbf16>
    %cst_59 = arith.constant dense<0.000000e+00> : vector<8x512xf32>
    %59 = tpu.matmul %56, %58, %cst_59 {dimension_numbers = #tpu.dot_dimension_numbers<[1], [0], [0], [1], [0, 0, 1, 1], [], []>} : vector<8x4xbf16>, vector<4x512xbf16>, vector<8x512xf32> -> vector<8x512xf32>
    %60 = arith.addf %54, %59 : vector<8x512xf32>
    %c10 = arith.constant 10 : index
    %c0_60 = arith.constant 0 : index
    %c0_61 = arith.constant 0 : index
    %61 = vector.load %arg1[%c10, %c0_60, %c0_61] : memref<49x8x4xbf16, #tpu.memory_space<vmem>>, vector<1x8x4xbf16>
    %62 = vector.shape_cast %61 : vector<1x8x4xbf16> to vector<8x4xbf16>
    %c10_62 = arith.constant 10 : index
    %c0_63 = arith.constant 0 : index
    %c0_64 = arith.constant 0 : index
    %63 = vector.load %arg0[%c10_62, %c0_63, %c0_64] : memref<49x4x512xbf16, #tpu.memory_space<vmem>>, vector<1x4x512xbf16>
    %64 = vector.shape_cast %63 : vector<1x4x512xbf16> to vector<4x512xbf16>
    %cst_65 = arith.constant dense<0.000000e+00> : vector<8x512xf32>
    %65 = tpu.matmul %62, %64, %cst_65 {dimension_numbers = #tpu.dot_dimension_numbers<[1], [0], [0], [1], [0, 0, 1, 1], [], []>} : vector<8x4xbf16>, vector<4x512xbf16>, vector<8x512xf32> -> vector<8x512xf32>
    %66 = arith.addf %60, %65 : vector<8x512xf32>
    %c11 = arith.constant 11 : index
    %c0_66 = arith.constant 0 : index
    %c0_67 = arith.constant 0 : index
    %67 = vector.load %arg1[%c11, %c0_66, %c0_67] : memref<49x8x4xbf16, #tpu.memory_space<vmem>>, vector<1x8x4xbf16>
    %68 = vector.shape_cast %67 : vector<1x8x4xbf16> to vector<8x4xbf16>
    %c11_68 = arith.constant 11 : index
    %c0_69 = arith.constant 0 : index
    %c0_70 = arith.constant 0 : index
    %69 = vector.load %arg0[%c11_68, %c0_69, %c0_70] : memref<49x4x512xbf16, #tpu.memory_space<vmem>>, vector<1x4x512xbf16>
    %70 = vector.shape_cast %69 : vector<1x4x512xbf16> to vector<4x512xbf16>
    %cst_71 = arith.constant dense<0.000000e+00> : vector<8x512xf32>
    %71 = tpu.matmul %68, %70, %cst_71 {dimension_numbers = #tpu.dot_dimension_numbers<[1], [0], [0], [1], [0, 0, 1, 1], [], []>} : vector<8x4xbf16>, vector<4x512xbf16>, vector<8x512xf32> -> vector<8x512xf32>
    %72 = arith.addf %66, %71 : vector<8x512xf32>
    %c12 = arith.constant 12 : index
    %c0_72 = arith.constant 0 : index
    %c0_73 = arith.constant 0 : index
    %73 = vector.load %arg1[%c12, %c0_72, %c0_73] : memref<49x8x4xbf16, #tpu.memory_space<vmem>>, vector<1x8x4xbf16>
    %74 = vector.shape_cast %73 : vector<1x8x4xbf16> to vector<8x4xbf16>
    %c12_74 = arith.constant 12 : index
    %c0_75 = arith.constant 0 : index
    %c0_76 = arith.constant 0 : index
    %75 = vector.load %arg0[%c12_74, %c0_75, %c0_76] : memref<49x4x512xbf16, #tpu.memory_space<vmem>>, vector<1x4x512xbf16>
    %76 = vector.shape_cast %75 : vector<1x4x512xbf16> to vector<4x512xbf16>
    %cst_77 = arith.constant dense<0.000000e+00> : vector<8x512xf32>
    %77 = tpu.matmul %74, %76, %cst_77 {dimension_numbers = #tpu.dot_dimension_numbers<[1], [0], [0], [1], [0, 0, 1, 1], [], []>} : vector<8x4xbf16>, vector<4x512xbf16>, vector<8x512xf32> -> vector<8x512xf32>
    %78 = arith.addf %72, %77 : vector<8x512xf32>
    %c13 = arith.constant 13 : index
    %c0_78 = arith.constant 0 : index
    %c0_79 = arith.constant 0 : index
    %79 = vector.load %arg1[%c13, %c0_78, %c0_79] : memref<49x8x4xbf16, #tpu.memory_space<vmem>>, vector<1x8x4xbf16>
    %80 = vector.shape_cast %79 : vector<1x8x4xbf16> to vector<8x4xbf16>
    %c13_80 = arith.constant 13 : index
    %c0_81 = arith.constant 0 : index
    %c0_82 = arith.constant 0 : index
    %81 = vector.load %arg0[%c13_80, %c0_81, %c0_82] : memref<49x4x512xbf16, #tpu.memory_space<vmem>>, vector<1x4x512xbf16>
    %82 = vector.shape_cast %81 : vector<1x4x512xbf16> to vector<4x512xbf16>
    %cst_83 = arith.constant dense<0.000000e+00> : vector<8x512xf32>
    %83 = tpu.matmul %80, %82, %cst_83 {dimension_numbers = #tpu.dot_dimension_numbers<[1], [0], [0], [1], [0, 0, 1, 1], [], []>} : vector<8x4xbf16>, vector<4x512xbf16>, vector<8x512xf32> -> vector<8x512xf32>
    %84 = arith.addf %78, %83 : vector<8x512xf32>
    %c14 = arith.constant 14 : index
    %c0_84 = arith.constant 0 : index
    %c0_85 = arith.constant 0 : index
    %85 = vector.load %arg1[%c14, %c0_84, %c0_85] : memref<49x8x4xbf16, #tpu.memory_space<vmem>>, vector<1x8x4xbf16>
    %86 = vector.shape_cast %85 : vector<1x8x4xbf16> to vector<8x4xbf16>
    %c14_86 = arith.constant 14 : index
    %c0_87 = arith.constant 0 : index
    %c0_88 = arith.constant 0 : index
    %87 = vector.load %arg0[%c14_86, %c0_87, %c0_88] : memref<49x4x512xbf16, #tpu.memory_space<vmem>>, vector<1x4x512xbf16>
    %88 = vector.shape_cast %87 : vector<1x4x512xbf16> to vector<4x512xbf16>
    %cst_89 = arith.constant dense<0.000000e+00> : vector<8x512xf32>
    %89 = tpu.matmul %86, %88, %cst_89 {dimension_numbers = #tpu.dot_dimension_numbers<[1], [0], [0], [1], [0, 0, 1, 1], [], []>} : vector<8x4xbf16>, vector<4x512xbf16>, vector<8x512xf32> -> vector<8x512xf32>
    %90 = arith.addf %84, %89 : vector<8x512xf32>
    %c15 = arith.constant 15 : index
    %c0_90 = arith.constant 0 : index
    %c0_91 = arith.constant 0 : index
    %91 = vector.load %arg1[%c15, %c0_90, %c0_91] : memref<49x8x4xbf16, #tpu.memory_space<vmem>>, vector<1x8x4xbf16>
    %92 = vector.shape_cast %91 : vector<1x8x4xbf16> to vector<8x4xbf16>
    %c15_92 = arith.constant 15 : index
    %c0_93 = arith.constant 0 : index
    %c0_94 = arith.constant 0 : index
    %93 = vector.load %arg0[%c15_92, %c0_93, %c0_94] : memref<49x4x512xbf16, #tpu.memory_space<vmem>>, vector<1x4x512xbf16>
    %94 = vector.shape_cast %93 : vector<1x4x512xbf16> to vector<4x512xbf16>
    %cst_95 = arith.constant dense<0.000000e+00> : vector<8x512xf32>
    %95 = tpu.matmul %92, %94, %cst_95 {dimension_numbers = #tpu.dot_dimension_numbers<[1], [0], [0], [1], [0, 0, 1, 1], [], []>} : vector<8x4xbf16>, vector<4x512xbf16>, vector<8x512xf32> -> vector<8x512xf32>
    %96 = arith.addf %90, %95 : vector<8x512xf32>
    %c16 = arith.constant 16 : index
    %c0_96 = arith.constant 0 : index
    %c0_97 = arith.constant 0 : index
    %97 = vector.load %arg1[%c16, %c0_96, %c0_97] : memref<49x8x4xbf16, #tpu.memory_space<vmem>>, vector<1x8x4xbf16>
    %98 = vector.shape_cast %97 : vector<1x8x4xbf16> to vector<8x4xbf16>
    %c16_98 = arith.constant 16 : index
    %c0_99 = arith.constant 0 : index
    %c0_100 = arith.constant 0 : index
    %99 = vector.load %arg0[%c16_98, %c0_99, %c0_100] : memref<49x4x512xbf16, #tpu.memory_space<vmem>>, vector<1x4x512xbf16>
    %100 = vector.shape_cast %99 : vector<1x4x512xbf16> to vector<4x512xbf16>
    %cst_101 = arith.constant dense<0.000000e+00> : vector<8x512xf32>
    %101 = tpu.matmul %98, %100, %cst_101 {dimension_numbers = #tpu.dot_dimension_numbers<[1], [0], [0], [1], [0, 0, 1, 1], [], []>} : vector<8x4xbf16>, vector<4x512xbf16>, vector<8x512xf32> -> vector<8x512xf32>
    %102 = arith.addf %96, %101 : vector<8x512xf32>
    %c17 = arith.constant 17 : index
    %c0_102 = arith.constant 0 : index
    %c0_103 = arith.constant 0 : index
    %103 = vector.load %arg1[%c17, %c0_102, %c0_103] : memref<49x8x4xbf16, #tpu.memory_space<vmem>>, vector<1x8x4xbf16>
    %104 = vector.shape_cast %103 : vector<1x8x4xbf16> to vector<8x4xbf16>
    %c17_104 = arith.constant 17 : index
    %c0_105 = arith.constant 0 : index
    %c0_106 = arith.constant 0 : index
    %105 = vector.load %arg0[%c17_104, %c0_105, %c0_106] : memref<49x4x512xbf16, #tpu.memory_space<vmem>>, vector<1x4x512xbf16>
    %106 = vector.shape_cast %105 : vector<1x4x512xbf16> to vector<4x512xbf16>
    %cst_107 = arith.constant dense<0.000000e+00> : vector<8x512xf32>
    %107 = tpu.matmul %104, %106, %cst_107 {dimension_numbers = #tpu.dot_dimension_numbers<[1], [0], [0], [1], [0, 0, 1, 1], [], []>} : vector<8x4xbf16>, vector<4x512xbf16>, vector<8x512xf32> -> vector<8x512xf32>
    %108 = arith.addf %102, %107 : vector<8x512xf32>
    %c18 = arith.constant 18 : index
    %c0_108 = arith.constant 0 : index
    %c0_109 = arith.constant 0 : index
    %109 = vector.load %arg1[%c18, %c0_108, %c0_109] : memref<49x8x4xbf16, #tpu.memory_space<vmem>>, vector<1x8x4xbf16>
    %110 = vector.shape_cast %109 : vector<1x8x4xbf16> to vector<8x4xbf16>
    %c18_110 = arith.constant 18 : index
    %c0_111 = arith.constant 0 : index
    %c0_112 = arith.constant 0 : index
    %111 = vector.load %arg0[%c18_110, %c0_111, %c0_112] : memref<49x4x512xbf16, #tpu.memory_space<vmem>>, vector<1x4x512xbf16>
    %112 = vector.shape_cast %111 : vector<1x4x512xbf16> to vector<4x512xbf16>
    %cst_113 = arith.constant dense<0.000000e+00> : vector<8x512xf32>
    %113 = tpu.matmul %110, %112, %cst_113 {dimension_numbers = #tpu.dot_dimension_numbers<[1], [0], [0], [1], [0, 0, 1, 1], [], []>} : vector<8x4xbf16>, vector<4x512xbf16>, vector<8x512xf32> -> vector<8x512xf32>
    %114 = arith.addf %108, %113 : vector<8x512xf32>
    %c19 = arith.constant 19 : index
    %c0_114 = arith.constant 0 : index
    %c0_115 = arith.constant 0 : index
    %115 = vector.load %arg1[%c19, %c0_114, %c0_115] : memref<49x8x4xbf16, #tpu.memory_space<vmem>>, vector<1x8x4xbf16>
    %116 = vector.shape_cast %115 : vector<1x8x4xbf16> to vector<8x4xbf16>
    %c19_116 = arith.constant 19 : index
    %c0_117 = arith.constant 0 : index
    %c0_118 = arith.constant 0 : index
    %117 = vector.load %arg0[%c19_116, %c0_117, %c0_118] : memref<49x4x512xbf16, #tpu.memory_space<vmem>>, vector<1x4x512xbf16>
    %118 = vector.shape_cast %117 : vector<1x4x512xbf16> to vector<4x512xbf16>
    %cst_119 = arith.constant dense<0.000000e+00> : vector<8x512xf32>
    %119 = tpu.matmul %116, %118, %cst_119 {dimension_numbers = #tpu.dot_dimension_numbers<[1], [0], [0], [1], [0, 0, 1, 1], [], []>} : vector<8x4xbf16>, vector<4x512xbf16>, vector<8x512xf32> -> vector<8x512xf32>
    %120 = arith.addf %114, %119 : vector<8x512xf32>
    %c20 = arith.constant 20 : index
    %c0_120 = arith.constant 0 : index
    %c0_121 = arith.constant 0 : index
    %121 = vector.load %arg1[%c20, %c0_120, %c0_121] : memref<49x8x4xbf16, #tpu.memory_space<vmem>>, vector<1x8x4xbf16>
    %122 = vector.shape_cast %121 : vector<1x8x4xbf16> to vector<8x4xbf16>
    %c20_122 = arith.constant 20 : index
    %c0_123 = arith.constant 0 : index
    %c0_124 = arith.constant 0 : index
    %123 = vector.load %arg0[%c20_122, %c0_123, %c0_124] : memref<49x4x512xbf16, #tpu.memory_space<vmem>>, vector<1x4x512xbf16>
    %124 = vector.shape_cast %123 : vector<1x4x512xbf16> to vector<4x512xbf16>
    %cst_125 = arith.constant dense<0.000000e+00> : vector<8x512xf32>
    %125 = tpu.matmul %122, %124, %cst_125 {dimension_numbers = #tpu.dot_dimension_numbers<[1], [0], [0], [1], [0, 0, 1, 1], [], []>} : vector<8x4xbf16>, vector<4x512xbf16>, vector<8x512xf32> -> vector<8x512xf32>
    %126 = arith.addf %120, %125 : vector<8x512xf32>
    %c21 = arith.constant 21 : index
    %c0_126 = arith.constant 0 : index
    %c0_127 = arith.constant 0 : index
    %127 = vector.load %arg1[%c21, %c0_126, %c0_127] : memref<49x8x4xbf16, #tpu.memory_space<vmem>>, vector<1x8x4xbf16>
    %128 = vector.shape_cast %127 : vector<1x8x4xbf16> to vector<8x4xbf16>
    %c21_128 = arith.constant 21 : index
    %c0_129 = arith.constant 0 : index
    %c0_130 = arith.constant 0 : index
    %129 = vector.load %arg0[%c21_128, %c0_129, %c0_130] : memref<49x4x512xbf16, #tpu.memory_space<vmem>>, vector<1x4x512xbf16>
    %130 = vector.shape_cast %129 : vector<1x4x512xbf16> to vector<4x512xbf16>
    %cst_131 = arith.constant dense<0.000000e+00> : vector<8x512xf32>
    %131 = tpu.matmul %128, %130, %cst_131 {dimension_numbers = #tpu.dot_dimension_numbers<[1], [0], [0], [1], [0, 0, 1, 1], [], []>} : vector<8x4xbf16>, vector<4x512xbf16>, vector<8x512xf32> -> vector<8x512xf32>
    %132 = arith.addf %126, %131 : vector<8x512xf32>
    %c22 = arith.constant 22 : index
    %c0_132 = arith.constant 0 : index
    %c0_133 = arith.constant 0 : index
    %133 = vector.load %arg1[%c22, %c0_132, %c0_133] : memref<49x8x4xbf16, #tpu.memory_space<vmem>>, vector<1x8x4xbf16>
    %134 = vector.shape_cast %133 : vector<1x8x4xbf16> to vector<8x4xbf16>
    %c22_134 = arith.constant 22 : index
    %c0_135 = arith.constant 0 : index
    %c0_136 = arith.constant 0 : index
    %135 = vector.load %arg0[%c22_134, %c0_135, %c0_136] : memref<49x4x512xbf16, #tpu.memory_space<vmem>>, vector<1x4x512xbf16>
    %136 = vector.shape_cast %135 : vector<1x4x512xbf16> to vector<4x512xbf16>
    %cst_137 = arith.constant dense<0.000000e+00> : vector<8x512xf32>
    %137 = tpu.matmul %134, %136, %cst_137 {dimension_numbers = #tpu.dot_dimension_numbers<[1], [0], [0], [1], [0, 0, 1, 1], [], []>} : vector<8x4xbf16>, vector<4x512xbf16>, vector<8x512xf32> -> vector<8x512xf32>
    %138 = arith.addf %132, %137 : vector<8x512xf32>
    %c23 = arith.constant 23 : index
    %c0_138 = arith.constant 0 : index
    %c0_139 = arith.constant 0 : index
    %139 = vector.load %arg1[%c23, %c0_138, %c0_139] : memref<49x8x4xbf16, #tpu.memory_space<vmem>>, vector<1x8x4xbf16>
    %140 = vector.shape_cast %139 : vector<1x8x4xbf16> to vector<8x4xbf16>
    %c23_140 = arith.constant 23 : index
    %c0_141 = arith.constant 0 : index
    %c0_142 = arith.constant 0 : index
    %141 = vector.load %arg0[%c23_140, %c0_141, %c0_142] : memref<49x4x512xbf16, #tpu.memory_space<vmem>>, vector<1x4x512xbf16>
    %142 = vector.shape_cast %141 : vector<1x4x512xbf16> to vector<4x512xbf16>
    %cst_143 = arith.constant dense<0.000000e+00> : vector<8x512xf32>
    %143 = tpu.matmul %140, %142, %cst_143 {dimension_numbers = #tpu.dot_dimension_numbers<[1], [0], [0], [1], [0, 0, 1, 1], [], []>} : vector<8x4xbf16>, vector<4x512xbf16>, vector<8x512xf32> -> vector<8x512xf32>
    %144 = arith.addf %138, %143 : vector<8x512xf32>
    %c24 = arith.constant 24 : index
    %c0_144 = arith.constant 0 : index
    %c0_145 = arith.constant 0 : index
    %145 = vector.load %arg1[%c24, %c0_144, %c0_145] : memref<49x8x4xbf16, #tpu.memory_space<vmem>>, vector<1x8x4xbf16>
    %146 = vector.shape_cast %145 : vector<1x8x4xbf16> to vector<8x4xbf16>
    %c24_146 = arith.constant 24 : index
    %c0_147 = arith.constant 0 : index
    %c0_148 = arith.constant 0 : index
    %147 = vector.load %arg0[%c24_146, %c0_147, %c0_148] : memref<49x4x512xbf16, #tpu.memory_space<vmem>>, vector<1x4x512xbf16>
    %148 = vector.shape_cast %147 : vector<1x4x512xbf16> to vector<4x512xbf16>
    %cst_149 = arith.constant dense<0.000000e+00> : vector<8x512xf32>
    %149 = tpu.matmul %146, %148, %cst_149 {dimension_numbers = #tpu.dot_dimension_numbers<[1], [0], [0], [1], [0, 0, 1, 1], [], []>} : vector<8x4xbf16>, vector<4x512xbf16>, vector<8x512xf32> -> vector<8x512xf32>
    %150 = arith.addf %144, %149 : vector<8x512xf32>
    %c25 = arith.constant 25 : index
    %c0_150 = arith.constant 0 : index
    %c0_151 = arith.constant 0 : index
    %151 = vector.load %arg1[%c25, %c0_150, %c0_151] : memref<49x8x4xbf16, #tpu.memory_space<vmem>>, vector<1x8x4xbf16>
    %152 = vector.shape_cast %151 : vector<1x8x4xbf16> to vector<8x4xbf16>
    %c25_152 = arith.constant 25 : index
    %c0_153 = arith.constant 0 : index
    %c0_154 = arith.constant 0 : index
    %153 = vector.load %arg0[%c25_152, %c0_153, %c0_154] : memref<49x4x512xbf16, #tpu.memory_space<vmem>>, vector<1x4x512xbf16>
    %154 = vector.shape_cast %153 : vector<1x4x512xbf16> to vector<4x512xbf16>
    %cst_155 = arith.constant dense<0.000000e+00> : vector<8x512xf32>
    %155 = tpu.matmul %152, %154, %cst_155 {dimension_numbers = #tpu.dot_dimension_numbers<[1], [0], [0], [1], [0, 0, 1, 1], [], []>} : vector<8x4xbf16>, vector<4x512xbf16>, vector<8x512xf32> -> vector<8x512xf32>
    %156 = arith.addf %150, %155 : vector<8x512xf32>
    %c26 = arith.constant 26 : index
    %c0_156 = arith.constant 0 : index
    %c0_157 = arith.constant 0 : index
    %157 = vector.load %arg1[%c26, %c0_156, %c0_157] : memref<49x8x4xbf16, #tpu.memory_space<vmem>>, vector<1x8x4xbf16>
    %158 = vector.shape_cast %157 : vector<1x8x4xbf16> to vector<8x4xbf16>
    %c26_158 = arith.constant 26 : index
    %c0_159 = arith.constant 0 : index
    %c0_160 = arith.constant 0 : index
    %159 = vector.load %arg0[%c26_158, %c0_159, %c0_160] : memref<49x4x512xbf16, #tpu.memory_space<vmem>>, vector<1x4x512xbf16>
    %160 = vector.shape_cast %159 : vector<1x4x512xbf16> to vector<4x512xbf16>
    %cst_161 = arith.constant dense<0.000000e+00> : vector<8x512xf32>
    %161 = tpu.matmul %158, %160, %cst_161 {dimension_numbers = #tpu.dot_dimension_numbers<[1], [0], [0], [1], [0, 0, 1, 1], [], []>} : vector<8x4xbf16>, vector<4x512xbf16>, vector<8x512xf32> -> vector<8x512xf32>
    %162 = arith.addf %156, %161 : vector<8x512xf32>
    %c27 = arith.constant 27 : index
    %c0_162 = arith.constant 0 : index
    %c0_163 = arith.constant 0 : index
    %163 = vector.load %arg1[%c27, %c0_162, %c0_163] : memref<49x8x4xbf16, #tpu.memory_space<vmem>>, vector<1x8x4xbf16>
    %164 = vector.shape_cast %163 : vector<1x8x4xbf16> to vector<8x4xbf16>
    %c27_164 = arith.constant 27 : index
    %c0_165 = arith.constant 0 : index
    %c0_166 = arith.constant 0 : index
    %165 = vector.load %arg0[%c27_164, %c0_165, %c0_166] : memref<49x4x512xbf16, #tpu.memory_space<vmem>>, vector<1x4x512xbf16>
    %166 = vector.shape_cast %165 : vector<1x4x512xbf16> to vector<4x512xbf16>
    %cst_167 = arith.constant dense<0.000000e+00> : vector<8x512xf32>
    %167 = tpu.matmul %164, %166, %cst_167 {dimension_numbers = #tpu.dot_dimension_numbers<[1], [0], [0], [1], [0, 0, 1, 1], [], []>} : vector<8x4xbf16>, vector<4x512xbf16>, vector<8x512xf32> -> vector<8x512xf32>
    %168 = arith.addf %162, %167 : vector<8x512xf32>
    %c28 = arith.constant 28 : index
    %c0_168 = arith.constant 0 : index
    %c0_169 = arith.constant 0 : index
    %169 = vector.load %arg1[%c28, %c0_168, %c0_169] : memref<49x8x4xbf16, #tpu.memory_space<vmem>>, vector<1x8x4xbf16>
    %170 = vector.shape_cast %169 : vector<1x8x4xbf16> to vector<8x4xbf16>
    %c28_170 = arith.constant 28 : index
    %c0_171 = arith.constant 0 : index
    %c0_172 = arith.constant 0 : index
    %171 = vector.load %arg0[%c28_170, %c0_171, %c0_172] : memref<49x4x512xbf16, #tpu.memory_space<vmem>>, vector<1x4x512xbf16>
    %172 = vector.shape_cast %171 : vector<1x4x512xbf16> to vector<4x512xbf16>
    %cst_173 = arith.constant dense<0.000000e+00> : vector<8x512xf32>
    %173 = tpu.matmul %170, %172, %cst_173 {dimension_numbers = #tpu.dot_dimension_numbers<[1], [0], [0], [1], [0, 0, 1, 1], [], []>} : vector<8x4xbf16>, vector<4x512xbf16>, vector<8x512xf32> -> vector<8x512xf32>
    %174 = arith.addf %168, %173 : vector<8x512xf32>
    %c29 = arith.constant 29 : index
    %c0_174 = arith.constant 0 : index
    %c0_175 = arith.constant 0 : index
    %175 = vector.load %arg1[%c29, %c0_174, %c0_175] : memref<49x8x4xbf16, #tpu.memory_space<vmem>>, vector<1x8x4xbf16>
    %176 = vector.shape_cast %175 : vector<1x8x4xbf16> to vector<8x4xbf16>
    %c29_176 = arith.constant 29 : index
    %c0_177 = arith.constant 0 : index
    %c0_178 = arith.constant 0 : index
    %177 = vector.load %arg0[%c29_176, %c0_177, %c0_178] : memref<49x4x512xbf16, #tpu.memory_space<vmem>>, vector<1x4x512xbf16>
    %178 = vector.shape_cast %177 : vector<1x4x512xbf16> to vector<4x512xbf16>
    %cst_179 = arith.constant dense<0.000000e+00> : vector<8x512xf32>
    %179 = tpu.matmul %176, %178, %cst_179 {dimension_numbers = #tpu.dot_dimension_numbers<[1], [0], [0], [1], [0, 0, 1, 1], [], []>} : vector<8x4xbf16>, vector<4x512xbf16>, vector<8x512xf32> -> vector<8x512xf32>
    %180 = arith.addf %174, %179 : vector<8x512xf32>
    %c30 = arith.constant 30 : index
    %c0_180 = arith.constant 0 : index
    %c0_181 = arith.constant 0 : index
    %181 = vector.load %arg1[%c30, %c0_180, %c0_181] : memref<49x8x4xbf16, #tpu.memory_space<vmem>>, vector<1x8x4xbf16>
    %182 = vector.shape_cast %181 : vector<1x8x4xbf16> to vector<8x4xbf16>
    %c30_182 = arith.constant 30 : index
    %c0_183 = arith.constant 0 : index
    %c0_184 = arith.constant 0 : index
    %183 = vector.load %arg0[%c30_182, %c0_183, %c0_184] : memref<49x4x512xbf16, #tpu.memory_space<vmem>>, vector<1x4x512xbf16>
    %184 = vector.shape_cast %183 : vector<1x4x512xbf16> to vector<4x512xbf16>
    %cst_185 = arith.constant dense<0.000000e+00> : vector<8x512xf32>
    %185 = tpu.matmul %182, %184, %cst_185 {dimension_numbers = #tpu.dot_dimension_numbers<[1], [0], [0], [1], [0, 0, 1, 1], [], []>} : vector<8x4xbf16>, vector<4x512xbf16>, vector<8x512xf32> -> vector<8x512xf32>
    %186 = arith.addf %180, %185 : vector<8x512xf32>
    %c31 = arith.constant 31 : index
    %c0_186 = arith.constant 0 : index
    %c0_187 = arith.constant 0 : index
    %187 = vector.load %arg1[%c31, %c0_186, %c0_187] : memref<49x8x4xbf16, #tpu.memory_space<vmem>>, vector<1x8x4xbf16>
    %188 = vector.shape_cast %187 : vector<1x8x4xbf16> to vector<8x4xbf16>
    %c31_188 = arith.constant 31 : index
    %c0_189 = arith.constant 0 : index
    %c0_190 = arith.constant 0 : index
    %189 = vector.load %arg0[%c31_188, %c0_189, %c0_190] : memref<49x4x512xbf16, #tpu.memory_space<vmem>>, vector<1x4x512xbf16>
    %190 = vector.shape_cast %189 : vector<1x4x512xbf16> to vector<4x512xbf16>
    %cst_191 = arith.constant dense<0.000000e+00> : vector<8x512xf32>
    %191 = tpu.matmul %188, %190, %cst_191 {dimension_numbers = #tpu.dot_dimension_numbers<[1], [0], [0], [1], [0, 0, 1, 1], [], []>} : vector<8x4xbf16>, vector<4x512xbf16>, vector<8x512xf32> -> vector<8x512xf32>
    %192 = arith.addf %186, %191 : vector<8x512xf32>
    %c32 = arith.constant 32 : index
    %c0_192 = arith.constant 0 : index
    %c0_193 = arith.constant 0 : index
    %193 = vector.load %arg1[%c32, %c0_192, %c0_193] : memref<49x8x4xbf16, #tpu.memory_space<vmem>>, vector<1x8x4xbf16>
    %194 = vector.shape_cast %193 : vector<1x8x4xbf16> to vector<8x4xbf16>
    %c32_194 = arith.constant 32 : index
    %c0_195 = arith.constant 0 : index
    %c0_196 = arith.constant 0 : index
    %195 = vector.load %arg0[%c32_194, %c0_195, %c0_196] : memref<49x4x512xbf16, #tpu.memory_space<vmem>>, vector<1x4x512xbf16>
    %196 = vector.shape_cast %195 : vector<1x4x512xbf16> to vector<4x512xbf16>
    %cst_197 = arith.constant dense<0.000000e+00> : vector<8x512xf32>
    %197 = tpu.matmul %194, %196, %cst_197 {dimension_numbers = #tpu.dot_dimension_numbers<[1], [0], [0], [1], [0, 0, 1, 1], [], []>} : vector<8x4xbf16>, vector<4x512xbf16>, vector<8x512xf32> -> vector<8x512xf32>
    %198 = arith.addf %192, %197 : vector<8x512xf32>
    %c33 = arith.constant 33 : index
    %c0_198 = arith.constant 0 : index
    %c0_199 = arith.constant 0 : index
    %199 = vector.load %arg1[%c33, %c0_198, %c0_199] : memref<49x8x4xbf16, #tpu.memory_space<vmem>>, vector<1x8x4xbf16>
    %200 = vector.shape_cast %199 : vector<1x8x4xbf16> to vector<8x4xbf16>
    %c33_200 = arith.constant 33 : index
    %c0_201 = arith.constant 0 : index
    %c0_202 = arith.constant 0 : index
    %201 = vector.load %arg0[%c33_200, %c0_201, %c0_202] : memref<49x4x512xbf16, #tpu.memory_space<vmem>>, vector<1x4x512xbf16>
    %202 = vector.shape_cast %201 : vector<1x4x512xbf16> to vector<4x512xbf16>
    %cst_203 = arith.constant dense<0.000000e+00> : vector<8x512xf32>
    %203 = tpu.matmul %200, %202, %cst_203 {dimension_numbers = #tpu.dot_dimension_numbers<[1], [0], [0], [1], [0, 0, 1, 1], [], []>} : vector<8x4xbf16>, vector<4x512xbf16>, vector<8x512xf32> -> vector<8x512xf32>
    %204 = arith.addf %198, %203 : vector<8x512xf32>
    %c34 = arith.constant 34 : index
    %c0_204 = arith.constant 0 : index
    %c0_205 = arith.constant 0 : index
    %205 = vector.load %arg1[%c34, %c0_204, %c0_205] : memref<49x8x4xbf16, #tpu.memory_space<vmem>>, vector<1x8x4xbf16>
    %206 = vector.shape_cast %205 : vector<1x8x4xbf16> to vector<8x4xbf16>
    %c34_206 = arith.constant 34 : index
    %c0_207 = arith.constant 0 : index
    %c0_208 = arith.constant 0 : index
    %207 = vector.load %arg0[%c34_206, %c0_207, %c0_208] : memref<49x4x512xbf16, #tpu.memory_space<vmem>>, vector<1x4x512xbf16>
    %208 = vector.shape_cast %207 : vector<1x4x512xbf16> to vector<4x512xbf16>
    %cst_209 = arith.constant dense<0.000000e+00> : vector<8x512xf32>
    %209 = tpu.matmul %206, %208, %cst_209 {dimension_numbers = #tpu.dot_dimension_numbers<[1], [0], [0], [1], [0, 0, 1, 1], [], []>} : vector<8x4xbf16>, vector<4x512xbf16>, vector<8x512xf32> -> vector<8x512xf32>
    %210 = arith.addf %204, %209 : vector<8x512xf32>
    %c35 = arith.constant 35 : index
    %c0_210 = arith.constant 0 : index
    %c0_211 = arith.constant 0 : index
    %211 = vector.load %arg1[%c35, %c0_210, %c0_211] : memref<49x8x4xbf16, #tpu.memory_space<vmem>>, vector<1x8x4xbf16>
    %212 = vector.shape_cast %211 : vector<1x8x4xbf16> to vector<8x4xbf16>
    %c35_212 = arith.constant 35 : index
    %c0_213 = arith.constant 0 : index
    %c0_214 = arith.constant 0 : index
    %213 = vector.load %arg0[%c35_212, %c0_213, %c0_214] : memref<49x4x512xbf16, #tpu.memory_space<vmem>>, vector<1x4x512xbf16>
    %214 = vector.shape_cast %213 : vector<1x4x512xbf16> to vector<4x512xbf16>
    %cst_215 = arith.constant dense<0.000000e+00> : vector<8x512xf32>
    %215 = tpu.matmul %212, %214, %cst_215 {dimension_numbers = #tpu.dot_dimension_numbers<[1], [0], [0], [1], [0, 0, 1, 1], [], []>} : vector<8x4xbf16>, vector<4x512xbf16>, vector<8x512xf32> -> vector<8x512xf32>
    %216 = arith.addf %210, %215 : vector<8x512xf32>
    %c36 = arith.constant 36 : index
    %c0_216 = arith.constant 0 : index
    %c0_217 = arith.constant 0 : index
    %217 = vector.load %arg1[%c36, %c0_216, %c0_217] : memref<49x8x4xbf16, #tpu.memory_space<vmem>>, vector<1x8x4xbf16>
    %218 = vector.shape_cast %217 : vector<1x8x4xbf16> to vector<8x4xbf16>
    %c36_218 = arith.constant 36 : index
    %c0_219 = arith.constant 0 : index
    %c0_220 = arith.constant 0 : index
    %219 = vector.load %arg0[%c36_218, %c0_219, %c0_220] : memref<49x4x512xbf16, #tpu.memory_space<vmem>>, vector<1x4x512xbf16>
    %220 = vector.shape_cast %219 : vector<1x4x512xbf16> to vector<4x512xbf16>
    %cst_221 = arith.constant dense<0.000000e+00> : vector<8x512xf32>
    %221 = tpu.matmul %218, %220, %cst_221 {dimension_numbers = #tpu.dot_dimension_numbers<[1], [0], [0], [1], [0, 0, 1, 1], [], []>} : vector<8x4xbf16>, vector<4x512xbf16>, vector<8x512xf32> -> vector<8x512xf32>
    %222 = arith.addf %216, %221 : vector<8x512xf32>
    %c37 = arith.constant 37 : index
    %c0_222 = arith.constant 0 : index
    %c0_223 = arith.constant 0 : index
    %223 = vector.load %arg1[%c37, %c0_222, %c0_223] : memref<49x8x4xbf16, #tpu.memory_space<vmem>>, vector<1x8x4xbf16>
    %224 = vector.shape_cast %223 : vector<1x8x4xbf16> to vector<8x4xbf16>
    %c37_224 = arith.constant 37 : index
    %c0_225 = arith.constant 0 : index
    %c0_226 = arith.constant 0 : index
    %225 = vector.load %arg0[%c37_224, %c0_225, %c0_226] : memref<49x4x512xbf16, #tpu.memory_space<vmem>>, vector<1x4x512xbf16>
    %226 = vector.shape_cast %225 : vector<1x4x512xbf16> to vector<4x512xbf16>
    %cst_227 = arith.constant dense<0.000000e+00> : vector<8x512xf32>
    %227 = tpu.matmul %224, %226, %cst_227 {dimension_numbers = #tpu.dot_dimension_numbers<[1], [0], [0], [1], [0, 0, 1, 1], [], []>} : vector<8x4xbf16>, vector<4x512xbf16>, vector<8x512xf32> -> vector<8x512xf32>
    %228 = arith.addf %222, %227 : vector<8x512xf32>
    %c38 = arith.constant 38 : index
    %c0_228 = arith.constant 0 : index
    %c0_229 = arith.constant 0 : index
    %229 = vector.load %arg1[%c38, %c0_228, %c0_229] : memref<49x8x4xbf16, #tpu.memory_space<vmem>>, vector<1x8x4xbf16>
    %230 = vector.shape_cast %229 : vector<1x8x4xbf16> to vector<8x4xbf16>
    %c38_230 = arith.constant 38 : index
    %c0_231 = arith.constant 0 : index
    %c0_232 = arith.constant 0 : index
    %231 = vector.load %arg0[%c38_230, %c0_231, %c0_232] : memref<49x4x512xbf16, #tpu.memory_space<vmem>>, vector<1x4x512xbf16>
    %232 = vector.shape_cast %231 : vector<1x4x512xbf16> to vector<4x512xbf16>
    %cst_233 = arith.constant dense<0.000000e+00> : vector<8x512xf32>
    %233 = tpu.matmul %230, %232, %cst_233 {dimension_numbers = #tpu.dot_dimension_numbers<[1], [0], [0], [1], [0, 0, 1, 1], [], []>} : vector<8x4xbf16>, vector<4x512xbf16>, vector<8x512xf32> -> vector<8x512xf32>
    %234 = arith.addf %228, %233 : vector<8x512xf32>
    %c39 = arith.constant 39 : index
    %c0_234 = arith.constant 0 : index
    %c0_235 = arith.constant 0 : index
    %235 = vector.load %arg1[%c39, %c0_234, %c0_235] : memref<49x8x4xbf16, #tpu.memory_space<vmem>>, vector<1x8x4xbf16>
    %236 = vector.shape_cast %235 : vector<1x8x4xbf16> to vector<8x4xbf16>
    %c39_236 = arith.constant 39 : index
    %c0_237 = arith.constant 0 : index
    %c0_238 = arith.constant 0 : index
    %237 = vector.load %arg0[%c39_236, %c0_237, %c0_238] : memref<49x4x512xbf16, #tpu.memory_space<vmem>>, vector<1x4x512xbf16>
    %238 = vector.shape_cast %237 : vector<1x4x512xbf16> to vector<4x512xbf16>
    %cst_239 = arith.constant dense<0.000000e+00> : vector<8x512xf32>
    %239 = tpu.matmul %236, %238, %cst_239 {dimension_numbers = #tpu.dot_dimension_numbers<[1], [0], [0], [1], [0, 0, 1, 1], [], []>} : vector<8x4xbf16>, vector<4x512xbf16>, vector<8x512xf32> -> vector<8x512xf32>
    %240 = arith.addf %234, %239 : vector<8x512xf32>
    %c40 = arith.constant 40 : index
    %c0_240 = arith.constant 0 : index
    %c0_241 = arith.constant 0 : index
    %241 = vector.load %arg1[%c40, %c0_240, %c0_241] : memref<49x8x4xbf16, #tpu.memory_space<vmem>>, vector<1x8x4xbf16>
    %242 = vector.shape_cast %241 : vector<1x8x4xbf16> to vector<8x4xbf16>
    %c40_242 = arith.constant 40 : index
    %c0_243 = arith.constant 0 : index
    %c0_244 = arith.constant 0 : index
    %243 = vector.load %arg0[%c40_242, %c0_243, %c0_244] : memref<49x4x512xbf16, #tpu.memory_space<vmem>>, vector<1x4x512xbf16>
    %244 = vector.shape_cast %243 : vector<1x4x512xbf16> to vector<4x512xbf16>
    %cst_245 = arith.constant dense<0.000000e+00> : vector<8x512xf32>
    %245 = tpu.matmul %242, %244, %cst_245 {dimension_numbers = #tpu.dot_dimension_numbers<[1], [0], [0], [1], [0, 0, 1, 1], [], []>} : vector<8x4xbf16>, vector<4x512xbf16>, vector<8x512xf32> -> vector<8x512xf32>
    %246 = arith.addf %240, %245 : vector<8x512xf32>
    %c41 = arith.constant 41 : index
    %c0_246 = arith.constant 0 : index
    %c0_247 = arith.constant 0 : index
    %247 = vector.load %arg1[%c41, %c0_246, %c0_247] : memref<49x8x4xbf16, #tpu.memory_space<vmem>>, vector<1x8x4xbf16>
    %248 = vector.shape_cast %247 : vector<1x8x4xbf16> to vector<8x4xbf16>
    %c41_248 = arith.constant 41 : index
    %c0_249 = arith.constant 0 : index
    %c0_250 = arith.constant 0 : index
    %249 = vector.load %arg0[%c41_248, %c0_249, %c0_250] : memref<49x4x512xbf16, #tpu.memory_space<vmem>>, vector<1x4x512xbf16>
    %250 = vector.shape_cast %249 : vector<1x4x512xbf16> to vector<4x512xbf16>
    %cst_251 = arith.constant dense<0.000000e+00> : vector<8x512xf32>
    %251 = tpu.matmul %248, %250, %cst_251 {dimension_numbers = #tpu.dot_dimension_numbers<[1], [0], [0], [1], [0, 0, 1, 1], [], []>} : vector<8x4xbf16>, vector<4x512xbf16>, vector<8x512xf32> -> vector<8x512xf32>
    %252 = arith.addf %246, %251 : vector<8x512xf32>
    %c42 = arith.constant 42 : index
    %c0_252 = arith.constant 0 : index
    %c0_253 = arith.constant 0 : index
    %253 = vector.load %arg1[%c42, %c0_252, %c0_253] : memref<49x8x4xbf16, #tpu.memory_space<vmem>>, vector<1x8x4xbf16>
    %254 = vector.shape_cast %253 : vector<1x8x4xbf16> to vector<8x4xbf16>
    %c42_254 = arith.constant 42 : index
    %c0_255 = arith.constant 0 : index
    %c0_256 = arith.constant 0 : index
    %255 = vector.load %arg0[%c42_254, %c0_255, %c0_256] : memref<49x4x512xbf16, #tpu.memory_space<vmem>>, vector<1x4x512xbf16>
    %256 = vector.shape_cast %255 : vector<1x4x512xbf16> to vector<4x512xbf16>
    %cst_257 = arith.constant dense<0.000000e+00> : vector<8x512xf32>
    %257 = tpu.matmul %254, %256, %cst_257 {dimension_numbers = #tpu.dot_dimension_numbers<[1], [0], [0], [1], [0, 0, 1, 1], [], []>} : vector<8x4xbf16>, vector<4x512xbf16>, vector<8x512xf32> -> vector<8x512xf32>
    %258 = arith.addf %252, %257 : vector<8x512xf32>
    %c43 = arith.constant 43 : index
    %c0_258 = arith.constant 0 : index
    %c0_259 = arith.constant 0 : index
    %259 = vector.load %arg1[%c43, %c0_258, %c0_259] : memref<49x8x4xbf16, #tpu.memory_space<vmem>>, vector<1x8x4xbf16>
    %260 = vector.shape_cast %259 : vector<1x8x4xbf16> to vector<8x4xbf16>
    %c43_260 = arith.constant 43 : index
    %c0_261 = arith.constant 0 : index
    %c0_262 = arith.constant 0 : index
    %261 = vector.load %arg0[%c43_260, %c0_261, %c0_262] : memref<49x4x512xbf16, #tpu.memory_space<vmem>>, vector<1x4x512xbf16>
    %262 = vector.shape_cast %261 : vector<1x4x512xbf16> to vector<4x512xbf16>
    %cst_263 = arith.constant dense<0.000000e+00> : vector<8x512xf32>
    %263 = tpu.matmul %260, %262, %cst_263 {dimension_numbers = #tpu.dot_dimension_numbers<[1], [0], [0], [1], [0, 0, 1, 1], [], []>} : vector<8x4xbf16>, vector<4x512xbf16>, vector<8x512xf32> -> vector<8x512xf32>
    %264 = arith.addf %258, %263 : vector<8x512xf32>
    %c44 = arith.constant 44 : index
    %c0_264 = arith.constant 0 : index
    %c0_265 = arith.constant 0 : index
    %265 = vector.load %arg1[%c44, %c0_264, %c0_265] : memref<49x8x4xbf16, #tpu.memory_space<vmem>>, vector<1x8x4xbf16>
    %266 = vector.shape_cast %265 : vector<1x8x4xbf16> to vector<8x4xbf16>
    %c44_266 = arith.constant 44 : index
    %c0_267 = arith.constant 0 : index
    %c0_268 = arith.constant 0 : index
    %267 = vector.load %arg0[%c44_266, %c0_267, %c0_268] : memref<49x4x512xbf16, #tpu.memory_space<vmem>>, vector<1x4x512xbf16>
    %268 = vector.shape_cast %267 : vector<1x4x512xbf16> to vector<4x512xbf16>
    %cst_269 = arith.constant dense<0.000000e+00> : vector<8x512xf32>
    %269 = tpu.matmul %266, %268, %cst_269 {dimension_numbers = #tpu.dot_dimension_numbers<[1], [0], [0], [1], [0, 0, 1, 1], [], []>} : vector<8x4xbf16>, vector<4x512xbf16>, vector<8x512xf32> -> vector<8x512xf32>
    %270 = arith.addf %264, %269 : vector<8x512xf32>
    %c45 = arith.constant 45 : index
    %c0_270 = arith.constant 0 : index
    %c0_271 = arith.constant 0 : index
    %271 = vector.load %arg1[%c45, %c0_270, %c0_271] : memref<49x8x4xbf16, #tpu.memory_space<vmem>>, vector<1x8x4xbf16>
    %272 = vector.shape_cast %271 : vector<1x8x4xbf16> to vector<8x4xbf16>
    %c45_272 = arith.constant 45 : index
    %c0_273 = arith.constant 0 : index
    %c0_274 = arith.constant 0 : index
    %273 = vector.load %arg0[%c45_272, %c0_273, %c0_274] : memref<49x4x512xbf16, #tpu.memory_space<vmem>>, vector<1x4x512xbf16>
    %274 = vector.shape_cast %273 : vector<1x4x512xbf16> to vector<4x512xbf16>
    %cst_275 = arith.constant dense<0.000000e+00> : vector<8x512xf32>
    %275 = tpu.matmul %272, %274, %cst_275 {dimension_numbers = #tpu.dot_dimension_numbers<[1], [0], [0], [1], [0, 0, 1, 1], [], []>} : vector<8x4xbf16>, vector<4x512xbf16>, vector<8x512xf32> -> vector<8x512xf32>
    %276 = arith.addf %270, %275 : vector<8x512xf32>
    %c46 = arith.constant 46 : index
    %c0_276 = arith.constant 0 : index
    %c0_277 = arith.constant 0 : index
    %277 = vector.load %arg1[%c46, %c0_276, %c0_277] : memref<49x8x4xbf16, #tpu.memory_space<vmem>>, vector<1x8x4xbf16>
    %278 = vector.shape_cast %277 : vector<1x8x4xbf16> to vector<8x4xbf16>
    %c46_278 = arith.constant 46 : index
    %c0_279 = arith.constant 0 : index
    %c0_280 = arith.constant 0 : index
    %279 = vector.load %arg0[%c46_278, %c0_279, %c0_280] : memref<49x4x512xbf16, #tpu.memory_space<vmem>>, vector<1x4x512xbf16>
    %280 = vector.shape_cast %279 : vector<1x4x512xbf16> to vector<4x512xbf16>
    %cst_281 = arith.constant dense<0.000000e+00> : vector<8x512xf32>
    %281 = tpu.matmul %278, %280, %cst_281 {dimension_numbers = #tpu.dot_dimension_numbers<[1], [0], [0], [1], [0, 0, 1, 1], [], []>} : vector<8x4xbf16>, vector<4x512xbf16>, vector<8x512xf32> -> vector<8x512xf32>
    %282 = arith.addf %276, %281 : vector<8x512xf32>
    %c47 = arith.constant 47 : index
    %c0_282 = arith.constant 0 : index
    %c0_283 = arith.constant 0 : index
    %283 = vector.load %arg1[%c47, %c0_282, %c0_283] : memref<49x8x4xbf16, #tpu.memory_space<vmem>>, vector<1x8x4xbf16>
    %284 = vector.shape_cast %283 : vector<1x8x4xbf16> to vector<8x4xbf16>
    %c47_284 = arith.constant 47 : index
    %c0_285 = arith.constant 0 : index
    %c0_286 = arith.constant 0 : index
    %285 = vector.load %arg0[%c47_284, %c0_285, %c0_286] : memref<49x4x512xbf16, #tpu.memory_space<vmem>>, vector<1x4x512xbf16>
    %286 = vector.shape_cast %285 : vector<1x4x512xbf16> to vector<4x512xbf16>
    %cst_287 = arith.constant dense<0.000000e+00> : vector<8x512xf32>
    %287 = tpu.matmul %284, %286, %cst_287 {dimension_numbers = #tpu.dot_dimension_numbers<[1], [0], [0], [1], [0, 0, 1, 1], [], []>} : vector<8x4xbf16>, vector<4x512xbf16>, vector<8x512xf32> -> vector<8x512xf32>
    %288 = arith.addf %282, %287 : vector<8x512xf32>
    %c48 = arith.constant 48 : index
    %c0_288 = arith.constant 0 : index
    %c0_289 = arith.constant 0 : index
    %289 = vector.load %arg1[%c48, %c0_288, %c0_289] : memref<49x8x4xbf16, #tpu.memory_space<vmem>>, vector<1x8x4xbf16>
    %290 = vector.shape_cast %289 : vector<1x8x4xbf16> to vector<8x4xbf16>
    %c48_290 = arith.constant 48 : index
    %c0_291 = arith.constant 0 : index
    %c0_292 = arith.constant 0 : index
    %291 = vector.load %arg0[%c48_290, %c0_291, %c0_292] : memref<49x4x512xbf16, #tpu.memory_space<vmem>>, vector<1x4x512xbf16>
    %292 = vector.shape_cast %291 : vector<1x4x512xbf16> to vector<4x512xbf16>
    %cst_293 = arith.constant dense<0.000000e+00> : vector<8x512xf32>
    %293 = tpu.matmul %290, %292, %cst_293 {dimension_numbers = #tpu.dot_dimension_numbers<[1], [0], [0], [1], [0, 0, 1, 1], [], []>} : vector<8x4xbf16>, vector<4x512xbf16>, vector<8x512xf32> -> vector<8x512xf32>
    %294 = arith.addf %288, %293 : vector<8x512xf32>
    %cst_294 = arith.constant dense<0.000000e+00> : vector<8xf32>
    %295 = vector.multi_reduction <add>, %294, %cst_294 [1] : vector<8x512xf32> to vector<8xf32>
    %296 = vector.shape_cast %295 : vector<8xf32> to vector<8x1xf32>
    %cst_295 = arith.constant 5.120000e+02 : f32
    %297 = vector.broadcast %cst_295 : f32 to vector<8x1xf32>
    %298 = arith.divf %296, %297 : vector<8x1xf32>
    %299 = vector.broadcast %298 : vector<8x1xf32> to vector<8x512xf32>
    %300 = arith.subf %294, %299 : vector<8x512xf32>
    %301 = arith.mulf %300, %300 : vector<8x512xf32>
    %cst_296 = arith.constant dense<0.000000e+00> : vector<8xf32>
    %302 = vector.multi_reduction <add>, %301, %cst_296 [1] : vector<8x512xf32> to vector<8xf32>
    %303 = vector.shape_cast %302 : vector<8xf32> to vector<8x1xf32>
    %cst_297 = arith.constant 5.120000e+02 : f32
    %304 = vector.broadcast %cst_297 : f32 to vector<8x1xf32>
    %305 = arith.divf %303, %304 : vector<8x1xf32>
    %c0_298 = arith.constant 0 : index
    %c0_299 = arith.constant 0 : index
    %306 = vector.load %arg2[%c0_298, %c0_299] : memref<8x1xf32, #tpu.memory_space<vmem>>, vector<8x1xf32>
    %cst_300 = arith.constant 9.99999974E-6 : f32
    %307 = vector.broadcast %cst_300 : f32 to vector<8x1xf32>
    %308 = arith.addf %305, %307 : vector<8x1xf32>
    %309 = math.rsqrt %308 : vector<8x1xf32>
    %310 = arith.mulf %306, %309 : vector<8x1xf32>
    %311 = vector.broadcast %310 : vector<8x1xf32> to vector<8x512xf32>
    %312 = arith.mulf %300, %311 : vector<8x512xf32>
    %c0_301 = arith.constant 0 : index
    %c0_302 = arith.constant 0 : index
    %313 = vector.load %arg3[%c0_301, %c0_302] : memref<8x1xf32, #tpu.memory_space<vmem>>, vector<8x1xf32>
    %314 = vector.broadcast %313 : vector<8x1xf32> to vector<8x512xf32>
    %315 = arith.addf %312, %314 : vector<8x512xf32>
    %cst_303 = arith.constant 0.000000e+00 : f32
    %316 = vector.broadcast %cst_303 : f32 to vector<8x512xf32>
    %317 = arith.maximumf %315, %316 : vector<8x512xf32>
    %c0_304 = arith.constant 0 : index
    %c0_305 = arith.constant 0 : index
    %318 = vector.load %arg4[%c0_304, %c0_305] : memref<8x512xf32, #tpu.memory_space<vmem>>, vector<8x512xf32>
    tpu.vector_store %arg4[%c0_304, %c0_305], %317 {strides = array<i32>} : memref<8x512xf32, #tpu.memory_space<vmem>>, vector<8x512xf32>,
    return
  }
}

module attributes {stable_mosaic.version = 11 : i64} {
  func.func @_fused_conv_kernel(%arg0: memref<9x8x128xbf16, #tpu.memory_space<vmem>>, %arg1: memref<9x16x8xbf16, #tpu.memory_space<vmem>>, %arg2: memref<16x1xf32, #tpu.memory_space<vmem>>, %arg3: memref<16x1xf32, #tpu.memory_space<vmem>>, %arg4: memref<16x128xf32, #tpu.memory_space<vmem>>) attributes {dimension_semantics = [], scalar_prefetch = 0 : i64, scratch_operands = 0 : i64, tpu.core_type = #tpu.core_type<tc>} {
    %cst = arith.constant 0.000000e+00 : f32
    %0 = vector.broadcast %cst : f32 to vector<16x128xf32>
    %c0 = arith.constant 0 : index
    %c0_0 = arith.constant 0 : index
    %c0_1 = arith.constant 0 : index
    %1 = vector.load %arg1[%c0, %c0_0, %c0_1] : memref<9x16x8xbf16, #tpu.memory_space<vmem>>, vector<1x16x8xbf16>
    %2 = vector.shape_cast %1 : vector<1x16x8xbf16> to vector<16x8xbf16>
    %c0_2 = arith.constant 0 : index
    %c0_3 = arith.constant 0 : index
    %c0_4 = arith.constant 0 : index
    %3 = vector.load %arg0[%c0_2, %c0_3, %c0_4] : memref<9x8x128xbf16, #tpu.memory_space<vmem>>, vector<1x8x128xbf16>
    %4 = vector.shape_cast %3 : vector<1x8x128xbf16> to vector<8x128xbf16>
    %cst_5 = arith.constant dense<0.000000e+00> : vector<16x128xf32>
    %5 = tpu.matmul %2, %4, %cst_5 {dimension_numbers = #tpu.dot_dimension_numbers<[1], [0], [0], [1], [0, 0, 1, 1], [], []>} : vector<16x8xbf16>, vector<8x128xbf16>, vector<16x128xf32> -> vector<16x128xf32>
    %6 = arith.addf %0, %5 : vector<16x128xf32>
    %c1 = arith.constant 1 : index
    %c0_6 = arith.constant 0 : index
    %c0_7 = arith.constant 0 : index
    %7 = vector.load %arg1[%c1, %c0_6, %c0_7] : memref<9x16x8xbf16, #tpu.memory_space<vmem>>, vector<1x16x8xbf16>
    %8 = vector.shape_cast %7 : vector<1x16x8xbf16> to vector<16x8xbf16>
    %c1_8 = arith.constant 1 : index
    %c0_9 = arith.constant 0 : index
    %c0_10 = arith.constant 0 : index
    %9 = vector.load %arg0[%c1_8, %c0_9, %c0_10] : memref<9x8x128xbf16, #tpu.memory_space<vmem>>, vector<1x8x128xbf16>
    %10 = vector.shape_cast %9 : vector<1x8x128xbf16> to vector<8x128xbf16>
    %cst_11 = arith.constant dense<0.000000e+00> : vector<16x128xf32>
    %11 = tpu.matmul %8, %10, %cst_11 {dimension_numbers = #tpu.dot_dimension_numbers<[1], [0], [0], [1], [0, 0, 1, 1], [], []>} : vector<16x8xbf16>, vector<8x128xbf16>, vector<16x128xf32> -> vector<16x128xf32>
    %12 = arith.addf %6, %11 : vector<16x128xf32>
    %c2 = arith.constant 2 : index
    %c0_12 = arith.constant 0 : index
    %c0_13 = arith.constant 0 : index
    %13 = vector.load %arg1[%c2, %c0_12, %c0_13] : memref<9x16x8xbf16, #tpu.memory_space<vmem>>, vector<1x16x8xbf16>
    %14 = vector.shape_cast %13 : vector<1x16x8xbf16> to vector<16x8xbf16>
    %c2_14 = arith.constant 2 : index
    %c0_15 = arith.constant 0 : index
    %c0_16 = arith.constant 0 : index
    %15 = vector.load %arg0[%c2_14, %c0_15, %c0_16] : memref<9x8x128xbf16, #tpu.memory_space<vmem>>, vector<1x8x128xbf16>
    %16 = vector.shape_cast %15 : vector<1x8x128xbf16> to vector<8x128xbf16>
    %cst_17 = arith.constant dense<0.000000e+00> : vector<16x128xf32>
    %17 = tpu.matmul %14, %16, %cst_17 {dimension_numbers = #tpu.dot_dimension_numbers<[1], [0], [0], [1], [0, 0, 1, 1], [], []>} : vector<16x8xbf16>, vector<8x128xbf16>, vector<16x128xf32> -> vector<16x128xf32>
    %18 = arith.addf %12, %17 : vector<16x128xf32>
    %c3 = arith.constant 3 : index
    %c0_18 = arith.constant 0 : index
    %c0_19 = arith.constant 0 : index
    %19 = vector.load %arg1[%c3, %c0_18, %c0_19] : memref<9x16x8xbf16, #tpu.memory_space<vmem>>, vector<1x16x8xbf16>
    %20 = vector.shape_cast %19 : vector<1x16x8xbf16> to vector<16x8xbf16>
    %c3_20 = arith.constant 3 : index
    %c0_21 = arith.constant 0 : index
    %c0_22 = arith.constant 0 : index
    %21 = vector.load %arg0[%c3_20, %c0_21, %c0_22] : memref<9x8x128xbf16, #tpu.memory_space<vmem>>, vector<1x8x128xbf16>
    %22 = vector.shape_cast %21 : vector<1x8x128xbf16> to vector<8x128xbf16>
    %cst_23 = arith.constant dense<0.000000e+00> : vector<16x128xf32>
    %23 = tpu.matmul %20, %22, %cst_23 {dimension_numbers = #tpu.dot_dimension_numbers<[1], [0], [0], [1], [0, 0, 1, 1], [], []>} : vector<16x8xbf16>, vector<8x128xbf16>, vector<16x128xf32> -> vector<16x128xf32>
    %24 = arith.addf %18, %23 : vector<16x128xf32>
    %c4 = arith.constant 4 : index
    %c0_24 = arith.constant 0 : index
    %c0_25 = arith.constant 0 : index
    %25 = vector.load %arg1[%c4, %c0_24, %c0_25] : memref<9x16x8xbf16, #tpu.memory_space<vmem>>, vector<1x16x8xbf16>
    %26 = vector.shape_cast %25 : vector<1x16x8xbf16> to vector<16x8xbf16>
    %c4_26 = arith.constant 4 : index
    %c0_27 = arith.constant 0 : index
    %c0_28 = arith.constant 0 : index
    %27 = vector.load %arg0[%c4_26, %c0_27, %c0_28] : memref<9x8x128xbf16, #tpu.memory_space<vmem>>, vector<1x8x128xbf16>
    %28 = vector.shape_cast %27 : vector<1x8x128xbf16> to vector<8x128xbf16>
    %cst_29 = arith.constant dense<0.000000e+00> : vector<16x128xf32>
    %29 = tpu.matmul %26, %28, %cst_29 {dimension_numbers = #tpu.dot_dimension_numbers<[1], [0], [0], [1], [0, 0, 1, 1], [], []>} : vector<16x8xbf16>, vector<8x128xbf16>, vector<16x128xf32> -> vector<16x128xf32>
    %30 = arith.addf %24, %29 : vector<16x128xf32>
    %c5 = arith.constant 5 : index
    %c0_30 = arith.constant 0 : index
    %c0_31 = arith.constant 0 : index
    %31 = vector.load %arg1[%c5, %c0_30, %c0_31] : memref<9x16x8xbf16, #tpu.memory_space<vmem>>, vector<1x16x8xbf16>
    %32 = vector.shape_cast %31 : vector<1x16x8xbf16> to vector<16x8xbf16>
    %c5_32 = arith.constant 5 : index
    %c0_33 = arith.constant 0 : index
    %c0_34 = arith.constant 0 : index
    %33 = vector.load %arg0[%c5_32, %c0_33, %c0_34] : memref<9x8x128xbf16, #tpu.memory_space<vmem>>, vector<1x8x128xbf16>
    %34 = vector.shape_cast %33 : vector<1x8x128xbf16> to vector<8x128xbf16>
    %cst_35 = arith.constant dense<0.000000e+00> : vector<16x128xf32>
    %35 = tpu.matmul %32, %34, %cst_35 {dimension_numbers = #tpu.dot_dimension_numbers<[1], [0], [0], [1], [0, 0, 1, 1], [], []>} : vector<16x8xbf16>, vector<8x128xbf16>, vector<16x128xf32> -> vector<16x128xf32>
    %36 = arith.addf %30, %35 : vector<16x128xf32>
    %c6 = arith.constant 6 : index
    %c0_36 = arith.constant 0 : index
    %c0_37 = arith.constant 0 : index
    %37 = vector.load %arg1[%c6, %c0_36, %c0_37] : memref<9x16x8xbf16, #tpu.memory_space<vmem>>, vector<1x16x8xbf16>
    %38 = vector.shape_cast %37 : vector<1x16x8xbf16> to vector<16x8xbf16>
    %c6_38 = arith.constant 6 : index
    %c0_39 = arith.constant 0 : index
    %c0_40 = arith.constant 0 : index
    %39 = vector.load %arg0[%c6_38, %c0_39, %c0_40] : memref<9x8x128xbf16, #tpu.memory_space<vmem>>, vector<1x8x128xbf16>
    %40 = vector.shape_cast %39 : vector<1x8x128xbf16> to vector<8x128xbf16>
    %cst_41 = arith.constant dense<0.000000e+00> : vector<16x128xf32>
    %41 = tpu.matmul %38, %40, %cst_41 {dimension_numbers = #tpu.dot_dimension_numbers<[1], [0], [0], [1], [0, 0, 1, 1], [], []>} : vector<16x8xbf16>, vector<8x128xbf16>, vector<16x128xf32> -> vector<16x128xf32>
    %42 = arith.addf %36, %41 : vector<16x128xf32>
    %c7 = arith.constant 7 : index
    %c0_42 = arith.constant 0 : index
    %c0_43 = arith.constant 0 : index
    %43 = vector.load %arg1[%c7, %c0_42, %c0_43] : memref<9x16x8xbf16, #tpu.memory_space<vmem>>, vector<1x16x8xbf16>
    %44 = vector.shape_cast %43 : vector<1x16x8xbf16> to vector<16x8xbf16>
    %c7_44 = arith.constant 7 : index
    %c0_45 = arith.constant 0 : index
    %c0_46 = arith.constant 0 : index
    %45 = vector.load %arg0[%c7_44, %c0_45, %c0_46] : memref<9x8x128xbf16, #tpu.memory_space<vmem>>, vector<1x8x128xbf16>
    %46 = vector.shape_cast %45 : vector<1x8x128xbf16> to vector<8x128xbf16>
    %cst_47 = arith.constant dense<0.000000e+00> : vector<16x128xf32>
    %47 = tpu.matmul %44, %46, %cst_47 {dimension_numbers = #tpu.dot_dimension_numbers<[1], [0], [0], [1], [0, 0, 1, 1], [], []>} : vector<16x8xbf16>, vector<8x128xbf16>, vector<16x128xf32> -> vector<16x128xf32>
    %48 = arith.addf %42, %47 : vector<16x128xf32>
    %c8 = arith.constant 8 : index
    %c0_48 = arith.constant 0 : index
    %c0_49 = arith.constant 0 : index
    %49 = vector.load %arg1[%c8, %c0_48, %c0_49] : memref<9x16x8xbf16, #tpu.memory_space<vmem>>, vector<1x16x8xbf16>
    %50 = vector.shape_cast %49 : vector<1x16x8xbf16> to vector<16x8xbf16>
    %c8_50 = arith.constant 8 : index
    %c0_51 = arith.constant 0 : index
    %c0_52 = arith.constant 0 : index
    %51 = vector.load %arg0[%c8_50, %c0_51, %c0_52] : memref<9x8x128xbf16, #tpu.memory_space<vmem>>, vector<1x8x128xbf16>
    %52 = vector.shape_cast %51 : vector<1x8x128xbf16> to vector<8x128xbf16>
    %cst_53 = arith.constant dense<0.000000e+00> : vector<16x128xf32>
    %53 = tpu.matmul %50, %52, %cst_53 {dimension_numbers = #tpu.dot_dimension_numbers<[1], [0], [0], [1], [0, 0, 1, 1], [], []>} : vector<16x8xbf16>, vector<8x128xbf16>, vector<16x128xf32> -> vector<16x128xf32>
    %54 = arith.addf %48, %53 : vector<16x128xf32>
    %cst_54 = arith.constant dense<0.000000e+00> : vector<16xf32>
    %55 = vector.multi_reduction <add>, %54, %cst_54 [1] : vector<16x128xf32> to vector<16xf32>
    %56 = vector.shape_cast %55 : vector<16xf32> to vector<16x1xf32>
    %cst_55 = arith.constant 1.280000e+02 : f32
    %57 = vector.broadcast %cst_55 : f32 to vector<16x1xf32>
    %58 = arith.divf %56, %57 : vector<16x1xf32>
    %59 = vector.broadcast %58 : vector<16x1xf32> to vector<16x128xf32>
    %60 = arith.subf %54, %59 : vector<16x128xf32>
    %61 = arith.mulf %60, %60 : vector<16x128xf32>
    %cst_56 = arith.constant dense<0.000000e+00> : vector<16xf32>
    %62 = vector.multi_reduction <add>, %61, %cst_56 [1] : vector<16x128xf32> to vector<16xf32>
    %63 = vector.shape_cast %62 : vector<16xf32> to vector<16x1xf32>
    %cst_57 = arith.constant 1.280000e+02 : f32
    %64 = vector.broadcast %cst_57 : f32 to vector<16x1xf32>
    %65 = arith.divf %63, %64 : vector<16x1xf32>
    %c0_58 = arith.constant 0 : index
    %c0_59 = arith.constant 0 : index
    %66 = vector.load %arg2[%c0_58, %c0_59] : memref<16x1xf32, #tpu.memory_space<vmem>>, vector<16x1xf32>
    %cst_60 = arith.constant 9.99999974E-6 : f32
    %67 = vector.broadcast %cst_60 : f32 to vector<16x1xf32>
    %68 = arith.addf %65, %67 : vector<16x1xf32>
    %69 = math.rsqrt %68 : vector<16x1xf32>
    %70 = arith.mulf %66, %69 : vector<16x1xf32>
    %71 = vector.broadcast %70 : vector<16x1xf32> to vector<16x128xf32>
    %72 = arith.mulf %60, %71 : vector<16x128xf32>
    %c0_61 = arith.constant 0 : index
    %c0_62 = arith.constant 0 : index
    %73 = vector.load %arg3[%c0_61, %c0_62] : memref<16x1xf32, #tpu.memory_space<vmem>>, vector<16x1xf32>
    %74 = vector.broadcast %73 : vector<16x1xf32> to vector<16x128xf32>
    %75 = arith.addf %72, %74 : vector<16x128xf32>
    %cst_63 = arith.constant 0.000000e+00 : f32
    %76 = vector.broadcast %cst_63 : f32 to vector<16x128xf32>
    %77 = arith.maximumf %75, %76 : vector<16x128xf32>
    %c0_64 = arith.constant 0 : index
    %c0_65 = arith.constant 0 : index
    %78 = vector.load %arg4[%c0_64, %c0_65] : memref<16x128xf32, #tpu.memory_space<vmem>>, vector<16x128xf32>
    tpu.vector_store %arg4[%c0_64, %c0_65], %77 {strides = array<i32>} : memref<16x128xf32, #tpu.memory_space<vmem>>, vector<16x128xf32>,
    return
  }
}

module attributes {stable_mosaic.version = 11 : i64} {
  func.func @_fused_conv_kernel(%arg0: memref<9x16x32xbf16, #tpu.memory_space<vmem>>, %arg1: memref<9x32x16xbf16, #tpu.memory_space<vmem>>, %arg2: memref<32x1xf32, #tpu.memory_space<vmem>>, %arg3: memref<32x1xf32, #tpu.memory_space<vmem>>, %arg4: memref<32x32xf32, #tpu.memory_space<vmem>>) attributes {dimension_semantics = [], scalar_prefetch = 0 : i64, scratch_operands = 0 : i64, tpu.core_type = #tpu.core_type<tc>} {
    %cst = arith.constant 0.000000e+00 : f32
    %0 = vector.broadcast %cst : f32 to vector<32x32xf32>
    %c0 = arith.constant 0 : index
    %c0_0 = arith.constant 0 : index
    %c0_1 = arith.constant 0 : index
    %1 = vector.load %arg1[%c0, %c0_0, %c0_1] : memref<9x32x16xbf16, #tpu.memory_space<vmem>>, vector<1x32x16xbf16>
    %2 = vector.shape_cast %1 : vector<1x32x16xbf16> to vector<32x16xbf16>
    %c0_2 = arith.constant 0 : index
    %c0_3 = arith.constant 0 : index
    %c0_4 = arith.constant 0 : index
    %3 = vector.load %arg0[%c0_2, %c0_3, %c0_4] : memref<9x16x32xbf16, #tpu.memory_space<vmem>>, vector<1x16x32xbf16>
    %4 = vector.shape_cast %3 : vector<1x16x32xbf16> to vector<16x32xbf16>
    %cst_5 = arith.constant dense<0.000000e+00> : vector<32x32xf32>
    %5 = tpu.matmul %2, %4, %cst_5 {dimension_numbers = #tpu.dot_dimension_numbers<[1], [0], [0], [1], [0, 0, 1, 1], [], []>} : vector<32x16xbf16>, vector<16x32xbf16>, vector<32x32xf32> -> vector<32x32xf32>
    %6 = arith.addf %0, %5 : vector<32x32xf32>
    %c1 = arith.constant 1 : index
    %c0_6 = arith.constant 0 : index
    %c0_7 = arith.constant 0 : index
    %7 = vector.load %arg1[%c1, %c0_6, %c0_7] : memref<9x32x16xbf16, #tpu.memory_space<vmem>>, vector<1x32x16xbf16>
    %8 = vector.shape_cast %7 : vector<1x32x16xbf16> to vector<32x16xbf16>
    %c1_8 = arith.constant 1 : index
    %c0_9 = arith.constant 0 : index
    %c0_10 = arith.constant 0 : index
    %9 = vector.load %arg0[%c1_8, %c0_9, %c0_10] : memref<9x16x32xbf16, #tpu.memory_space<vmem>>, vector<1x16x32xbf16>
    %10 = vector.shape_cast %9 : vector<1x16x32xbf16> to vector<16x32xbf16>
    %cst_11 = arith.constant dense<0.000000e+00> : vector<32x32xf32>
    %11 = tpu.matmul %8, %10, %cst_11 {dimension_numbers = #tpu.dot_dimension_numbers<[1], [0], [0], [1], [0, 0, 1, 1], [], []>} : vector<32x16xbf16>, vector<16x32xbf16>, vector<32x32xf32> -> vector<32x32xf32>
    %12 = arith.addf %6, %11 : vector<32x32xf32>
    %c2 = arith.constant 2 : index
    %c0_12 = arith.constant 0 : index
    %c0_13 = arith.constant 0 : index
    %13 = vector.load %arg1[%c2, %c0_12, %c0_13] : memref<9x32x16xbf16, #tpu.memory_space<vmem>>, vector<1x32x16xbf16>
    %14 = vector.shape_cast %13 : vector<1x32x16xbf16> to vector<32x16xbf16>
    %c2_14 = arith.constant 2 : index
    %c0_15 = arith.constant 0 : index
    %c0_16 = arith.constant 0 : index
    %15 = vector.load %arg0[%c2_14, %c0_15, %c0_16] : memref<9x16x32xbf16, #tpu.memory_space<vmem>>, vector<1x16x32xbf16>
    %16 = vector.shape_cast %15 : vector<1x16x32xbf16> to vector<16x32xbf16>
    %cst_17 = arith.constant dense<0.000000e+00> : vector<32x32xf32>
    %17 = tpu.matmul %14, %16, %cst_17 {dimension_numbers = #tpu.dot_dimension_numbers<[1], [0], [0], [1], [0, 0, 1, 1], [], []>} : vector<32x16xbf16>, vector<16x32xbf16>, vector<32x32xf32> -> vector<32x32xf32>
    %18 = arith.addf %12, %17 : vector<32x32xf32>
    %c3 = arith.constant 3 : index
    %c0_18 = arith.constant 0 : index
    %c0_19 = arith.constant 0 : index
    %19 = vector.load %arg1[%c3, %c0_18, %c0_19] : memref<9x32x16xbf16, #tpu.memory_space<vmem>>, vector<1x32x16xbf16>
    %20 = vector.shape_cast %19 : vector<1x32x16xbf16> to vector<32x16xbf16>
    %c3_20 = arith.constant 3 : index
    %c0_21 = arith.constant 0 : index
    %c0_22 = arith.constant 0 : index
    %21 = vector.load %arg0[%c3_20, %c0_21, %c0_22] : memref<9x16x32xbf16, #tpu.memory_space<vmem>>, vector<1x16x32xbf16>
    %22 = vector.shape_cast %21 : vector<1x16x32xbf16> to vector<16x32xbf16>
    %cst_23 = arith.constant dense<0.000000e+00> : vector<32x32xf32>
    %23 = tpu.matmul %20, %22, %cst_23 {dimension_numbers = #tpu.dot_dimension_numbers<[1], [0], [0], [1], [0, 0, 1, 1], [], []>} : vector<32x16xbf16>, vector<16x32xbf16>, vector<32x32xf32> -> vector<32x32xf32>
    %24 = arith.addf %18, %23 : vector<32x32xf32>
    %c4 = arith.constant 4 : index
    %c0_24 = arith.constant 0 : index
    %c0_25 = arith.constant 0 : index
    %25 = vector.load %arg1[%c4, %c0_24, %c0_25] : memref<9x32x16xbf16, #tpu.memory_space<vmem>>, vector<1x32x16xbf16>
    %26 = vector.shape_cast %25 : vector<1x32x16xbf16> to vector<32x16xbf16>
    %c4_26 = arith.constant 4 : index
    %c0_27 = arith.constant 0 : index
    %c0_28 = arith.constant 0 : index
    %27 = vector.load %arg0[%c4_26, %c0_27, %c0_28] : memref<9x16x32xbf16, #tpu.memory_space<vmem>>, vector<1x16x32xbf16>
    %28 = vector.shape_cast %27 : vector<1x16x32xbf16> to vector<16x32xbf16>
    %cst_29 = arith.constant dense<0.000000e+00> : vector<32x32xf32>
    %29 = tpu.matmul %26, %28, %cst_29 {dimension_numbers = #tpu.dot_dimension_numbers<[1], [0], [0], [1], [0, 0, 1, 1], [], []>} : vector<32x16xbf16>, vector<16x32xbf16>, vector<32x32xf32> -> vector<32x32xf32>
    %30 = arith.addf %24, %29 : vector<32x32xf32>
    %c5 = arith.constant 5 : index
    %c0_30 = arith.constant 0 : index
    %c0_31 = arith.constant 0 : index
    %31 = vector.load %arg1[%c5, %c0_30, %c0_31] : memref<9x32x16xbf16, #tpu.memory_space<vmem>>, vector<1x32x16xbf16>
    %32 = vector.shape_cast %31 : vector<1x32x16xbf16> to vector<32x16xbf16>
    %c5_32 = arith.constant 5 : index
    %c0_33 = arith.constant 0 : index
    %c0_34 = arith.constant 0 : index
    %33 = vector.load %arg0[%c5_32, %c0_33, %c0_34] : memref<9x16x32xbf16, #tpu.memory_space<vmem>>, vector<1x16x32xbf16>
    %34 = vector.shape_cast %33 : vector<1x16x32xbf16> to vector<16x32xbf16>
    %cst_35 = arith.constant dense<0.000000e+00> : vector<32x32xf32>
    %35 = tpu.matmul %32, %34, %cst_35 {dimension_numbers = #tpu.dot_dimension_numbers<[1], [0], [0], [1], [0, 0, 1, 1], [], []>} : vector<32x16xbf16>, vector<16x32xbf16>, vector<32x32xf32> -> vector<32x32xf32>
    %36 = arith.addf %30, %35 : vector<32x32xf32>
    %c6 = arith.constant 6 : index
    %c0_36 = arith.constant 0 : index
    %c0_37 = arith.constant 0 : index
    %37 = vector.load %arg1[%c6, %c0_36, %c0_37] : memref<9x32x16xbf16, #tpu.memory_space<vmem>>, vector<1x32x16xbf16>
    %38 = vector.shape_cast %37 : vector<1x32x16xbf16> to vector<32x16xbf16>
    %c6_38 = arith.constant 6 : index
    %c0_39 = arith.constant 0 : index
    %c0_40 = arith.constant 0 : index
    %39 = vector.load %arg0[%c6_38, %c0_39, %c0_40] : memref<9x16x32xbf16, #tpu.memory_space<vmem>>, vector<1x16x32xbf16>
    %40 = vector.shape_cast %39 : vector<1x16x32xbf16> to vector<16x32xbf16>
    %cst_41 = arith.constant dense<0.000000e+00> : vector<32x32xf32>
    %41 = tpu.matmul %38, %40, %cst_41 {dimension_numbers = #tpu.dot_dimension_numbers<[1], [0], [0], [1], [0, 0, 1, 1], [], []>} : vector<32x16xbf16>, vector<16x32xbf16>, vector<32x32xf32> -> vector<32x32xf32>
    %42 = arith.addf %36, %41 : vector<32x32xf32>
    %c7 = arith.constant 7 : index
    %c0_42 = arith.constant 0 : index
    %c0_43 = arith.constant 0 : index
    %43 = vector.load %arg1[%c7, %c0_42, %c0_43] : memref<9x32x16xbf16, #tpu.memory_space<vmem>>, vector<1x32x16xbf16>
    %44 = vector.shape_cast %43 : vector<1x32x16xbf16> to vector<32x16xbf16>
    %c7_44 = arith.constant 7 : index
    %c0_45 = arith.constant 0 : index
    %c0_46 = arith.constant 0 : index
    %45 = vector.load %arg0[%c7_44, %c0_45, %c0_46] : memref<9x16x32xbf16, #tpu.memory_space<vmem>>, vector<1x16x32xbf16>
    %46 = vector.shape_cast %45 : vector<1x16x32xbf16> to vector<16x32xbf16>
    %cst_47 = arith.constant dense<0.000000e+00> : vector<32x32xf32>
    %47 = tpu.matmul %44, %46, %cst_47 {dimension_numbers = #tpu.dot_dimension_numbers<[1], [0], [0], [1], [0, 0, 1, 1], [], []>} : vector<32x16xbf16>, vector<16x32xbf16>, vector<32x32xf32> -> vector<32x32xf32>
    %48 = arith.addf %42, %47 : vector<32x32xf32>
    %c8 = arith.constant 8 : index
    %c0_48 = arith.constant 0 : index
    %c0_49 = arith.constant 0 : index
    %49 = vector.load %arg1[%c8, %c0_48, %c0_49] : memref<9x32x16xbf16, #tpu.memory_space<vmem>>, vector<1x32x16xbf16>
    %50 = vector.shape_cast %49 : vector<1x32x16xbf16> to vector<32x16xbf16>
    %c8_50 = arith.constant 8 : index
    %c0_51 = arith.constant 0 : index
    %c0_52 = arith.constant 0 : index
    %51 = vector.load %arg0[%c8_50, %c0_51, %c0_52] : memref<9x16x32xbf16, #tpu.memory_space<vmem>>, vector<1x16x32xbf16>
    %52 = vector.shape_cast %51 : vector<1x16x32xbf16> to vector<16x32xbf16>
    %cst_53 = arith.constant dense<0.000000e+00> : vector<32x32xf32>
    %53 = tpu.matmul %50, %52, %cst_53 {dimension_numbers = #tpu.dot_dimension_numbers<[1], [0], [0], [1], [0, 0, 1, 1], [], []>} : vector<32x16xbf16>, vector<16x32xbf16>, vector<32x32xf32> -> vector<32x32xf32>
    %54 = arith.addf %48, %53 : vector<32x32xf32>
    %cst_54 = arith.constant dense<0.000000e+00> : vector<32xf32>
    %55 = vector.multi_reduction <add>, %54, %cst_54 [1] : vector<32x32xf32> to vector<32xf32>
    %56 = vector.shape_cast %55 : vector<32xf32> to vector<32x1xf32>
    %cst_55 = arith.constant 3.200000e+01 : f32
    %57 = vector.broadcast %cst_55 : f32 to vector<32x1xf32>
    %58 = arith.divf %56, %57 : vector<32x1xf32>
    %59 = vector.broadcast %58 : vector<32x1xf32> to vector<32x32xf32>
    %60 = arith.subf %54, %59 : vector<32x32xf32>
    %61 = arith.mulf %60, %60 : vector<32x32xf32>
    %cst_56 = arith.constant dense<0.000000e+00> : vector<32xf32>
    %62 = vector.multi_reduction <add>, %61, %cst_56 [1] : vector<32x32xf32> to vector<32xf32>
    %63 = vector.shape_cast %62 : vector<32xf32> to vector<32x1xf32>
    %cst_57 = arith.constant 3.200000e+01 : f32
    %64 = vector.broadcast %cst_57 : f32 to vector<32x1xf32>
    %65 = arith.divf %63, %64 : vector<32x1xf32>
    %c0_58 = arith.constant 0 : index
    %c0_59 = arith.constant 0 : index
    %66 = vector.load %arg2[%c0_58, %c0_59] : memref<32x1xf32, #tpu.memory_space<vmem>>, vector<32x1xf32>
    %cst_60 = arith.constant 9.99999974E-6 : f32
    %67 = vector.broadcast %cst_60 : f32 to vector<32x1xf32>
    %68 = arith.addf %65, %67 : vector<32x1xf32>
    %69 = math.rsqrt %68 : vector<32x1xf32>
    %70 = arith.mulf %66, %69 : vector<32x1xf32>
    %71 = vector.broadcast %70 : vector<32x1xf32> to vector<32x32xf32>
    %72 = arith.mulf %60, %71 : vector<32x32xf32>
    %c0_61 = arith.constant 0 : index
    %c0_62 = arith.constant 0 : index
    %73 = vector.load %arg3[%c0_61, %c0_62] : memref<32x1xf32, #tpu.memory_space<vmem>>, vector<32x1xf32>
    %74 = vector.broadcast %73 : vector<32x1xf32> to vector<32x32xf32>
    %75 = arith.addf %72, %74 : vector<32x32xf32>
    %cst_63 = arith.constant 0.000000e+00 : f32
    %76 = vector.broadcast %cst_63 : f32 to vector<32x32xf32>
    %77 = arith.maximumf %75, %76 : vector<32x32xf32>
    %c0_64 = arith.constant 0 : index
    %c0_65 = arith.constant 0 : index
    %78 = vector.load %arg4[%c0_64, %c0_65] : memref<32x32xf32, #tpu.memory_space<vmem>>, vector<32x32xf32>
    tpu.vector_store %arg4[%c0_64, %c0_65], %77 {strides = array<i32>} : memref<32x32xf32, #tpu.memory_space<vmem>>, vector<32x32xf32>,
    return
  }
}

module attributes {stable_mosaic.version = 11 : i64} {
  func.func @_fused_conv_kernel(%arg0: memref<9x32x32xbf16, #tpu.memory_space<vmem>>, %arg1: memref<9x32x32xbf16, #tpu.memory_space<vmem>>, %arg2: memref<32x1xf32, #tpu.memory_space<vmem>>, %arg3: memref<32x1xf32, #tpu.memory_space<vmem>>, %arg4: memref<32x32xf32, #tpu.memory_space<vmem>>, %arg5: memref<32x32xf32, #tpu.memory_space<vmem>>) attributes {dimension_semantics = [], scalar_prefetch = 0 : i64, scratch_operands = 0 : i64, tpu.core_type = #tpu.core_type<tc>} {
    %cst = arith.constant 0.000000e+00 : f32
    %0 = vector.broadcast %cst : f32 to vector<32x32xf32>
    %c0 = arith.constant 0 : index
    %c0_0 = arith.constant 0 : index
    %c0_1 = arith.constant 0 : index
    %1 = vector.load %arg1[%c0, %c0_0, %c0_1] : memref<9x32x32xbf16, #tpu.memory_space<vmem>>, vector<1x32x32xbf16>
    %2 = vector.shape_cast %1 : vector<1x32x32xbf16> to vector<32x32xbf16>
    %c0_2 = arith.constant 0 : index
    %c0_3 = arith.constant 0 : index
    %c0_4 = arith.constant 0 : index
    %3 = vector.load %arg0[%c0_2, %c0_3, %c0_4] : memref<9x32x32xbf16, #tpu.memory_space<vmem>>, vector<1x32x32xbf16>
    %4 = vector.shape_cast %3 : vector<1x32x32xbf16> to vector<32x32xbf16>
    %cst_5 = arith.constant dense<0.000000e+00> : vector<32x32xf32>
    %5 = tpu.matmul %2, %4, %cst_5 {dimension_numbers = #tpu.dot_dimension_numbers<[1], [0], [0], [1], [0, 0, 1, 1], [], []>} : vector<32x32xbf16>, vector<32x32xbf16>, vector<32x32xf32> -> vector<32x32xf32>
    %6 = arith.addf %0, %5 : vector<32x32xf32>
    %c1 = arith.constant 1 : index
    %c0_6 = arith.constant 0 : index
    %c0_7 = arith.constant 0 : index
    %7 = vector.load %arg1[%c1, %c0_6, %c0_7] : memref<9x32x32xbf16, #tpu.memory_space<vmem>>, vector<1x32x32xbf16>
    %8 = vector.shape_cast %7 : vector<1x32x32xbf16> to vector<32x32xbf16>
    %c1_8 = arith.constant 1 : index
    %c0_9 = arith.constant 0 : index
    %c0_10 = arith.constant 0 : index
    %9 = vector.load %arg0[%c1_8, %c0_9, %c0_10] : memref<9x32x32xbf16, #tpu.memory_space<vmem>>, vector<1x32x32xbf16>
    %10 = vector.shape_cast %9 : vector<1x32x32xbf16> to vector<32x32xbf16>
    %cst_11 = arith.constant dense<0.000000e+00> : vector<32x32xf32>
    %11 = tpu.matmul %8, %10, %cst_11 {dimension_numbers = #tpu.dot_dimension_numbers<[1], [0], [0], [1], [0, 0, 1, 1], [], []>} : vector<32x32xbf16>, vector<32x32xbf16>, vector<32x32xf32> -> vector<32x32xf32>
    %12 = arith.addf %6, %11 : vector<32x32xf32>
    %c2 = arith.constant 2 : index
    %c0_12 = arith.constant 0 : index
    %c0_13 = arith.constant 0 : index
    %13 = vector.load %arg1[%c2, %c0_12, %c0_13] : memref<9x32x32xbf16, #tpu.memory_space<vmem>>, vector<1x32x32xbf16>
    %14 = vector.shape_cast %13 : vector<1x32x32xbf16> to vector<32x32xbf16>
    %c2_14 = arith.constant 2 : index
    %c0_15 = arith.constant 0 : index
    %c0_16 = arith.constant 0 : index
    %15 = vector.load %arg0[%c2_14, %c0_15, %c0_16] : memref<9x32x32xbf16, #tpu.memory_space<vmem>>, vector<1x32x32xbf16>
    %16 = vector.shape_cast %15 : vector<1x32x32xbf16> to vector<32x32xbf16>
    %cst_17 = arith.constant dense<0.000000e+00> : vector<32x32xf32>
    %17 = tpu.matmul %14, %16, %cst_17 {dimension_numbers = #tpu.dot_dimension_numbers<[1], [0], [0], [1], [0, 0, 1, 1], [], []>} : vector<32x32xbf16>, vector<32x32xbf16>, vector<32x32xf32> -> vector<32x32xf32>
    %18 = arith.addf %12, %17 : vector<32x32xf32>
    %c3 = arith.constant 3 : index
    %c0_18 = arith.constant 0 : index
    %c0_19 = arith.constant 0 : index
    %19 = vector.load %arg1[%c3, %c0_18, %c0_19] : memref<9x32x32xbf16, #tpu.memory_space<vmem>>, vector<1x32x32xbf16>
    %20 = vector.shape_cast %19 : vector<1x32x32xbf16> to vector<32x32xbf16>
    %c3_20 = arith.constant 3 : index
    %c0_21 = arith.constant 0 : index
    %c0_22 = arith.constant 0 : index
    %21 = vector.load %arg0[%c3_20, %c0_21, %c0_22] : memref<9x32x32xbf16, #tpu.memory_space<vmem>>, vector<1x32x32xbf16>
    %22 = vector.shape_cast %21 : vector<1x32x32xbf16> to vector<32x32xbf16>
    %cst_23 = arith.constant dense<0.000000e+00> : vector<32x32xf32>
    %23 = tpu.matmul %20, %22, %cst_23 {dimension_numbers = #tpu.dot_dimension_numbers<[1], [0], [0], [1], [0, 0, 1, 1], [], []>} : vector<32x32xbf16>, vector<32x32xbf16>, vector<32x32xf32> -> vector<32x32xf32>
    %24 = arith.addf %18, %23 : vector<32x32xf32>
    %c4 = arith.constant 4 : index
    %c0_24 = arith.constant 0 : index
    %c0_25 = arith.constant 0 : index
    %25 = vector.load %arg1[%c4, %c0_24, %c0_25] : memref<9x32x32xbf16, #tpu.memory_space<vmem>>, vector<1x32x32xbf16>
    %26 = vector.shape_cast %25 : vector<1x32x32xbf16> to vector<32x32xbf16>
    %c4_26 = arith.constant 4 : index
    %c0_27 = arith.constant 0 : index
    %c0_28 = arith.constant 0 : index
    %27 = vector.load %arg0[%c4_26, %c0_27, %c0_28] : memref<9x32x32xbf16, #tpu.memory_space<vmem>>, vector<1x32x32xbf16>
    %28 = vector.shape_cast %27 : vector<1x32x32xbf16> to vector<32x32xbf16>
    %cst_29 = arith.constant dense<0.000000e+00> : vector<32x32xf32>
    %29 = tpu.matmul %26, %28, %cst_29 {dimension_numbers = #tpu.dot_dimension_numbers<[1], [0], [0], [1], [0, 0, 1, 1], [], []>} : vector<32x32xbf16>, vector<32x32xbf16>, vector<32x32xf32> -> vector<32x32xf32>
    %30 = arith.addf %24, %29 : vector<32x32xf32>
    %c5 = arith.constant 5 : index
    %c0_30 = arith.constant 0 : index
    %c0_31 = arith.constant 0 : index
    %31 = vector.load %arg1[%c5, %c0_30, %c0_31] : memref<9x32x32xbf16, #tpu.memory_space<vmem>>, vector<1x32x32xbf16>
    %32 = vector.shape_cast %31 : vector<1x32x32xbf16> to vector<32x32xbf16>
    %c5_32 = arith.constant 5 : index
    %c0_33 = arith.constant 0 : index
    %c0_34 = arith.constant 0 : index
    %33 = vector.load %arg0[%c5_32, %c0_33, %c0_34] : memref<9x32x32xbf16, #tpu.memory_space<vmem>>, vector<1x32x32xbf16>
    %34 = vector.shape_cast %33 : vector<1x32x32xbf16> to vector<32x32xbf16>
    %cst_35 = arith.constant dense<0.000000e+00> : vector<32x32xf32>
    %35 = tpu.matmul %32, %34, %cst_35 {dimension_numbers = #tpu.dot_dimension_numbers<[1], [0], [0], [1], [0, 0, 1, 1], [], []>} : vector<32x32xbf16>, vector<32x32xbf16>, vector<32x32xf32> -> vector<32x32xf32>
    %36 = arith.addf %30, %35 : vector<32x32xf32>
    %c6 = arith.constant 6 : index
    %c0_36 = arith.constant 0 : index
    %c0_37 = arith.constant 0 : index
    %37 = vector.load %arg1[%c6, %c0_36, %c0_37] : memref<9x32x32xbf16, #tpu.memory_space<vmem>>, vector<1x32x32xbf16>
    %38 = vector.shape_cast %37 : vector<1x32x32xbf16> to vector<32x32xbf16>
    %c6_38 = arith.constant 6 : index
    %c0_39 = arith.constant 0 : index
    %c0_40 = arith.constant 0 : index
    %39 = vector.load %arg0[%c6_38, %c0_39, %c0_40] : memref<9x32x32xbf16, #tpu.memory_space<vmem>>, vector<1x32x32xbf16>
    %40 = vector.shape_cast %39 : vector<1x32x32xbf16> to vector<32x32xbf16>
    %cst_41 = arith.constant dense<0.000000e+00> : vector<32x32xf32>
    %41 = tpu.matmul %38, %40, %cst_41 {dimension_numbers = #tpu.dot_dimension_numbers<[1], [0], [0], [1], [0, 0, 1, 1], [], []>} : vector<32x32xbf16>, vector<32x32xbf16>, vector<32x32xf32> -> vector<32x32xf32>
    %42 = arith.addf %36, %41 : vector<32x32xf32>
    %c7 = arith.constant 7 : index
    %c0_42 = arith.constant 0 : index
    %c0_43 = arith.constant 0 : index
    %43 = vector.load %arg1[%c7, %c0_42, %c0_43] : memref<9x32x32xbf16, #tpu.memory_space<vmem>>, vector<1x32x32xbf16>
    %44 = vector.shape_cast %43 : vector<1x32x32xbf16> to vector<32x32xbf16>
    %c7_44 = arith.constant 7 : index
    %c0_45 = arith.constant 0 : index
    %c0_46 = arith.constant 0 : index
    %45 = vector.load %arg0[%c7_44, %c0_45, %c0_46] : memref<9x32x32xbf16, #tpu.memory_space<vmem>>, vector<1x32x32xbf16>
    %46 = vector.shape_cast %45 : vector<1x32x32xbf16> to vector<32x32xbf16>
    %cst_47 = arith.constant dense<0.000000e+00> : vector<32x32xf32>
    %47 = tpu.matmul %44, %46, %cst_47 {dimension_numbers = #tpu.dot_dimension_numbers<[1], [0], [0], [1], [0, 0, 1, 1], [], []>} : vector<32x32xbf16>, vector<32x32xbf16>, vector<32x32xf32> -> vector<32x32xf32>
    %48 = arith.addf %42, %47 : vector<32x32xf32>
    %c8 = arith.constant 8 : index
    %c0_48 = arith.constant 0 : index
    %c0_49 = arith.constant 0 : index
    %49 = vector.load %arg1[%c8, %c0_48, %c0_49] : memref<9x32x32xbf16, #tpu.memory_space<vmem>>, vector<1x32x32xbf16>
    %50 = vector.shape_cast %49 : vector<1x32x32xbf16> to vector<32x32xbf16>
    %c8_50 = arith.constant 8 : index
    %c0_51 = arith.constant 0 : index
    %c0_52 = arith.constant 0 : index
    %51 = vector.load %arg0[%c8_50, %c0_51, %c0_52] : memref<9x32x32xbf16, #tpu.memory_space<vmem>>, vector<1x32x32xbf16>
    %52 = vector.shape_cast %51 : vector<1x32x32xbf16> to vector<32x32xbf16>
    %cst_53 = arith.constant dense<0.000000e+00> : vector<32x32xf32>
    %53 = tpu.matmul %50, %52, %cst_53 {dimension_numbers = #tpu.dot_dimension_numbers<[1], [0], [0], [1], [0, 0, 1, 1], [], []>} : vector<32x32xbf16>, vector<32x32xbf16>, vector<32x32xf32> -> vector<32x32xf32>
    %54 = arith.addf %48, %53 : vector<32x32xf32>
    %cst_54 = arith.constant dense<0.000000e+00> : vector<32xf32>
    %55 = vector.multi_reduction <add>, %54, %cst_54 [1] : vector<32x32xf32> to vector<32xf32>
    %56 = vector.shape_cast %55 : vector<32xf32> to vector<32x1xf32>
    %cst_55 = arith.constant 3.200000e+01 : f32
    %57 = vector.broadcast %cst_55 : f32 to vector<32x1xf32>
    %58 = arith.divf %56, %57 : vector<32x1xf32>
    %59 = vector.broadcast %58 : vector<32x1xf32> to vector<32x32xf32>
    %60 = arith.subf %54, %59 : vector<32x32xf32>
    %61 = arith.mulf %60, %60 : vector<32x32xf32>
    %cst_56 = arith.constant dense<0.000000e+00> : vector<32xf32>
    %62 = vector.multi_reduction <add>, %61, %cst_56 [1] : vector<32x32xf32> to vector<32xf32>
    %63 = vector.shape_cast %62 : vector<32xf32> to vector<32x1xf32>
    %cst_57 = arith.constant 3.200000e+01 : f32
    %64 = vector.broadcast %cst_57 : f32 to vector<32x1xf32>
    %65 = arith.divf %63, %64 : vector<32x1xf32>
    %c0_58 = arith.constant 0 : index
    %c0_59 = arith.constant 0 : index
    %66 = vector.load %arg2[%c0_58, %c0_59] : memref<32x1xf32, #tpu.memory_space<vmem>>, vector<32x1xf32>
    %cst_60 = arith.constant 9.99999974E-6 : f32
    %67 = vector.broadcast %cst_60 : f32 to vector<32x1xf32>
    %68 = arith.addf %65, %67 : vector<32x1xf32>
    %69 = math.rsqrt %68 : vector<32x1xf32>
    %70 = arith.mulf %66, %69 : vector<32x1xf32>
    %71 = vector.broadcast %70 : vector<32x1xf32> to vector<32x32xf32>
    %72 = arith.mulf %60, %71 : vector<32x32xf32>
    %c0_61 = arith.constant 0 : index
    %c0_62 = arith.constant 0 : index
    %73 = vector.load %arg3[%c0_61, %c0_62] : memref<32x1xf32, #tpu.memory_space<vmem>>, vector<32x1xf32>
    %74 = vector.broadcast %73 : vector<32x1xf32> to vector<32x32xf32>
    %75 = arith.addf %72, %74 : vector<32x32xf32>
    %c0_63 = arith.constant 0 : index
    %c0_64 = arith.constant 0 : index
    %76 = vector.load %arg4[%c0_63, %c0_64] : memref<32x32xf32, #tpu.memory_space<vmem>>, vector<32x32xf32>
    %77 = arith.addf %75, %76 : vector<32x32xf32>
    %c0_65 = arith.constant 0 : index
    %c0_66 = arith.constant 0 : index
    %78 = vector.load %arg5[%c0_65, %c0_66] : memref<32x32xf32, #tpu.memory_space<vmem>>, vector<32x32xf32>
    tpu.vector_store %arg5[%c0_65, %c0_66], %77 {strides = array<i32>} : memref<32x32xf32, #tpu.memory_space<vmem>>, vector<32x32xf32>,
    return
  }
}

module attributes {stable_mosaic.version = 11 : i64} {
  func.func @_fused_conv_kernel(%arg0: memref<9x32x32xbf16, #tpu.memory_space<vmem>>, %arg1: memref<9x32x32xbf16, #tpu.memory_space<vmem>>, %arg2: memref<32x1xf32, #tpu.memory_space<vmem>>, %arg3: memref<32x1xf32, #tpu.memory_space<vmem>>, %arg4: memref<32x32xf32, #tpu.memory_space<vmem>>) attributes {dimension_semantics = [], scalar_prefetch = 0 : i64, scratch_operands = 0 : i64, tpu.core_type = #tpu.core_type<tc>} {
    %cst = arith.constant 0.000000e+00 : f32
    %0 = vector.broadcast %cst : f32 to vector<32x32xf32>
    %c0 = arith.constant 0 : index
    %c0_0 = arith.constant 0 : index
    %c0_1 = arith.constant 0 : index
    %1 = vector.load %arg1[%c0, %c0_0, %c0_1] : memref<9x32x32xbf16, #tpu.memory_space<vmem>>, vector<1x32x32xbf16>
    %2 = vector.shape_cast %1 : vector<1x32x32xbf16> to vector<32x32xbf16>
    %c0_2 = arith.constant 0 : index
    %c0_3 = arith.constant 0 : index
    %c0_4 = arith.constant 0 : index
    %3 = vector.load %arg0[%c0_2, %c0_3, %c0_4] : memref<9x32x32xbf16, #tpu.memory_space<vmem>>, vector<1x32x32xbf16>
    %4 = vector.shape_cast %3 : vector<1x32x32xbf16> to vector<32x32xbf16>
    %cst_5 = arith.constant dense<0.000000e+00> : vector<32x32xf32>
    %5 = tpu.matmul %2, %4, %cst_5 {dimension_numbers = #tpu.dot_dimension_numbers<[1], [0], [0], [1], [0, 0, 1, 1], [], []>} : vector<32x32xbf16>, vector<32x32xbf16>, vector<32x32xf32> -> vector<32x32xf32>
    %6 = arith.addf %0, %5 : vector<32x32xf32>
    %c1 = arith.constant 1 : index
    %c0_6 = arith.constant 0 : index
    %c0_7 = arith.constant 0 : index
    %7 = vector.load %arg1[%c1, %c0_6, %c0_7] : memref<9x32x32xbf16, #tpu.memory_space<vmem>>, vector<1x32x32xbf16>
    %8 = vector.shape_cast %7 : vector<1x32x32xbf16> to vector<32x32xbf16>
    %c1_8 = arith.constant 1 : index
    %c0_9 = arith.constant 0 : index
    %c0_10 = arith.constant 0 : index
    %9 = vector.load %arg0[%c1_8, %c0_9, %c0_10] : memref<9x32x32xbf16, #tpu.memory_space<vmem>>, vector<1x32x32xbf16>
    %10 = vector.shape_cast %9 : vector<1x32x32xbf16> to vector<32x32xbf16>
    %cst_11 = arith.constant dense<0.000000e+00> : vector<32x32xf32>
    %11 = tpu.matmul %8, %10, %cst_11 {dimension_numbers = #tpu.dot_dimension_numbers<[1], [0], [0], [1], [0, 0, 1, 1], [], []>} : vector<32x32xbf16>, vector<32x32xbf16>, vector<32x32xf32> -> vector<32x32xf32>
    %12 = arith.addf %6, %11 : vector<32x32xf32>
    %c2 = arith.constant 2 : index
    %c0_12 = arith.constant 0 : index
    %c0_13 = arith.constant 0 : index
    %13 = vector.load %arg1[%c2, %c0_12, %c0_13] : memref<9x32x32xbf16, #tpu.memory_space<vmem>>, vector<1x32x32xbf16>
    %14 = vector.shape_cast %13 : vector<1x32x32xbf16> to vector<32x32xbf16>
    %c2_14 = arith.constant 2 : index
    %c0_15 = arith.constant 0 : index
    %c0_16 = arith.constant 0 : index
    %15 = vector.load %arg0[%c2_14, %c0_15, %c0_16] : memref<9x32x32xbf16, #tpu.memory_space<vmem>>, vector<1x32x32xbf16>
    %16 = vector.shape_cast %15 : vector<1x32x32xbf16> to vector<32x32xbf16>
    %cst_17 = arith.constant dense<0.000000e+00> : vector<32x32xf32>
    %17 = tpu.matmul %14, %16, %cst_17 {dimension_numbers = #tpu.dot_dimension_numbers<[1], [0], [0], [1], [0, 0, 1, 1], [], []>} : vector<32x32xbf16>, vector<32x32xbf16>, vector<32x32xf32> -> vector<32x32xf32>
    %18 = arith.addf %12, %17 : vector<32x32xf32>
    %c3 = arith.constant 3 : index
    %c0_18 = arith.constant 0 : index
    %c0_19 = arith.constant 0 : index
    %19 = vector.load %arg1[%c3, %c0_18, %c0_19] : memref<9x32x32xbf16, #tpu.memory_space<vmem>>, vector<1x32x32xbf16>
    %20 = vector.shape_cast %19 : vector<1x32x32xbf16> to vector<32x32xbf16>
    %c3_20 = arith.constant 3 : index
    %c0_21 = arith.constant 0 : index
    %c0_22 = arith.constant 0 : index
    %21 = vector.load %arg0[%c3_20, %c0_21, %c0_22] : memref<9x32x32xbf16, #tpu.memory_space<vmem>>, vector<1x32x32xbf16>
    %22 = vector.shape_cast %21 : vector<1x32x32xbf16> to vector<32x32xbf16>
    %cst_23 = arith.constant dense<0.000000e+00> : vector<32x32xf32>
    %23 = tpu.matmul %20, %22, %cst_23 {dimension_numbers = #tpu.dot_dimension_numbers<[1], [0], [0], [1], [0, 0, 1, 1], [], []>} : vector<32x32xbf16>, vector<32x32xbf16>, vector<32x32xf32> -> vector<32x32xf32>
    %24 = arith.addf %18, %23 : vector<32x32xf32>
    %c4 = arith.constant 4 : index
    %c0_24 = arith.constant 0 : index
    %c0_25 = arith.constant 0 : index
    %25 = vector.load %arg1[%c4, %c0_24, %c0_25] : memref<9x32x32xbf16, #tpu.memory_space<vmem>>, vector<1x32x32xbf16>
    %26 = vector.shape_cast %25 : vector<1x32x32xbf16> to vector<32x32xbf16>
    %c4_26 = arith.constant 4 : index
    %c0_27 = arith.constant 0 : index
    %c0_28 = arith.constant 0 : index
    %27 = vector.load %arg0[%c4_26, %c0_27, %c0_28] : memref<9x32x32xbf16, #tpu.memory_space<vmem>>, vector<1x32x32xbf16>
    %28 = vector.shape_cast %27 : vector<1x32x32xbf16> to vector<32x32xbf16>
    %cst_29 = arith.constant dense<0.000000e+00> : vector<32x32xf32>
    %29 = tpu.matmul %26, %28, %cst_29 {dimension_numbers = #tpu.dot_dimension_numbers<[1], [0], [0], [1], [0, 0, 1, 1], [], []>} : vector<32x32xbf16>, vector<32x32xbf16>, vector<32x32xf32> -> vector<32x32xf32>
    %30 = arith.addf %24, %29 : vector<32x32xf32>
    %c5 = arith.constant 5 : index
    %c0_30 = arith.constant 0 : index
    %c0_31 = arith.constant 0 : index
    %31 = vector.load %arg1[%c5, %c0_30, %c0_31] : memref<9x32x32xbf16, #tpu.memory_space<vmem>>, vector<1x32x32xbf16>
    %32 = vector.shape_cast %31 : vector<1x32x32xbf16> to vector<32x32xbf16>
    %c5_32 = arith.constant 5 : index
    %c0_33 = arith.constant 0 : index
    %c0_34 = arith.constant 0 : index
    %33 = vector.load %arg0[%c5_32, %c0_33, %c0_34] : memref<9x32x32xbf16, #tpu.memory_space<vmem>>, vector<1x32x32xbf16>
    %34 = vector.shape_cast %33 : vector<1x32x32xbf16> to vector<32x32xbf16>
    %cst_35 = arith.constant dense<0.000000e+00> : vector<32x32xf32>
    %35 = tpu.matmul %32, %34, %cst_35 {dimension_numbers = #tpu.dot_dimension_numbers<[1], [0], [0], [1], [0, 0, 1, 1], [], []>} : vector<32x32xbf16>, vector<32x32xbf16>, vector<32x32xf32> -> vector<32x32xf32>
    %36 = arith.addf %30, %35 : vector<32x32xf32>
    %c6 = arith.constant 6 : index
    %c0_36 = arith.constant 0 : index
    %c0_37 = arith.constant 0 : index
    %37 = vector.load %arg1[%c6, %c0_36, %c0_37] : memref<9x32x32xbf16, #tpu.memory_space<vmem>>, vector<1x32x32xbf16>
    %38 = vector.shape_cast %37 : vector<1x32x32xbf16> to vector<32x32xbf16>
    %c6_38 = arith.constant 6 : index
    %c0_39 = arith.constant 0 : index
    %c0_40 = arith.constant 0 : index
    %39 = vector.load %arg0[%c6_38, %c0_39, %c0_40] : memref<9x32x32xbf16, #tpu.memory_space<vmem>>, vector<1x32x32xbf16>
    %40 = vector.shape_cast %39 : vector<1x32x32xbf16> to vector<32x32xbf16>
    %cst_41 = arith.constant dense<0.000000e+00> : vector<32x32xf32>
    %41 = tpu.matmul %38, %40, %cst_41 {dimension_numbers = #tpu.dot_dimension_numbers<[1], [0], [0], [1], [0, 0, 1, 1], [], []>} : vector<32x32xbf16>, vector<32x32xbf16>, vector<32x32xf32> -> vector<32x32xf32>
    %42 = arith.addf %36, %41 : vector<32x32xf32>
    %c7 = arith.constant 7 : index
    %c0_42 = arith.constant 0 : index
    %c0_43 = arith.constant 0 : index
    %43 = vector.load %arg1[%c7, %c0_42, %c0_43] : memref<9x32x32xbf16, #tpu.memory_space<vmem>>, vector<1x32x32xbf16>
    %44 = vector.shape_cast %43 : vector<1x32x32xbf16> to vector<32x32xbf16>
    %c7_44 = arith.constant 7 : index
    %c0_45 = arith.constant 0 : index
    %c0_46 = arith.constant 0 : index
    %45 = vector.load %arg0[%c7_44, %c0_45, %c0_46] : memref<9x32x32xbf16, #tpu.memory_space<vmem>>, vector<1x32x32xbf16>
    %46 = vector.shape_cast %45 : vector<1x32x32xbf16> to vector<32x32xbf16>
    %cst_47 = arith.constant dense<0.000000e+00> : vector<32x32xf32>
    %47 = tpu.matmul %44, %46, %cst_47 {dimension_numbers = #tpu.dot_dimension_numbers<[1], [0], [0], [1], [0, 0, 1, 1], [], []>} : vector<32x32xbf16>, vector<32x32xbf16>, vector<32x32xf32> -> vector<32x32xf32>
    %48 = arith.addf %42, %47 : vector<32x32xf32>
    %c8 = arith.constant 8 : index
    %c0_48 = arith.constant 0 : index
    %c0_49 = arith.constant 0 : index
    %49 = vector.load %arg1[%c8, %c0_48, %c0_49] : memref<9x32x32xbf16, #tpu.memory_space<vmem>>, vector<1x32x32xbf16>
    %50 = vector.shape_cast %49 : vector<1x32x32xbf16> to vector<32x32xbf16>
    %c8_50 = arith.constant 8 : index
    %c0_51 = arith.constant 0 : index
    %c0_52 = arith.constant 0 : index
    %51 = vector.load %arg0[%c8_50, %c0_51, %c0_52] : memref<9x32x32xbf16, #tpu.memory_space<vmem>>, vector<1x32x32xbf16>
    %52 = vector.shape_cast %51 : vector<1x32x32xbf16> to vector<32x32xbf16>
    %cst_53 = arith.constant dense<0.000000e+00> : vector<32x32xf32>
    %53 = tpu.matmul %50, %52, %cst_53 {dimension_numbers = #tpu.dot_dimension_numbers<[1], [0], [0], [1], [0, 0, 1, 1], [], []>} : vector<32x32xbf16>, vector<32x32xbf16>, vector<32x32xf32> -> vector<32x32xf32>
    %54 = arith.addf %48, %53 : vector<32x32xf32>
    %cst_54 = arith.constant dense<0.000000e+00> : vector<32xf32>
    %55 = vector.multi_reduction <add>, %54, %cst_54 [1] : vector<32x32xf32> to vector<32xf32>
    %56 = vector.shape_cast %55 : vector<32xf32> to vector<32x1xf32>
    %cst_55 = arith.constant 3.200000e+01 : f32
    %57 = vector.broadcast %cst_55 : f32 to vector<32x1xf32>
    %58 = arith.divf %56, %57 : vector<32x1xf32>
    %59 = vector.broadcast %58 : vector<32x1xf32> to vector<32x32xf32>
    %60 = arith.subf %54, %59 : vector<32x32xf32>
    %61 = arith.mulf %60, %60 : vector<32x32xf32>
    %cst_56 = arith.constant dense<0.000000e+00> : vector<32xf32>
    %62 = vector.multi_reduction <add>, %61, %cst_56 [1] : vector<32x32xf32> to vector<32xf32>
    %63 = vector.shape_cast %62 : vector<32xf32> to vector<32x1xf32>
    %cst_57 = arith.constant 3.200000e+01 : f32
    %64 = vector.broadcast %cst_57 : f32 to vector<32x1xf32>
    %65 = arith.divf %63, %64 : vector<32x1xf32>
    %c0_58 = arith.constant 0 : index
    %c0_59 = arith.constant 0 : index
    %66 = vector.load %arg2[%c0_58, %c0_59] : memref<32x1xf32, #tpu.memory_space<vmem>>, vector<32x1xf32>
    %cst_60 = arith.constant 9.99999974E-6 : f32
    %67 = vector.broadcast %cst_60 : f32 to vector<32x1xf32>
    %68 = arith.addf %65, %67 : vector<32x1xf32>
    %69 = math.rsqrt %68 : vector<32x1xf32>
    %70 = arith.mulf %66, %69 : vector<32x1xf32>
    %71 = vector.broadcast %70 : vector<32x1xf32> to vector<32x32xf32>
    %72 = arith.mulf %60, %71 : vector<32x32xf32>
    %c0_61 = arith.constant 0 : index
    %c0_62 = arith.constant 0 : index
    %73 = vector.load %arg3[%c0_61, %c0_62] : memref<32x1xf32, #tpu.memory_space<vmem>>, vector<32x1xf32>
    %74 = vector.broadcast %73 : vector<32x1xf32> to vector<32x32xf32>
    %75 = arith.addf %72, %74 : vector<32x32xf32>
    %cst_63 = arith.constant 0.000000e+00 : f32
    %76 = vector.broadcast %cst_63 : f32 to vector<32x32xf32>
    %77 = arith.maximumf %75, %76 : vector<32x32xf32>
    %c0_64 = arith.constant 0 : index
    %c0_65 = arith.constant 0 : index
    %78 = vector.load %arg4[%c0_64, %c0_65] : memref<32x32xf32, #tpu.memory_space<vmem>>, vector<32x32xf32>
    tpu.vector_store %arg4[%c0_64, %c0_65], %77 {strides = array<i32>} : memref<32x32xf32, #tpu.memory_space<vmem>>, vector<32x32xf32>,
    return
  }
}

module attributes {stable_mosaic.version = 11 : i64} {
  func.func @_fused_convT_kernel(%arg0: memref<4x32x32xbf16, #tpu.memory_space<vmem>>, %arg1: memref<9x16x32xbf16, #tpu.memory_space<vmem>>, %arg2: memref<16x1xf32, #tpu.memory_space<vmem>>, %arg3: memref<16x1xf32, #tpu.memory_space<vmem>>, %arg4: memref<4x16x32xf32, #tpu.memory_space<vmem>>) attributes {dimension_semantics = [], scalar_prefetch = 0 : i64, scratch_operands = 0 : i64, tpu.core_type = #tpu.core_type<tc>} {
    %c4 = arith.constant 4 : index
    %c0 = arith.constant 0 : index
    %c0_0 = arith.constant 0 : index
    %0 = vector.load %arg1[%c4, %c0, %c0_0] : memref<9x16x32xbf16, #tpu.memory_space<vmem>>, vector<1x16x32xbf16>
    %1 = vector.shape_cast %0 : vector<1x16x32xbf16> to vector<16x32xbf16>
    %c0_1 = arith.constant 0 : index
    %c0_2 = arith.constant 0 : index
    %c0_3 = arith.constant 0 : index
    %2 = vector.load %arg0[%c0_1, %c0_2, %c0_3] : memref<4x32x32xbf16, #tpu.memory_space<vmem>>, vector<1x32x32xbf16>
    %3 = vector.shape_cast %2 : vector<1x32x32xbf16> to vector<32x32xbf16>
    %cst = arith.constant dense<0.000000e+00> : vector<16x32xf32>
    %4 = tpu.matmul %1, %3, %cst {dimension_numbers = #tpu.dot_dimension_numbers<[1], [0], [0], [1], [0, 0, 1, 1], [], []>} : vector<16x32xbf16>, vector<32x32xbf16>, vector<16x32xf32> -> vector<16x32xf32>
    %c3 = arith.constant 3 : index
    %c0_4 = arith.constant 0 : index
    %c0_5 = arith.constant 0 : index
    %5 = vector.load %arg1[%c3, %c0_4, %c0_5] : memref<9x16x32xbf16, #tpu.memory_space<vmem>>, vector<1x16x32xbf16>
    %6 = vector.shape_cast %5 : vector<1x16x32xbf16> to vector<16x32xbf16>
    %c1 = arith.constant 1 : index
    %c0_6 = arith.constant 0 : index
    %c0_7 = arith.constant 0 : index
    %7 = vector.load %arg0[%c1, %c0_6, %c0_7] : memref<4x32x32xbf16, #tpu.memory_space<vmem>>, vector<1x32x32xbf16>
    %8 = vector.shape_cast %7 : vector<1x32x32xbf16> to vector<32x32xbf16>
    %cst_8 = arith.constant dense<0.000000e+00> : vector<16x32xf32>
    %9 = tpu.matmul %6, %8, %cst_8 {dimension_numbers = #tpu.dot_dimension_numbers<[1], [0], [0], [1], [0, 0, 1, 1], [], []>} : vector<16x32xbf16>, vector<32x32xbf16>, vector<16x32xf32> -> vector<16x32xf32>
    %c5 = arith.constant 5 : index
    %c0_9 = arith.constant 0 : index
    %c0_10 = arith.constant 0 : index
    %10 = vector.load %arg1[%c5, %c0_9, %c0_10] : memref<9x16x32xbf16, #tpu.memory_space<vmem>>, vector<1x16x32xbf16>
    %11 = vector.shape_cast %10 : vector<1x16x32xbf16> to vector<16x32xbf16>
    %c0_11 = arith.constant 0 : index
    %c0_12 = arith.constant 0 : index
    %c0_13 = arith.constant 0 : index
    %12 = vector.load %arg0[%c0_11, %c0_12, %c0_13] : memref<4x32x32xbf16, #tpu.memory_space<vmem>>, vector<1x32x32xbf16>
    %13 = vector.shape_cast %12 : vector<1x32x32xbf16> to vector<32x32xbf16>
    %cst_14 = arith.constant dense<0.000000e+00> : vector<16x32xf32>
    %14 = tpu.matmul %11, %13, %cst_14 {dimension_numbers = #tpu.dot_dimension_numbers<[1], [0], [0], [1], [0, 0, 1, 1], [], []>} : vector<16x32xbf16>, vector<32x32xbf16>, vector<16x32xf32> -> vector<16x32xf32>
    %15 = arith.addf %9, %14 : vector<16x32xf32>
    %c1_15 = arith.constant 1 : index
    %c0_16 = arith.constant 0 : index
    %c0_17 = arith.constant 0 : index
    %16 = vector.load %arg1[%c1_15, %c0_16, %c0_17] : memref<9x16x32xbf16, #tpu.memory_space<vmem>>, vector<1x16x32xbf16>
    %17 = vector.shape_cast %16 : vector<1x16x32xbf16> to vector<16x32xbf16>
    %c2 = arith.constant 2 : index
    %c0_18 = arith.constant 0 : index
    %c0_19 = arith.constant 0 : index
    %18 = vector.load %arg0[%c2, %c0_18, %c0_19] : memref<4x32x32xbf16, #tpu.memory_space<vmem>>, vector<1x32x32xbf16>
    %19 = vector.shape_cast %18 : vector<1x32x32xbf16> to vector<32x32xbf16>
    %cst_20 = arith.constant dense<0.000000e+00> : vector<16x32xf32>
    %20 = tpu.matmul %17, %19, %cst_20 {dimension_numbers = #tpu.dot_dimension_numbers<[1], [0], [0], [1], [0, 0, 1, 1], [], []>} : vector<16x32xbf16>, vector<32x32xbf16>, vector<16x32xf32> -> vector<16x32xf32>
    %c7 = arith.constant 7 : index
    %c0_21 = arith.constant 0 : index
    %c0_22 = arith.constant 0 : index
    %21 = vector.load %arg1[%c7, %c0_21, %c0_22] : memref<9x16x32xbf16, #tpu.memory_space<vmem>>, vector<1x16x32xbf16>
    %22 = vector.shape_cast %21 : vector<1x16x32xbf16> to vector<16x32xbf16>
    %c0_23 = arith.constant 0 : index
    %c0_24 = arith.constant 0 : index
    %c0_25 = arith.constant 0 : index
    %23 = vector.load %arg0[%c0_23, %c0_24, %c0_25] : memref<4x32x32xbf16, #tpu.memory_space<vmem>>, vector<1x32x32xbf16>
    %24 = vector.shape_cast %23 : vector<1x32x32xbf16> to vector<32x32xbf16>
    %cst_26 = arith.constant dense<0.000000e+00> : vector<16x32xf32>
    %25 = tpu.matmul %22, %24, %cst_26 {dimension_numbers = #tpu.dot_dimension_numbers<[1], [0], [0], [1], [0, 0, 1, 1], [], []>} : vector<16x32xbf16>, vector<32x32xbf16>, vector<16x32xf32> -> vector<16x32xf32>
    %26 = arith.addf %20, %25 : vector<16x32xf32>
    %c0_27 = arith.constant 0 : index
    %c0_28 = arith.constant 0 : index
    %c0_29 = arith.constant 0 : index
    %27 = vector.load %arg1[%c0_27, %c0_28, %c0_29] : memref<9x16x32xbf16, #tpu.memory_space<vmem>>, vector<1x16x32xbf16>
    %28 = vector.shape_cast %27 : vector<1x16x32xbf16> to vector<16x32xbf16>
    %c3_30 = arith.constant 3 : index
    %c0_31 = arith.constant 0 : index
    %c0_32 = arith.constant 0 : index
    %29 = vector.load %arg0[%c3_30, %c0_31, %c0_32] : memref<4x32x32xbf16, #tpu.memory_space<vmem>>, vector<1x32x32xbf16>
    %30 = vector.shape_cast %29 : vector<1x32x32xbf16> to vector<32x32xbf16>
    %cst_33 = arith.constant dense<0.000000e+00> : vector<16x32xf32>
    %31 = tpu.matmul %28, %30, %cst_33 {dimension_numbers = #tpu.dot_dimension_numbers<[1], [0], [0], [1], [0, 0, 1, 1], [], []>} : vector<16x32xbf16>, vector<32x32xbf16>, vector<16x32xf32> -> vector<16x32xf32>
    %c2_34 = arith.constant 2 : index
    %c0_35 = arith.constant 0 : index
    %c0_36 = arith.constant 0 : index
    %32 = vector.load %arg1[%c2_34, %c0_35, %c0_36] : memref<9x16x32xbf16, #tpu.memory_space<vmem>>, vector<1x16x32xbf16>
    %33 = vector.shape_cast %32 : vector<1x16x32xbf16> to vector<16x32xbf16>
    %c2_37 = arith.constant 2 : index
    %c0_38 = arith.constant 0 : index
    %c0_39 = arith.constant 0 : index
    %34 = vector.load %arg0[%c2_37, %c0_38, %c0_39] : memref<4x32x32xbf16, #tpu.memory_space<vmem>>, vector<1x32x32xbf16>
    %35 = vector.shape_cast %34 : vector<1x32x32xbf16> to vector<32x32xbf16>
    %cst_40 = arith.constant dense<0.000000e+00> : vector<16x32xf32>
    %36 = tpu.matmul %33, %35, %cst_40 {dimension_numbers = #tpu.dot_dimension_numbers<[1], [0], [0], [1], [0, 0, 1, 1], [], []>} : vector<16x32xbf16>, vector<32x32xbf16>, vector<16x32xf32> -> vector<16x32xf32>
    %37 = arith.addf %31, %36 : vector<16x32xf32>
    %c6 = arith.constant 6 : index
    %c0_41 = arith.constant 0 : index
    %c0_42 = arith.constant 0 : index
    %38 = vector.load %arg1[%c6, %c0_41, %c0_42] : memref<9x16x32xbf16, #tpu.memory_space<vmem>>, vector<1x16x32xbf16>
    %39 = vector.shape_cast %38 : vector<1x16x32xbf16> to vector<16x32xbf16>
    %c1_43 = arith.constant 1 : index
    %c0_44 = arith.constant 0 : index
    %c0_45 = arith.constant 0 : index
    %40 = vector.load %arg0[%c1_43, %c0_44, %c0_45] : memref<4x32x32xbf16, #tpu.memory_space<vmem>>, vector<1x32x32xbf16>
    %41 = vector.shape_cast %40 : vector<1x32x32xbf16> to vector<32x32xbf16>
    %cst_46 = arith.constant dense<0.000000e+00> : vector<16x32xf32>
    %42 = tpu.matmul %39, %41, %cst_46 {dimension_numbers = #tpu.dot_dimension_numbers<[1], [0], [0], [1], [0, 0, 1, 1], [], []>} : vector<16x32xbf16>, vector<32x32xbf16>, vector<16x32xf32> -> vector<16x32xf32>
    %43 = arith.addf %37, %42 : vector<16x32xf32>
    %c8 = arith.constant 8 : index
    %c0_47 = arith.constant 0 : index
    %c0_48 = arith.constant 0 : index
    %44 = vector.load %arg1[%c8, %c0_47, %c0_48] : memref<9x16x32xbf16, #tpu.memory_space<vmem>>, vector<1x16x32xbf16>
    %45 = vector.shape_cast %44 : vector<1x16x32xbf16> to vector<16x32xbf16>
    %c0_49 = arith.constant 0 : index
    %c0_50 = arith.constant 0 : index
    %c0_51 = arith.constant 0 : index
    %46 = vector.load %arg0[%c0_49, %c0_50, %c0_51] : memref<4x32x32xbf16, #tpu.memory_space<vmem>>, vector<1x32x32xbf16>
    %47 = vector.shape_cast %46 : vector<1x32x32xbf16> to vector<32x32xbf16>
    %cst_52 = arith.constant dense<0.000000e+00> : vector<16x32xf32>
    %48 = tpu.matmul %45, %47, %cst_52 {dimension_numbers = #tpu.dot_dimension_numbers<[1], [0], [0], [1], [0, 0, 1, 1], [], []>} : vector<16x32xbf16>, vector<32x32xbf16>, vector<16x32xf32> -> vector<16x32xf32>
    %49 = arith.addf %43, %48 : vector<16x32xf32>
    %50 = arith.addf %4, %15 : vector<16x32xf32>
    %51 = arith.addf %50, %26 : vector<16x32xf32>
    %52 = arith.addf %51, %49 : vector<16x32xf32>
    %cst_53 = arith.constant dense<0.000000e+00> : vector<16xf32>
    %53 = vector.multi_reduction <add>, %52, %cst_53 [1] : vector<16x32xf32> to vector<16xf32>
    %54 = vector.shape_cast %53 : vector<16xf32> to vector<16x1xf32>
    %cst_54 = arith.constant 1.280000e+02 : f32
    %55 = vector.broadcast %cst_54 : f32 to vector<16x1xf32>
    %56 = arith.divf %54, %55 : vector<16x1xf32>
    %57 = vector.broadcast %56 : vector<16x1xf32> to vector<16x32xf32>
    %58 = arith.subf %4, %57 : vector<16x32xf32>
    %59 = vector.broadcast %56 : vector<16x1xf32> to vector<16x32xf32>
    %60 = arith.subf %15, %59 : vector<16x32xf32>
    %61 = vector.broadcast %56 : vector<16x1xf32> to vector<16x32xf32>
    %62 = arith.subf %26, %61 : vector<16x32xf32>
    %63 = vector.broadcast %56 : vector<16x1xf32> to vector<16x32xf32>
    %64 = arith.subf %49, %63 : vector<16x32xf32>
    %65 = arith.mulf %58, %58 : vector<16x32xf32>
    %cst_55 = arith.constant dense<0.000000e+00> : vector<16xf32>
    %66 = vector.multi_reduction <add>, %65, %cst_55 [1] : vector<16x32xf32> to vector<16xf32>
    %67 = vector.shape_cast %66 : vector<16xf32> to vector<16x1xf32>
    %68 = arith.mulf %60, %60 : vector<16x32xf32>
    %cst_56 = arith.constant dense<0.000000e+00> : vector<16xf32>
    %69 = vector.multi_reduction <add>, %68, %cst_56 [1] : vector<16x32xf32> to vector<16xf32>
    %70 = vector.shape_cast %69 : vector<16xf32> to vector<16x1xf32>
    %71 = arith.addf %67, %70 : vector<16x1xf32>
    %72 = arith.mulf %62, %62 : vector<16x32xf32>
    %cst_57 = arith.constant dense<0.000000e+00> : vector<16xf32>
    %73 = vector.multi_reduction <add>, %72, %cst_57 [1] : vector<16x32xf32> to vector<16xf32>
    %74 = vector.shape_cast %73 : vector<16xf32> to vector<16x1xf32>
    %75 = arith.addf %71, %74 : vector<16x1xf32>
    %76 = arith.mulf %64, %64 : vector<16x32xf32>
    %cst_58 = arith.constant dense<0.000000e+00> : vector<16xf32>
    %77 = vector.multi_reduction <add>, %76, %cst_58 [1] : vector<16x32xf32> to vector<16xf32>
    %78 = vector.shape_cast %77 : vector<16xf32> to vector<16x1xf32>
    %79 = arith.addf %75, %78 : vector<16x1xf32>
    %cst_59 = arith.constant 1.280000e+02 : f32
    %80 = vector.broadcast %cst_59 : f32 to vector<16x1xf32>
    %81 = arith.divf %79, %80 : vector<16x1xf32>
    %c0_60 = arith.constant 0 : index
    %c0_61 = arith.constant 0 : index
    %82 = vector.load %arg2[%c0_60, %c0_61] : memref<16x1xf32, #tpu.memory_space<vmem>>, vector<16x1xf32>
    %cst_62 = arith.constant 9.99999974E-6 : f32
    %83 = vector.broadcast %cst_62 : f32 to vector<16x1xf32>
    %84 = arith.addf %81, %83 : vector<16x1xf32>
    %85 = math.rsqrt %84 : vector<16x1xf32>
    %86 = arith.mulf %82, %85 : vector<16x1xf32>
    %c0_63 = arith.constant 0 : index
    %c0_64 = arith.constant 0 : index
    %87 = vector.load %arg3[%c0_63, %c0_64] : memref<16x1xf32, #tpu.memory_space<vmem>>, vector<16x1xf32>
    %88 = vector.broadcast %86 : vector<16x1xf32> to vector<16x32xf32>
    %89 = arith.mulf %58, %88 : vector<16x32xf32>
    %90 = vector.broadcast %87 : vector<16x1xf32> to vector<16x32xf32>
    %91 = arith.addf %89, %90 : vector<16x32xf32>
    %cst_65 = arith.constant 0.000000e+00 : f32
    %92 = vector.broadcast %cst_65 : f32 to vector<16x32xf32>
    %93 = arith.maximumf %91, %92 : vector<16x32xf32>
    %c0_66 = arith.constant 0 : index
    %c0_67 = arith.constant 0 : index
    %c0_68 = arith.constant 0 : index
    %94 = vector.load %arg4[%c0_66, %c0_67, %c0_68] : memref<4x16x32xf32, #tpu.memory_space<vmem>>, vector<1x16x32xf32>
    %95 = vector.shape_cast %94 : vector<1x16x32xf32> to vector<16x32xf32>
    %96 = vector.shape_cast %93 : vector<16x32xf32> to vector<1x16x32xf32>
    tpu.vector_store %arg4[%c0_66, %c0_67, %c0_68], %96 {strides = array<i32>} : memref<4x16x32xf32, #tpu.memory_space<vmem>>, vector<1x16x32xf32>,
    %97 = vector.broadcast %86 : vector<16x1xf32> to vector<16x32xf32>
    %98 = arith.mulf %60, %97 : vector<16x32xf32>
    %99 = vector.broadcast %87 : vector<16x1xf32> to vector<16x32xf32>
    %100 = arith.addf %98, %99 : vector<16x32xf32>
    %cst_69 = arith.constant 0.000000e+00 : f32
    %101 = vector.broadcast %cst_69 : f32 to vector<16x32xf32>
    %102 = arith.maximumf %100, %101 : vector<16x32xf32>
    %c1_70 = arith.constant 1 : index
    %c0_71 = arith.constant 0 : index
    %c0_72 = arith.constant 0 : index
    %103 = vector.load %arg4[%c1_70, %c0_71, %c0_72] : memref<4x16x32xf32, #tpu.memory_space<vmem>>, vector<1x16x32xf32>
    %104 = vector.shape_cast %103 : vector<1x16x32xf32> to vector<16x32xf32>
    %105 = vector.shape_cast %102 : vector<16x32xf32> to vector<1x16x32xf32>
    tpu.vector_store %arg4[%c1_70, %c0_71, %c0_72], %105 {strides = array<i32>} : memref<4x16x32xf32, #tpu.memory_space<vmem>>, vector<1x16x32xf32>,
    %106 = vector.broadcast %86 : vector<16x1xf32> to vector<16x32xf32>
    %107 = arith.mulf %62, %106 : vector<16x32xf32>
    %108 = vector.broadcast %87 : vector<16x1xf32> to vector<16x32xf32>
    %109 = arith.addf %107, %108 : vector<16x32xf32>
    %cst_73 = arith.constant 0.000000e+00 : f32
    %110 = vector.broadcast %cst_73 : f32 to vector<16x32xf32>
    %111 = arith.maximumf %109, %110 : vector<16x32xf32>
    %c2_74 = arith.constant 2 : index
    %c0_75 = arith.constant 0 : index
    %c0_76 = arith.constant 0 : index
    %112 = vector.load %arg4[%c2_74, %c0_75, %c0_76] : memref<4x16x32xf32, #tpu.memory_space<vmem>>, vector<1x16x32xf32>
    %113 = vector.shape_cast %112 : vector<1x16x32xf32> to vector<16x32xf32>
    %114 = vector.shape_cast %111 : vector<16x32xf32> to vector<1x16x32xf32>
    tpu.vector_store %arg4[%c2_74, %c0_75, %c0_76], %114 {strides = array<i32>} : memref<4x16x32xf32, #tpu.memory_space<vmem>>, vector<1x16x32xf32>,
    %115 = vector.broadcast %86 : vector<16x1xf32> to vector<16x32xf32>
    %116 = arith.mulf %64, %115 : vector<16x32xf32>
    %117 = vector.broadcast %87 : vector<16x1xf32> to vector<16x32xf32>
    %118 = arith.addf %116, %117 : vector<16x32xf32>
    %cst_77 = arith.constant 0.000000e+00 : f32
    %119 = vector.broadcast %cst_77 : f32 to vector<16x32xf32>
    %120 = arith.maximumf %118, %119 : vector<16x32xf32>
    %c3_78 = arith.constant 3 : index
    %c0_79 = arith.constant 0 : index
    %c0_80 = arith.constant 0 : index
    %121 = vector.load %arg4[%c3_78, %c0_79, %c0_80] : memref<4x16x32xf32, #tpu.memory_space<vmem>>, vector<1x16x32xf32>
    %122 = vector.shape_cast %121 : vector<1x16x32xf32> to vector<16x32xf32>
    %123 = vector.shape_cast %120 : vector<16x32xf32> to vector<1x16x32xf32>
    tpu.vector_store %arg4[%c3_78, %c0_79, %c0_80], %123 {strides = array<i32>} : memref<4x16x32xf32, #tpu.memory_space<vmem>>, vector<1x16x32xf32>,
    return
  }
}

module attributes {stable_mosaic.version = 11 : i64} {
  func.func @_fused_convT_kernel(%arg0: memref<4x16x128xbf16, #tpu.memory_space<vmem>>, %arg1: memref<9x8x16xbf16, #tpu.memory_space<vmem>>, %arg2: memref<8x1xf32, #tpu.memory_space<vmem>>, %arg3: memref<8x1xf32, #tpu.memory_space<vmem>>, %arg4: memref<4x8x128xf32, #tpu.memory_space<vmem>>) attributes {dimension_semantics = [], scalar_prefetch = 0 : i64, scratch_operands = 0 : i64, tpu.core_type = #tpu.core_type<tc>} {
    %c4 = arith.constant 4 : index
    %c0 = arith.constant 0 : index
    %c0_0 = arith.constant 0 : index
    %0 = vector.load %arg1[%c4, %c0, %c0_0] : memref<9x8x16xbf16, #tpu.memory_space<vmem>>, vector<1x8x16xbf16>
    %1 = vector.shape_cast %0 : vector<1x8x16xbf16> to vector<8x16xbf16>
    %c0_1 = arith.constant 0 : index
    %c0_2 = arith.constant 0 : index
    %c0_3 = arith.constant 0 : index
    %2 = vector.load %arg0[%c0_1, %c0_2, %c0_3] : memref<4x16x128xbf16, #tpu.memory_space<vmem>>, vector<1x16x128xbf16>
    %3 = vector.shape_cast %2 : vector<1x16x128xbf16> to vector<16x128xbf16>
    %cst = arith.constant dense<0.000000e+00> : vector<8x128xf32>
    %4 = tpu.matmul %1, %3, %cst {dimension_numbers = #tpu.dot_dimension_numbers<[1], [0], [0], [1], [0, 0, 1, 1], [], []>} : vector<8x16xbf16>, vector<16x128xbf16>, vector<8x128xf32> -> vector<8x128xf32>
    %c3 = arith.constant 3 : index
    %c0_4 = arith.constant 0 : index
    %c0_5 = arith.constant 0 : index
    %5 = vector.load %arg1[%c3, %c0_4, %c0_5] : memref<9x8x16xbf16, #tpu.memory_space<vmem>>, vector<1x8x16xbf16>
    %6 = vector.shape_cast %5 : vector<1x8x16xbf16> to vector<8x16xbf16>
    %c1 = arith.constant 1 : index
    %c0_6 = arith.constant 0 : index
    %c0_7 = arith.constant 0 : index
    %7 = vector.load %arg0[%c1, %c0_6, %c0_7] : memref<4x16x128xbf16, #tpu.memory_space<vmem>>, vector<1x16x128xbf16>
    %8 = vector.shape_cast %7 : vector<1x16x128xbf16> to vector<16x128xbf16>
    %cst_8 = arith.constant dense<0.000000e+00> : vector<8x128xf32>
    %9 = tpu.matmul %6, %8, %cst_8 {dimension_numbers = #tpu.dot_dimension_numbers<[1], [0], [0], [1], [0, 0, 1, 1], [], []>} : vector<8x16xbf16>, vector<16x128xbf16>, vector<8x128xf32> -> vector<8x128xf32>
    %c5 = arith.constant 5 : index
    %c0_9 = arith.constant 0 : index
    %c0_10 = arith.constant 0 : index
    %10 = vector.load %arg1[%c5, %c0_9, %c0_10] : memref<9x8x16xbf16, #tpu.memory_space<vmem>>, vector<1x8x16xbf16>
    %11 = vector.shape_cast %10 : vector<1x8x16xbf16> to vector<8x16xbf16>
    %c0_11 = arith.constant 0 : index
    %c0_12 = arith.constant 0 : index
    %c0_13 = arith.constant 0 : index
    %12 = vector.load %arg0[%c0_11, %c0_12, %c0_13] : memref<4x16x128xbf16, #tpu.memory_space<vmem>>, vector<1x16x128xbf16>
    %13 = vector.shape_cast %12 : vector<1x16x128xbf16> to vector<16x128xbf16>
    %cst_14 = arith.constant dense<0.000000e+00> : vector<8x128xf32>
    %14 = tpu.matmul %11, %13, %cst_14 {dimension_numbers = #tpu.dot_dimension_numbers<[1], [0], [0], [1], [0, 0, 1, 1], [], []>} : vector<8x16xbf16>, vector<16x128xbf16>, vector<8x128xf32> -> vector<8x128xf32>
    %15 = arith.addf %9, %14 : vector<8x128xf32>
    %c1_15 = arith.constant 1 : index
    %c0_16 = arith.constant 0 : index
    %c0_17 = arith.constant 0 : index
    %16 = vector.load %arg1[%c1_15, %c0_16, %c0_17] : memref<9x8x16xbf16, #tpu.memory_space<vmem>>, vector<1x8x16xbf16>
    %17 = vector.shape_cast %16 : vector<1x8x16xbf16> to vector<8x16xbf16>
    %c2 = arith.constant 2 : index
    %c0_18 = arith.constant 0 : index
    %c0_19 = arith.constant 0 : index
    %18 = vector.load %arg0[%c2, %c0_18, %c0_19] : memref<4x16x128xbf16, #tpu.memory_space<vmem>>, vector<1x16x128xbf16>
    %19 = vector.shape_cast %18 : vector<1x16x128xbf16> to vector<16x128xbf16>
    %cst_20 = arith.constant dense<0.000000e+00> : vector<8x128xf32>
    %20 = tpu.matmul %17, %19, %cst_20 {dimension_numbers = #tpu.dot_dimension_numbers<[1], [0], [0], [1], [0, 0, 1, 1], [], []>} : vector<8x16xbf16>, vector<16x128xbf16>, vector<8x128xf32> -> vector<8x128xf32>
    %c7 = arith.constant 7 : index
    %c0_21 = arith.constant 0 : index
    %c0_22 = arith.constant 0 : index
    %21 = vector.load %arg1[%c7, %c0_21, %c0_22] : memref<9x8x16xbf16, #tpu.memory_space<vmem>>, vector<1x8x16xbf16>
    %22 = vector.shape_cast %21 : vector<1x8x16xbf16> to vector<8x16xbf16>
    %c0_23 = arith.constant 0 : index
    %c0_24 = arith.constant 0 : index
    %c0_25 = arith.constant 0 : index
    %23 = vector.load %arg0[%c0_23, %c0_24, %c0_25] : memref<4x16x128xbf16, #tpu.memory_space<vmem>>, vector<1x16x128xbf16>
    %24 = vector.shape_cast %23 : vector<1x16x128xbf16> to vector<16x128xbf16>
    %cst_26 = arith.constant dense<0.000000e+00> : vector<8x128xf32>
    %25 = tpu.matmul %22, %24, %cst_26 {dimension_numbers = #tpu.dot_dimension_numbers<[1], [0], [0], [1], [0, 0, 1, 1], [], []>} : vector<8x16xbf16>, vector<16x128xbf16>, vector<8x128xf32> -> vector<8x128xf32>
    %26 = arith.addf %20, %25 : vector<8x128xf32>
    %c0_27 = arith.constant 0 : index
    %c0_28 = arith.constant 0 : index
    %c0_29 = arith.constant 0 : index
    %27 = vector.load %arg1[%c0_27, %c0_28, %c0_29] : memref<9x8x16xbf16, #tpu.memory_space<vmem>>, vector<1x8x16xbf16>
    %28 = vector.shape_cast %27 : vector<1x8x16xbf16> to vector<8x16xbf16>
    %c3_30 = arith.constant 3 : index
    %c0_31 = arith.constant 0 : index
    %c0_32 = arith.constant 0 : index
    %29 = vector.load %arg0[%c3_30, %c0_31, %c0_32] : memref<4x16x128xbf16, #tpu.memory_space<vmem>>, vector<1x16x128xbf16>
    %30 = vector.shape_cast %29 : vector<1x16x128xbf16> to vector<16x128xbf16>
    %cst_33 = arith.constant dense<0.000000e+00> : vector<8x128xf32>
    %31 = tpu.matmul %28, %30, %cst_33 {dimension_numbers = #tpu.dot_dimension_numbers<[1], [0], [0], [1], [0, 0, 1, 1], [], []>} : vector<8x16xbf16>, vector<16x128xbf16>, vector<8x128xf32> -> vector<8x128xf32>
    %c2_34 = arith.constant 2 : index
    %c0_35 = arith.constant 0 : index
    %c0_36 = arith.constant 0 : index
    %32 = vector.load %arg1[%c2_34, %c0_35, %c0_36] : memref<9x8x16xbf16, #tpu.memory_space<vmem>>, vector<1x8x16xbf16>
    %33 = vector.shape_cast %32 : vector<1x8x16xbf16> to vector<8x16xbf16>
    %c2_37 = arith.constant 2 : index
    %c0_38 = arith.constant 0 : index
    %c0_39 = arith.constant 0 : index
    %34 = vector.load %arg0[%c2_37, %c0_38, %c0_39] : memref<4x16x128xbf16, #tpu.memory_space<vmem>>, vector<1x16x128xbf16>
    %35 = vector.shape_cast %34 : vector<1x16x128xbf16> to vector<16x128xbf16>
    %cst_40 = arith.constant dense<0.000000e+00> : vector<8x128xf32>
    %36 = tpu.matmul %33, %35, %cst_40 {dimension_numbers = #tpu.dot_dimension_numbers<[1], [0], [0], [1], [0, 0, 1, 1], [], []>} : vector<8x16xbf16>, vector<16x128xbf16>, vector<8x128xf32> -> vector<8x128xf32>
    %37 = arith.addf %31, %36 : vector<8x128xf32>
    %c6 = arith.constant 6 : index
    %c0_41 = arith.constant 0 : index
    %c0_42 = arith.constant 0 : index
    %38 = vector.load %arg1[%c6, %c0_41, %c0_42] : memref<9x8x16xbf16, #tpu.memory_space<vmem>>, vector<1x8x16xbf16>
    %39 = vector.shape_cast %38 : vector<1x8x16xbf16> to vector<8x16xbf16>
    %c1_43 = arith.constant 1 : index
    %c0_44 = arith.constant 0 : index
    %c0_45 = arith.constant 0 : index
    %40 = vector.load %arg0[%c1_43, %c0_44, %c0_45] : memref<4x16x128xbf16, #tpu.memory_space<vmem>>, vector<1x16x128xbf16>
    %41 = vector.shape_cast %40 : vector<1x16x128xbf16> to vector<16x128xbf16>
    %cst_46 = arith.constant dense<0.000000e+00> : vector<8x128xf32>
    %42 = tpu.matmul %39, %41, %cst_46 {dimension_numbers = #tpu.dot_dimension_numbers<[1], [0], [0], [1], [0, 0, 1, 1], [], []>} : vector<8x16xbf16>, vector<16x128xbf16>, vector<8x128xf32> -> vector<8x128xf32>
    %43 = arith.addf %37, %42 : vector<8x128xf32>
    %c8 = arith.constant 8 : index
    %c0_47 = arith.constant 0 : index
    %c0_48 = arith.constant 0 : index
    %44 = vector.load %arg1[%c8, %c0_47, %c0_48] : memref<9x8x16xbf16, #tpu.memory_space<vmem>>, vector<1x8x16xbf16>
    %45 = vector.shape_cast %44 : vector<1x8x16xbf16> to vector<8x16xbf16>
    %c0_49 = arith.constant 0 : index
    %c0_50 = arith.constant 0 : index
    %c0_51 = arith.constant 0 : index
    %46 = vector.load %arg0[%c0_49, %c0_50, %c0_51] : memref<4x16x128xbf16, #tpu.memory_space<vmem>>, vector<1x16x128xbf16>
    %47 = vector.shape_cast %46 : vector<1x16x128xbf16> to vector<16x128xbf16>
    %cst_52 = arith.constant dense<0.000000e+00> : vector<8x128xf32>
    %48 = tpu.matmul %45, %47, %cst_52 {dimension_numbers = #tpu.dot_dimension_numbers<[1], [0], [0], [1], [0, 0, 1, 1], [], []>} : vector<8x16xbf16>, vector<16x128xbf16>, vector<8x128xf32> -> vector<8x128xf32>
    %49 = arith.addf %43, %48 : vector<8x128xf32>
    %50 = arith.addf %4, %15 : vector<8x128xf32>
    %51 = arith.addf %50, %26 : vector<8x128xf32>
    %52 = arith.addf %51, %49 : vector<8x128xf32>
    %cst_53 = arith.constant dense<0.000000e+00> : vector<8xf32>
    %53 = vector.multi_reduction <add>, %52, %cst_53 [1] : vector<8x128xf32> to vector<8xf32>
    %54 = vector.shape_cast %53 : vector<8xf32> to vector<8x1xf32>
    %cst_54 = arith.constant 5.120000e+02 : f32
    %55 = vector.broadcast %cst_54 : f32 to vector<8x1xf32>
    %56 = arith.divf %54, %55 : vector<8x1xf32>
    %57 = vector.broadcast %56 : vector<8x1xf32> to vector<8x128xf32>
    %58 = arith.subf %4, %57 : vector<8x128xf32>
    %59 = vector.broadcast %56 : vector<8x1xf32> to vector<8x128xf32>
    %60 = arith.subf %15, %59 : vector<8x128xf32>
    %61 = vector.broadcast %56 : vector<8x1xf32> to vector<8x128xf32>
    %62 = arith.subf %26, %61 : vector<8x128xf32>
    %63 = vector.broadcast %56 : vector<8x1xf32> to vector<8x128xf32>
    %64 = arith.subf %49, %63 : vector<8x128xf32>
    %65 = arith.mulf %58, %58 : vector<8x128xf32>
    %cst_55 = arith.constant dense<0.000000e+00> : vector<8xf32>
    %66 = vector.multi_reduction <add>, %65, %cst_55 [1] : vector<8x128xf32> to vector<8xf32>
    %67 = vector.shape_cast %66 : vector<8xf32> to vector<8x1xf32>
    %68 = arith.mulf %60, %60 : vector<8x128xf32>
    %cst_56 = arith.constant dense<0.000000e+00> : vector<8xf32>
    %69 = vector.multi_reduction <add>, %68, %cst_56 [1] : vector<8x128xf32> to vector<8xf32>
    %70 = vector.shape_cast %69 : vector<8xf32> to vector<8x1xf32>
    %71 = arith.addf %67, %70 : vector<8x1xf32>
    %72 = arith.mulf %62, %62 : vector<8x128xf32>
    %cst_57 = arith.constant dense<0.000000e+00> : vector<8xf32>
    %73 = vector.multi_reduction <add>, %72, %cst_57 [1] : vector<8x128xf32> to vector<8xf32>
    %74 = vector.shape_cast %73 : vector<8xf32> to vector<8x1xf32>
    %75 = arith.addf %71, %74 : vector<8x1xf32>
    %76 = arith.mulf %64, %64 : vector<8x128xf32>
    %cst_58 = arith.constant dense<0.000000e+00> : vector<8xf32>
    %77 = vector.multi_reduction <add>, %76, %cst_58 [1] : vector<8x128xf32> to vector<8xf32>
    %78 = vector.shape_cast %77 : vector<8xf32> to vector<8x1xf32>
    %79 = arith.addf %75, %78 : vector<8x1xf32>
    %cst_59 = arith.constant 5.120000e+02 : f32
    %80 = vector.broadcast %cst_59 : f32 to vector<8x1xf32>
    %81 = arith.divf %79, %80 : vector<8x1xf32>
    %c0_60 = arith.constant 0 : index
    %c0_61 = arith.constant 0 : index
    %82 = vector.load %arg2[%c0_60, %c0_61] : memref<8x1xf32, #tpu.memory_space<vmem>>, vector<8x1xf32>
    %cst_62 = arith.constant 9.99999974E-6 : f32
    %83 = vector.broadcast %cst_62 : f32 to vector<8x1xf32>
    %84 = arith.addf %81, %83 : vector<8x1xf32>
    %85 = math.rsqrt %84 : vector<8x1xf32>
    %86 = arith.mulf %82, %85 : vector<8x1xf32>
    %c0_63 = arith.constant 0 : index
    %c0_64 = arith.constant 0 : index
    %87 = vector.load %arg3[%c0_63, %c0_64] : memref<8x1xf32, #tpu.memory_space<vmem>>, vector<8x1xf32>
    %88 = vector.broadcast %86 : vector<8x1xf32> to vector<8x128xf32>
    %89 = arith.mulf %58, %88 : vector<8x128xf32>
    %90 = vector.broadcast %87 : vector<8x1xf32> to vector<8x128xf32>
    %91 = arith.addf %89, %90 : vector<8x128xf32>
    %cst_65 = arith.constant 0.000000e+00 : f32
    %92 = vector.broadcast %cst_65 : f32 to vector<8x128xf32>
    %93 = arith.maximumf %91, %92 : vector<8x128xf32>
    %c0_66 = arith.constant 0 : index
    %c0_67 = arith.constant 0 : index
    %c0_68 = arith.constant 0 : index
    %94 = vector.load %arg4[%c0_66, %c0_67, %c0_68] : memref<4x8x128xf32, #tpu.memory_space<vmem>>, vector<1x8x128xf32>
    %95 = vector.shape_cast %94 : vector<1x8x128xf32> to vector<8x128xf32>
    %96 = vector.shape_cast %93 : vector<8x128xf32> to vector<1x8x128xf32>
    tpu.vector_store %arg4[%c0_66, %c0_67, %c0_68], %96 {strides = array<i32>} : memref<4x8x128xf32, #tpu.memory_space<vmem>>, vector<1x8x128xf32>,
    %97 = vector.broadcast %86 : vector<8x1xf32> to vector<8x128xf32>
    %98 = arith.mulf %60, %97 : vector<8x128xf32>
    %99 = vector.broadcast %87 : vector<8x1xf32> to vector<8x128xf32>
    %100 = arith.addf %98, %99 : vector<8x128xf32>
    %cst_69 = arith.constant 0.000000e+00 : f32
    %101 = vector.broadcast %cst_69 : f32 to vector<8x128xf32>
    %102 = arith.maximumf %100, %101 : vector<8x128xf32>
    %c1_70 = arith.constant 1 : index
    %c0_71 = arith.constant 0 : index
    %c0_72 = arith.constant 0 : index
    %103 = vector.load %arg4[%c1_70, %c0_71, %c0_72] : memref<4x8x128xf32, #tpu.memory_space<vmem>>, vector<1x8x128xf32>
    %104 = vector.shape_cast %103 : vector<1x8x128xf32> to vector<8x128xf32>
    %105 = vector.shape_cast %102 : vector<8x128xf32> to vector<1x8x128xf32>
    tpu.vector_store %arg4[%c1_70, %c0_71, %c0_72], %105 {strides = array<i32>} : memref<4x8x128xf32, #tpu.memory_space<vmem>>, vector<1x8x128xf32>,
    %106 = vector.broadcast %86 : vector<8x1xf32> to vector<8x128xf32>
    %107 = arith.mulf %62, %106 : vector<8x128xf32>
    %108 = vector.broadcast %87 : vector<8x1xf32> to vector<8x128xf32>
    %109 = arith.addf %107, %108 : vector<8x128xf32>
    %cst_73 = arith.constant 0.000000e+00 : f32
    %110 = vector.broadcast %cst_73 : f32 to vector<8x128xf32>
    %111 = arith.maximumf %109, %110 : vector<8x128xf32>
    %c2_74 = arith.constant 2 : index
    %c0_75 = arith.constant 0 : index
    %c0_76 = arith.constant 0 : index
    %112 = vector.load %arg4[%c2_74, %c0_75, %c0_76] : memref<4x8x128xf32, #tpu.memory_space<vmem>>, vector<1x8x128xf32>
    %113 = vector.shape_cast %112 : vector<1x8x128xf32> to vector<8x128xf32>
    %114 = vector.shape_cast %111 : vector<8x128xf32> to vector<1x8x128xf32>
    tpu.vector_store %arg4[%c2_74, %c0_75, %c0_76], %114 {strides = array<i32>} : memref<4x8x128xf32, #tpu.memory_space<vmem>>, vector<1x8x128xf32>,
    %115 = vector.broadcast %86 : vector<8x1xf32> to vector<8x128xf32>
    %116 = arith.mulf %64, %115 : vector<8x128xf32>
    %117 = vector.broadcast %87 : vector<8x1xf32> to vector<8x128xf32>
    %118 = arith.addf %116, %117 : vector<8x128xf32>
    %cst_77 = arith.constant 0.000000e+00 : f32
    %119 = vector.broadcast %cst_77 : f32 to vector<8x128xf32>
    %120 = arith.maximumf %118, %119 : vector<8x128xf32>
    %c3_78 = arith.constant 3 : index
    %c0_79 = arith.constant 0 : index
    %c0_80 = arith.constant 0 : index
    %121 = vector.load %arg4[%c3_78, %c0_79, %c0_80] : memref<4x8x128xf32, #tpu.memory_space<vmem>>, vector<1x8x128xf32>
    %122 = vector.shape_cast %121 : vector<1x8x128xf32> to vector<8x128xf32>
    %123 = vector.shape_cast %120 : vector<8x128xf32> to vector<1x8x128xf32>
    tpu.vector_store %arg4[%c3_78, %c0_79, %c0_80], %123 {strides = array<i32>} : memref<4x8x128xf32, #tpu.memory_space<vmem>>, vector<1x8x128xf32>,
    return
  }
}

module attributes {stable_mosaic.version = 11 : i64} {
  func.func @_fused_conv_kernel(%arg0: memref<49x8x512xbf16, #tpu.memory_space<vmem>>, %arg1: memref<49x3x8xbf16, #tpu.memory_space<vmem>>, %arg2: memref<3x1xf32, #tpu.memory_space<vmem>>, %arg3: memref<3x512xf32, #tpu.memory_space<vmem>>) attributes {dimension_semantics = [], scalar_prefetch = 0 : i64, scratch_operands = 0 : i64, tpu.core_type = #tpu.core_type<tc>} {
    %cst = arith.constant 0.000000e+00 : f32
    %0 = vector.broadcast %cst : f32 to vector<3x512xf32>
    %c0 = arith.constant 0 : index
    %c0_0 = arith.constant 0 : index
    %c0_1 = arith.constant 0 : index
    %1 = vector.load %arg1[%c0, %c0_0, %c0_1] : memref<49x3x8xbf16, #tpu.memory_space<vmem>>, vector<1x3x8xbf16>
    %2 = vector.shape_cast %1 : vector<1x3x8xbf16> to vector<3x8xbf16>
    %c0_2 = arith.constant 0 : index
    %c0_3 = arith.constant 0 : index
    %c0_4 = arith.constant 0 : index
    %3 = vector.load %arg0[%c0_2, %c0_3, %c0_4] : memref<49x8x512xbf16, #tpu.memory_space<vmem>>, vector<1x8x512xbf16>
    %4 = vector.shape_cast %3 : vector<1x8x512xbf16> to vector<8x512xbf16>
    %cst_5 = arith.constant dense<0.000000e+00> : vector<3x512xf32>
    %5 = tpu.matmul %2, %4, %cst_5 {dimension_numbers = #tpu.dot_dimension_numbers<[1], [0], [0], [1], [0, 0, 1, 1], [], []>} : vector<3x8xbf16>, vector<8x512xbf16>, vector<3x512xf32> -> vector<3x512xf32>
    %6 = arith.addf %0, %5 : vector<3x512xf32>
    %c1 = arith.constant 1 : index
    %c0_6 = arith.constant 0 : index
    %c0_7 = arith.constant 0 : index
    %7 = vector.load %arg1[%c1, %c0_6, %c0_7] : memref<49x3x8xbf16, #tpu.memory_space<vmem>>, vector<1x3x8xbf16>
    %8 = vector.shape_cast %7 : vector<1x3x8xbf16> to vector<3x8xbf16>
    %c1_8 = arith.constant 1 : index
    %c0_9 = arith.constant 0 : index
    %c0_10 = arith.constant 0 : index
    %9 = vector.load %arg0[%c1_8, %c0_9, %c0_10] : memref<49x8x512xbf16, #tpu.memory_space<vmem>>, vector<1x8x512xbf16>
    %10 = vector.shape_cast %9 : vector<1x8x512xbf16> to vector<8x512xbf16>
    %cst_11 = arith.constant dense<0.000000e+00> : vector<3x512xf32>
    %11 = tpu.matmul %8, %10, %cst_11 {dimension_numbers = #tpu.dot_dimension_numbers<[1], [0], [0], [1], [0, 0, 1, 1], [], []>} : vector<3x8xbf16>, vector<8x512xbf16>, vector<3x512xf32> -> vector<3x512xf32>
    %12 = arith.addf %6, %11 : vector<3x512xf32>
    %c2 = arith.constant 2 : index
    %c0_12 = arith.constant 0 : index
    %c0_13 = arith.constant 0 : index
    %13 = vector.load %arg1[%c2, %c0_12, %c0_13] : memref<49x3x8xbf16, #tpu.memory_space<vmem>>, vector<1x3x8xbf16>
    %14 = vector.shape_cast %13 : vector<1x3x8xbf16> to vector<3x8xbf16>
    %c2_14 = arith.constant 2 : index
    %c0_15 = arith.constant 0 : index
    %c0_16 = arith.constant 0 : index
    %15 = vector.load %arg0[%c2_14, %c0_15, %c0_16] : memref<49x8x512xbf16, #tpu.memory_space<vmem>>, vector<1x8x512xbf16>
    %16 = vector.shape_cast %15 : vector<1x8x512xbf16> to vector<8x512xbf16>
    %cst_17 = arith.constant dense<0.000000e+00> : vector<3x512xf32>
    %17 = tpu.matmul %14, %16, %cst_17 {dimension_numbers = #tpu.dot_dimension_numbers<[1], [0], [0], [1], [0, 0, 1, 1], [], []>} : vector<3x8xbf16>, vector<8x512xbf16>, vector<3x512xf32> -> vector<3x512xf32>
    %18 = arith.addf %12, %17 : vector<3x512xf32>
    %c3 = arith.constant 3 : index
    %c0_18 = arith.constant 0 : index
    %c0_19 = arith.constant 0 : index
    %19 = vector.load %arg1[%c3, %c0_18, %c0_19] : memref<49x3x8xbf16, #tpu.memory_space<vmem>>, vector<1x3x8xbf16>
    %20 = vector.shape_cast %19 : vector<1x3x8xbf16> to vector<3x8xbf16>
    %c3_20 = arith.constant 3 : index
    %c0_21 = arith.constant 0 : index
    %c0_22 = arith.constant 0 : index
    %21 = vector.load %arg0[%c3_20, %c0_21, %c0_22] : memref<49x8x512xbf16, #tpu.memory_space<vmem>>, vector<1x8x512xbf16>
    %22 = vector.shape_cast %21 : vector<1x8x512xbf16> to vector<8x512xbf16>
    %cst_23 = arith.constant dense<0.000000e+00> : vector<3x512xf32>
    %23 = tpu.matmul %20, %22, %cst_23 {dimension_numbers = #tpu.dot_dimension_numbers<[1], [0], [0], [1], [0, 0, 1, 1], [], []>} : vector<3x8xbf16>, vector<8x512xbf16>, vector<3x512xf32> -> vector<3x512xf32>
    %24 = arith.addf %18, %23 : vector<3x512xf32>
    %c4 = arith.constant 4 : index
    %c0_24 = arith.constant 0 : index
    %c0_25 = arith.constant 0 : index
    %25 = vector.load %arg1[%c4, %c0_24, %c0_25] : memref<49x3x8xbf16, #tpu.memory_space<vmem>>, vector<1x3x8xbf16>
    %26 = vector.shape_cast %25 : vector<1x3x8xbf16> to vector<3x8xbf16>
    %c4_26 = arith.constant 4 : index
    %c0_27 = arith.constant 0 : index
    %c0_28 = arith.constant 0 : index
    %27 = vector.load %arg0[%c4_26, %c0_27, %c0_28] : memref<49x8x512xbf16, #tpu.memory_space<vmem>>, vector<1x8x512xbf16>
    %28 = vector.shape_cast %27 : vector<1x8x512xbf16> to vector<8x512xbf16>
    %cst_29 = arith.constant dense<0.000000e+00> : vector<3x512xf32>
    %29 = tpu.matmul %26, %28, %cst_29 {dimension_numbers = #tpu.dot_dimension_numbers<[1], [0], [0], [1], [0, 0, 1, 1], [], []>} : vector<3x8xbf16>, vector<8x512xbf16>, vector<3x512xf32> -> vector<3x512xf32>
    %30 = arith.addf %24, %29 : vector<3x512xf32>
    %c5 = arith.constant 5 : index
    %c0_30 = arith.constant 0 : index
    %c0_31 = arith.constant 0 : index
    %31 = vector.load %arg1[%c5, %c0_30, %c0_31] : memref<49x3x8xbf16, #tpu.memory_space<vmem>>, vector<1x3x8xbf16>
    %32 = vector.shape_cast %31 : vector<1x3x8xbf16> to vector<3x8xbf16>
    %c5_32 = arith.constant 5 : index
    %c0_33 = arith.constant 0 : index
    %c0_34 = arith.constant 0 : index
    %33 = vector.load %arg0[%c5_32, %c0_33, %c0_34] : memref<49x8x512xbf16, #tpu.memory_space<vmem>>, vector<1x8x512xbf16>
    %34 = vector.shape_cast %33 : vector<1x8x512xbf16> to vector<8x512xbf16>
    %cst_35 = arith.constant dense<0.000000e+00> : vector<3x512xf32>
    %35 = tpu.matmul %32, %34, %cst_35 {dimension_numbers = #tpu.dot_dimension_numbers<[1], [0], [0], [1], [0, 0, 1, 1], [], []>} : vector<3x8xbf16>, vector<8x512xbf16>, vector<3x512xf32> -> vector<3x512xf32>
    %36 = arith.addf %30, %35 : vector<3x512xf32>
    %c6 = arith.constant 6 : index
    %c0_36 = arith.constant 0 : index
    %c0_37 = arith.constant 0 : index
    %37 = vector.load %arg1[%c6, %c0_36, %c0_37] : memref<49x3x8xbf16, #tpu.memory_space<vmem>>, vector<1x3x8xbf16>
    %38 = vector.shape_cast %37 : vector<1x3x8xbf16> to vector<3x8xbf16>
    %c6_38 = arith.constant 6 : index
    %c0_39 = arith.constant 0 : index
    %c0_40 = arith.constant 0 : index
    %39 = vector.load %arg0[%c6_38, %c0_39, %c0_40] : memref<49x8x512xbf16, #tpu.memory_space<vmem>>, vector<1x8x512xbf16>
    %40 = vector.shape_cast %39 : vector<1x8x512xbf16> to vector<8x512xbf16>
    %cst_41 = arith.constant dense<0.000000e+00> : vector<3x512xf32>
    %41 = tpu.matmul %38, %40, %cst_41 {dimension_numbers = #tpu.dot_dimension_numbers<[1], [0], [0], [1], [0, 0, 1, 1], [], []>} : vector<3x8xbf16>, vector<8x512xbf16>, vector<3x512xf32> -> vector<3x512xf32>
    %42 = arith.addf %36, %41 : vector<3x512xf32>
    %c7 = arith.constant 7 : index
    %c0_42 = arith.constant 0 : index
    %c0_43 = arith.constant 0 : index
    %43 = vector.load %arg1[%c7, %c0_42, %c0_43] : memref<49x3x8xbf16, #tpu.memory_space<vmem>>, vector<1x3x8xbf16>
    %44 = vector.shape_cast %43 : vector<1x3x8xbf16> to vector<3x8xbf16>
    %c7_44 = arith.constant 7 : index
    %c0_45 = arith.constant 0 : index
    %c0_46 = arith.constant 0 : index
    %45 = vector.load %arg0[%c7_44, %c0_45, %c0_46] : memref<49x8x512xbf16, #tpu.memory_space<vmem>>, vector<1x8x512xbf16>
    %46 = vector.shape_cast %45 : vector<1x8x512xbf16> to vector<8x512xbf16>
    %cst_47 = arith.constant dense<0.000000e+00> : vector<3x512xf32>
    %47 = tpu.matmul %44, %46, %cst_47 {dimension_numbers = #tpu.dot_dimension_numbers<[1], [0], [0], [1], [0, 0, 1, 1], [], []>} : vector<3x8xbf16>, vector<8x512xbf16>, vector<3x512xf32> -> vector<3x512xf32>
    %48 = arith.addf %42, %47 : vector<3x512xf32>
    %c8 = arith.constant 8 : index
    %c0_48 = arith.constant 0 : index
    %c0_49 = arith.constant 0 : index
    %49 = vector.load %arg1[%c8, %c0_48, %c0_49] : memref<49x3x8xbf16, #tpu.memory_space<vmem>>, vector<1x3x8xbf16>
    %50 = vector.shape_cast %49 : vector<1x3x8xbf16> to vector<3x8xbf16>
    %c8_50 = arith.constant 8 : index
    %c0_51 = arith.constant 0 : index
    %c0_52 = arith.constant 0 : index
    %51 = vector.load %arg0[%c8_50, %c0_51, %c0_52] : memref<49x8x512xbf16, #tpu.memory_space<vmem>>, vector<1x8x512xbf16>
    %52 = vector.shape_cast %51 : vector<1x8x512xbf16> to vector<8x512xbf16>
    %cst_53 = arith.constant dense<0.000000e+00> : vector<3x512xf32>
    %53 = tpu.matmul %50, %52, %cst_53 {dimension_numbers = #tpu.dot_dimension_numbers<[1], [0], [0], [1], [0, 0, 1, 1], [], []>} : vector<3x8xbf16>, vector<8x512xbf16>, vector<3x512xf32> -> vector<3x512xf32>
    %54 = arith.addf %48, %53 : vector<3x512xf32>
    %c9 = arith.constant 9 : index
    %c0_54 = arith.constant 0 : index
    %c0_55 = arith.constant 0 : index
    %55 = vector.load %arg1[%c9, %c0_54, %c0_55] : memref<49x3x8xbf16, #tpu.memory_space<vmem>>, vector<1x3x8xbf16>
    %56 = vector.shape_cast %55 : vector<1x3x8xbf16> to vector<3x8xbf16>
    %c9_56 = arith.constant 9 : index
    %c0_57 = arith.constant 0 : index
    %c0_58 = arith.constant 0 : index
    %57 = vector.load %arg0[%c9_56, %c0_57, %c0_58] : memref<49x8x512xbf16, #tpu.memory_space<vmem>>, vector<1x8x512xbf16>
    %58 = vector.shape_cast %57 : vector<1x8x512xbf16> to vector<8x512xbf16>
    %cst_59 = arith.constant dense<0.000000e+00> : vector<3x512xf32>
    %59 = tpu.matmul %56, %58, %cst_59 {dimension_numbers = #tpu.dot_dimension_numbers<[1], [0], [0], [1], [0, 0, 1, 1], [], []>} : vector<3x8xbf16>, vector<8x512xbf16>, vector<3x512xf32> -> vector<3x512xf32>
    %60 = arith.addf %54, %59 : vector<3x512xf32>
    %c10 = arith.constant 10 : index
    %c0_60 = arith.constant 0 : index
    %c0_61 = arith.constant 0 : index
    %61 = vector.load %arg1[%c10, %c0_60, %c0_61] : memref<49x3x8xbf16, #tpu.memory_space<vmem>>, vector<1x3x8xbf16>
    %62 = vector.shape_cast %61 : vector<1x3x8xbf16> to vector<3x8xbf16>
    %c10_62 = arith.constant 10 : index
    %c0_63 = arith.constant 0 : index
    %c0_64 = arith.constant 0 : index
    %63 = vector.load %arg0[%c10_62, %c0_63, %c0_64] : memref<49x8x512xbf16, #tpu.memory_space<vmem>>, vector<1x8x512xbf16>
    %64 = vector.shape_cast %63 : vector<1x8x512xbf16> to vector<8x512xbf16>
    %cst_65 = arith.constant dense<0.000000e+00> : vector<3x512xf32>
    %65 = tpu.matmul %62, %64, %cst_65 {dimension_numbers = #tpu.dot_dimension_numbers<[1], [0], [0], [1], [0, 0, 1, 1], [], []>} : vector<3x8xbf16>, vector<8x512xbf16>, vector<3x512xf32> -> vector<3x512xf32>
    %66 = arith.addf %60, %65 : vector<3x512xf32>
    %c11 = arith.constant 11 : index
    %c0_66 = arith.constant 0 : index
    %c0_67 = arith.constant 0 : index
    %67 = vector.load %arg1[%c11, %c0_66, %c0_67] : memref<49x3x8xbf16, #tpu.memory_space<vmem>>, vector<1x3x8xbf16>
    %68 = vector.shape_cast %67 : vector<1x3x8xbf16> to vector<3x8xbf16>
    %c11_68 = arith.constant 11 : index
    %c0_69 = arith.constant 0 : index
    %c0_70 = arith.constant 0 : index
    %69 = vector.load %arg0[%c11_68, %c0_69, %c0_70] : memref<49x8x512xbf16, #tpu.memory_space<vmem>>, vector<1x8x512xbf16>
    %70 = vector.shape_cast %69 : vector<1x8x512xbf16> to vector<8x512xbf16>
    %cst_71 = arith.constant dense<0.000000e+00> : vector<3x512xf32>
    %71 = tpu.matmul %68, %70, %cst_71 {dimension_numbers = #tpu.dot_dimension_numbers<[1], [0], [0], [1], [0, 0, 1, 1], [], []>} : vector<3x8xbf16>, vector<8x512xbf16>, vector<3x512xf32> -> vector<3x512xf32>
    %72 = arith.addf %66, %71 : vector<3x512xf32>
    %c12 = arith.constant 12 : index
    %c0_72 = arith.constant 0 : index
    %c0_73 = arith.constant 0 : index
    %73 = vector.load %arg1[%c12, %c0_72, %c0_73] : memref<49x3x8xbf16, #tpu.memory_space<vmem>>, vector<1x3x8xbf16>
    %74 = vector.shape_cast %73 : vector<1x3x8xbf16> to vector<3x8xbf16>
    %c12_74 = arith.constant 12 : index
    %c0_75 = arith.constant 0 : index
    %c0_76 = arith.constant 0 : index
    %75 = vector.load %arg0[%c12_74, %c0_75, %c0_76] : memref<49x8x512xbf16, #tpu.memory_space<vmem>>, vector<1x8x512xbf16>
    %76 = vector.shape_cast %75 : vector<1x8x512xbf16> to vector<8x512xbf16>
    %cst_77 = arith.constant dense<0.000000e+00> : vector<3x512xf32>
    %77 = tpu.matmul %74, %76, %cst_77 {dimension_numbers = #tpu.dot_dimension_numbers<[1], [0], [0], [1], [0, 0, 1, 1], [], []>} : vector<3x8xbf16>, vector<8x512xbf16>, vector<3x512xf32> -> vector<3x512xf32>
    %78 = arith.addf %72, %77 : vector<3x512xf32>
    %c13 = arith.constant 13 : index
    %c0_78 = arith.constant 0 : index
    %c0_79 = arith.constant 0 : index
    %79 = vector.load %arg1[%c13, %c0_78, %c0_79] : memref<49x3x8xbf16, #tpu.memory_space<vmem>>, vector<1x3x8xbf16>
    %80 = vector.shape_cast %79 : vector<1x3x8xbf16> to vector<3x8xbf16>
    %c13_80 = arith.constant 13 : index
    %c0_81 = arith.constant 0 : index
    %c0_82 = arith.constant 0 : index
    %81 = vector.load %arg0[%c13_80, %c0_81, %c0_82] : memref<49x8x512xbf16, #tpu.memory_space<vmem>>, vector<1x8x512xbf16>
    %82 = vector.shape_cast %81 : vector<1x8x512xbf16> to vector<8x512xbf16>
    %cst_83 = arith.constant dense<0.000000e+00> : vector<3x512xf32>
    %83 = tpu.matmul %80, %82, %cst_83 {dimension_numbers = #tpu.dot_dimension_numbers<[1], [0], [0], [1], [0, 0, 1, 1], [], []>} : vector<3x8xbf16>, vector<8x512xbf16>, vector<3x512xf32> -> vector<3x512xf32>
    %84 = arith.addf %78, %83 : vector<3x512xf32>
    %c14 = arith.constant 14 : index
    %c0_84 = arith.constant 0 : index
    %c0_85 = arith.constant 0 : index
    %85 = vector.load %arg1[%c14, %c0_84, %c0_85] : memref<49x3x8xbf16, #tpu.memory_space<vmem>>, vector<1x3x8xbf16>
    %86 = vector.shape_cast %85 : vector<1x3x8xbf16> to vector<3x8xbf16>
    %c14_86 = arith.constant 14 : index
    %c0_87 = arith.constant 0 : index
    %c0_88 = arith.constant 0 : index
    %87 = vector.load %arg0[%c14_86, %c0_87, %c0_88] : memref<49x8x512xbf16, #tpu.memory_space<vmem>>, vector<1x8x512xbf16>
    %88 = vector.shape_cast %87 : vector<1x8x512xbf16> to vector<8x512xbf16>
    %cst_89 = arith.constant dense<0.000000e+00> : vector<3x512xf32>
    %89 = tpu.matmul %86, %88, %cst_89 {dimension_numbers = #tpu.dot_dimension_numbers<[1], [0], [0], [1], [0, 0, 1, 1], [], []>} : vector<3x8xbf16>, vector<8x512xbf16>, vector<3x512xf32> -> vector<3x512xf32>
    %90 = arith.addf %84, %89 : vector<3x512xf32>
    %c15 = arith.constant 15 : index
    %c0_90 = arith.constant 0 : index
    %c0_91 = arith.constant 0 : index
    %91 = vector.load %arg1[%c15, %c0_90, %c0_91] : memref<49x3x8xbf16, #tpu.memory_space<vmem>>, vector<1x3x8xbf16>
    %92 = vector.shape_cast %91 : vector<1x3x8xbf16> to vector<3x8xbf16>
    %c15_92 = arith.constant 15 : index
    %c0_93 = arith.constant 0 : index
    %c0_94 = arith.constant 0 : index
    %93 = vector.load %arg0[%c15_92, %c0_93, %c0_94] : memref<49x8x512xbf16, #tpu.memory_space<vmem>>, vector<1x8x512xbf16>
    %94 = vector.shape_cast %93 : vector<1x8x512xbf16> to vector<8x512xbf16>
    %cst_95 = arith.constant dense<0.000000e+00> : vector<3x512xf32>
    %95 = tpu.matmul %92, %94, %cst_95 {dimension_numbers = #tpu.dot_dimension_numbers<[1], [0], [0], [1], [0, 0, 1, 1], [], []>} : vector<3x8xbf16>, vector<8x512xbf16>, vector<3x512xf32> -> vector<3x512xf32>
    %96 = arith.addf %90, %95 : vector<3x512xf32>
    %c16 = arith.constant 16 : index
    %c0_96 = arith.constant 0 : index
    %c0_97 = arith.constant 0 : index
    %97 = vector.load %arg1[%c16, %c0_96, %c0_97] : memref<49x3x8xbf16, #tpu.memory_space<vmem>>, vector<1x3x8xbf16>
    %98 = vector.shape_cast %97 : vector<1x3x8xbf16> to vector<3x8xbf16>
    %c16_98 = arith.constant 16 : index
    %c0_99 = arith.constant 0 : index
    %c0_100 = arith.constant 0 : index
    %99 = vector.load %arg0[%c16_98, %c0_99, %c0_100] : memref<49x8x512xbf16, #tpu.memory_space<vmem>>, vector<1x8x512xbf16>
    %100 = vector.shape_cast %99 : vector<1x8x512xbf16> to vector<8x512xbf16>
    %cst_101 = arith.constant dense<0.000000e+00> : vector<3x512xf32>
    %101 = tpu.matmul %98, %100, %cst_101 {dimension_numbers = #tpu.dot_dimension_numbers<[1], [0], [0], [1], [0, 0, 1, 1], [], []>} : vector<3x8xbf16>, vector<8x512xbf16>, vector<3x512xf32> -> vector<3x512xf32>
    %102 = arith.addf %96, %101 : vector<3x512xf32>
    %c17 = arith.constant 17 : index
    %c0_102 = arith.constant 0 : index
    %c0_103 = arith.constant 0 : index
    %103 = vector.load %arg1[%c17, %c0_102, %c0_103] : memref<49x3x8xbf16, #tpu.memory_space<vmem>>, vector<1x3x8xbf16>
    %104 = vector.shape_cast %103 : vector<1x3x8xbf16> to vector<3x8xbf16>
    %c17_104 = arith.constant 17 : index
    %c0_105 = arith.constant 0 : index
    %c0_106 = arith.constant 0 : index
    %105 = vector.load %arg0[%c17_104, %c0_105, %c0_106] : memref<49x8x512xbf16, #tpu.memory_space<vmem>>, vector<1x8x512xbf16>
    %106 = vector.shape_cast %105 : vector<1x8x512xbf16> to vector<8x512xbf16>
    %cst_107 = arith.constant dense<0.000000e+00> : vector<3x512xf32>
    %107 = tpu.matmul %104, %106, %cst_107 {dimension_numbers = #tpu.dot_dimension_numbers<[1], [0], [0], [1], [0, 0, 1, 1], [], []>} : vector<3x8xbf16>, vector<8x512xbf16>, vector<3x512xf32> -> vector<3x512xf32>
    %108 = arith.addf %102, %107 : vector<3x512xf32>
    %c18 = arith.constant 18 : index
    %c0_108 = arith.constant 0 : index
    %c0_109 = arith.constant 0 : index
    %109 = vector.load %arg1[%c18, %c0_108, %c0_109] : memref<49x3x8xbf16, #tpu.memory_space<vmem>>, vector<1x3x8xbf16>
    %110 = vector.shape_cast %109 : vector<1x3x8xbf16> to vector<3x8xbf16>
    %c18_110 = arith.constant 18 : index
    %c0_111 = arith.constant 0 : index
    %c0_112 = arith.constant 0 : index
    %111 = vector.load %arg0[%c18_110, %c0_111, %c0_112] : memref<49x8x512xbf16, #tpu.memory_space<vmem>>, vector<1x8x512xbf16>
    %112 = vector.shape_cast %111 : vector<1x8x512xbf16> to vector<8x512xbf16>
    %cst_113 = arith.constant dense<0.000000e+00> : vector<3x512xf32>
    %113 = tpu.matmul %110, %112, %cst_113 {dimension_numbers = #tpu.dot_dimension_numbers<[1], [0], [0], [1], [0, 0, 1, 1], [], []>} : vector<3x8xbf16>, vector<8x512xbf16>, vector<3x512xf32> -> vector<3x512xf32>
    %114 = arith.addf %108, %113 : vector<3x512xf32>
    %c19 = arith.constant 19 : index
    %c0_114 = arith.constant 0 : index
    %c0_115 = arith.constant 0 : index
    %115 = vector.load %arg1[%c19, %c0_114, %c0_115] : memref<49x3x8xbf16, #tpu.memory_space<vmem>>, vector<1x3x8xbf16>
    %116 = vector.shape_cast %115 : vector<1x3x8xbf16> to vector<3x8xbf16>
    %c19_116 = arith.constant 19 : index
    %c0_117 = arith.constant 0 : index
    %c0_118 = arith.constant 0 : index
    %117 = vector.load %arg0[%c19_116, %c0_117, %c0_118] : memref<49x8x512xbf16, #tpu.memory_space<vmem>>, vector<1x8x512xbf16>
    %118 = vector.shape_cast %117 : vector<1x8x512xbf16> to vector<8x512xbf16>
    %cst_119 = arith.constant dense<0.000000e+00> : vector<3x512xf32>
    %119 = tpu.matmul %116, %118, %cst_119 {dimension_numbers = #tpu.dot_dimension_numbers<[1], [0], [0], [1], [0, 0, 1, 1], [], []>} : vector<3x8xbf16>, vector<8x512xbf16>, vector<3x512xf32> -> vector<3x512xf32>
    %120 = arith.addf %114, %119 : vector<3x512xf32>
    %c20 = arith.constant 20 : index
    %c0_120 = arith.constant 0 : index
    %c0_121 = arith.constant 0 : index
    %121 = vector.load %arg1[%c20, %c0_120, %c0_121] : memref<49x3x8xbf16, #tpu.memory_space<vmem>>, vector<1x3x8xbf16>
    %122 = vector.shape_cast %121 : vector<1x3x8xbf16> to vector<3x8xbf16>
    %c20_122 = arith.constant 20 : index
    %c0_123 = arith.constant 0 : index
    %c0_124 = arith.constant 0 : index
    %123 = vector.load %arg0[%c20_122, %c0_123, %c0_124] : memref<49x8x512xbf16, #tpu.memory_space<vmem>>, vector<1x8x512xbf16>
    %124 = vector.shape_cast %123 : vector<1x8x512xbf16> to vector<8x512xbf16>
    %cst_125 = arith.constant dense<0.000000e+00> : vector<3x512xf32>
    %125 = tpu.matmul %122, %124, %cst_125 {dimension_numbers = #tpu.dot_dimension_numbers<[1], [0], [0], [1], [0, 0, 1, 1], [], []>} : vector<3x8xbf16>, vector<8x512xbf16>, vector<3x512xf32> -> vector<3x512xf32>
    %126 = arith.addf %120, %125 : vector<3x512xf32>
    %c21 = arith.constant 21 : index
    %c0_126 = arith.constant 0 : index
    %c0_127 = arith.constant 0 : index
    %127 = vector.load %arg1[%c21, %c0_126, %c0_127] : memref<49x3x8xbf16, #tpu.memory_space<vmem>>, vector<1x3x8xbf16>
    %128 = vector.shape_cast %127 : vector<1x3x8xbf16> to vector<3x8xbf16>
    %c21_128 = arith.constant 21 : index
    %c0_129 = arith.constant 0 : index
    %c0_130 = arith.constant 0 : index
    %129 = vector.load %arg0[%c21_128, %c0_129, %c0_130] : memref<49x8x512xbf16, #tpu.memory_space<vmem>>, vector<1x8x512xbf16>
    %130 = vector.shape_cast %129 : vector<1x8x512xbf16> to vector<8x512xbf16>
    %cst_131 = arith.constant dense<0.000000e+00> : vector<3x512xf32>
    %131 = tpu.matmul %128, %130, %cst_131 {dimension_numbers = #tpu.dot_dimension_numbers<[1], [0], [0], [1], [0, 0, 1, 1], [], []>} : vector<3x8xbf16>, vector<8x512xbf16>, vector<3x512xf32> -> vector<3x512xf32>
    %132 = arith.addf %126, %131 : vector<3x512xf32>
    %c22 = arith.constant 22 : index
    %c0_132 = arith.constant 0 : index
    %c0_133 = arith.constant 0 : index
    %133 = vector.load %arg1[%c22, %c0_132, %c0_133] : memref<49x3x8xbf16, #tpu.memory_space<vmem>>, vector<1x3x8xbf16>
    %134 = vector.shape_cast %133 : vector<1x3x8xbf16> to vector<3x8xbf16>
    %c22_134 = arith.constant 22 : index
    %c0_135 = arith.constant 0 : index
    %c0_136 = arith.constant 0 : index
    %135 = vector.load %arg0[%c22_134, %c0_135, %c0_136] : memref<49x8x512xbf16, #tpu.memory_space<vmem>>, vector<1x8x512xbf16>
    %136 = vector.shape_cast %135 : vector<1x8x512xbf16> to vector<8x512xbf16>
    %cst_137 = arith.constant dense<0.000000e+00> : vector<3x512xf32>
    %137 = tpu.matmul %134, %136, %cst_137 {dimension_numbers = #tpu.dot_dimension_numbers<[1], [0], [0], [1], [0, 0, 1, 1], [], []>} : vector<3x8xbf16>, vector<8x512xbf16>, vector<3x512xf32> -> vector<3x512xf32>
    %138 = arith.addf %132, %137 : vector<3x512xf32>
    %c23 = arith.constant 23 : index
    %c0_138 = arith.constant 0 : index
    %c0_139 = arith.constant 0 : index
    %139 = vector.load %arg1[%c23, %c0_138, %c0_139] : memref<49x3x8xbf16, #tpu.memory_space<vmem>>, vector<1x3x8xbf16>
    %140 = vector.shape_cast %139 : vector<1x3x8xbf16> to vector<3x8xbf16>
    %c23_140 = arith.constant 23 : index
    %c0_141 = arith.constant 0 : index
    %c0_142 = arith.constant 0 : index
    %141 = vector.load %arg0[%c23_140, %c0_141, %c0_142] : memref<49x8x512xbf16, #tpu.memory_space<vmem>>, vector<1x8x512xbf16>
    %142 = vector.shape_cast %141 : vector<1x8x512xbf16> to vector<8x512xbf16>
    %cst_143 = arith.constant dense<0.000000e+00> : vector<3x512xf32>
    %143 = tpu.matmul %140, %142, %cst_143 {dimension_numbers = #tpu.dot_dimension_numbers<[1], [0], [0], [1], [0, 0, 1, 1], [], []>} : vector<3x8xbf16>, vector<8x512xbf16>, vector<3x512xf32> -> vector<3x512xf32>
    %144 = arith.addf %138, %143 : vector<3x512xf32>
    %c24 = arith.constant 24 : index
    %c0_144 = arith.constant 0 : index
    %c0_145 = arith.constant 0 : index
    %145 = vector.load %arg1[%c24, %c0_144, %c0_145] : memref<49x3x8xbf16, #tpu.memory_space<vmem>>, vector<1x3x8xbf16>
    %146 = vector.shape_cast %145 : vector<1x3x8xbf16> to vector<3x8xbf16>
    %c24_146 = arith.constant 24 : index
    %c0_147 = arith.constant 0 : index
    %c0_148 = arith.constant 0 : index
    %147 = vector.load %arg0[%c24_146, %c0_147, %c0_148] : memref<49x8x512xbf16, #tpu.memory_space<vmem>>, vector<1x8x512xbf16>
    %148 = vector.shape_cast %147 : vector<1x8x512xbf16> to vector<8x512xbf16>
    %cst_149 = arith.constant dense<0.000000e+00> : vector<3x512xf32>
    %149 = tpu.matmul %146, %148, %cst_149 {dimension_numbers = #tpu.dot_dimension_numbers<[1], [0], [0], [1], [0, 0, 1, 1], [], []>} : vector<3x8xbf16>, vector<8x512xbf16>, vector<3x512xf32> -> vector<3x512xf32>
    %150 = arith.addf %144, %149 : vector<3x512xf32>
    %c25 = arith.constant 25 : index
    %c0_150 = arith.constant 0 : index
    %c0_151 = arith.constant 0 : index
    %151 = vector.load %arg1[%c25, %c0_150, %c0_151] : memref<49x3x8xbf16, #tpu.memory_space<vmem>>, vector<1x3x8xbf16>
    %152 = vector.shape_cast %151 : vector<1x3x8xbf16> to vector<3x8xbf16>
    %c25_152 = arith.constant 25 : index
    %c0_153 = arith.constant 0 : index
    %c0_154 = arith.constant 0 : index
    %153 = vector.load %arg0[%c25_152, %c0_153, %c0_154] : memref<49x8x512xbf16, #tpu.memory_space<vmem>>, vector<1x8x512xbf16>
    %154 = vector.shape_cast %153 : vector<1x8x512xbf16> to vector<8x512xbf16>
    %cst_155 = arith.constant dense<0.000000e+00> : vector<3x512xf32>
    %155 = tpu.matmul %152, %154, %cst_155 {dimension_numbers = #tpu.dot_dimension_numbers<[1], [0], [0], [1], [0, 0, 1, 1], [], []>} : vector<3x8xbf16>, vector<8x512xbf16>, vector<3x512xf32> -> vector<3x512xf32>
    %156 = arith.addf %150, %155 : vector<3x512xf32>
    %c26 = arith.constant 26 : index
    %c0_156 = arith.constant 0 : index
    %c0_157 = arith.constant 0 : index
    %157 = vector.load %arg1[%c26, %c0_156, %c0_157] : memref<49x3x8xbf16, #tpu.memory_space<vmem>>, vector<1x3x8xbf16>
    %158 = vector.shape_cast %157 : vector<1x3x8xbf16> to vector<3x8xbf16>
    %c26_158 = arith.constant 26 : index
    %c0_159 = arith.constant 0 : index
    %c0_160 = arith.constant 0 : index
    %159 = vector.load %arg0[%c26_158, %c0_159, %c0_160] : memref<49x8x512xbf16, #tpu.memory_space<vmem>>, vector<1x8x512xbf16>
    %160 = vector.shape_cast %159 : vector<1x8x512xbf16> to vector<8x512xbf16>
    %cst_161 = arith.constant dense<0.000000e+00> : vector<3x512xf32>
    %161 = tpu.matmul %158, %160, %cst_161 {dimension_numbers = #tpu.dot_dimension_numbers<[1], [0], [0], [1], [0, 0, 1, 1], [], []>} : vector<3x8xbf16>, vector<8x512xbf16>, vector<3x512xf32> -> vector<3x512xf32>
    %162 = arith.addf %156, %161 : vector<3x512xf32>
    %c27 = arith.constant 27 : index
    %c0_162 = arith.constant 0 : index
    %c0_163 = arith.constant 0 : index
    %163 = vector.load %arg1[%c27, %c0_162, %c0_163] : memref<49x3x8xbf16, #tpu.memory_space<vmem>>, vector<1x3x8xbf16>
    %164 = vector.shape_cast %163 : vector<1x3x8xbf16> to vector<3x8xbf16>
    %c27_164 = arith.constant 27 : index
    %c0_165 = arith.constant 0 : index
    %c0_166 = arith.constant 0 : index
    %165 = vector.load %arg0[%c27_164, %c0_165, %c0_166] : memref<49x8x512xbf16, #tpu.memory_space<vmem>>, vector<1x8x512xbf16>
    %166 = vector.shape_cast %165 : vector<1x8x512xbf16> to vector<8x512xbf16>
    %cst_167 = arith.constant dense<0.000000e+00> : vector<3x512xf32>
    %167 = tpu.matmul %164, %166, %cst_167 {dimension_numbers = #tpu.dot_dimension_numbers<[1], [0], [0], [1], [0, 0, 1, 1], [], []>} : vector<3x8xbf16>, vector<8x512xbf16>, vector<3x512xf32> -> vector<3x512xf32>
    %168 = arith.addf %162, %167 : vector<3x512xf32>
    %c28 = arith.constant 28 : index
    %c0_168 = arith.constant 0 : index
    %c0_169 = arith.constant 0 : index
    %169 = vector.load %arg1[%c28, %c0_168, %c0_169] : memref<49x3x8xbf16, #tpu.memory_space<vmem>>, vector<1x3x8xbf16>
    %170 = vector.shape_cast %169 : vector<1x3x8xbf16> to vector<3x8xbf16>
    %c28_170 = arith.constant 28 : index
    %c0_171 = arith.constant 0 : index
    %c0_172 = arith.constant 0 : index
    %171 = vector.load %arg0[%c28_170, %c0_171, %c0_172] : memref<49x8x512xbf16, #tpu.memory_space<vmem>>, vector<1x8x512xbf16>
    %172 = vector.shape_cast %171 : vector<1x8x512xbf16> to vector<8x512xbf16>
    %cst_173 = arith.constant dense<0.000000e+00> : vector<3x512xf32>
    %173 = tpu.matmul %170, %172, %cst_173 {dimension_numbers = #tpu.dot_dimension_numbers<[1], [0], [0], [1], [0, 0, 1, 1], [], []>} : vector<3x8xbf16>, vector<8x512xbf16>, vector<3x512xf32> -> vector<3x512xf32>
    %174 = arith.addf %168, %173 : vector<3x512xf32>
    %c29 = arith.constant 29 : index
    %c0_174 = arith.constant 0 : index
    %c0_175 = arith.constant 0 : index
    %175 = vector.load %arg1[%c29, %c0_174, %c0_175] : memref<49x3x8xbf16, #tpu.memory_space<vmem>>, vector<1x3x8xbf16>
    %176 = vector.shape_cast %175 : vector<1x3x8xbf16> to vector<3x8xbf16>
    %c29_176 = arith.constant 29 : index
    %c0_177 = arith.constant 0 : index
    %c0_178 = arith.constant 0 : index
    %177 = vector.load %arg0[%c29_176, %c0_177, %c0_178] : memref<49x8x512xbf16, #tpu.memory_space<vmem>>, vector<1x8x512xbf16>
    %178 = vector.shape_cast %177 : vector<1x8x512xbf16> to vector<8x512xbf16>
    %cst_179 = arith.constant dense<0.000000e+00> : vector<3x512xf32>
    %179 = tpu.matmul %176, %178, %cst_179 {dimension_numbers = #tpu.dot_dimension_numbers<[1], [0], [0], [1], [0, 0, 1, 1], [], []>} : vector<3x8xbf16>, vector<8x512xbf16>, vector<3x512xf32> -> vector<3x512xf32>
    %180 = arith.addf %174, %179 : vector<3x512xf32>
    %c30 = arith.constant 30 : index
    %c0_180 = arith.constant 0 : index
    %c0_181 = arith.constant 0 : index
    %181 = vector.load %arg1[%c30, %c0_180, %c0_181] : memref<49x3x8xbf16, #tpu.memory_space<vmem>>, vector<1x3x8xbf16>
    %182 = vector.shape_cast %181 : vector<1x3x8xbf16> to vector<3x8xbf16>
    %c30_182 = arith.constant 30 : index
    %c0_183 = arith.constant 0 : index
    %c0_184 = arith.constant 0 : index
    %183 = vector.load %arg0[%c30_182, %c0_183, %c0_184] : memref<49x8x512xbf16, #tpu.memory_space<vmem>>, vector<1x8x512xbf16>
    %184 = vector.shape_cast %183 : vector<1x8x512xbf16> to vector<8x512xbf16>
    %cst_185 = arith.constant dense<0.000000e+00> : vector<3x512xf32>
    %185 = tpu.matmul %182, %184, %cst_185 {dimension_numbers = #tpu.dot_dimension_numbers<[1], [0], [0], [1], [0, 0, 1, 1], [], []>} : vector<3x8xbf16>, vector<8x512xbf16>, vector<3x512xf32> -> vector<3x512xf32>
    %186 = arith.addf %180, %185 : vector<3x512xf32>
    %c31 = arith.constant 31 : index
    %c0_186 = arith.constant 0 : index
    %c0_187 = arith.constant 0 : index
    %187 = vector.load %arg1[%c31, %c0_186, %c0_187] : memref<49x3x8xbf16, #tpu.memory_space<vmem>>, vector<1x3x8xbf16>
    %188 = vector.shape_cast %187 : vector<1x3x8xbf16> to vector<3x8xbf16>
    %c31_188 = arith.constant 31 : index
    %c0_189 = arith.constant 0 : index
    %c0_190 = arith.constant 0 : index
    %189 = vector.load %arg0[%c31_188, %c0_189, %c0_190] : memref<49x8x512xbf16, #tpu.memory_space<vmem>>, vector<1x8x512xbf16>
    %190 = vector.shape_cast %189 : vector<1x8x512xbf16> to vector<8x512xbf16>
    %cst_191 = arith.constant dense<0.000000e+00> : vector<3x512xf32>
    %191 = tpu.matmul %188, %190, %cst_191 {dimension_numbers = #tpu.dot_dimension_numbers<[1], [0], [0], [1], [0, 0, 1, 1], [], []>} : vector<3x8xbf16>, vector<8x512xbf16>, vector<3x512xf32> -> vector<3x512xf32>
    %192 = arith.addf %186, %191 : vector<3x512xf32>
    %c32 = arith.constant 32 : index
    %c0_192 = arith.constant 0 : index
    %c0_193 = arith.constant 0 : index
    %193 = vector.load %arg1[%c32, %c0_192, %c0_193] : memref<49x3x8xbf16, #tpu.memory_space<vmem>>, vector<1x3x8xbf16>
    %194 = vector.shape_cast %193 : vector<1x3x8xbf16> to vector<3x8xbf16>
    %c32_194 = arith.constant 32 : index
    %c0_195 = arith.constant 0 : index
    %c0_196 = arith.constant 0 : index
    %195 = vector.load %arg0[%c32_194, %c0_195, %c0_196] : memref<49x8x512xbf16, #tpu.memory_space<vmem>>, vector<1x8x512xbf16>
    %196 = vector.shape_cast %195 : vector<1x8x512xbf16> to vector<8x512xbf16>
    %cst_197 = arith.constant dense<0.000000e+00> : vector<3x512xf32>
    %197 = tpu.matmul %194, %196, %cst_197 {dimension_numbers = #tpu.dot_dimension_numbers<[1], [0], [0], [1], [0, 0, 1, 1], [], []>} : vector<3x8xbf16>, vector<8x512xbf16>, vector<3x512xf32> -> vector<3x512xf32>
    %198 = arith.addf %192, %197 : vector<3x512xf32>
    %c33 = arith.constant 33 : index
    %c0_198 = arith.constant 0 : index
    %c0_199 = arith.constant 0 : index
    %199 = vector.load %arg1[%c33, %c0_198, %c0_199] : memref<49x3x8xbf16, #tpu.memory_space<vmem>>, vector<1x3x8xbf16>
    %200 = vector.shape_cast %199 : vector<1x3x8xbf16> to vector<3x8xbf16>
    %c33_200 = arith.constant 33 : index
    %c0_201 = arith.constant 0 : index
    %c0_202 = arith.constant 0 : index
    %201 = vector.load %arg0[%c33_200, %c0_201, %c0_202] : memref<49x8x512xbf16, #tpu.memory_space<vmem>>, vector<1x8x512xbf16>
    %202 = vector.shape_cast %201 : vector<1x8x512xbf16> to vector<8x512xbf16>
    %cst_203 = arith.constant dense<0.000000e+00> : vector<3x512xf32>
    %203 = tpu.matmul %200, %202, %cst_203 {dimension_numbers = #tpu.dot_dimension_numbers<[1], [0], [0], [1], [0, 0, 1, 1], [], []>} : vector<3x8xbf16>, vector<8x512xbf16>, vector<3x512xf32> -> vector<3x512xf32>
    %204 = arith.addf %198, %203 : vector<3x512xf32>
    %c34 = arith.constant 34 : index
    %c0_204 = arith.constant 0 : index
    %c0_205 = arith.constant 0 : index
    %205 = vector.load %arg1[%c34, %c0_204, %c0_205] : memref<49x3x8xbf16, #tpu.memory_space<vmem>>, vector<1x3x8xbf16>
    %206 = vector.shape_cast %205 : vector<1x3x8xbf16> to vector<3x8xbf16>
    %c34_206 = arith.constant 34 : index
    %c0_207 = arith.constant 0 : index
    %c0_208 = arith.constant 0 : index
    %207 = vector.load %arg0[%c34_206, %c0_207, %c0_208] : memref<49x8x512xbf16, #tpu.memory_space<vmem>>, vector<1x8x512xbf16>
    %208 = vector.shape_cast %207 : vector<1x8x512xbf16> to vector<8x512xbf16>
    %cst_209 = arith.constant dense<0.000000e+00> : vector<3x512xf32>
    %209 = tpu.matmul %206, %208, %cst_209 {dimension_numbers = #tpu.dot_dimension_numbers<[1], [0], [0], [1], [0, 0, 1, 1], [], []>} : vector<3x8xbf16>, vector<8x512xbf16>, vector<3x512xf32> -> vector<3x512xf32>
    %210 = arith.addf %204, %209 : vector<3x512xf32>
    %c35 = arith.constant 35 : index
    %c0_210 = arith.constant 0 : index
    %c0_211 = arith.constant 0 : index
    %211 = vector.load %arg1[%c35, %c0_210, %c0_211] : memref<49x3x8xbf16, #tpu.memory_space<vmem>>, vector<1x3x8xbf16>
    %212 = vector.shape_cast %211 : vector<1x3x8xbf16> to vector<3x8xbf16>
    %c35_212 = arith.constant 35 : index
    %c0_213 = arith.constant 0 : index
    %c0_214 = arith.constant 0 : index
    %213 = vector.load %arg0[%c35_212, %c0_213, %c0_214] : memref<49x8x512xbf16, #tpu.memory_space<vmem>>, vector<1x8x512xbf16>
    %214 = vector.shape_cast %213 : vector<1x8x512xbf16> to vector<8x512xbf16>
    %cst_215 = arith.constant dense<0.000000e+00> : vector<3x512xf32>
    %215 = tpu.matmul %212, %214, %cst_215 {dimension_numbers = #tpu.dot_dimension_numbers<[1], [0], [0], [1], [0, 0, 1, 1], [], []>} : vector<3x8xbf16>, vector<8x512xbf16>, vector<3x512xf32> -> vector<3x512xf32>
    %216 = arith.addf %210, %215 : vector<3x512xf32>
    %c36 = arith.constant 36 : index
    %c0_216 = arith.constant 0 : index
    %c0_217 = arith.constant 0 : index
    %217 = vector.load %arg1[%c36, %c0_216, %c0_217] : memref<49x3x8xbf16, #tpu.memory_space<vmem>>, vector<1x3x8xbf16>
    %218 = vector.shape_cast %217 : vector<1x3x8xbf16> to vector<3x8xbf16>
    %c36_218 = arith.constant 36 : index
    %c0_219 = arith.constant 0 : index
    %c0_220 = arith.constant 0 : index
    %219 = vector.load %arg0[%c36_218, %c0_219, %c0_220] : memref<49x8x512xbf16, #tpu.memory_space<vmem>>, vector<1x8x512xbf16>
    %220 = vector.shape_cast %219 : vector<1x8x512xbf16> to vector<8x512xbf16>
    %cst_221 = arith.constant dense<0.000000e+00> : vector<3x512xf32>
    %221 = tpu.matmul %218, %220, %cst_221 {dimension_numbers = #tpu.dot_dimension_numbers<[1], [0], [0], [1], [0, 0, 1, 1], [], []>} : vector<3x8xbf16>, vector<8x512xbf16>, vector<3x512xf32> -> vector<3x512xf32>
    %222 = arith.addf %216, %221 : vector<3x512xf32>
    %c37 = arith.constant 37 : index
    %c0_222 = arith.constant 0 : index
    %c0_223 = arith.constant 0 : index
    %223 = vector.load %arg1[%c37, %c0_222, %c0_223] : memref<49x3x8xbf16, #tpu.memory_space<vmem>>, vector<1x3x8xbf16>
    %224 = vector.shape_cast %223 : vector<1x3x8xbf16> to vector<3x8xbf16>
    %c37_224 = arith.constant 37 : index
    %c0_225 = arith.constant 0 : index
    %c0_226 = arith.constant 0 : index
    %225 = vector.load %arg0[%c37_224, %c0_225, %c0_226] : memref<49x8x512xbf16, #tpu.memory_space<vmem>>, vector<1x8x512xbf16>
    %226 = vector.shape_cast %225 : vector<1x8x512xbf16> to vector<8x512xbf16>
    %cst_227 = arith.constant dense<0.000000e+00> : vector<3x512xf32>
    %227 = tpu.matmul %224, %226, %cst_227 {dimension_numbers = #tpu.dot_dimension_numbers<[1], [0], [0], [1], [0, 0, 1, 1], [], []>} : vector<3x8xbf16>, vector<8x512xbf16>, vector<3x512xf32> -> vector<3x512xf32>
    %228 = arith.addf %222, %227 : vector<3x512xf32>
    %c38 = arith.constant 38 : index
    %c0_228 = arith.constant 0 : index
    %c0_229 = arith.constant 0 : index
    %229 = vector.load %arg1[%c38, %c0_228, %c0_229] : memref<49x3x8xbf16, #tpu.memory_space<vmem>>, vector<1x3x8xbf16>
    %230 = vector.shape_cast %229 : vector<1x3x8xbf16> to vector<3x8xbf16>
    %c38_230 = arith.constant 38 : index
    %c0_231 = arith.constant 0 : index
    %c0_232 = arith.constant 0 : index
    %231 = vector.load %arg0[%c38_230, %c0_231, %c0_232] : memref<49x8x512xbf16, #tpu.memory_space<vmem>>, vector<1x8x512xbf16>
    %232 = vector.shape_cast %231 : vector<1x8x512xbf16> to vector<8x512xbf16>
    %cst_233 = arith.constant dense<0.000000e+00> : vector<3x512xf32>
    %233 = tpu.matmul %230, %232, %cst_233 {dimension_numbers = #tpu.dot_dimension_numbers<[1], [0], [0], [1], [0, 0, 1, 1], [], []>} : vector<3x8xbf16>, vector<8x512xbf16>, vector<3x512xf32> -> vector<3x512xf32>
    %234 = arith.addf %228, %233 : vector<3x512xf32>
    %c39 = arith.constant 39 : index
    %c0_234 = arith.constant 0 : index
    %c0_235 = arith.constant 0 : index
    %235 = vector.load %arg1[%c39, %c0_234, %c0_235] : memref<49x3x8xbf16, #tpu.memory_space<vmem>>, vector<1x3x8xbf16>
    %236 = vector.shape_cast %235 : vector<1x3x8xbf16> to vector<3x8xbf16>
    %c39_236 = arith.constant 39 : index
    %c0_237 = arith.constant 0 : index
    %c0_238 = arith.constant 0 : index
    %237 = vector.load %arg0[%c39_236, %c0_237, %c0_238] : memref<49x8x512xbf16, #tpu.memory_space<vmem>>, vector<1x8x512xbf16>
    %238 = vector.shape_cast %237 : vector<1x8x512xbf16> to vector<8x512xbf16>
    %cst_239 = arith.constant dense<0.000000e+00> : vector<3x512xf32>
    %239 = tpu.matmul %236, %238, %cst_239 {dimension_numbers = #tpu.dot_dimension_numbers<[1], [0], [0], [1], [0, 0, 1, 1], [], []>} : vector<3x8xbf16>, vector<8x512xbf16>, vector<3x512xf32> -> vector<3x512xf32>
    %240 = arith.addf %234, %239 : vector<3x512xf32>
    %c40 = arith.constant 40 : index
    %c0_240 = arith.constant 0 : index
    %c0_241 = arith.constant 0 : index
    %241 = vector.load %arg1[%c40, %c0_240, %c0_241] : memref<49x3x8xbf16, #tpu.memory_space<vmem>>, vector<1x3x8xbf16>
    %242 = vector.shape_cast %241 : vector<1x3x8xbf16> to vector<3x8xbf16>
    %c40_242 = arith.constant 40 : index
    %c0_243 = arith.constant 0 : index
    %c0_244 = arith.constant 0 : index
    %243 = vector.load %arg0[%c40_242, %c0_243, %c0_244] : memref<49x8x512xbf16, #tpu.memory_space<vmem>>, vector<1x8x512xbf16>
    %244 = vector.shape_cast %243 : vector<1x8x512xbf16> to vector<8x512xbf16>
    %cst_245 = arith.constant dense<0.000000e+00> : vector<3x512xf32>
    %245 = tpu.matmul %242, %244, %cst_245 {dimension_numbers = #tpu.dot_dimension_numbers<[1], [0], [0], [1], [0, 0, 1, 1], [], []>} : vector<3x8xbf16>, vector<8x512xbf16>, vector<3x512xf32> -> vector<3x512xf32>
    %246 = arith.addf %240, %245 : vector<3x512xf32>
    %c41 = arith.constant 41 : index
    %c0_246 = arith.constant 0 : index
    %c0_247 = arith.constant 0 : index
    %247 = vector.load %arg1[%c41, %c0_246, %c0_247] : memref<49x3x8xbf16, #tpu.memory_space<vmem>>, vector<1x3x8xbf16>
    %248 = vector.shape_cast %247 : vector<1x3x8xbf16> to vector<3x8xbf16>
    %c41_248 = arith.constant 41 : index
    %c0_249 = arith.constant 0 : index
    %c0_250 = arith.constant 0 : index
    %249 = vector.load %arg0[%c41_248, %c0_249, %c0_250] : memref<49x8x512xbf16, #tpu.memory_space<vmem>>, vector<1x8x512xbf16>
    %250 = vector.shape_cast %249 : vector<1x8x512xbf16> to vector<8x512xbf16>
    %cst_251 = arith.constant dense<0.000000e+00> : vector<3x512xf32>
    %251 = tpu.matmul %248, %250, %cst_251 {dimension_numbers = #tpu.dot_dimension_numbers<[1], [0], [0], [1], [0, 0, 1, 1], [], []>} : vector<3x8xbf16>, vector<8x512xbf16>, vector<3x512xf32> -> vector<3x512xf32>
    %252 = arith.addf %246, %251 : vector<3x512xf32>
    %c42 = arith.constant 42 : index
    %c0_252 = arith.constant 0 : index
    %c0_253 = arith.constant 0 : index
    %253 = vector.load %arg1[%c42, %c0_252, %c0_253] : memref<49x3x8xbf16, #tpu.memory_space<vmem>>, vector<1x3x8xbf16>
    %254 = vector.shape_cast %253 : vector<1x3x8xbf16> to vector<3x8xbf16>
    %c42_254 = arith.constant 42 : index
    %c0_255 = arith.constant 0 : index
    %c0_256 = arith.constant 0 : index
    %255 = vector.load %arg0[%c42_254, %c0_255, %c0_256] : memref<49x8x512xbf16, #tpu.memory_space<vmem>>, vector<1x8x512xbf16>
    %256 = vector.shape_cast %255 : vector<1x8x512xbf16> to vector<8x512xbf16>
    %cst_257 = arith.constant dense<0.000000e+00> : vector<3x512xf32>
    %257 = tpu.matmul %254, %256, %cst_257 {dimension_numbers = #tpu.dot_dimension_numbers<[1], [0], [0], [1], [0, 0, 1, 1], [], []>} : vector<3x8xbf16>, vector<8x512xbf16>, vector<3x512xf32> -> vector<3x512xf32>
    %258 = arith.addf %252, %257 : vector<3x512xf32>
    %c43 = arith.constant 43 : index
    %c0_258 = arith.constant 0 : index
    %c0_259 = arith.constant 0 : index
    %259 = vector.load %arg1[%c43, %c0_258, %c0_259] : memref<49x3x8xbf16, #tpu.memory_space<vmem>>, vector<1x3x8xbf16>
    %260 = vector.shape_cast %259 : vector<1x3x8xbf16> to vector<3x8xbf16>
    %c43_260 = arith.constant 43 : index
    %c0_261 = arith.constant 0 : index
    %c0_262 = arith.constant 0 : index
    %261 = vector.load %arg0[%c43_260, %c0_261, %c0_262] : memref<49x8x512xbf16, #tpu.memory_space<vmem>>, vector<1x8x512xbf16>
    %262 = vector.shape_cast %261 : vector<1x8x512xbf16> to vector<8x512xbf16>
    %cst_263 = arith.constant dense<0.000000e+00> : vector<3x512xf32>
    %263 = tpu.matmul %260, %262, %cst_263 {dimension_numbers = #tpu.dot_dimension_numbers<[1], [0], [0], [1], [0, 0, 1, 1], [], []>} : vector<3x8xbf16>, vector<8x512xbf16>, vector<3x512xf32> -> vector<3x512xf32>
    %264 = arith.addf %258, %263 : vector<3x512xf32>
    %c44 = arith.constant 44 : index
    %c0_264 = arith.constant 0 : index
    %c0_265 = arith.constant 0 : index
    %265 = vector.load %arg1[%c44, %c0_264, %c0_265] : memref<49x3x8xbf16, #tpu.memory_space<vmem>>, vector<1x3x8xbf16>
    %266 = vector.shape_cast %265 : vector<1x3x8xbf16> to vector<3x8xbf16>
    %c44_266 = arith.constant 44 : index
    %c0_267 = arith.constant 0 : index
    %c0_268 = arith.constant 0 : index
    %267 = vector.load %arg0[%c44_266, %c0_267, %c0_268] : memref<49x8x512xbf16, #tpu.memory_space<vmem>>, vector<1x8x512xbf16>
    %268 = vector.shape_cast %267 : vector<1x8x512xbf16> to vector<8x512xbf16>
    %cst_269 = arith.constant dense<0.000000e+00> : vector<3x512xf32>
    %269 = tpu.matmul %266, %268, %cst_269 {dimension_numbers = #tpu.dot_dimension_numbers<[1], [0], [0], [1], [0, 0, 1, 1], [], []>} : vector<3x8xbf16>, vector<8x512xbf16>, vector<3x512xf32> -> vector<3x512xf32>
    %270 = arith.addf %264, %269 : vector<3x512xf32>
    %c45 = arith.constant 45 : index
    %c0_270 = arith.constant 0 : index
    %c0_271 = arith.constant 0 : index
    %271 = vector.load %arg1[%c45, %c0_270, %c0_271] : memref<49x3x8xbf16, #tpu.memory_space<vmem>>, vector<1x3x8xbf16>
    %272 = vector.shape_cast %271 : vector<1x3x8xbf16> to vector<3x8xbf16>
    %c45_272 = arith.constant 45 : index
    %c0_273 = arith.constant 0 : index
    %c0_274 = arith.constant 0 : index
    %273 = vector.load %arg0[%c45_272, %c0_273, %c0_274] : memref<49x8x512xbf16, #tpu.memory_space<vmem>>, vector<1x8x512xbf16>
    %274 = vector.shape_cast %273 : vector<1x8x512xbf16> to vector<8x512xbf16>
    %cst_275 = arith.constant dense<0.000000e+00> : vector<3x512xf32>
    %275 = tpu.matmul %272, %274, %cst_275 {dimension_numbers = #tpu.dot_dimension_numbers<[1], [0], [0], [1], [0, 0, 1, 1], [], []>} : vector<3x8xbf16>, vector<8x512xbf16>, vector<3x512xf32> -> vector<3x512xf32>
    %276 = arith.addf %270, %275 : vector<3x512xf32>
    %c46 = arith.constant 46 : index
    %c0_276 = arith.constant 0 : index
    %c0_277 = arith.constant 0 : index
    %277 = vector.load %arg1[%c46, %c0_276, %c0_277] : memref<49x3x8xbf16, #tpu.memory_space<vmem>>, vector<1x3x8xbf16>
    %278 = vector.shape_cast %277 : vector<1x3x8xbf16> to vector<3x8xbf16>
    %c46_278 = arith.constant 46 : index
    %c0_279 = arith.constant 0 : index
    %c0_280 = arith.constant 0 : index
    %279 = vector.load %arg0[%c46_278, %c0_279, %c0_280] : memref<49x8x512xbf16, #tpu.memory_space<vmem>>, vector<1x8x512xbf16>
    %280 = vector.shape_cast %279 : vector<1x8x512xbf16> to vector<8x512xbf16>
    %cst_281 = arith.constant dense<0.000000e+00> : vector<3x512xf32>
    %281 = tpu.matmul %278, %280, %cst_281 {dimension_numbers = #tpu.dot_dimension_numbers<[1], [0], [0], [1], [0, 0, 1, 1], [], []>} : vector<3x8xbf16>, vector<8x512xbf16>, vector<3x512xf32> -> vector<3x512xf32>
    %282 = arith.addf %276, %281 : vector<3x512xf32>
    %c47 = arith.constant 47 : index
    %c0_282 = arith.constant 0 : index
    %c0_283 = arith.constant 0 : index
    %283 = vector.load %arg1[%c47, %c0_282, %c0_283] : memref<49x3x8xbf16, #tpu.memory_space<vmem>>, vector<1x3x8xbf16>
    %284 = vector.shape_cast %283 : vector<1x3x8xbf16> to vector<3x8xbf16>
    %c47_284 = arith.constant 47 : index
    %c0_285 = arith.constant 0 : index
    %c0_286 = arith.constant 0 : index
    %285 = vector.load %arg0[%c47_284, %c0_285, %c0_286] : memref<49x8x512xbf16, #tpu.memory_space<vmem>>, vector<1x8x512xbf16>
    %286 = vector.shape_cast %285 : vector<1x8x512xbf16> to vector<8x512xbf16>
    %cst_287 = arith.constant dense<0.000000e+00> : vector<3x512xf32>
    %287 = tpu.matmul %284, %286, %cst_287 {dimension_numbers = #tpu.dot_dimension_numbers<[1], [0], [0], [1], [0, 0, 1, 1], [], []>} : vector<3x8xbf16>, vector<8x512xbf16>, vector<3x512xf32> -> vector<3x512xf32>
    %288 = arith.addf %282, %287 : vector<3x512xf32>
    %c48 = arith.constant 48 : index
    %c0_288 = arith.constant 0 : index
    %c0_289 = arith.constant 0 : index
    %289 = vector.load %arg1[%c48, %c0_288, %c0_289] : memref<49x3x8xbf16, #tpu.memory_space<vmem>>, vector<1x3x8xbf16>
    %290 = vector.shape_cast %289 : vector<1x3x8xbf16> to vector<3x8xbf16>
    %c48_290 = arith.constant 48 : index
    %c0_291 = arith.constant 0 : index
    %c0_292 = arith.constant 0 : index
    %291 = vector.load %arg0[%c48_290, %c0_291, %c0_292] : memref<49x8x512xbf16, #tpu.memory_space<vmem>>, vector<1x8x512xbf16>
    %292 = vector.shape_cast %291 : vector<1x8x512xbf16> to vector<8x512xbf16>
    %cst_293 = arith.constant dense<0.000000e+00> : vector<3x512xf32>
    %293 = tpu.matmul %290, %292, %cst_293 {dimension_numbers = #tpu.dot_dimension_numbers<[1], [0], [0], [1], [0, 0, 1, 1], [], []>} : vector<3x8xbf16>, vector<8x512xbf16>, vector<3x512xf32> -> vector<3x512xf32>
    %294 = arith.addf %288, %293 : vector<3x512xf32>
    %c0_294 = arith.constant 0 : index
    %c0_295 = arith.constant 0 : index
    %295 = vector.load %arg2[%c0_294, %c0_295] : memref<3x1xf32, #tpu.memory_space<vmem>>, vector<3x1xf32>
    %296 = vector.broadcast %295 : vector<3x1xf32> to vector<3x512xf32>
    %297 = arith.addf %294, %296 : vector<3x512xf32>
    %298 = math.tanh %297 : vector<3x512xf32>
    %c0_296 = arith.constant 0 : index
    %c0_297 = arith.constant 0 : index
    %299 = vector.load %arg3[%c0_296, %c0_297] : memref<3x512xf32, #tpu.memory_space<vmem>>, vector<3x512xf32>
    tpu.vector_store %arg3[%c0_296, %c0_297], %298 {strides = array<i32>} : memref<3x512xf32, #tpu.memory_space<vmem>>, vector<3x512xf32>,
    return
  }
}

</mosaic_0001>

<bundles_post_ra>
// kernel: resnet_generator_forward.11
= control target key start
LH: loop header
LB: loop body
LE: loop exit
PB: predicated region body
PF: predicated region fallthrough
CT: control target
= control target key end

     0   :  { %vm35_vm0 = vcmask 1043456   ;;  %vm31_vm1 = vcmask 64512   ;;  %v766_v0 = vmov 0.0   ;;  %vm767_vm2 = vmmov 0   ;;  %s893_s0 = inlined_call_operand.vmem [shape: bf16[9,8,128], index: 0, kind: input, shape index: {}]   ;;  %s894_s1 = inlined_call_operand.vmem [shape: bf16[9,16,8], index: 1, kind: input, shape index: {}]   ;;  %s895_s3 = inlined_call_operand.vmem [shape: f32[16,1], index: 3, kind: input, shape index: {}]   ;;  %s896_s2 = inlined_call_operand.vmem [shape: f32[16,1], index: 2, kind: input, shape index: {}]   ;;  %s897_s4 = inlined_call_operand.vmem [shape: f32[16,128], index: 4, kind: output, shape index: {}]  }
   0x1   :  { %664 = vmatprep.subr.bf16.mxu1 %v766_v0  ;;  %688 = vmatprep.subr.bf16.mxu0 %v766_v0  ;;  %v606_v1 = vld [vmem:[%s893_s0 + $0x4] sm:$0xf]  ;;  %v623_v2 = vld [vmem:[%s893_s0 + $0x10] sm:$0xf]  ;;  %v753_v5 = vld [vmem:[%s894_s1 + $0x8] sm:$0xff]   ;;  %v768_v46 = vmov 0  }
   0x2   :  { %v37_v3 = vsel %vm35_vm0, %v606_v1, 0  ;;  %v264_v4 = vsel %vm35_vm0, %v623_v2, 0  ;;  %666 = vmatprep.mubr.msk.bf16.mxu1 %vm767_vm2, %v766_v0  ;;  %690 = vmatprep.mubr.msk.bf16.mxu0 %vm767_vm2, %v766_v0  ;;  %v754_v6 = vld [vmem:[%s894_s1 + $0x20] sm:$0xff]   ;;  %v628_v7 = vld [vmem:[%s893_s0 + $0x14] sm:$0xf]  ;;  %v756_v14 = vld [vmem:[%s894_s1 + $0x28] sm:$0xff]  }
   0x3   :  { %665 = vmatpush3.bf16.msra.mxu1 %v37_v3  ;;  %689 = vmatpush3.bf16.msra.mxu0 %v264_v4  ;;  %v323_v8 = vsel %vm35_vm0, %v628_v7, 0  ;;  %v20_v9 = vld [vmem:[%s893_s0] sm:$0xf]  ;;  %v633_v11 = vld [vmem:[%s893_s0 + $0x18] sm:$0xf]  ;;  %v757_v19 = vld [vmem:[%s894_s1 + $0x10] sm:$0xff]  }
   0x4   :  { %694 = vmatprep.subr.bf16.mxu0 %v766_v0  ;;  %670 = vmatprep.subr.bf16.mxu1 %v766_v0  ;;  %v89_v10 = vsel %vm35_vm0, %v20_v9, 0  ;;  %v613_v12 = vld [vmem:[%s893_s0 + $0x8] sm:$0xf]  ;;  %v755_v13 = vld [vmem:[%s894_s1] sm:$0xff]   ;;  %v382_v15 = vsel %vm35_vm0, %v633_v11, 0  ;;  %v758_v20 = vld [vmem:[%s894_s1 + $0x30] sm:$0xff]  }
   0x5   :  { %v146_v16 = vsel %vm35_vm0, %v613_v12, 0  ;;  %v638_v17 = vld [vmem:[%s893_s0 + $0x1c] sm:$0xf]  ;;  %v618_v18 = vld [vmem:[%s893_s0 + $0xc] sm:$0xf]  ;;  %v761_v27 = vld [vmem:[%s894_s1 + $0x40] sm:$0xff]   ;;  %752 = vset.pattern.permute.xlu1 %v768_v46  ;;  %751 = vset.pattern.permute.xlu0 %v768_v46 }
   0x6   :  { %667 = vmatmul.mubr.msk.bf16.vlgmr.msra.gmra.mrb[0].mxu1 %vm31_vm1, %v753_v5  ;;  %691 = vmatmul.mubr.msk.bf16.vlgmr.msra.gmra.mrb[0].mxu0 %vm31_vm1, %v754_v6  ;;  %v441_v21 = vsel %vm35_vm0, %v638_v17, 0  ;;  %v205_v22 = vsel %vm35_vm0, %v618_v18, 0  ;;  %v643_v23 = vld [vmem:[%s893_s0 + $0x20] sm:$0xf]  ;;  %v759_v24 = vld [vmem:[%s894_s1 + $0x18] sm:$0xff]   ;;  %v563_v57 = vld [vmem:[%s896_s2 + $0x8] sm:$0xff] }
   0x7   :  { %695 = vmatpush3.bf16.msra.mxu0 %v323_v8  ;;  %671 = vmatpush3.bf16.msra.mxu1 %v89_v10  ;;  %v760_v25 = vld [vmem:[%s894_s1 + $0x38] sm:$0xff]   ;;  %v500_v26 = vsel %vm35_vm0, %v643_v23, 0  ;;  %v582_v47 = vld [vmem:[%s895_s3] sm:$0xff]  ;;  %v583_v60 = vld [vmem:[%s895_s3 + $0x8] sm:$0xff] }
   0x8   :  { %672 = vmatprep.mubr.msk.bf16.mxu1 %vm767_vm2, %v766_v0  ;;  %696 = vmatprep.mubr.msk.bf16.mxu0 %vm767_vm2, %v766_v0  ;;  %v562_v54 = vld [vmem:[%s896_s2] sm:$0xff] }
   0x9   :  { %700 = vmatprep.subr.bf16.mxu0 %v766_v0  ;;  %676 = vmatprep.subr.bf16.mxu1 %v766_v0 }
  0x12   :  { %673 = vmatmul.mubr.msk.bf16.vlgmr.msra.gmra.mrb[0].mxu1 %vm31_vm1, %v755_v13  ;;  %697 = vmatmul.mubr.msk.bf16.vlgmr.msra.gmra.mrb[0].mxu0 %vm31_vm1, %v756_v14 }
  0x13   :  { %701 = vmatpush3.bf16.msra.mxu0 %v382_v15  ;;  %677 = vmatpush3.bf16.msra.mxu1 %v146_v16 }
  0x14   :  { %678 = vmatprep.mubr.msk.bf16.mxu1 %vm767_vm2, %v766_v0  ;;  %702 = vmatprep.mubr.msk.bf16.mxu0 %vm767_vm2, %v766_v0 }
  0x15   :  { %706 = vmatprep.subr.bf16.mxu0 %v766_v0  ;;  %682 = vmatprep.subr.bf16.mxu1 %v766_v0 }
  0x1e   :  { %679 = vmatmul.mubr.msk.bf16.vlgmr.msra.gmra.mrb[0].mxu1 %vm31_vm1, %v757_v19  ;;  %703 = vmatmul.mubr.msk.bf16.vlgmr.msra.gmra.mrb[0].mxu0 %vm31_vm1, %v758_v20 }
  0x1f   :  { %707 = vmatpush3.bf16.msra.mxu0 %v441_v21  ;;  %683 = vmatpush3.bf16.msra.mxu1 %v205_v22 }
  0x20   :  { %684 = vmatprep.mubr.msk.bf16.mxu1 %vm767_vm2, %v766_v0  ;;  %708 = vmatprep.mubr.msk.bf16.mxu0 %vm767_vm2, %v766_v0 }
  0x21   :  { %712 = vmatprep.subr.bf16.mxu0 %v766_v0 }
  0x2a   :  { %685 = vmatmul.mubr.msk.bf16.vlgmr.msra.gmra.mrb[0].mxu1 %vm31_vm1, %v759_v24  ;;  %709 = vmatmul.mubr.msk.bf16.vlgmr.msra.gmra.mrb[0].mxu0 %vm31_vm1, %v760_v25 }
  0x2b   :  { %713 = vmatpush3.bf16.msra.mxu0 %v500_v26  ;;  %714 = vmatprep.mubr.msk.bf16.mxu0 %vm767_vm2, %v766_v0 }
  0x36   :  { %715 = vmatmul.mubr.msk.bf16.vlgmr.msra.gmra.mrb[0].mxu0 %vm31_vm1, %v761_v27 }
  0xfd   :  { %v241_v28 = vpop.f32.mrb[0].mxu1 }
  0xfe   :  { %v686_v29 = vpop.f32.mrb[1].mxu1 }
  0xff   :  { %v244_v30 = vpop.f32.mrb[2].mxu1 }
 0x100   :  { %v687_v31 = vpop.f32.mrb[3].mxu1 }
 0x109   :  { %v536_v32 = vpop.f32.mrb[0].mxu0 }
 0x10a   :  { %v718_v33 = vadd.f32 %v536_v32, %v241_v28  ;;  %v716_v34 = vpop.f32.mrb[1].mxu0 }
 0x10b   :  { %v539_v35 = vpop.f32.mrb[2].mxu0 }
 0x10c   :  { %v719_v36 = vadd.f32 %v539_v35, %v244_v30  ;;  %v717_v37 = vpop.f32.mrb[3].mxu0  ;;  %545 = vadd.xlane.f32.xlu0 %v718_v33 }
 0x110   :  { %547 = vadd.xlane.f32.xlu0 %v719_v36 }
 0x199   :  { %v546_v38 = vpop.xlane.xlu0 %545 }
 0x19a   :  { %v550_v39 = vmul.f32 0.0078125, %v546_v38 }
 0x19c   :  { %v552_v40 = vsub.f32 %v718_v33, %v550_v39 }
 0x19d   :  { %v548_v41 = vpop.xlane.xlu0 %547 }
 0x19e   :  { %v551_v42 = vmul.f32 0.0078125, %v548_v41  ;;  %v554_v43 = vmul.f32 %v552_v40, %v552_v40 }
 0x1a0   :  { %v553_v44 = vsub.f32 %v719_v36, %v551_v42  ;;  %556 = vadd.xlane.f32.xlu1 %v554_v43 }
 0x1a2   :  { %v555_v45 = vmul.f32 %v553_v44, %v553_v44 }
 0x1a4   :  { %558 = vadd.xlane.f32.xlu1 %v555_v45 }
 0x1b5   :  { %586 = vperm.xlu1 %752, %v582_v47  }
 0x22d   :  { %v557_v48 = vpop.xlane.xlu1 %556 }
 0x22e   :  { %v560_v49 = vmul.f32 0.0078125, %v557_v48 }
 0x230   :  { %v564_v50 = vadd.f32 1e-05, %v560_v49 }
 0x231   :  { %v559_v51 = vpop.xlane.xlu1 %558 }
 0x232   :  { %762 = vrsqrt.f32 %v564_v50  ;;  %v561_v52 = vmul.f32 0.0078125, %v559_v51 }
 0x234   :  { %v565_v53 = vadd.f32 1e-05, %v561_v52 }
 0x235   :  { %v587_v61 = vpop.permute.xlu1 %586 }
 0x236   :  { %764 = vrsqrt.f32 %v565_v53 }
 0x23c   :  { %v763_v55 = vpop.eup %762 }
 0x23d   :  { %v568_v56 = vmul.f32 %v763_v55, %v562_v54 }
 0x23f   :  { %572 = vperm.xlu0 %751, %v568_v56  }
 0x240   :  { %v765_v58 = vpop.eup %764 }
 0x241   :  { %v569_v59 = vmul.f32 %v765_v58, %v563_v57 }
 0x243   :  { %577 = vperm.xlu1 %752, %v569_v59  }
 0x247   :  { %591 = vperm.xlu1 %752, %v583_v60  }
 0x2be   :  { %v573_v62 = vpop.permute.xlu0 %572 }
 0x2bf   :  { %v580_v63 = vmul.f32 %v573_v62, %v552_v40 }
 0x2c1   :  { %v594_v0 = vadd.f32 %v587_v61, %v580_v63 }
 0x2c2   :  { %v578_v1 = vpop.permute.xlu1 %577 }
 0x2c3   :  { %v596_v2 = vmax.f32 %v594_v0, 0.0  ;;  %v581_v3 = vmul.f32 %v578_v1, %v553_v44 }
 0x2c5   :  { %598 = vst [vmem:[%s897_s4] sm:$0xff] %v596_v2 }
 0x2c6   :  { %v592_v4 = vpop.permute.xlu1 %591 }
 0x2c7   :  { %v595_v5 = vadd.f32 %v592_v4, %v581_v3 }
 0x2c9   :  { %v597_v6 = vmax.f32 %v595_v5, 0.0 }
 0x2cb   :  { %599 = vst [vmem:[%s897_s4 + $0x8] sm:$0xff] %v597_v6 }

// kernel: resnet_generator_forward.12
= control target key start
LH: loop header
LB: loop body
LE: loop exit
PB: predicated region body
PF: predicated region fallthrough
CT: control target
= control target key end

     0   :  { %vm48_vm0 = vcmask 130048   ;;  %vm756_vm1 = vcmask 261120   ;;  %v1122_v63 = vmov 0   ;;  %s1315_s0 = inlined_call_operand.vmem [shape: bf16[9,16,32], index: 0, kind: input, shape index: {}]   ;;  %s1316_s1 = inlined_call_operand.vmem [shape: bf16[9,32,16], index: 1, kind: input, shape index: {}]   ;;  %s1317_s2 = inlined_call_operand.vmem [shape: f32[32,1], index: 2, kind: input, shape index: {}]   ;;  %s1318_s3 = inlined_call_operand.vmem [shape: f32[32,1], index: 3, kind: input, shape index: {}]   ;;  %s1319_s4 = inlined_call_operand.vmem [shape: f32[32,32], index: 4, kind: output, shape index: {}]  }
   0x1   :  { %v1087_v0 = vld [vmem:[%s1315_s0 + $0x8] sm:$0xff]   ;;  %v1088_v1 = vld [vmem:[%s1315_s0 + $0x20] sm:$0xff]   ;;  %v1089_v2 = vld [vmem:[%s1316_s1 + $0x10] sm:$0xff]   ;;  %1085 = vset.pattern.permute.xlu0 %v1122_v63  ;;  %1086 = vset.pattern.permute.xlu1 %v1122_v63 }
   0x2   :  { %998 = vmatprep.subr.bf16.mxu1 %v1087_v0  ;;  %1022 = vmatprep.subr.bf16.mxu0 %v1088_v1  ;;  %v1090_v3 = vld [vmem:[%s1316_s1 + $0x40] sm:$0xff]   ;;  %v1091_v4 = vld [vmem:[%s1316_s1 + $0x18] sm:$0xff]   ;;  %v1092_v5 = vld [vmem:[%s1316_s1 + $0x48] sm:$0xff]  }
   0x3   :  { %999 = vmatpush3.bf16.msra.mxu1 %v1087_v0  ;;  %1023 = vmatpush3.bf16.msra.mxu0 %v1088_v1  ;;  %v1093_v6 = vld [vmem:[%s1315_s0 + $0x28] sm:$0xff]   ;;  %v1094_v7 = vld [vmem:[%s1315_s0] sm:$0xff]   ;;  %v1096_v9 = vld [vmem:[%s1316_s1 + $0x50] sm:$0xff]  }
   0x4   :  { %1000 = vmatprep.mubr.msk.bf16.mxu1 %vm48_vm0, %v1089_v2  ;;  %1024 = vmatprep.mubr.msk.bf16.mxu0 %vm48_vm0, %v1090_v3  ;;  %v1095_v8 = vld [vmem:[%s1316_s1] sm:$0xff]   ;;  %v1099_v10 = vld [vmem:[%s1315_s0 + $0x30] sm:$0xff]   ;;  %v1097_v12 = vld [vmem:[%s1316_s1 + $0x8] sm:$0xff]  }
   0x5   :  { %1028 = vmatprep.subr.bf16.mxu0 %v1093_v6  ;;  %1004 = vmatprep.subr.bf16.mxu1 %v1094_v7  ;;  %v1100_v11 = vld [vmem:[%s1315_s0 + $0x10] sm:$0xff]   ;;  %v1098_v13 = vld [vmem:[%s1316_s1 + $0x58] sm:$0xff]   ;;  %v1101_v14 = vld [vmem:[%s1316_s1 + $0x20] sm:$0xff]  }
   0x6   :  { %1001 = vmatmul.mubr.msk.bf16.vlgmr.msra.gmra.mrb[0].mxu1 %vm48_vm0, %v1091_v4  ;;  %1025 = vmatmul.mubr.msk.bf16.vlgmr.msra.gmra.mrb[0].mxu0 %vm48_vm0, %v1092_v5  ;;  %v1102_v15 = vld [vmem:[%s1316_s1 + $0x60] sm:$0xff]   ;;  %v1105_v16 = vld [vmem:[%s1315_s0 + $0x38] sm:$0xff]   ;;  %v1103_v18 = vld [vmem:[%s1316_s1 + $0x28] sm:$0xff]  }
   0x7   :  { %1029 = vmatpush3.bf16.msra.mxu0 %v1093_v6  ;;  %1005 = vmatpush3.bf16.msra.mxu1 %v1094_v7  ;;  %v1106_v17 = vld [vmem:[%s1315_s0 + $0x18] sm:$0xff]   ;;  %v1104_v19 = vld [vmem:[%s1316_s1 + $0x68] sm:$0xff]   ;;  %v1107_v20 = vld [vmem:[%s1316_s1 + $0x30] sm:$0xff]  }
   0x8   :  { %1006 = vmatprep.mubr.msk.bf16.mxu1 %vm48_vm0, %v1095_v8  ;;  %1030 = vmatprep.mubr.msk.bf16.mxu0 %vm48_vm0, %v1096_v9  ;;  %v1108_v21 = vld [vmem:[%s1316_s1 + $0x70] sm:$0xff]   ;;  %v1111_v22 = vld [vmem:[%s1315_s0 + $0x40] sm:$0xff]   ;;  %v1109_v23 = vld [vmem:[%s1316_s1 + $0x38] sm:$0xff]  }
   0x9   :  { %1034 = vmatprep.subr.bf16.mxu0 %v1099_v10  ;;  %1010 = vmatprep.subr.bf16.mxu1 %v1100_v11  ;;  %v1110_v24 = vld [vmem:[%s1316_s1 + $0x78] sm:$0xff]   ;;  %v1112_v25 = vld [vmem:[%s1316_s1 + $0x80] sm:$0xff]   ;;  %v1113_v26 = vld [vmem:[%s1316_s1 + $0x88] sm:$0xff]  }
   0xa   :  { %v798_v8 = vld [vmem:[%s1317_s2] sm:$0xff] }
  0x12   :  { %1007 = vmatmul.mubr.msk.bf16.vlgmr.msra.gmra.mrb[0].mxu1 %vm48_vm0, %v1097_v12  ;;  %1031 = vmatmul.mubr.msk.bf16.vlgmr.msra.gmra.mrb[0].mxu0 %vm48_vm0, %v1098_v13  ;;  %v800_v12 = vld [vmem:[%s1317_s2 + $0x10] sm:$0xff] }
  0x13   :  { %1011 = vmatpush3.bf16.msra.mxu1 %v1100_v11  ;;  %1035 = vmatpush3.bf16.msra.mxu0 %v1099_v10 }
  0x14   :  { %1012 = vmatprep.mubr.msk.bf16.mxu1 %vm48_vm0, %v1101_v14  ;;  %1036 = vmatprep.mubr.msk.bf16.mxu0 %vm48_vm0, %v1102_v15 }
  0x15   :  { %1040 = vmatprep.subr.bf16.mxu0 %v1105_v16  ;;  %1016 = vmatprep.subr.bf16.mxu1 %v1106_v17 }
  0x1e   :  { %1013 = vmatmul.mubr.msk.bf16.vlgmr.msra.gmra.mrb[0].mxu1 %vm48_vm0, %v1103_v18  ;;  %1037 = vmatmul.mubr.msk.bf16.vlgmr.msra.gmra.mrb[0].mxu0 %vm48_vm0, %v1104_v19  ;;  %v838_v18 = vld [vmem:[%s1318_s3] sm:$0xff]  ;;  %v839_v19 = vld [vmem:[%s1318_s3 + $0x8] sm:$0xff] }
  0x1f   :  { %1017 = vmatpush3.bf16.msra.mxu1 %v1106_v17  ;;  %1041 = vmatpush3.bf16.msra.mxu0 %v1105_v16 }
  0x20   :  { %1018 = vmatprep.mubr.msk.bf16.mxu1 %vm48_vm0, %v1107_v20  ;;  %1042 = vmatprep.mubr.msk.bf16.mxu0 %vm48_vm0, %v1108_v21  ;;  %v840_v20 = vld [vmem:[%s1318_s3 + $0x10] sm:$0xff] }
  0x21   :  { %1046 = vmatprep.subr.bf16.mxu0 %v1111_v22 }
  0x2a   :  { %1019 = vmatmul.mubr.msk.bf16.vlgmr.msra.gmra.mrb[0].mxu1 %vm48_vm0, %v1109_v23  ;;  %1043 = vmatmul.mubr.msk.bf16.vlgmr.msra.gmra.mrb[0].mxu0 %vm48_vm0, %v1110_v24 }
  0x2b   :  { %1047 = vmatpush3.bf16.msra.mxu0 %v1111_v22  ;;  %1048 = vmatprep.mubr.msk.bf16.mxu0 %vm48_vm0, %v1112_v25  ;;  %v801_v22 = vld [vmem:[%s1317_s2 + $0x18] sm:$0xff]  ;;  %v799_v25 = vld [vmem:[%s1317_s2 + $0x8] sm:$0xff] }
  0x36   :  { %1049 = vmatmul.mubr.msk.bf16.vlgmr.msra.gmra.mrb[0].mxu0 %vm48_vm0, %v1113_v26 }
  0xfd   :  { %v1020_v27 = vpop.f32.mrb[0].mxu1 }
  0xfe   :  { %v322_v28 = vpop.f32.mrb[1].mxu1 }
  0xff   :  { %v1021_v29 = vpop.f32.mrb[2].mxu1 }
 0x100   :  { %v325_v30 = vpop.f32.mrb[3].mxu1 }
 0x109   :  { %v1050_v31 = vpop.f32.mrb[0].mxu0 }
 0x10a   :  { %v1052_v32 = vadd.f32 %v1050_v31, %v1020_v27  ;;  %v737_v33 = vpop.f32.mrb[1].mxu0  ;;  %v841_v27 = vld [vmem:[%s1318_s3 + $0x18] sm:$0xff] }
 0x10b   :  { %v1053_v34 = vadd.f32 %v737_v33, %v322_v28  ;;  %v1051_v35 = vpop.f32.mrb[2].mxu0 }
 0x10c   :  { %v1054_v36 = vadd.f32 %v1051_v35, %v1021_v29  ;;  %v740_v37 = vpop.f32.mrb[3].mxu0  ;;  %v763_v38 = vsel %vm756_vm1, %v1052_v32, 0.0 }
 0x10d   :  { %v1055_v39 = vadd.f32 %v740_v37, %v325_v30  ;;  %764 = vadd.xlane.f32.xlu1 %v763_v38  ;;  %v757_v40 = vsel %vm756_vm1, %v1053_v34, 0.0 }
 0x10e   :  { %758 = vadd.xlane.f32.xlu0 %v757_v40  ;;  %v766_v41 = vsel %vm756_vm1, %v1054_v36, 0.0 }
 0x10f   :  { %v760_v42 = vsel %vm756_vm1, %v1055_v39, 0.0 }
 0x111   :  { %767 = vadd.xlane.f32.xlu1 %v766_v41 }
 0x112   :  { %761 = vadd.xlane.f32.xlu0 %v760_v42 }
 0x19a   :  { %v765_v43 = vpop.xlane.xlu1 %764 }
 0x19b   :  { %v772_v44 = vmul.f32 0.03125, %v765_v43  ;;  %v759_v45 = vpop.xlane.xlu0 %758 }
 0x19c   :  { %v770_v46 = vmul.f32 0.03125, %v759_v45 }
 0x19d   :  { %v1251_v47 = vsub.f32 %v1052_v32, %v772_v44 }
 0x19e   :  { %v1253_v48 = vsub.f32 %v1053_v34, %v770_v46  ;;  %v768_v49 = vpop.xlane.xlu1 %767 }
 0x19f   :  { %v773_v50 = vmul.f32 0.03125, %v768_v49  ;;  %v762_v51 = vpop.xlane.xlu0 %761  ;;  %v780_v57 = vmul.f32 %v1251_v47, %v1251_v47 }
 0x1a0   :  { %v771_v52 = vmul.f32 0.03125, %v762_v51  ;;  %v778_v53 = vmul.f32 %v1253_v48, %v1253_v48 }
 0x1a1   :  { %v1257_v54 = vsub.f32 %v1054_v36, %v773_v50  ;;  %v788_v59 = vsel %vm756_vm1, %v780_v57, 0.0 }
 0x1a2   :  { %v1259_v55 = vsub.f32 %v1055_v39, %v771_v52  ;;  %v782_v56 = vsel %vm756_vm1, %v778_v53, 0.0 }
 0x1a3   :  { %783 = vadd.xlane.f32.xlu0 %v782_v56  ;;  %v781_v61 = vmul.f32 %v1257_v54, %v1257_v54 }
 0x1a4   :  { %v779_v58 = vmul.f32 %v1259_v55, %v1259_v55 }
 0x1a5   :  { %v791_v62 = vsel %vm756_vm1, %v781_v61, 0.0 }
 0x1a6   :  { %v785_v60 = vsel %vm756_vm1, %v779_v58, 0.0 }
 0x1a7   :  { %789 = vadd.xlane.f32.xlu0 %v788_v59  ;;  %786 = vadd.xlane.f32.xlu1 %v785_v60 }
 0x1ab   :  { %792 = vadd.xlane.f32.xlu1 %v791_v62 }
 0x230   :  { %v784_v0 = vpop.xlane.xlu0 %783 }
 0x231   :  { %v794_v1 = vmul.f32 0.03125, %v784_v0 }
 0x233   :  { %v802_v2 = vadd.f32 1e-05, %v794_v1 }
 0x234   :  { %v790_v3 = vpop.xlane.xlu0 %789  ;;  %v787_v5 = vpop.xlane.xlu1 %786 }
 0x235   :  { %1114 = vrsqrt.f32 %v802_v2  ;;  %v796_v4 = vmul.f32 0.03125, %v790_v3  ;;  %v795_v14 = vmul.f32 0.03125, %v787_v5 }
 0x237   :  { %v804_v6 = vadd.f32 1e-05, %v796_v4  ;;  %v803_v17 = vadd.f32 1e-05, %v795_v14 }
 0x238   :  { %v793_v7 = vpop.xlane.xlu1 %792 }
 0x239   :  { %1116 = vrsqrt.f32 %v804_v6  ;;  %v797_v10 = vmul.f32 0.03125, %v793_v7 }
 0x23b   :  { %v805_v15 = vadd.f32 1e-05, %v797_v10 }
 0x23d   :  { %1118 = vrsqrt.f32 %v805_v15 }
 0x23e   :  { %1120 = vrsqrt.f32 %v803_v17 }
 0x23f   :  { %v1115_v9 = vpop.eup %1114 }
 0x240   :  { %v810_v11 = vmul.f32 %v1115_v9, %v798_v8 }
 0x242   :  { %816 = vperm.xlu0 %1085, %v810_v11  }
 0x243   :  { %v1117_v13 = vpop.eup %1116 }
 0x244   :  { %v812_v16 = vmul.f32 %v1117_v13, %v800_v12 }
 0x246   :  { %826 = vperm.xlu1 %1086, %v812_v16  }
 0x247   :  { %v1119_v21 = vpop.eup %1118 }
 0x248   :  { %v813_v23 = vmul.f32 %v1119_v21, %v801_v22  ;;  %v1121_v24 = vpop.eup %1120 }
 0x249   :  { %v811_v26 = vmul.f32 %v1121_v24, %v799_v25 }
 0x24a   :  { %844 = vperm.xlu1 %1086, %v838_v18  }
 0x24e   :  { %849 = vperm.xlu1 %1086, %v839_v19  }
 0x252   :  { %854 = vperm.xlu1 %1086, %v840_v20  }
 0x256   :  { %831 = vperm.xlu1 %1086, %v813_v23  }
 0x25a   :  { %821 = vperm.xlu1 %1086, %v811_v26  }
 0x25e   :  { %859 = vperm.xlu1 %1086, %v841_v27  }
 0x2c1   :  { %v817_v28 = vpop.permute.xlu0 %816 }
 0x2c2   :  { %v834_v30 = vmul.f32 %v817_v28, %v1253_v48 }
 0x2c5   :  { %v827_v29 = vpop.permute.xlu1 %826 }
 0x2c6   :  { %v836_v35 = vmul.f32 %v827_v29, %v1251_v47 }
 0x2c9   :  { %v845_v31 = vpop.permute.xlu1 %844 }
 0x2ca   :  { %v862_v32 = vadd.f32 %v845_v31, %v834_v30 }
 0x2cc   :  { %v866_v33 = vmax.f32 %v862_v32, 0.0 }
 0x2cd   :  { %v850_v34 = vpop.permute.xlu1 %849 }
 0x2ce   :  { %870 = vst.msk [vmem:[%s1319_s4] sm:$0xff] %vm756_vm1, %v866_v33 }
 0x2d1   :  { %v855_v36 = vpop.permute.xlu1 %854 }
 0x2d2   :  { %v864_v37 = vadd.f32 %v855_v36, %v836_v35 }
 0x2d4   :  { %v868_v38 = vmax.f32 %v864_v37, 0.0 }
 0x2d5   :  { %v832_v39 = vpop.permute.xlu1 %831 }
 0x2d6   :  { %872 = vst.msk [vmem:[%s1319_s4 + $0x10] sm:$0xff] %vm756_vm1, %v868_v38  ;;  %v837_v42 = vmul.f32 %v832_v39, %v1257_v54 }
 0x2d9   :  { %v822_v40 = vpop.permute.xlu1 %821 }
 0x2da   :  { %v835_v41 = vmul.f32 %v822_v40, %v1259_v55 }
 0x2dc   :  { %v863_v43 = vadd.f32 %v850_v34, %v835_v41 }
 0x2dd   :  { %v860_v44 = vpop.permute.xlu1 %859 }
 0x2de   :  { %v867_v45 = vmax.f32 %v863_v43, 0.0  ;;  %v865_v46 = vadd.f32 %v860_v44, %v837_v42 }
 0x2e0   :  { %871 = vst.msk [vmem:[%s1319_s4 + $0x8] sm:$0xff] %vm756_vm1, %v867_v45  ;;  %v869_v47 = vmax.f32 %v865_v46, 0.0 }
 0x2e2   :  { %873 = vst.msk [vmem:[%s1319_s4 + $0x18] sm:$0xff] %vm756_vm1, %v869_v47 }

// kernel: resnet_generator_forward.10
= control target key start
LH: loop header
LB: loop body
LE: loop exit
PB: predicated region body
PF: predicated region fallthrough
CT: control target
= control target key end

     0   :  { %v29_v0 = vlaneseq  ;;  %v6824_v2 = vmov 1983009808   ;;  %v6825_v4 = vmov 0   ;;  %vm46_vm0 = vcmask 1041408   ;;  %s7657_s0 = inlined_call_operand.vmem [shape: bf16[49,4,512], index: 0, kind: input, shape index: {}]   ;;  %s7658_s1 = inlined_call_operand.vmem [shape: bf16[49,8,4], index: 1, kind: input, shape index: {}]   ;;  %s7659_s2 = inlined_call_operand.vmem [shape: f32[8,1], index: 2, kind: input, shape index: {}]   ;;  %s7660_s3 = inlined_call_operand.vmem [shape: f32[8,1], index: 3, kind: input, shape index: {}]   ;;  %s7661_s4 = inlined_call_operand.vmem [shape: f32[8,512], index: 4, kind: output, shape index: {}]  }
   0x1   :  { %v6094_v1 = vld [vmem:[%s7657_s0 + $0x8] sm:$0xff]  ;;  %v27_v3 = vunpack.c.l.s4 %v6824_v2  ;;  %91 = vmatprep.mubr.bf16.mxu0 %v6825_v4  ;;  %132 = vmatprep.mubr.bf16.mxu1 %v6825_v4  ;;  %v19_v5 = vld [vmem:[%s7657_s0] sm:$0xff]  ;;  %v6104_v10 = vld [vmem:[%s7657_s0 + $0x10] sm:$0xff]  ;;  %vm42_vm1 = vcmask 31744  }
   0x2   :  { %v30_v6 = vshrl.u32 %v29_v0, 7  ;;  %6771 = vset.pattern.permute.xlu1 %v6825_v4  ;;  %6772 = vset.pattern.permute.xlu0 %v6825_v4  ;;  %v25_v8 = vcombine.high %v6094_v1, %v6094_v1  ;;  %v142_v9 = vcombine.high %v19_v5, %v19_v5  ;;  %v261_v12 = vcombine.high %v6104_v10, %v6104_v10  ;;  %v6093_v25 = vld [vmem:[%s7658_s1 + $0x4] sm:$0xf]  ;;  %v6110_v30 = vld [vmem:[%s7657_s0 + $0x18] sm:$0xff]  ;;  %v18_v34 = vld [vmem:[%s7658_s1] sm:$0xf] }
   0x3   :  { %v28_v7 = vunpack.c.0.s8 %v27_v3  ;;  %v384_v31 = vcombine.high %v6110_v30, %v6110_v30  ;;  %v6116_v39 = vld [vmem:[%s7657_s0 + $0x20] sm:$0xff]  ;;  %v6103_v43 = vld [vmem:[%s7658_s1 + $0x8] sm:$0xf]  ;;  %v6109_v52 = vld [vmem:[%s7658_s1 + $0xc] sm:$0xf] }
   0x4   :  { %v507_v40 = vcombine.high %v6116_v39, %v6116_v39  ;;  %v6122_v48 = vld [vmem:[%s7657_s0 + $0x28] sm:$0xff]  ;;  %v6128_v57 = vld [vmem:[%s7657_s0 + $0x30] sm:$0xff]  ;;  %v6134_v2 = vld [vmem:[%s7657_s0 + $0x38] sm:$0xff] }
   0x5   :  { %v6864_v11 = vsub.s32 %v28_v7, %v30_v6  ;;  %v630_v49 = vcombine.high %v6122_v48, %v6122_v48  ;;  %v753_v58 = vcombine.high %v6128_v57, %v6128_v57  ;;  %v6115_v61 = vld [vmem:[%s7658_s1 + $0x10] sm:$0xf]  ;;  %v876_v3 = vcombine.high %v6134_v2, %v6134_v2  ;;  %v6121_v7 = vld [vmem:[%s7658_s1 + $0x14] sm:$0xf] }
   0x7   :  { %v32_v13 = vrot.slane %v6094_v1, %v6864_v11  ;;  %v39_v14 = vrot.slane %v25_v8, %v6864_v11  ;;  %v149_v15 = vrot.slane %v19_v5, %v6864_v11  ;;  %v156_v16 = vrot.slane %v142_v9, %v6864_v11 }
   0x8   :  { %v268_v23 = vrot.slane %v6104_v10, %v6864_v11  ;;  %v275_v24 = vrot.slane %v261_v12, %v6864_v11  ;;  %v391_v32 = vrot.slane %v6110_v30, %v6864_v11  ;;  %v398_v33 = vrot.slane %v384_v31, %v6864_v11  ;;  %v6152_v31 = vld [vmem:[%s7657_s0 + $0x50] sm:$0xff] }
   0x9   :  { %v40_v17 = vcombine.high %v32_v13, %v32_v13  ;;  %v41_v18 = vcombine.high %v39_v14, %v39_v14  ;;  %v48_v19 = vsel %vm46_vm0, %v32_v13, 0  ;;  %v54_v20 = vsel %vm46_vm0, %v39_v14, 0  ;;  %v6140_v13 = vld [vmem:[%s7657_s0 + $0x40] sm:$0xff] }
   0xa   :  { %v157_v21 = vcombine.high %v149_v15, %v149_v15  ;;  %v158_v22 = vcombine.high %v156_v16, %v156_v16  ;;  %v163_v26 = vsel %vm46_vm0, %v149_v15, 0  ;;  %v169_v27 = vsel %vm46_vm0, %v156_v16, 0 }
   0xb   :  { %6095 = vmatprep.subr.msk.bf16.mxu0 %vm46_vm0, %v40_v17  ;;  %6097 = vmatprep.subr.msk.bf16.mxu1 %vm46_vm0, %v41_v18  ;;  %v276_v28 = vcombine.high %v268_v23, %v268_v23  ;;  %v277_v29 = vcombine.high %v275_v24, %v275_v24  ;;  %v282_v35 = vsel %vm46_vm0, %v268_v23, 0  ;;  %v288_v36 = vsel %vm46_vm0, %v275_v24, 0  ;;  %v6127_v17 = vld [vmem:[%s7658_s1 + $0x18] sm:$0xf] }
   0xc   :  { %60 = vmatpush1.bf16.msra.mxu0 %v48_v19  ;;  %101 = vmatpush1.bf16.msra.mxu1 %v54_v20  ;;  %v399_v37 = vcombine.high %v391_v32, %v391_v32  ;;  %v400_v38 = vcombine.high %v398_v33, %v398_v33  ;;  %v514_v41 = vrot.slane %v6116_v39, %v6864_v11  ;;  %v405_v44 = vsel %vm46_vm0, %v391_v32, 0 }
   0xd   :  { %6099 = vmatprep.subr.msk.bf16.mxu0 %vm46_vm0, %v157_v21  ;;  %6101 = vmatprep.subr.msk.bf16.mxu1 %vm46_vm0, %v158_v22  ;;  %v521_v42 = vrot.slane %v507_v40, %v6864_v11  ;;  %v411_v45 = vsel %vm46_vm0, %v398_v33, 0  ;;  %v637_v50 = vrot.slane %v6122_v48, %v6864_v11  ;;  %v644_v51 = vrot.slane %v630_v49, %v6864_v11  ;;  %v6146_v22 = vld [vmem:[%s7657_s0 + $0x48] sm:$0xff]  ;;  %v6158_v40 = vld [vmem:[%s7657_s0 + $0x58] sm:$0xff]  ;;  %v6164_v49 = vld [vmem:[%s7657_s0 + $0x60] sm:$0xff] }
   0xe   :  { %v522_v46 = vcombine.high %v514_v41, %v514_v41  ;;  %v528_v53 = vsel %vm46_vm0, %v514_v41, 0  ;;  %v760_v59 = vrot.slane %v6128_v57, %v6864_v11  ;;  %v767_v60 = vrot.slane %v753_v58, %v6864_v11  ;;  %v6170_v58 = vld [vmem:[%s7657_s0 + $0x68] sm:$0xff] }
   0xf   :  { %6096 = vmatmul.mubr.msk.bf16.vlgmr.msra.gmra.mrb[0].mxu0 %vm42_vm1, %v6093_v25  ;;  %6098 = vmatmul.mubr.msk.bf16.vlgmr.msra.gmra.mrb[0].mxu1 %vm42_vm1, %v6093_v25  ;;  %v523_v47 = vcombine.high %v521_v42, %v521_v42  ;;  %v534_v54 = vsel %vm46_vm0, %v521_v42, 0  ;;  %v645_v55 = vcombine.high %v637_v50, %v637_v50  ;;  %v646_v56 = vcombine.high %v644_v51, %v644_v51 }
  0x10   :  { %175 = vmatpush1.bf16.msra.mxu0 %v163_v26  ;;  %216 = vmatpush1.bf16.msra.mxu1 %v169_v27  ;;  %v651_v62 = vsel %vm46_vm0, %v637_v50, 0  ;;  %v657_v63 = vsel %vm46_vm0, %v644_v51, 0  ;;  %v768_v0 = vcombine.high %v760_v59, %v760_v59  ;;  %v769_v1 = vcombine.high %v767_v60, %v767_v60  ;;  %v6133_v26 = vld [vmem:[%s7658_s1 + $0x1c] sm:$0xf] }
  0x11   :  { %206 = vmatprep.mubr.bf16.mxu0 %v6825_v4  ;;  %247 = vmatprep.mubr.bf16.mxu1 %v6825_v4  ;;  %v883_v5 = vrot.slane %v6134_v2, %v6864_v11  ;;  %v890_v6 = vrot.slane %v876_v3, %v6864_v11  ;;  %v774_v8 = vsel %vm46_vm0, %v760_v59, 0  ;;  %v780_v9 = vsel %vm46_vm0, %v767_v60, 0  ;;  %v6176_v3 = vld [vmem:[%s7657_s0 + $0x70] sm:$0xff] }
  0x12   :  { %6105 = vmatprep.subr.msk.bf16.mxu0 %vm46_vm0, %v276_v28  ;;  %6107 = vmatprep.subr.msk.bf16.mxu1 %vm46_vm0, %v277_v29  ;;  %v999_v14 = vcombine.high %v6140_v13, %v6140_v13  ;;  %v1006_v15 = vrot.slane %v6140_v13, %v6864_v11  ;;  %v1122_v23 = vcombine.high %v6146_v22, %v6146_v22 }
  0x13   :  { %v891_v10 = vcombine.high %v883_v5, %v883_v5  ;;  %v892_v12 = vcombine.high %v890_v6, %v890_v6  ;;  %v897_v18 = vsel %vm46_vm0, %v883_v5, 0  ;;  %v903_v19 = vsel %vm46_vm0, %v890_v6, 0 }
  0x14   :  { %v1013_v16 = vrot.slane %v999_v14, %v6864_v11  ;;  %v1014_v20 = vcombine.high %v1006_v15, %v1006_v15  ;;  %v1129_v24 = vrot.slane %v6146_v22, %v6864_v11  ;;  %v1136_v25 = vrot.slane %v1122_v23, %v6864_v11  ;;  %v6182_v14 = vld [vmem:[%s7657_s0 + $0x78] sm:$0xff]  ;;  %v6188_v23 = vld [vmem:[%s7657_s0 + $0x80] sm:$0xff] }
  0x15   :  { %v1020_v27 = vsel %vm46_vm0, %v1006_v15, 0  ;;  %v1245_v32 = vcombine.high %v6152_v31, %v6152_v31  ;;  %v1252_v33 = vrot.slane %v6152_v31, %v6864_v11  ;;  %v1368_v41 = vcombine.high %v6158_v40, %v6158_v40 }
  0x16   :  { %v1015_v21 = vcombine.high %v1013_v16, %v1013_v16  ;;  %v1026_v28 = vsel %vm46_vm0, %v1013_v16, 0  ;;  %v1137_v29 = vcombine.high %v1129_v24, %v1129_v24  ;;  %v1138_v30 = vcombine.high %v1136_v25, %v1136_v25 }
  0x17   :  { %v1375_v42 = vrot.slane %v6158_v40, %v6864_v11  ;;  %v1491_v50 = vcombine.high %v6164_v49, %v6164_v49  ;;  %v1498_v51 = vrot.slane %v6164_v49, %v6864_v11  ;;  %v1614_v59 = vcombine.high %v6170_v58, %v6170_v58 }
  0x18   :  { %v1621_v60 = vrot.slane %v6170_v58, %v6864_v11  ;;  %v1737_v5 = vcombine.high %v6176_v3, %v6176_v3  ;;  %v1744_v6 = vrot.slane %v6176_v3, %v6864_v11  ;;  %v1860_v15 = vcombine.high %v6182_v14, %v6182_v14 }
  0x19   :  { %v1867_v16 = vrot.slane %v6182_v14, %v6864_v11 }
  0x1b   :  { %6100 = vmatmul.mubr.msk.bf16.vlgmr.msra.gmra.mrb[0].mxu0 %vm42_vm1, %v18_v34  ;;  %6102 = vmatmul.mubr.msk.bf16.vlgmr.msra.gmra.mrb[0].mxu1 %vm42_vm1, %v18_v34  ;;  %v1259_v34 = vrot.slane %v1245_v32, %v6864_v11  ;;  %v6194_v32 = vld [vmem:[%s7657_s0 + $0x88] sm:$0xff] }
  0x1c   :  { %294 = vmatpush1.bf16.msra.mxu0 %v282_v35  ;;  %335 = vmatpush1.bf16.msra.mxu1 %v288_v36  ;;  %v6139_v35 = vld [vmem:[%s7658_s1 + $0x20] sm:$0xf]  ;;  %v1143_v36 = vsel %vm46_vm0, %v1129_v24, 0  ;;  %v1983_v24 = vcombine.high %v6188_v23, %v6188_v23 }
  0x1d   :  { %325 = vmatprep.mubr.bf16.mxu0 %v6825_v4  ;;  %366 = vmatprep.mubr.bf16.mxu1 %v6825_v4  ;;  %v1261_v39 = vcombine.high %v1259_v34, %v1259_v34 }
  0x1e   :  { %6111 = vmatprep.subr.msk.bf16.mxu0 %vm46_vm0, %v399_v37  ;;  %6113 = vmatprep.subr.msk.bf16.mxu1 %vm46_vm0, %v400_v38  ;;  %v1149_v37 = vsel %vm46_vm0, %v1136_v25, 0  ;;  %v1260_v38 = vcombine.high %v1252_v33, %v1252_v33  ;;  %v1990_v25 = vrot.slane %v6188_v23, %v6864_v11 }
  0x27   :  { %6106 = vmatmul.mubr.msk.bf16.vlgmr.msra.gmra.mrb[0].mxu0 %vm42_vm1, %v6103_v43  ;;  %6108 = vmatmul.mubr.msk.bf16.vlgmr.msra.gmra.mrb[0].mxu1 %vm42_vm1, %v6103_v43  ;;  %v1382_v43 = vrot.slane %v1368_v41, %v6864_v11  ;;  %v6200_v41 = vld [vmem:[%s7657_s0 + $0x90] sm:$0xff] }
  0x28   :  { %417 = vmatpush1.bf16.msra.mxu0 %v405_v44  ;;  %458 = vmatpush1.bf16.msra.mxu1 %v411_v45  ;;  %v6145_v44 = vld [vmem:[%s7658_s1 + $0x24] sm:$0xf]  ;;  %v1266_v45 = vsel %vm46_vm0, %v1252_v33, 0  ;;  %v2106_v33 = vcombine.high %v6194_v32, %v6194_v32 }
  0x29   :  { %448 = vmatprep.mubr.bf16.mxu0 %v6825_v4  ;;  %489 = vmatprep.mubr.bf16.mxu1 %v6825_v4  ;;  %v1384_v48 = vcombine.high %v1382_v43, %v1382_v43 }
  0x2a   :  { %6117 = vmatprep.subr.msk.bf16.mxu0 %vm46_vm0, %v522_v46  ;;  %6119 = vmatprep.subr.msk.bf16.mxu1 %vm46_vm0, %v523_v47  ;;  %v1272_v46 = vsel %vm46_vm0, %v1259_v34, 0  ;;  %v1383_v47 = vcombine.high %v1375_v42, %v1375_v42  ;;  %v2113_v34 = vrot.slane %v6194_v32, %v6864_v11 }
  0x33   :  { %6112 = vmatmul.mubr.msk.bf16.vlgmr.msra.gmra.mrb[0].mxu0 %vm42_vm1, %v6109_v52  ;;  %6114 = vmatmul.mubr.msk.bf16.vlgmr.msra.gmra.mrb[0].mxu1 %vm42_vm1, %v6109_v52  ;;  %v1505_v52 = vrot.slane %v1491_v50, %v6864_v11  ;;  %v6206_v50 = vld [vmem:[%s7657_s0 + $0x98] sm:$0xff] }
  0x34   :  { %540 = vmatpush1.bf16.msra.mxu0 %v528_v53  ;;  %581 = vmatpush1.bf16.msra.mxu1 %v534_v54  ;;  %v6151_v53 = vld [vmem:[%s7658_s1 + $0x28] sm:$0xf]  ;;  %v1389_v54 = vsel %vm46_vm0, %v1375_v42, 0  ;;  %v2229_v42 = vcombine.high %v6200_v41, %v6200_v41 }
  0x35   :  { %571 = vmatprep.mubr.bf16.mxu0 %v6825_v4  ;;  %612 = vmatprep.mubr.bf16.mxu1 %v6825_v4  ;;  %v1507_v57 = vcombine.high %v1505_v52, %v1505_v52 }
  0x36   :  { %6123 = vmatprep.subr.msk.bf16.mxu0 %vm46_vm0, %v645_v55  ;;  %6125 = vmatprep.subr.msk.bf16.mxu1 %vm46_vm0, %v646_v56  ;;  %v1395_v55 = vsel %vm46_vm0, %v1382_v43, 0  ;;  %v1506_v56 = vcombine.high %v1498_v51, %v1498_v51  ;;  %v2236_v43 = vrot.slane %v6200_v41, %v6864_v11 }
  0x3f   :  { %6118 = vmatmul.mubr.msk.bf16.vlgmr.msra.gmra.mrb[0].mxu0 %vm42_vm1, %v6115_v61  ;;  %6120 = vmatmul.mubr.msk.bf16.vlgmr.msra.gmra.mrb[0].mxu1 %vm42_vm1, %v6115_v61  ;;  %v1628_v61 = vrot.slane %v1614_v59, %v6864_v11  ;;  %v6212_v59 = vld [vmem:[%s7657_s0 + $0xa0] sm:$0xff] }
  0x40   :  { %663 = vmatpush1.bf16.msra.mxu0 %v651_v62  ;;  %704 = vmatpush1.bf16.msra.mxu1 %v657_v63  ;;  %v6157_v62 = vld [vmem:[%s7658_s1 + $0x2c] sm:$0xf]  ;;  %v1512_v63 = vsel %vm46_vm0, %v1498_v51, 0  ;;  %v2352_v51 = vcombine.high %v6206_v50, %v6206_v50 }
  0x41   :  { %694 = vmatprep.mubr.bf16.mxu0 %v6825_v4  ;;  %735 = vmatprep.mubr.bf16.mxu1 %v6825_v4  ;;  %v1630_v2 = vcombine.high %v1628_v61, %v1628_v61 }
  0x42   :  { %6129 = vmatprep.subr.msk.bf16.mxu0 %vm46_vm0, %v768_v0  ;;  %6131 = vmatprep.subr.msk.bf16.mxu1 %vm46_vm0, %v769_v1  ;;  %v1518_v0 = vsel %vm46_vm0, %v1505_v52, 0  ;;  %v1629_v1 = vcombine.high %v1621_v60, %v1621_v60  ;;  %v2359_v52 = vrot.slane %v6206_v50, %v6864_v11 }
  0x4b   :  { %6124 = vmatmul.mubr.msk.bf16.vlgmr.msra.gmra.mrb[0].mxu0 %vm42_vm1, %v6121_v7  ;;  %6126 = vmatmul.mubr.msk.bf16.vlgmr.msra.gmra.mrb[0].mxu1 %vm42_vm1, %v6121_v7  ;;  %v1751_v7 = vrot.slane %v1737_v5, %v6864_v11  ;;  %v6218_v5 = vld [vmem:[%s7657_s0 + $0xa8] sm:$0xff] }
  0x4c   :  { %786 = vmatpush1.bf16.msra.mxu0 %v774_v8  ;;  %827 = vmatpush1.bf16.msra.mxu1 %v780_v9  ;;  %v6163_v8 = vld [vmem:[%s7658_s1 + $0x30] sm:$0xf]  ;;  %v1635_v9 = vsel %vm46_vm0, %v1621_v60, 0  ;;  %v2475_v60 = vcombine.high %v6212_v59, %v6212_v59 }
  0x4d   :  { %817 = vmatprep.mubr.bf16.mxu0 %v6825_v4  ;;  %858 = vmatprep.mubr.bf16.mxu1 %v6825_v4  ;;  %v1753_v13 = vcombine.high %v1751_v7, %v1751_v7 }
  0x4e   :  { %6135 = vmatprep.subr.msk.bf16.mxu0 %vm46_vm0, %v891_v10  ;;  %6137 = vmatprep.subr.msk.bf16.mxu1 %vm46_vm0, %v892_v12  ;;  %v1641_v10 = vsel %vm46_vm0, %v1628_v61, 0  ;;  %v1752_v12 = vcombine.high %v1744_v6, %v1744_v6  ;;  %v2482_v61 = vrot.slane %v6212_v59, %v6864_v11 }
  0x57   :  { %6130 = vmatmul.mubr.msk.bf16.vlgmr.msra.gmra.mrb[0].mxu0 %vm42_vm1, %v6127_v17  ;;  %6132 = vmatmul.mubr.msk.bf16.vlgmr.msra.gmra.mrb[0].mxu1 %vm42_vm1, %v6127_v17  ;;  %v1874_v17 = vrot.slane %v1860_v15, %v6864_v11  ;;  %v6224_v15 = vld [vmem:[%s7657_s0 + $0xb0] sm:$0xff] }
  0x58   :  { %909 = vmatpush1.bf16.msra.mxu0 %v897_v18  ;;  %950 = vmatpush1.bf16.msra.mxu1 %v903_v19  ;;  %v6169_v18 = vld [vmem:[%s7658_s1 + $0x34] sm:$0xf]  ;;  %v1758_v19 = vsel %vm46_vm0, %v1744_v6, 0  ;;  %v2598_v6 = vcombine.high %v6218_v5, %v6218_v5 }
  0x59   :  { %940 = vmatprep.mubr.bf16.mxu0 %v6825_v4  ;;  %981 = vmatprep.mubr.bf16.mxu1 %v6825_v4  ;;  %v1876_v22 = vcombine.high %v1874_v17, %v1874_v17 }
  0x5a   :  { %6141 = vmatprep.subr.msk.bf16.mxu0 %vm46_vm0, %v1014_v20  ;;  %6143 = vmatprep.subr.msk.bf16.mxu1 %vm46_vm0, %v1015_v21  ;;  %v1764_v20 = vsel %vm46_vm0, %v1751_v7, 0  ;;  %v1875_v21 = vcombine.high %v1867_v16, %v1867_v16  ;;  %v2605_v7 = vrot.slane %v6218_v5, %v6864_v11 }
  0x63   :  { %6136 = vmatmul.mubr.msk.bf16.vlgmr.msra.gmra.mrb[0].mxu0 %vm42_vm1, %v6133_v26  ;;  %6138 = vmatmul.mubr.msk.bf16.vlgmr.msra.gmra.mrb[0].mxu1 %vm42_vm1, %v6133_v26  ;;  %v1997_v26 = vrot.slane %v1983_v24, %v6864_v11  ;;  %v6230_v24 = vld [vmem:[%s7657_s0 + $0xb8] sm:$0xff] }
  0x64   :  { %1032 = vmatpush1.bf16.msra.mxu0 %v1020_v27  ;;  %1073 = vmatpush1.bf16.msra.mxu1 %v1026_v28  ;;  %v6175_v27 = vld [vmem:[%s7658_s1 + $0x38] sm:$0xf]  ;;  %v1881_v28 = vsel %vm46_vm0, %v1867_v16, 0  ;;  %v2721_v16 = vcombine.high %v6224_v15, %v6224_v15 }
  0x65   :  { %1063 = vmatprep.mubr.bf16.mxu0 %v6825_v4  ;;  %1104 = vmatprep.mubr.bf16.mxu1 %v6825_v4  ;;  %v1999_v31 = vcombine.high %v1997_v26, %v1997_v26 }
  0x66   :  { %6147 = vmatprep.subr.msk.bf16.mxu0 %vm46_vm0, %v1137_v29  ;;  %6149 = vmatprep.subr.msk.bf16.mxu1 %vm46_vm0, %v1138_v30  ;;  %v1887_v29 = vsel %vm46_vm0, %v1874_v17, 0  ;;  %v1998_v30 = vcombine.high %v1990_v25, %v1990_v25  ;;  %v2728_v17 = vrot.slane %v6224_v15, %v6864_v11 }
  0x6f   :  { %6142 = vmatmul.mubr.msk.bf16.vlgmr.msra.gmra.mrb[0].mxu0 %vm42_vm1, %v6139_v35  ;;  %6144 = vmatmul.mubr.msk.bf16.vlgmr.msra.gmra.mrb[0].mxu1 %vm42_vm1, %v6139_v35  ;;  %v2120_v35 = vrot.slane %v2106_v33, %v6864_v11  ;;  %v6236_v33 = vld [vmem:[%s7657_s0 + $0xc0] sm:$0xff] }
  0x70   :  { %1155 = vmatpush1.bf16.msra.mxu0 %v1143_v36  ;;  %1196 = vmatpush1.bf16.msra.mxu1 %v1149_v37  ;;  %v6181_v36 = vld [vmem:[%s7658_s1 + $0x3c] sm:$0xf]  ;;  %v2004_v37 = vsel %vm46_vm0, %v1990_v25, 0  ;;  %v2844_v25 = vcombine.high %v6230_v24, %v6230_v24 }
  0x71   :  { %1186 = vmatprep.mubr.bf16.mxu0 %v6825_v4  ;;  %1227 = vmatprep.mubr.bf16.mxu1 %v6825_v4  ;;  %v2122_v40 = vcombine.high %v2120_v35, %v2120_v35 }
  0x72   :  { %6153 = vmatprep.subr.msk.bf16.mxu0 %vm46_vm0, %v1260_v38  ;;  %6155 = vmatprep.subr.msk.bf16.mxu1 %vm46_vm0, %v1261_v39  ;;  %v2010_v38 = vsel %vm46_vm0, %v1997_v26, 0  ;;  %v2121_v39 = vcombine.high %v2113_v34, %v2113_v34  ;;  %v2851_v26 = vrot.slane %v6230_v24, %v6864_v11 }
  0x7b   :  { %6148 = vmatmul.mubr.msk.bf16.vlgmr.msra.gmra.mrb[0].mxu0 %vm42_vm1, %v6145_v44  ;;  %6150 = vmatmul.mubr.msk.bf16.vlgmr.msra.gmra.mrb[0].mxu1 %vm42_vm1, %v6145_v44  ;;  %v2243_v44 = vrot.slane %v2229_v42, %v6864_v11  ;;  %v6242_v42 = vld [vmem:[%s7657_s0 + $0xc8] sm:$0xff] }
  0x7c   :  { %1278 = vmatpush1.bf16.msra.mxu0 %v1266_v45  ;;  %1319 = vmatpush1.bf16.msra.mxu1 %v1272_v46  ;;  %v6187_v45 = vld [vmem:[%s7658_s1 + $0x40] sm:$0xf]  ;;  %v2127_v46 = vsel %vm46_vm0, %v2113_v34, 0  ;;  %v2967_v34 = vcombine.high %v6236_v33, %v6236_v33 }
  0x7d   :  { %1309 = vmatprep.mubr.bf16.mxu0 %v6825_v4  ;;  %1350 = vmatprep.mubr.bf16.mxu1 %v6825_v4  ;;  %v2245_v49 = vcombine.high %v2243_v44, %v2243_v44 }
  0x7e   :  { %6159 = vmatprep.subr.msk.bf16.mxu0 %vm46_vm0, %v1383_v47  ;;  %6161 = vmatprep.subr.msk.bf16.mxu1 %vm46_vm0, %v1384_v48  ;;  %v2133_v47 = vsel %vm46_vm0, %v2120_v35, 0  ;;  %v2244_v48 = vcombine.high %v2236_v43, %v2236_v43  ;;  %v2974_v35 = vrot.slane %v6236_v33, %v6864_v11 }
  0x87   :  { %6154 = vmatmul.mubr.msk.bf16.vlgmr.msra.gmra.mrb[0].mxu0 %vm42_vm1, %v6151_v53  ;;  %6156 = vmatmul.mubr.msk.bf16.vlgmr.msra.gmra.mrb[0].mxu1 %vm42_vm1, %v6151_v53  ;;  %v2366_v53 = vrot.slane %v2352_v51, %v6864_v11  ;;  %v6248_v51 = vld [vmem:[%s7657_s0 + $0xd0] sm:$0xff] }
  0x88   :  { %1401 = vmatpush1.bf16.msra.mxu0 %v1389_v54  ;;  %1442 = vmatpush1.bf16.msra.mxu1 %v1395_v55  ;;  %v6193_v54 = vld [vmem:[%s7658_s1 + $0x44] sm:$0xf]  ;;  %v2250_v55 = vsel %vm46_vm0, %v2236_v43, 0  ;;  %v3090_v43 = vcombine.high %v6242_v42, %v6242_v42 }
  0x89   :  { %1432 = vmatprep.mubr.bf16.mxu0 %v6825_v4  ;;  %1473 = vmatprep.mubr.bf16.mxu1 %v6825_v4  ;;  %v2368_v58 = vcombine.high %v2366_v53, %v2366_v53 }
  0x8a   :  { %6165 = vmatprep.subr.msk.bf16.mxu0 %vm46_vm0, %v1506_v56  ;;  %6167 = vmatprep.subr.msk.bf16.mxu1 %vm46_vm0, %v1507_v57  ;;  %v2256_v56 = vsel %vm46_vm0, %v2243_v44, 0  ;;  %v2367_v57 = vcombine.high %v2359_v52, %v2359_v52  ;;  %v3097_v44 = vrot.slane %v6242_v42, %v6864_v11 }
  0x93   :  { %6160 = vmatmul.mubr.msk.bf16.vlgmr.msra.gmra.mrb[0].mxu0 %vm42_vm1, %v6157_v62  ;;  %6162 = vmatmul.mubr.msk.bf16.vlgmr.msra.gmra.mrb[0].mxu1 %vm42_vm1, %v6157_v62  ;;  %v2489_v62 = vrot.slane %v2475_v60, %v6864_v11  ;;  %v6254_v60 = vld [vmem:[%s7657_s0 + $0xd8] sm:$0xff] }
  0x94   :  { %1524 = vmatpush1.bf16.msra.mxu0 %v1512_v63  ;;  %1565 = vmatpush1.bf16.msra.mxu1 %v1518_v0  ;;  %v6199_v63 = vld [vmem:[%s7658_s1 + $0x48] sm:$0xf]  ;;  %v2373_v0 = vsel %vm46_vm0, %v2359_v52, 0  ;;  %v3213_v52 = vcombine.high %v6248_v51, %v6248_v51 }
  0x95   :  { %1555 = vmatprep.mubr.bf16.mxu0 %v6825_v4  ;;  %1596 = vmatprep.mubr.bf16.mxu1 %v6825_v4  ;;  %v2491_v3 = vcombine.high %v2489_v62, %v2489_v62 }
  0x96   :  { %6171 = vmatprep.subr.msk.bf16.mxu0 %vm46_vm0, %v1629_v1  ;;  %6173 = vmatprep.subr.msk.bf16.mxu1 %vm46_vm0, %v1630_v2  ;;  %v2379_v1 = vsel %vm46_vm0, %v2366_v53, 0  ;;  %v2490_v2 = vcombine.high %v2482_v61, %v2482_v61  ;;  %v3220_v53 = vrot.slane %v6248_v51, %v6864_v11 }
  0x9f   :  { %6166 = vmatmul.mubr.msk.bf16.vlgmr.msra.gmra.mrb[0].mxu0 %vm42_vm1, %v6163_v8  ;;  %6168 = vmatmul.mubr.msk.bf16.vlgmr.msra.gmra.mrb[0].mxu1 %vm42_vm1, %v6163_v8  ;;  %v2612_v8 = vrot.slane %v2598_v6, %v6864_v11  ;;  %v6260_v6 = vld [vmem:[%s7657_s0 + $0xe0] sm:$0xff] }
  0xa0   :  { %1647 = vmatpush1.bf16.msra.mxu0 %v1635_v9  ;;  %1688 = vmatpush1.bf16.msra.mxu1 %v1641_v10  ;;  %v6205_v9 = vld [vmem:[%s7658_s1 + $0x4c] sm:$0xf]  ;;  %v2496_v10 = vsel %vm46_vm0, %v2482_v61, 0  ;;  %v3336_v61 = vcombine.high %v6254_v60, %v6254_v60 }
  0xa1   :  { %1678 = vmatprep.mubr.bf16.mxu0 %v6825_v4  ;;  %1719 = vmatprep.mubr.bf16.mxu1 %v6825_v4  ;;  %v2614_v14 = vcombine.high %v2612_v8, %v2612_v8 }
  0xa2   :  { %6177 = vmatprep.subr.msk.bf16.mxu0 %vm46_vm0, %v1752_v12  ;;  %6179 = vmatprep.subr.msk.bf16.mxu1 %vm46_vm0, %v1753_v13  ;;  %v2502_v12 = vsel %vm46_vm0, %v2489_v62, 0  ;;  %v2613_v13 = vcombine.high %v2605_v7, %v2605_v7  ;;  %v3343_v62 = vrot.slane %v6254_v60, %v6864_v11 }
  0xab   :  { %6172 = vmatmul.mubr.msk.bf16.vlgmr.msra.gmra.mrb[0].mxu0 %vm42_vm1, %v6169_v18  ;;  %6174 = vmatmul.mubr.msk.bf16.vlgmr.msra.gmra.mrb[0].mxu1 %vm42_vm1, %v6169_v18  ;;  %v2735_v18 = vrot.slane %v2721_v16, %v6864_v11  ;;  %v6266_v16 = vld [vmem:[%s7657_s0 + $0xe8] sm:$0xff] }
  0xac   :  { %1770 = vmatpush1.bf16.msra.mxu0 %v1758_v19  ;;  %1811 = vmatpush1.bf16.msra.mxu1 %v1764_v20  ;;  %v6211_v19 = vld [vmem:[%s7658_s1 + $0x50] sm:$0xf]  ;;  %v2619_v20 = vsel %vm46_vm0, %v2605_v7, 0  ;;  %v3459_v7 = vcombine.high %v6260_v6, %v6260_v6 }
  0xad   :  { %1801 = vmatprep.mubr.bf16.mxu0 %v6825_v4  ;;  %1842 = vmatprep.mubr.bf16.mxu1 %v6825_v4  ;;  %v2737_v23 = vcombine.high %v2735_v18, %v2735_v18 }
  0xae   :  { %6183 = vmatprep.subr.msk.bf16.mxu0 %vm46_vm0, %v1875_v21  ;;  %6185 = vmatprep.subr.msk.bf16.mxu1 %vm46_vm0, %v1876_v22  ;;  %v2625_v21 = vsel %vm46_vm0, %v2612_v8, 0  ;;  %v2736_v22 = vcombine.high %v2728_v17, %v2728_v17  ;;  %v3466_v8 = vrot.slane %v6260_v6, %v6864_v11 }
  0xb7   :  { %6178 = vmatmul.mubr.msk.bf16.vlgmr.msra.gmra.mrb[0].mxu0 %vm42_vm1, %v6175_v27  ;;  %6180 = vmatmul.mubr.msk.bf16.vlgmr.msra.gmra.mrb[0].mxu1 %vm42_vm1, %v6175_v27  ;;  %v2858_v27 = vrot.slane %v2844_v25, %v6864_v11  ;;  %v6272_v25 = vld [vmem:[%s7657_s0 + $0xf0] sm:$0xff] }
  0xb8   :  { %1893 = vmatpush1.bf16.msra.mxu0 %v1881_v28  ;;  %1934 = vmatpush1.bf16.msra.mxu1 %v1887_v29  ;;  %v6217_v28 = vld [vmem:[%s7658_s1 + $0x54] sm:$0xf]  ;;  %v2742_v29 = vsel %vm46_vm0, %v2728_v17, 0  ;;  %v3582_v17 = vcombine.high %v6266_v16, %v6266_v16 }
  0xb9   :  { %1924 = vmatprep.mubr.bf16.mxu0 %v6825_v4  ;;  %1965 = vmatprep.mubr.bf16.mxu1 %v6825_v4  ;;  %v2860_v32 = vcombine.high %v2858_v27, %v2858_v27 }
  0xba   :  { %6189 = vmatprep.subr.msk.bf16.mxu0 %vm46_vm0, %v1998_v30  ;;  %6191 = vmatprep.subr.msk.bf16.mxu1 %vm46_vm0, %v1999_v31  ;;  %v2748_v30 = vsel %vm46_vm0, %v2735_v18, 0  ;;  %v2859_v31 = vcombine.high %v2851_v26, %v2851_v26  ;;  %v3589_v18 = vrot.slane %v6266_v16, %v6864_v11 }
  0xc3   :  { %6184 = vmatmul.mubr.msk.bf16.vlgmr.msra.gmra.mrb[0].mxu0 %vm42_vm1, %v6181_v36  ;;  %6186 = vmatmul.mubr.msk.bf16.vlgmr.msra.gmra.mrb[0].mxu1 %vm42_vm1, %v6181_v36  ;;  %v2981_v36 = vrot.slane %v2967_v34, %v6864_v11  ;;  %v6278_v34 = vld [vmem:[%s7657_s0 + $0xf8] sm:$0xff] }
  0xc4   :  { %2016 = vmatpush1.bf16.msra.mxu0 %v2004_v37  ;;  %2057 = vmatpush1.bf16.msra.mxu1 %v2010_v38  ;;  %v6223_v37 = vld [vmem:[%s7658_s1 + $0x58] sm:$0xf]  ;;  %v2865_v38 = vsel %vm46_vm0, %v2851_v26, 0  ;;  %v3705_v26 = vcombine.high %v6272_v25, %v6272_v25 }
  0xc5   :  { %2047 = vmatprep.mubr.bf16.mxu0 %v6825_v4  ;;  %2088 = vmatprep.mubr.bf16.mxu1 %v6825_v4  ;;  %v2983_v41 = vcombine.high %v2981_v36, %v2981_v36 }
  0xc6   :  { %6195 = vmatprep.subr.msk.bf16.mxu0 %vm46_vm0, %v2121_v39  ;;  %6197 = vmatprep.subr.msk.bf16.mxu1 %vm46_vm0, %v2122_v40  ;;  %v2871_v39 = vsel %vm46_vm0, %v2858_v27, 0  ;;  %v2982_v40 = vcombine.high %v2974_v35, %v2974_v35  ;;  %v3712_v27 = vrot.slane %v6272_v25, %v6864_v11 }
  0xcf   :  { %6190 = vmatmul.mubr.msk.bf16.vlgmr.msra.gmra.mrb[0].mxu0 %vm42_vm1, %v6187_v45  ;;  %6192 = vmatmul.mubr.msk.bf16.vlgmr.msra.gmra.mrb[0].mxu1 %vm42_vm1, %v6187_v45  ;;  %v3104_v45 = vrot.slane %v3090_v43, %v6864_v11  ;;  %v6284_v43 = vld [vmem:[%s7657_s0 + $0x100] sm:$0xff] }
  0xd0   :  { %2139 = vmatpush1.bf16.msra.mxu0 %v2127_v46  ;;  %2180 = vmatpush1.bf16.msra.mxu1 %v2133_v47  ;;  %v6229_v46 = vld [vmem:[%s7658_s1 + $0x5c] sm:$0xf]  ;;  %v2988_v47 = vsel %vm46_vm0, %v2974_v35, 0  ;;  %v3828_v35 = vcombine.high %v6278_v34, %v6278_v34 }
  0xd1   :  { %2170 = vmatprep.mubr.bf16.mxu0 %v6825_v4  ;;  %2211 = vmatprep.mubr.bf16.mxu1 %v6825_v4  ;;  %v3106_v50 = vcombine.high %v3104_v45, %v3104_v45 }
  0xd2   :  { %6201 = vmatprep.subr.msk.bf16.mxu0 %vm46_vm0, %v2244_v48  ;;  %6203 = vmatprep.subr.msk.bf16.mxu1 %vm46_vm0, %v2245_v49  ;;  %v2994_v48 = vsel %vm46_vm0, %v2981_v36, 0  ;;  %v3105_v49 = vcombine.high %v3097_v44, %v3097_v44  ;;  %v3835_v36 = vrot.slane %v6278_v34, %v6864_v11 }
  0xdb   :  { %6196 = vmatmul.mubr.msk.bf16.vlgmr.msra.gmra.mrb[0].mxu0 %vm42_vm1, %v6193_v54  ;;  %6198 = vmatmul.mubr.msk.bf16.vlgmr.msra.gmra.mrb[0].mxu1 %vm42_vm1, %v6193_v54  ;;  %v3227_v54 = vrot.slane %v3213_v52, %v6864_v11  ;;  %v6290_v52 = vld [vmem:[%s7657_s0 + $0x108] sm:$0xff] }
  0xdc   :  { %2262 = vmatpush1.bf16.msra.mxu0 %v2250_v55  ;;  %2303 = vmatpush1.bf16.msra.mxu1 %v2256_v56  ;;  %v6235_v55 = vld [vmem:[%s7658_s1 + $0x60] sm:$0xf]  ;;  %v3111_v56 = vsel %vm46_vm0, %v3097_v44, 0  ;;  %v3951_v44 = vcombine.high %v6284_v43, %v6284_v43 }
  0xdd   :  { %2293 = vmatprep.mubr.bf16.mxu0 %v6825_v4  ;;  %2334 = vmatprep.mubr.bf16.mxu1 %v6825_v4  ;;  %v3229_v59 = vcombine.high %v3227_v54, %v3227_v54 }
  0xde   :  { %6207 = vmatprep.subr.msk.bf16.mxu0 %vm46_vm0, %v2367_v57  ;;  %6209 = vmatprep.subr.msk.bf16.mxu1 %vm46_vm0, %v2368_v58  ;;  %v3117_v57 = vsel %vm46_vm0, %v3104_v45, 0  ;;  %v3228_v58 = vcombine.high %v3220_v53, %v3220_v53  ;;  %v3958_v45 = vrot.slane %v6284_v43, %v6864_v11 }
  0xe7   :  { %6202 = vmatmul.mubr.msk.bf16.vlgmr.msra.gmra.mrb[0].mxu0 %vm42_vm1, %v6199_v63  ;;  %6204 = vmatmul.mubr.msk.bf16.vlgmr.msra.gmra.mrb[0].mxu1 %vm42_vm1, %v6199_v63  ;;  %v3350_v63 = vrot.slane %v3336_v61, %v6864_v11  ;;  %v6296_v61 = vld [vmem:[%s7657_s0 + $0x110] sm:$0xff] }
  0xe8   :  { %2385 = vmatpush1.bf16.msra.mxu0 %v2373_v0  ;;  %2426 = vmatpush1.bf16.msra.mxu1 %v2379_v1  ;;  %v6241_v0 = vld [vmem:[%s7658_s1 + $0x64] sm:$0xf]  ;;  %v3234_v1 = vsel %vm46_vm0, %v3220_v53, 0  ;;  %v4074_v53 = vcombine.high %v6290_v52, %v6290_v52 }
  0xe9   :  { %2416 = vmatprep.mubr.bf16.mxu0 %v6825_v4  ;;  %2457 = vmatprep.mubr.bf16.mxu1 %v6825_v4  ;;  %v3352_v5 = vcombine.high %v3350_v63, %v3350_v63 }
  0xea   :  { %6213 = vmatprep.subr.msk.bf16.mxu0 %vm46_vm0, %v2490_v2  ;;  %6215 = vmatprep.subr.msk.bf16.mxu1 %vm46_vm0, %v2491_v3  ;;  %v3240_v2 = vsel %vm46_vm0, %v3227_v54, 0  ;;  %v3351_v3 = vcombine.high %v3343_v62, %v3343_v62  ;;  %v4081_v54 = vrot.slane %v6290_v52, %v6864_v11 }
  0xf3   :  { %6208 = vmatmul.mubr.msk.bf16.vlgmr.msra.gmra.mrb[0].mxu0 %vm42_vm1, %v6205_v9  ;;  %6210 = vmatmul.mubr.msk.bf16.vlgmr.msra.gmra.mrb[0].mxu1 %vm42_vm1, %v6205_v9  ;;  %v3473_v9 = vrot.slane %v3459_v7, %v6864_v11  ;;  %v6302_v7 = vld [vmem:[%s7657_s0 + $0x118] sm:$0xff] }
  0xf4   :  { %2508 = vmatpush1.bf16.msra.mxu0 %v2496_v10  ;;  %2549 = vmatpush1.bf16.msra.mxu1 %v2502_v12  ;;  %v6247_v10 = vld [vmem:[%s7658_s1 + $0x68] sm:$0xf]  ;;  %v3357_v12 = vsel %vm46_vm0, %v3343_v62, 0  ;;  %v4197_v62 = vcombine.high %v6296_v61, %v6296_v61 }
  0xf5   :  { %2539 = vmatprep.mubr.bf16.mxu0 %v6825_v4  ;;  %2580 = vmatprep.mubr.bf16.mxu1 %v6825_v4  ;;  %v3475_v15 = vcombine.high %v3473_v9, %v3473_v9 }
  0xf6   :  { %6219 = vmatprep.subr.msk.bf16.mxu0 %vm46_vm0, %v2613_v13  ;;  %6221 = vmatprep.subr.msk.bf16.mxu1 %vm46_vm0, %v2614_v14  ;;  %v3363_v13 = vsel %vm46_vm0, %v3350_v63, 0  ;;  %v3474_v14 = vcombine.high %v3466_v8, %v3466_v8  ;;  %v4204_v63 = vrot.slane %v6296_v61, %v6864_v11 }
  0xff   :  { %6214 = vmatmul.mubr.msk.bf16.vlgmr.msra.gmra.mrb[0].mxu0 %vm42_vm1, %v6211_v19  ;;  %6216 = vmatmul.mubr.msk.bf16.vlgmr.msra.gmra.mrb[0].mxu1 %vm42_vm1, %v6211_v19  ;;  %v3596_v19 = vrot.slane %v3582_v17, %v6864_v11  ;;  %v6308_v17 = vld [vmem:[%s7657_s0 + $0x120] sm:$0xff] }
 0x100   :  { %2631 = vmatpush1.bf16.msra.mxu0 %v2619_v20  ;;  %2672 = vmatpush1.bf16.msra.mxu1 %v2625_v21  ;;  %v6253_v20 = vld [vmem:[%s7658_s1 + $0x6c] sm:$0xf]  ;;  %v3480_v21 = vsel %vm46_vm0, %v3466_v8, 0  ;;  %v4320_v8 = vcombine.high %v6302_v7, %v6302_v7 }
 0x101   :  { %2662 = vmatprep.mubr.bf16.mxu0 %v6825_v4  ;;  %2703 = vmatprep.mubr.bf16.mxu1 %v6825_v4  ;;  %v3598_v24 = vcombine.high %v3596_v19, %v3596_v19 }
 0x102   :  { %6225 = vmatprep.subr.msk.bf16.mxu0 %vm46_vm0, %v2736_v22  ;;  %6227 = vmatprep.subr.msk.bf16.mxu1 %vm46_vm0, %v2737_v23  ;;  %v3486_v22 = vsel %vm46_vm0, %v3473_v9, 0  ;;  %v3597_v23 = vcombine.high %v3589_v18, %v3589_v18  ;;  %v4327_v9 = vrot.slane %v6302_v7, %v6864_v11 }
 0x10b   :  { %6220 = vmatmul.mubr.msk.bf16.vlgmr.msra.gmra.mrb[0].mxu0 %vm42_vm1, %v6217_v28  ;;  %6222 = vmatmul.mubr.msk.bf16.vlgmr.msra.gmra.mrb[0].mxu1 %vm42_vm1, %v6217_v28  ;;  %v3719_v28 = vrot.slane %v3705_v26, %v6864_v11  ;;  %v6314_v26 = vld [vmem:[%s7657_s0 + $0x128] sm:$0xff] }
 0x10c   :  { %2754 = vmatpush1.bf16.msra.mxu0 %v2742_v29  ;;  %2795 = vmatpush1.bf16.msra.mxu1 %v2748_v30  ;;  %v6259_v29 = vld [vmem:[%s7658_s1 + $0x70] sm:$0xf]  ;;  %v3603_v30 = vsel %vm46_vm0, %v3589_v18, 0  ;;  %v4443_v18 = vcombine.high %v6308_v17, %v6308_v17 }
 0x10d   :  { %2785 = vmatprep.mubr.bf16.mxu0 %v6825_v4  ;;  %2826 = vmatprep.mubr.bf16.mxu1 %v6825_v4  ;;  %v3721_v33 = vcombine.high %v3719_v28, %v3719_v28 }
 0x10e   :  { %6231 = vmatprep.subr.msk.bf16.mxu0 %vm46_vm0, %v2859_v31  ;;  %6233 = vmatprep.subr.msk.bf16.mxu1 %vm46_vm0, %v2860_v32  ;;  %v3609_v31 = vsel %vm46_vm0, %v3596_v19, 0  ;;  %v3720_v32 = vcombine.high %v3712_v27, %v3712_v27  ;;  %v4450_v19 = vrot.slane %v6308_v17, %v6864_v11 }
 0x117   :  { %6226 = vmatmul.mubr.msk.bf16.vlgmr.msra.gmra.mrb[0].mxu0 %vm42_vm1, %v6223_v37  ;;  %6228 = vmatmul.mubr.msk.bf16.vlgmr.msra.gmra.mrb[0].mxu1 %vm42_vm1, %v6223_v37  ;;  %v3842_v37 = vrot.slane %v3828_v35, %v6864_v11  ;;  %v6320_v35 = vld [vmem:[%s7657_s0 + $0x130] sm:$0xff] }
 0x118   :  { %2877 = vmatpush1.bf16.msra.mxu0 %v2865_v38  ;;  %2918 = vmatpush1.bf16.msra.mxu1 %v2871_v39  ;;  %v6265_v38 = vld [vmem:[%s7658_s1 + $0x74] sm:$0xf]  ;;  %v3726_v39 = vsel %vm46_vm0, %v3712_v27, 0  ;;  %v4566_v27 = vcombine.high %v6314_v26, %v6314_v26 }
 0x119   :  { %2908 = vmatprep.mubr.bf16.mxu0 %v6825_v4  ;;  %2949 = vmatprep.mubr.bf16.mxu1 %v6825_v4  ;;  %v3844_v42 = vcombine.high %v3842_v37, %v3842_v37 }
 0x11a   :  { %6237 = vmatprep.subr.msk.bf16.mxu0 %vm46_vm0, %v2982_v40  ;;  %6239 = vmatprep.subr.msk.bf16.mxu1 %vm46_vm0, %v2983_v41  ;;  %v3732_v40 = vsel %vm46_vm0, %v3719_v28, 0  ;;  %v3843_v41 = vcombine.high %v3835_v36, %v3835_v36  ;;  %v4573_v28 = vrot.slane %v6314_v26, %v6864_v11 }
 0x123   :  { %6232 = vmatmul.mubr.msk.bf16.vlgmr.msra.gmra.mrb[0].mxu0 %vm42_vm1, %v6229_v46  ;;  %6234 = vmatmul.mubr.msk.bf16.vlgmr.msra.gmra.mrb[0].mxu1 %vm42_vm1, %v6229_v46  ;;  %v3965_v46 = vrot.slane %v3951_v44, %v6864_v11  ;;  %v6326_v44 = vld [vmem:[%s7657_s0 + $0x138] sm:$0xff] }
 0x124   :  { %3000 = vmatpush1.bf16.msra.mxu0 %v2988_v47  ;;  %3041 = vmatpush1.bf16.msra.mxu1 %v2994_v48  ;;  %v6271_v47 = vld [vmem:[%s7658_s1 + $0x78] sm:$0xf]  ;;  %v3849_v48 = vsel %vm46_vm0, %v3835_v36, 0  ;;  %v4689_v36 = vcombine.high %v6320_v35, %v6320_v35 }
 0x125   :  { %3031 = vmatprep.mubr.bf16.mxu0 %v6825_v4  ;;  %3072 = vmatprep.mubr.bf16.mxu1 %v6825_v4  ;;  %v3967_v51 = vcombine.high %v3965_v46, %v3965_v46 }
 0x126   :  { %6243 = vmatprep.subr.msk.bf16.mxu0 %vm46_vm0, %v3105_v49  ;;  %6245 = vmatprep.subr.msk.bf16.mxu1 %vm46_vm0, %v3106_v50  ;;  %v3855_v49 = vsel %vm46_vm0, %v3842_v37, 0  ;;  %v3966_v50 = vcombine.high %v3958_v45, %v3958_v45  ;;  %v4696_v37 = vrot.slane %v6320_v35, %v6864_v11 }
 0x12f   :  { %6238 = vmatmul.mubr.msk.bf16.vlgmr.msra.gmra.mrb[0].mxu0 %vm42_vm1, %v6235_v55  ;;  %6240 = vmatmul.mubr.msk.bf16.vlgmr.msra.gmra.mrb[0].mxu1 %vm42_vm1, %v6235_v55  ;;  %v4088_v55 = vrot.slane %v4074_v53, %v6864_v11  ;;  %v6332_v53 = vld [vmem:[%s7657_s0 + $0x140] sm:$0xff] }
 0x130   :  { %3123 = vmatpush1.bf16.msra.mxu0 %v3111_v56  ;;  %3164 = vmatpush1.bf16.msra.mxu1 %v3117_v57  ;;  %v6277_v56 = vld [vmem:[%s7658_s1 + $0x7c] sm:$0xf]  ;;  %v3972_v57 = vsel %vm46_vm0, %v3958_v45, 0  ;;  %v4812_v45 = vcombine.high %v6326_v44, %v6326_v44 }
 0x131   :  { %3154 = vmatprep.mubr.bf16.mxu0 %v6825_v4  ;;  %3195 = vmatprep.mubr.bf16.mxu1 %v6825_v4  ;;  %v4090_v60 = vcombine.high %v4088_v55, %v4088_v55 }
 0x132   :  { %6249 = vmatprep.subr.msk.bf16.mxu0 %vm46_vm0, %v3228_v58  ;;  %6251 = vmatprep.subr.msk.bf16.mxu1 %vm46_vm0, %v3229_v59  ;;  %v3978_v58 = vsel %vm46_vm0, %v3965_v46, 0  ;;  %v4089_v59 = vcombine.high %v4081_v54, %v4081_v54  ;;  %v4819_v46 = vrot.slane %v6326_v44, %v6864_v11 }
 0x13b   :  { %6244 = vmatmul.mubr.msk.bf16.vlgmr.msra.gmra.mrb[0].mxu0 %vm42_vm1, %v6241_v0  ;;  %6246 = vmatmul.mubr.msk.bf16.vlgmr.msra.gmra.mrb[0].mxu1 %vm42_vm1, %v6241_v0  ;;  %v4211_v0 = vrot.slane %v4197_v62, %v6864_v11  ;;  %v6338_v62 = vld [vmem:[%s7657_s0 + $0x148] sm:$0xff] }
 0x13c   :  { %3246 = vmatpush1.bf16.msra.mxu0 %v3234_v1  ;;  %3287 = vmatpush1.bf16.msra.mxu1 %v3240_v2  ;;  %v6283_v1 = vld [vmem:[%s7658_s1 + $0x80] sm:$0xf]  ;;  %v4095_v2 = vsel %vm46_vm0, %v4081_v54, 0  ;;  %v4935_v54 = vcombine.high %v6332_v53, %v6332_v53 }
 0x13d   :  { %3277 = vmatprep.mubr.bf16.mxu0 %v6825_v4  ;;  %3318 = vmatprep.mubr.bf16.mxu1 %v6825_v4  ;;  %v4213_v6 = vcombine.high %v4211_v0, %v4211_v0 }
 0x13e   :  { %6255 = vmatprep.subr.msk.bf16.mxu0 %vm46_vm0, %v3351_v3  ;;  %6257 = vmatprep.subr.msk.bf16.mxu1 %vm46_vm0, %v3352_v5  ;;  %v4101_v3 = vsel %vm46_vm0, %v4088_v55, 0  ;;  %v4212_v5 = vcombine.high %v4204_v63, %v4204_v63  ;;  %v4942_v55 = vrot.slane %v6332_v53, %v6864_v11 }
 0x147   :  { %6250 = vmatmul.mubr.msk.bf16.vlgmr.msra.gmra.mrb[0].mxu0 %vm42_vm1, %v6247_v10  ;;  %6252 = vmatmul.mubr.msk.bf16.vlgmr.msra.gmra.mrb[0].mxu1 %vm42_vm1, %v6247_v10  ;;  %v4334_v10 = vrot.slane %v4320_v8, %v6864_v11  ;;  %v6344_v8 = vld [vmem:[%s7657_s0 + $0x150] sm:$0xff] }
 0x148   :  { %3369 = vmatpush1.bf16.msra.mxu0 %v3357_v12  ;;  %3410 = vmatpush1.bf16.msra.mxu1 %v3363_v13  ;;  %v6289_v12 = vld [vmem:[%s7658_s1 + $0x84] sm:$0xf]  ;;  %v4218_v13 = vsel %vm46_vm0, %v4204_v63, 0  ;;  %v5058_v63 = vcombine.high %v6338_v62, %v6338_v62 }
 0x149   :  { %3400 = vmatprep.mubr.bf16.mxu0 %v6825_v4  ;;  %3441 = vmatprep.mubr.bf16.mxu1 %v6825_v4  ;;  %v4336_v16 = vcombine.high %v4334_v10, %v4334_v10 }
 0x14a   :  { %6261 = vmatprep.subr.msk.bf16.mxu0 %vm46_vm0, %v3474_v14  ;;  %6263 = vmatprep.subr.msk.bf16.mxu1 %vm46_vm0, %v3475_v15  ;;  %v4224_v14 = vsel %vm46_vm0, %v4211_v0, 0  ;;  %v4335_v15 = vcombine.high %v4327_v9, %v4327_v9  ;;  %v5065_v0 = vrot.slane %v6338_v62, %v6864_v11 }
 0x153   :  { %6256 = vmatmul.mubr.msk.bf16.vlgmr.msra.gmra.mrb[0].mxu0 %vm42_vm1, %v6253_v20  ;;  %6258 = vmatmul.mubr.msk.bf16.vlgmr.msra.gmra.mrb[0].mxu1 %vm42_vm1, %v6253_v20  ;;  %v4457_v20 = vrot.slane %v4443_v18, %v6864_v11  ;;  %v6350_v18 = vld [vmem:[%s7657_s0 + $0x158] sm:$0xff] }
 0x154   :  { %3492 = vmatpush1.bf16.msra.mxu0 %v3480_v21  ;;  %3533 = vmatpush1.bf16.msra.mxu1 %v3486_v22  ;;  %v6295_v21 = vld [vmem:[%s7658_s1 + $0x88] sm:$0xf]  ;;  %v4341_v22 = vsel %vm46_vm0, %v4327_v9, 0  ;;  %v5181_v9 = vcombine.high %v6344_v8, %v6344_v8 }
 0x155   :  { %3523 = vmatprep.mubr.bf16.mxu0 %v6825_v4  ;;  %3564 = vmatprep.mubr.bf16.mxu1 %v6825_v4  ;;  %v4459_v25 = vcombine.high %v4457_v20, %v4457_v20 }
 0x156   :  { %6267 = vmatprep.subr.msk.bf16.mxu0 %vm46_vm0, %v3597_v23  ;;  %6269 = vmatprep.subr.msk.bf16.mxu1 %vm46_vm0, %v3598_v24  ;;  %v4347_v23 = vsel %vm46_vm0, %v4334_v10, 0  ;;  %v4458_v24 = vcombine.high %v4450_v19, %v4450_v19  ;;  %v5188_v10 = vrot.slane %v6344_v8, %v6864_v11 }
 0x15f   :  { %6262 = vmatmul.mubr.msk.bf16.vlgmr.msra.gmra.mrb[0].mxu0 %vm42_vm1, %v6259_v29  ;;  %6264 = vmatmul.mubr.msk.bf16.vlgmr.msra.gmra.mrb[0].mxu1 %vm42_vm1, %v6259_v29  ;;  %v4580_v29 = vrot.slane %v4566_v27, %v6864_v11  ;;  %v6356_v27 = vld [vmem:[%s7657_s0 + $0x160] sm:$0xff] }
 0x160   :  { %3615 = vmatpush1.bf16.msra.mxu0 %v3603_v30  ;;  %3656 = vmatpush1.bf16.msra.mxu1 %v3609_v31  ;;  %v6301_v30 = vld [vmem:[%s7658_s1 + $0x8c] sm:$0xf]  ;;  %v4464_v31 = vsel %vm46_vm0, %v4450_v19, 0  ;;  %v5304_v19 = vcombine.high %v6350_v18, %v6350_v18 }
 0x161   :  { %3646 = vmatprep.mubr.bf16.mxu0 %v6825_v4  ;;  %3687 = vmatprep.mubr.bf16.mxu1 %v6825_v4  ;;  %v4582_v34 = vcombine.high %v4580_v29, %v4580_v29 }
 0x162   :  { %6273 = vmatprep.subr.msk.bf16.mxu0 %vm46_vm0, %v3720_v32  ;;  %6275 = vmatprep.subr.msk.bf16.mxu1 %vm46_vm0, %v3721_v33  ;;  %v4470_v32 = vsel %vm46_vm0, %v4457_v20, 0  ;;  %v4581_v33 = vcombine.high %v4573_v28, %v4573_v28  ;;  %v5311_v20 = vrot.slane %v6350_v18, %v6864_v11 }
 0x16b   :  { %6268 = vmatmul.mubr.msk.bf16.vlgmr.msra.gmra.mrb[0].mxu0 %vm42_vm1, %v6265_v38  ;;  %6270 = vmatmul.mubr.msk.bf16.vlgmr.msra.gmra.mrb[0].mxu1 %vm42_vm1, %v6265_v38  ;;  %v4703_v38 = vrot.slane %v4689_v36, %v6864_v11  ;;  %v6362_v36 = vld [vmem:[%s7657_s0 + $0x168] sm:$0xff] }
 0x16c   :  { %3738 = vmatpush1.bf16.msra.mxu0 %v3726_v39  ;;  %3779 = vmatpush1.bf16.msra.mxu1 %v3732_v40  ;;  %v6307_v39 = vld [vmem:[%s7658_s1 + $0x90] sm:$0xf]  ;;  %v4587_v40 = vsel %vm46_vm0, %v4573_v28, 0  ;;  %v5427_v28 = vcombine.high %v6356_v27, %v6356_v27 }
 0x16d   :  { %3769 = vmatprep.mubr.bf16.mxu0 %v6825_v4  ;;  %3810 = vmatprep.mubr.bf16.mxu1 %v6825_v4  ;;  %v4705_v43 = vcombine.high %v4703_v38, %v4703_v38 }
 0x16e   :  { %6279 = vmatprep.subr.msk.bf16.mxu0 %vm46_vm0, %v3843_v41  ;;  %6281 = vmatprep.subr.msk.bf16.mxu1 %vm46_vm0, %v3844_v42  ;;  %v4593_v41 = vsel %vm46_vm0, %v4580_v29, 0  ;;  %v4704_v42 = vcombine.high %v4696_v37, %v4696_v37  ;;  %v5434_v29 = vrot.slane %v6356_v27, %v6864_v11 }
 0x177   :  { %6274 = vmatmul.mubr.msk.bf16.vlgmr.msra.gmra.mrb[0].mxu0 %vm42_vm1, %v6271_v47  ;;  %6276 = vmatmul.mubr.msk.bf16.vlgmr.msra.gmra.mrb[0].mxu1 %vm42_vm1, %v6271_v47  ;;  %v4826_v47 = vrot.slane %v4812_v45, %v6864_v11  ;;  %v6368_v45 = vld [vmem:[%s7657_s0 + $0x170] sm:$0xff] }
 0x178   :  { %3861 = vmatpush1.bf16.msra.mxu0 %v3849_v48  ;;  %3902 = vmatpush1.bf16.msra.mxu1 %v3855_v49  ;;  %v6313_v48 = vld [vmem:[%s7658_s1 + $0x94] sm:$0xf]  ;;  %v4710_v49 = vsel %vm46_vm0, %v4696_v37, 0  ;;  %v5550_v37 = vcombine.high %v6362_v36, %v6362_v36 }
 0x179   :  { %3892 = vmatprep.mubr.bf16.mxu0 %v6825_v4  ;;  %3933 = vmatprep.mubr.bf16.mxu1 %v6825_v4  ;;  %v4828_v52 = vcombine.high %v4826_v47, %v4826_v47 }
 0x17a   :  { %6285 = vmatprep.subr.msk.bf16.mxu0 %vm46_vm0, %v3966_v50  ;;  %6287 = vmatprep.subr.msk.bf16.mxu1 %vm46_vm0, %v3967_v51  ;;  %v4716_v50 = vsel %vm46_vm0, %v4703_v38, 0  ;;  %v4827_v51 = vcombine.high %v4819_v46, %v4819_v46  ;;  %v5557_v38 = vrot.slane %v6362_v36, %v6864_v11 }
 0x183   :  { %6280 = vmatmul.mubr.msk.bf16.vlgmr.msra.gmra.mrb[0].mxu0 %vm42_vm1, %v6277_v56  ;;  %6282 = vmatmul.mubr.msk.bf16.vlgmr.msra.gmra.mrb[0].mxu1 %vm42_vm1, %v6277_v56  ;;  %v4949_v56 = vrot.slane %v4935_v54, %v6864_v11  ;;  %v6374_v54 = vld [vmem:[%s7657_s0 + $0x178] sm:$0xff] }
 0x184   :  { %3984 = vmatpush1.bf16.msra.mxu0 %v3972_v57  ;;  %4025 = vmatpush1.bf16.msra.mxu1 %v3978_v58  ;;  %v6319_v57 = vld [vmem:[%s7658_s1 + $0x98] sm:$0xf]  ;;  %v4833_v58 = vsel %vm46_vm0, %v4819_v46, 0  ;;  %v5673_v46 = vcombine.high %v6368_v45, %v6368_v45 }
 0x185   :  { %4015 = vmatprep.mubr.bf16.mxu0 %v6825_v4  ;;  %4056 = vmatprep.mubr.bf16.mxu1 %v6825_v4  ;;  %v4951_v61 = vcombine.high %v4949_v56, %v4949_v56 }
 0x186   :  { %6291 = vmatprep.subr.msk.bf16.mxu0 %vm46_vm0, %v4089_v59  ;;  %6293 = vmatprep.subr.msk.bf16.mxu1 %vm46_vm0, %v4090_v60  ;;  %v4839_v59 = vsel %vm46_vm0, %v4826_v47, 0  ;;  %v4950_v60 = vcombine.high %v4942_v55, %v4942_v55  ;;  %v5680_v47 = vrot.slane %v6368_v45, %v6864_v11 }
 0x18f   :  { %6286 = vmatmul.mubr.msk.bf16.vlgmr.msra.gmra.mrb[0].mxu0 %vm42_vm1, %v6283_v1  ;;  %6288 = vmatmul.mubr.msk.bf16.vlgmr.msra.gmra.mrb[0].mxu1 %vm42_vm1, %v6283_v1  ;;  %v5072_v1 = vrot.slane %v5058_v63, %v6864_v11  ;;  %v6380_v63 = vld [vmem:[%s7657_s0 + $0x180] sm:$0xff] }
 0x190   :  { %4107 = vmatpush1.bf16.msra.mxu0 %v4095_v2  ;;  %4148 = vmatpush1.bf16.msra.mxu1 %v4101_v3  ;;  %v6325_v2 = vld [vmem:[%s7658_s1 + $0x9c] sm:$0xf]  ;;  %v4956_v3 = vsel %vm46_vm0, %v4942_v55, 0  ;;  %v5796_v55 = vcombine.high %v6374_v54, %v6374_v54 }
 0x191   :  { %4138 = vmatprep.mubr.bf16.mxu0 %v6825_v4  ;;  %4179 = vmatprep.mubr.bf16.mxu1 %v6825_v4  ;;  %v5074_v7 = vcombine.high %v5072_v1, %v5072_v1 }
 0x192   :  { %6297 = vmatprep.subr.msk.bf16.mxu0 %vm46_vm0, %v4212_v5  ;;  %6299 = vmatprep.subr.msk.bf16.mxu1 %vm46_vm0, %v4213_v6  ;;  %v4962_v5 = vsel %vm46_vm0, %v4949_v56, 0  ;;  %v5073_v6 = vcombine.high %v5065_v0, %v5065_v0  ;;  %v5803_v56 = vrot.slane %v6374_v54, %v6864_v11 }
 0x19b   :  { %6292 = vmatmul.mubr.msk.bf16.vlgmr.msra.gmra.mrb[0].mxu0 %vm42_vm1, %v6289_v12  ;;  %6294 = vmatmul.mubr.msk.bf16.vlgmr.msra.gmra.mrb[0].mxu1 %vm42_vm1, %v6289_v12  ;;  %v5195_v12 = vrot.slane %v5181_v9, %v6864_v11 }
 0x19c   :  { %4230 = vmatpush1.bf16.msra.mxu0 %v4218_v13  ;;  %4271 = vmatpush1.bf16.msra.mxu1 %v4224_v14  ;;  %v6331_v13 = vld [vmem:[%s7658_s1 + $0xa0] sm:$0xf]  ;;  %v5079_v14 = vsel %vm46_vm0, %v5065_v0, 0  ;;  %v5919_v0 = vcombine.high %v6380_v63, %v6380_v63 }
 0x19d   :  { %4261 = vmatprep.mubr.bf16.mxu0 %v6825_v4  ;;  %4302 = vmatprep.mubr.bf16.mxu1 %v6825_v4  ;;  %v5197_v17 = vcombine.high %v5195_v12, %v5195_v12 }
 0x19e   :  { %6303 = vmatprep.subr.msk.bf16.mxu0 %vm46_vm0, %v4335_v15  ;;  %6305 = vmatprep.subr.msk.bf16.mxu1 %vm46_vm0, %v4336_v16  ;;  %v5085_v15 = vsel %vm46_vm0, %v5072_v1, 0  ;;  %v5196_v16 = vcombine.high %v5188_v10, %v5188_v10  ;;  %v5926_v1 = vrot.slane %v6380_v63, %v6864_v11 }
 0x1a0   :  { %v5940_v9 = vsel %vm46_vm0, %v5926_v1, 0 }
 0x1a7   :  { %6298 = vmatmul.mubr.msk.bf16.vlgmr.msra.gmra.mrb[0].mxu0 %vm42_vm1, %v6295_v21  ;;  %6300 = vmatmul.mubr.msk.bf16.vlgmr.msra.gmra.mrb[0].mxu1 %vm42_vm1, %v6295_v21  ;;  %v5318_v21 = vrot.slane %v5304_v19, %v6864_v11 }
 0x1a8   :  { %4353 = vmatpush1.bf16.msra.mxu0 %v4341_v22  ;;  %4394 = vmatpush1.bf16.msra.mxu1 %v4347_v23  ;;  %v6337_v22 = vld [vmem:[%s7658_s1 + $0xa4] sm:$0xf]  ;;  %v5202_v23 = vsel %vm46_vm0, %v5188_v10, 0 }
 0x1a9   :  { %4384 = vmatprep.mubr.bf16.mxu0 %v6825_v4  ;;  %4425 = vmatprep.mubr.bf16.mxu1 %v6825_v4  ;;  %v5320_v26 = vcombine.high %v5318_v21, %v5318_v21 }
 0x1aa   :  { %6309 = vmatprep.subr.msk.bf16.mxu0 %vm46_vm0, %v4458_v24  ;;  %6311 = vmatprep.subr.msk.bf16.mxu1 %vm46_vm0, %v4459_v25  ;;  %v5208_v24 = vsel %vm46_vm0, %v5195_v12, 0  ;;  %v5319_v25 = vcombine.high %v5311_v20, %v5311_v20  ;;  %v6379_v12 = vld [vmem:[%s7658_s1 + $0xc0] sm:$0xf] }
 0x1b3   :  { %6304 = vmatmul.mubr.msk.bf16.vlgmr.msra.gmra.mrb[0].mxu0 %vm42_vm1, %v6301_v30  ;;  %6306 = vmatmul.mubr.msk.bf16.vlgmr.msra.gmra.mrb[0].mxu1 %vm42_vm1, %v6301_v30  ;;  %v5441_v30 = vrot.slane %v5427_v28, %v6864_v11 }
 0x1b4   :  { %4476 = vmatpush1.bf16.msra.mxu0 %v4464_v31  ;;  %4517 = vmatpush1.bf16.msra.mxu1 %v4470_v32  ;;  %v6343_v31 = vld [vmem:[%s7658_s1 + $0xa8] sm:$0xf]  ;;  %v5325_v32 = vsel %vm46_vm0, %v5311_v20, 0 }
 0x1b5   :  { %4507 = vmatprep.mubr.bf16.mxu0 %v6825_v4  ;;  %4548 = vmatprep.mubr.bf16.mxu1 %v6825_v4  ;;  %v5443_v35 = vcombine.high %v5441_v30, %v5441_v30 }
 0x1b6   :  { %6315 = vmatprep.subr.msk.bf16.mxu0 %vm46_vm0, %v4581_v33  ;;  %6317 = vmatprep.subr.msk.bf16.mxu1 %vm46_vm0, %v4582_v34  ;;  %v5331_v33 = vsel %vm46_vm0, %v5318_v21, 0  ;;  %v5442_v34 = vcombine.high %v5434_v29, %v5434_v29 }
 0x1bf   :  { %6310 = vmatmul.mubr.msk.bf16.vlgmr.msra.gmra.mrb[0].mxu0 %vm42_vm1, %v6307_v39  ;;  %6312 = vmatmul.mubr.msk.bf16.vlgmr.msra.gmra.mrb[0].mxu1 %vm42_vm1, %v6307_v39  ;;  %v5564_v39 = vrot.slane %v5550_v37, %v6864_v11 }
 0x1c0   :  { %4599 = vmatpush1.bf16.msra.mxu0 %v4587_v40  ;;  %4640 = vmatpush1.bf16.msra.mxu1 %v4593_v41  ;;  %v6349_v40 = vld [vmem:[%s7658_s1 + $0xac] sm:$0xf]  ;;  %v5448_v41 = vsel %vm46_vm0, %v5434_v29, 0 }
 0x1c1   :  { %4630 = vmatprep.mubr.bf16.mxu0 %v6825_v4  ;;  %4671 = vmatprep.mubr.bf16.mxu1 %v6825_v4  ;;  %v5566_v44 = vcombine.high %v5564_v39, %v5564_v39 }
 0x1c2   :  { %6321 = vmatprep.subr.msk.bf16.mxu0 %vm46_vm0, %v4704_v42  ;;  %6323 = vmatprep.subr.msk.bf16.mxu1 %vm46_vm0, %v4705_v43  ;;  %v5454_v42 = vsel %vm46_vm0, %v5441_v30, 0  ;;  %v5565_v43 = vcombine.high %v5557_v38, %v5557_v38 }
 0x1cb   :  { %6316 = vmatmul.mubr.msk.bf16.vlgmr.msra.gmra.mrb[0].mxu0 %vm42_vm1, %v6313_v48  ;;  %6318 = vmatmul.mubr.msk.bf16.vlgmr.msra.gmra.mrb[0].mxu1 %vm42_vm1, %v6313_v48  ;;  %v5687_v48 = vrot.slane %v5673_v46, %v6864_v11 }
 0x1cc   :  { %4722 = vmatpush1.bf16.msra.mxu0 %v4710_v49  ;;  %4763 = vmatpush1.bf16.msra.mxu1 %v4716_v50  ;;  %v6355_v49 = vld [vmem:[%s7658_s1 + $0xb0] sm:$0xf]  ;;  %v5571_v50 = vsel %vm46_vm0, %v5557_v38, 0 }
 0x1cd   :  { %4753 = vmatprep.mubr.bf16.mxu0 %v6825_v4  ;;  %4794 = vmatprep.mubr.bf16.mxu1 %v6825_v4  ;;  %v5689_v53 = vcombine.high %v5687_v48, %v5687_v48 }
 0x1ce   :  { %6327 = vmatprep.subr.msk.bf16.mxu0 %vm46_vm0, %v4827_v51  ;;  %6329 = vmatprep.subr.msk.bf16.mxu1 %vm46_vm0, %v4828_v52  ;;  %v5577_v51 = vsel %vm46_vm0, %v5564_v39, 0  ;;  %v5688_v52 = vcombine.high %v5680_v47, %v5680_v47  ;;  %v6058_v39 = vld [vmem:[%s7659_s2] sm:$0xff] }
 0x1d7   :  { %6322 = vmatmul.mubr.msk.bf16.vlgmr.msra.gmra.mrb[0].mxu0 %vm42_vm1, %v6319_v57  ;;  %6324 = vmatmul.mubr.msk.bf16.vlgmr.msra.gmra.mrb[0].mxu1 %vm42_vm1, %v6319_v57  ;;  %v5810_v57 = vrot.slane %v5796_v55, %v6864_v11 }
 0x1d8   :  { %4845 = vmatpush1.bf16.msra.mxu0 %v4833_v58  ;;  %4886 = vmatpush1.bf16.msra.mxu1 %v4839_v59  ;;  %v6361_v58 = vld [vmem:[%s7658_s1 + $0xb4] sm:$0xf]  ;;  %v5694_v59 = vsel %vm46_vm0, %v5680_v47, 0 }
 0x1d9   :  { %4876 = vmatprep.mubr.bf16.mxu0 %v6825_v4  ;;  %4917 = vmatprep.mubr.bf16.mxu1 %v6825_v4  ;;  %v5812_v62 = vcombine.high %v5810_v57, %v5810_v57 }
 0x1da   :  { %6333 = vmatprep.subr.msk.bf16.mxu0 %vm46_vm0, %v4950_v60  ;;  %6335 = vmatprep.subr.msk.bf16.mxu1 %vm46_vm0, %v4951_v61  ;;  %v5700_v60 = vsel %vm46_vm0, %v5687_v48, 0  ;;  %v5811_v61 = vcombine.high %v5803_v56, %v5803_v56 }
 0x1e3   :  { %6328 = vmatmul.mubr.msk.bf16.vlgmr.msra.gmra.mrb[0].mxu0 %vm42_vm1, %v6325_v2  ;;  %6330 = vmatmul.mubr.msk.bf16.vlgmr.msra.gmra.mrb[0].mxu1 %vm42_vm1, %v6325_v2  ;;  %v5933_v2 = vrot.slane %v5919_v0, %v6864_v11  ;;  %v6373_v11 = vld [vmem:[%s7658_s1 + $0xbc] sm:$0xf] }
 0x1e4   :  { %4968 = vmatpush1.bf16.msra.mxu0 %v4956_v3  ;;  %5009 = vmatpush1.bf16.msra.mxu1 %v4962_v5  ;;  %v6367_v3 = vld [vmem:[%s7658_s1 + $0xb8] sm:$0xf]  ;;  %v5817_v5 = vsel %vm46_vm0, %v5803_v56, 0 }
 0x1e5   :  { %4999 = vmatprep.mubr.bf16.mxu0 %v6825_v4  ;;  %5040 = vmatprep.mubr.bf16.mxu1 %v6825_v4  ;;  %v5935_v8 = vcombine.high %v5933_v2, %v5933_v2  ;;  %v5946_v10 = vsel %vm46_vm0, %v5933_v2, 0 }
 0x1e6   :  { %6339 = vmatprep.subr.msk.bf16.mxu0 %vm46_vm0, %v5073_v6  ;;  %6341 = vmatprep.subr.msk.bf16.mxu1 %vm46_vm0, %v5074_v7  ;;  %v5823_v6 = vsel %vm46_vm0, %v5810_v57, 0  ;;  %v5934_v7 = vcombine.high %v5926_v1, %v5926_v1 }
 0x1ef   :  { %6334 = vmatmul.mubr.msk.bf16.vlgmr.msra.gmra.mrb[0].mxu0 %vm42_vm1, %v6331_v13  ;;  %6336 = vmatmul.mubr.msk.bf16.vlgmr.msra.gmra.mrb[0].mxu1 %vm42_vm1, %v6331_v13 }
 0x1f0   :  { %5091 = vmatpush1.bf16.msra.mxu0 %v5079_v14  ;;  %5132 = vmatpush1.bf16.msra.mxu1 %v5085_v15 }
 0x1f1   :  { %5122 = vmatprep.mubr.bf16.mxu0 %v6825_v4  ;;  %5163 = vmatprep.mubr.bf16.mxu1 %v6825_v4 }
 0x1f2   :  { %6345 = vmatprep.subr.msk.bf16.mxu0 %vm46_vm0, %v5196_v16  ;;  %6347 = vmatprep.subr.msk.bf16.mxu1 %vm46_vm0, %v5197_v17 }
 0x1fb   :  { %6340 = vmatmul.mubr.msk.bf16.vlgmr.msra.gmra.mrb[0].mxu0 %vm42_vm1, %v6337_v22  ;;  %6342 = vmatmul.mubr.msk.bf16.vlgmr.msra.gmra.mrb[0].mxu1 %vm42_vm1, %v6337_v22 }
 0x1fc   :  { %5214 = vmatpush1.bf16.msra.mxu0 %v5202_v23  ;;  %5255 = vmatpush1.bf16.msra.mxu1 %v5208_v24 }
 0x1fd   :  { %5245 = vmatprep.mubr.bf16.mxu0 %v6825_v4  ;;  %5286 = vmatprep.mubr.bf16.mxu1 %v6825_v4 }
 0x1fe   :  { %6351 = vmatprep.subr.msk.bf16.mxu0 %vm46_vm0, %v5319_v25  ;;  %6353 = vmatprep.subr.msk.bf16.mxu1 %vm46_vm0, %v5320_v26 }
 0x207   :  { %6346 = vmatmul.mubr.msk.bf16.vlgmr.msra.gmra.mrb[0].mxu0 %vm42_vm1, %v6343_v31  ;;  %6348 = vmatmul.mubr.msk.bf16.vlgmr.msra.gmra.mrb[0].mxu1 %vm42_vm1, %v6343_v31 }
 0x208   :  { %5337 = vmatpush1.bf16.msra.mxu0 %v5325_v32  ;;  %5378 = vmatpush1.bf16.msra.mxu1 %v5331_v33 }
 0x209   :  { %5368 = vmatprep.mubr.bf16.mxu0 %v6825_v4  ;;  %5409 = vmatprep.mubr.bf16.mxu1 %v6825_v4 }
 0x20a   :  { %6357 = vmatprep.subr.msk.bf16.mxu0 %vm46_vm0, %v5442_v34  ;;  %6359 = vmatprep.subr.msk.bf16.mxu1 %vm46_vm0, %v5443_v35 }
 0x213   :  { %6352 = vmatmul.mubr.msk.bf16.vlgmr.msra.gmra.mrb[0].mxu0 %vm42_vm1, %v6349_v40  ;;  %6354 = vmatmul.mubr.msk.bf16.vlgmr.msra.gmra.mrb[0].mxu1 %vm42_vm1, %v6349_v40 }
 0x214   :  { %5460 = vmatpush1.bf16.msra.mxu0 %v5448_v41  ;;  %5501 = vmatpush1.bf16.msra.mxu1 %v5454_v42  ;;  %v6071_v42 = vld [vmem:[%s7660_s3] sm:$0xff] }
 0x215   :  { %5491 = vmatprep.mubr.bf16.mxu0 %v6825_v4  ;;  %5532 = vmatprep.mubr.bf16.mxu1 %v6825_v4 }
 0x216   :  { %6363 = vmatprep.subr.msk.bf16.mxu0 %vm46_vm0, %v5565_v43  ;;  %6365 = vmatprep.subr.msk.bf16.mxu1 %vm46_vm0, %v5566_v44 }
 0x21f   :  { %6358 = vmatmul.mubr.msk.bf16.vlgmr.msra.gmra.mrb[0].mxu0 %vm42_vm1, %v6355_v49  ;;  %6360 = vmatmul.mubr.msk.bf16.vlgmr.msra.gmra.mrb[0].mxu1 %vm42_vm1, %v6355_v49 }
 0x220   :  { %5583 = vmatpush1.bf16.msra.mxu0 %v5571_v50  ;;  %5624 = vmatpush1.bf16.msra.mxu1 %v5577_v51 }
 0x221   :  { %5614 = vmatprep.mubr.bf16.mxu0 %v6825_v4  ;;  %5655 = vmatprep.mubr.bf16.mxu1 %v6825_v4 }
 0x222   :  { %6369 = vmatprep.subr.msk.bf16.mxu0 %vm46_vm0, %v5688_v52  ;;  %6371 = vmatprep.subr.msk.bf16.mxu1 %vm46_vm0, %v5689_v53 }
 0x22b   :  { %6364 = vmatmul.mubr.msk.bf16.vlgmr.msra.gmra.mrb[0].mxu0 %vm42_vm1, %v6361_v58  ;;  %6366 = vmatmul.mubr.msk.bf16.vlgmr.msra.gmra.mrb[0].mxu1 %vm42_vm1, %v6361_v58 }
 0x22c   :  { %5706 = vmatpush1.bf16.msra.mxu0 %v5694_v59  ;;  %5747 = vmatpush1.bf16.msra.mxu1 %v5700_v60 }
 0x22d   :  { %5737 = vmatprep.mubr.bf16.mxu0 %v6825_v4  ;;  %5778 = vmatprep.mubr.bf16.mxu1 %v6825_v4 }
 0x22e   :  { %6375 = vmatprep.subr.msk.bf16.mxu0 %vm46_vm0, %v5811_v61  ;;  %6377 = vmatprep.subr.msk.bf16.mxu1 %vm46_vm0, %v5812_v62 }
 0x237   :  { %6370 = vmatmul.mubr.msk.bf16.vlgmr.msra.gmra.mrb[0].mxu0 %vm42_vm1, %v6367_v3  ;;  %6372 = vmatmul.mubr.msk.bf16.vlgmr.msra.gmra.mrb[0].mxu1 %vm42_vm1, %v6367_v3 }
 0x238   :  { %5829 = vmatpush1.bf16.msra.mxu0 %v5817_v5  ;;  %5870 = vmatpush1.bf16.msra.mxu1 %v5823_v6 }
 0x239   :  { %5860 = vmatprep.mubr.bf16.mxu0 %v6825_v4  ;;  %5901 = vmatprep.mubr.bf16.mxu1 %v6825_v4 }
 0x23a   :  { %6381 = vmatprep.subr.msk.bf16.mxu0 %vm46_vm0, %v5934_v7  ;;  %6383 = vmatprep.subr.msk.bf16.mxu1 %vm46_vm0, %v5935_v8 }
 0x243   :  { %6376 = vmatmul.mubr.msk.bf16.vlgmr.msra.gmra.mrb[0].mxu0 %vm42_vm1, %v6373_v11  ;;  %6378 = vmatmul.mubr.msk.bf16.vlgmr.msra.gmra.mrb[0].mxu1 %vm42_vm1, %v6373_v11 }
 0x244   :  { %5952 = vmatpush1.bf16.msra.mxu0 %v5940_v9  ;;  %5993 = vmatpush1.bf16.msra.mxu1 %v5946_v10 }
 0x245   :  { %5983 = vmatprep.mubr.bf16.mxu0 %v6825_v4  ;;  %6024 = vmatprep.mubr.bf16.mxu1 %v6825_v4 }
 0x24f   :  { %6382 = vmatmul.mubr.msk.bf16.vlgmr.msra.gmra.mrb[0].mxu0 %vm42_vm1, %v6379_v12  ;;  %6384 = vmatmul.mubr.msk.bf16.vlgmr.msra.gmra.mrb[0].mxu1 %vm42_vm1, %v6379_v12 }
 0x322   :  { %v5985_v13 = vpop.f32.mrb[0].mxu0  ;;  %v6026_v14 = vpop.f32.mrb[0].mxu1 }
 0x323   :  { %v5987_v15 = vpop.f32.mrb[1].mxu0  ;;  %v6028_v16 = vpop.f32.mrb[1].mxu1 }
 0x324   :  { %v6037_v17 = vadd.f32 %v5987_v15, %v5985_v13  ;;  %v5989_v18 = vpop.f32.mrb[2].mxu0  ;;  %v6030_v19 = vpop.f32.mrb[2].mxu1 }
 0x325   :  { %v5990_v20 = vpop.f32.mrb[3].mxu0  ;;  %v6031_v21 = vpop.f32.mrb[3].mxu1 }
 0x326   :  { %v6038_v22 = vadd.f32 %v6037_v17, %v6026_v14 }
 0x328   :  { %v6039_v23 = vadd.f32 %v6038_v22, %v6028_v16 }
 0x32a   :  { %6040 = vadd.xlane.f32.xlu0 %v6039_v23 }
 0x3b7   :  { %v6041_v4 = vpop.xlane.xlu0 %6040 }
 0x3b8   :  { %v6043_v24 = vmul.f32 0.001953125, %v6041_v4 }
 0x3ba   :  { %v6044_v25 = vsub.f32 %v5985_v13, %v6043_v24  ;;  %v6045_v26 = vsub.f32 %v5987_v15, %v6043_v24  ;;  %v6046_v27 = vsub.f32 %v6026_v14, %v6043_v24  ;;  %v6047_v28 = vsub.f32 %v6028_v16, %v6043_v24 }
 0x3bc   :  { %v6048_v29 = vmul.f32 %v6044_v25, %v6044_v25  ;;  %v6049_v30 = vmul.f32 %v6045_v26, %v6045_v26  ;;  %v6050_v31 = vmul.f32 %v6046_v27, %v6046_v27  ;;  %v6051_v33 = vmul.f32 %v6047_v28, %v6047_v28 }
 0x3be   :  { %v6052_v32 = vadd.f32 %v6049_v30, %v6048_v29 }
 0x3c0   :  { %v6053_v34 = vadd.f32 %v6052_v32, %v6050_v31 }
 0x3c2   :  { %v6054_v35 = vadd.f32 %v6053_v34, %v6051_v33 }
 0x3c4   :  { %6055 = vadd.xlane.f32.xlu0 %v6054_v35 }
 0x451   :  { %v6056_v36 = vpop.xlane.xlu0 %6055 }
 0x452   :  { %v6057_v37 = vmul.f32 0.001953125, %v6056_v36 }
 0x454   :  { %v6059_v38 = vadd.f32 1e-05, %v6057_v37 }
 0x456   :  { %6822 = vrsqrt.f32 %v6059_v38 }
 0x460   :  { %v6823_v40 = vpop.eup %6822 }
 0x461   :  { %v6061_v41 = vmul.f32 %v6823_v40, %v6058_v39 }
 0x463   :  { %6064 = vperm.xlu1 %6771, %v6061_v41  }
 0x467   :  { %6074 = vperm.xlu1 %6771, %v6071_v42  }
 0x4e2   :  { %v6065_v43 = vpop.permute.xlu1 %6064 }
 0x4e3   :  { %v6067_v44 = vmul.f32 %v6065_v43, %v6044_v25  ;;  %v6068_v45 = vmul.f32 %v6065_v43, %v6045_v26  ;;  %v6069_v46 = vmul.f32 %v6065_v43, %v6046_v27  ;;  %v6070_v47 = vmul.f32 %v6065_v43, %v6047_v28 }
 0x4e6   :  { %v6075_v48 = vpop.permute.xlu1 %6074 }
 0x4e7   :  { %v6077_v49 = vadd.f32 %v6075_v48, %v6067_v44  ;;  %v6078_v50 = vadd.f32 %v6075_v48, %v6068_v45  ;;  %v6079_v51 = vadd.f32 %v6075_v48, %v6069_v46  ;;  %v6080_v52 = vadd.f32 %v6075_v48, %v6070_v47 }
 0x4e9   :  { %v6081_v53 = vmax.f32 %v6077_v49, 0.0  ;;  %v6082_v54 = vmax.f32 %v6078_v50, 0.0  ;;  %v6083_v55 = vmax.f32 %v6079_v51, 0.0  ;;  %v6084_v56 = vmax.f32 %v6080_v52, 0.0 }
 0x4eb   :  { %6085 = vst [vmem:[%s7661_s4] sm:$0xff] %v6081_v53  ;;  %6086 = vst [vmem:[%s7661_s4 + $0x8] sm:$0xff] %v6082_v54 }
 0x4ec   :  { %6087 = vst [vmem:[%s7661_s4 + $0x10] sm:$0xff] %v6083_v55  ;;  %6088 = vst [vmem:[%s7661_s4 + $0x18] sm:$0xff] %v6084_v56 }

// kernel: resnet_generator_forward.14
= control target key start
LH: loop header
LB: loop body
LE: loop exit
PB: predicated region body
PF: predicated region fallthrough
CT: control target
= control target key end

     0   :  { %vm61_vm0 = vcmask 261120   ;;  %s1498_s0 = inlined_call_operand.vmem [shape: bf16[9,32,32], index: 0, kind: input, shape index: {}]   ;;  %s1499_s1 = inlined_call_operand.vmem [shape: bf16[9,32,32], index: 1, kind: input, shape index: {}]   ;;  %s1500_s2 = inlined_call_operand.vmem [shape: f32[32,1], index: 2, kind: input, shape index: {}]   ;;  %s1501_s3 = inlined_call_operand.vmem [shape: f32[32,1], index: 3, kind: input, shape index: {}]   ;;  %s1502_s4 = inlined_call_operand.vmem [shape: f32[32,32], index: 4, kind: input, shape index: {}]   ;;  %s1503_s5 = inlined_call_operand.vmem [shape: f32[32,32], index: 5, kind: output, shape index: {}]  }
   0x1   :  { %v1217_v0 = vld [vmem:[%s1498_s0 + $0x10] sm:$0xff]   ;;  %v1218_v1 = vld [vmem:[%s1498_s0 + $0x40] sm:$0xff]   ;;  %v1219_v2 = vld [vmem:[%s1498_s0 + $0x18] sm:$0xff]  }
   0x2   :  { %1110 = vmatprep.subr.bf16.mxu1 %v1217_v0  ;;  %1142 = vmatprep.subr.bf16.mxu0 %v1218_v1  ;;  %v1220_v3 = vld [vmem:[%s1498_s0 + $0x48] sm:$0xff]   ;;  %v1221_v4 = vld [vmem:[%s1499_s1 + $0x10] sm:$0xff]   ;;  %v1222_v5 = vld [vmem:[%s1499_s1 + $0x40] sm:$0xff]  }
   0x3   :  { %1111 = vmatpush3.bf16.msra.mxu1 %v1217_v0  ;;  %1143 = vmatpush3.bf16.msra.mxu0 %v1218_v1  ;;  %v1223_v6 = vld [vmem:[%s1499_s1 + $0x18] sm:$0xff]   ;;  %v1224_v7 = vld [vmem:[%s1499_s1 + $0x48] sm:$0xff]   ;;  %v1225_v8 = vld [vmem:[%s1498_s0 + $0x50] sm:$0xff]  }
   0x4   :  { %1112 = vmatprep.subr.bf16.mxu1 %v1219_v2  ;;  %1144 = vmatprep.subr.bf16.mxu0 %v1220_v3  ;;  %v1226_v9 = vld [vmem:[%s1498_s0] sm:$0xff]   ;;  %v1227_v10 = vld [vmem:[%s1498_s0 + $0x58] sm:$0xff]   ;;  %v1228_v11 = vld [vmem:[%s1498_s0 + $0x8] sm:$0xff]  }
   0x5   :  { %1114 = vmatprep.mubr.msk.bf16.mxu1 %vm61_vm0, %v1221_v4  ;;  %1146 = vmatprep.mubr.msk.bf16.mxu0 %vm61_vm0, %v1222_v5  ;;  %v1229_v12 = vld [vmem:[%s1499_s1] sm:$0xff]   ;;  %v1230_v13 = vld [vmem:[%s1499_s1 + $0x50] sm:$0xff]   ;;  %v1231_v14 = vld [vmem:[%s1499_s1 + $0x8] sm:$0xff]  }
   0x6   :  { %v1233_v15 = vld [vmem:[%s1498_s0 + $0x60] sm:$0xff]   ;;  %v1232_v17 = vld [vmem:[%s1499_s1 + $0x58] sm:$0xff]   ;;  %v1235_v18 = vld [vmem:[%s1498_s0 + $0x68] sm:$0xff]  }
   0x7   :  { %1113 = vmatpush3.bf16.msra.mxu1 %v1219_v2  ;;  %1145 = vmatpush3.bf16.msra.mxu0 %v1220_v3  ;;  %v1234_v16 = vld [vmem:[%s1498_s0 + $0x20] sm:$0xff]   ;;  %v1236_v19 = vld [vmem:[%s1498_s0 + $0x28] sm:$0xff]   ;;  %v1241_v22 = vld [vmem:[%s1498_s0 + $0x70] sm:$0xff]  }
   0x8   :  { %1150 = vmatprep.subr.bf16.mxu0 %v1225_v8  ;;  %1118 = vmatprep.subr.bf16.mxu1 %v1226_v9  ;;  %v1237_v20 = vld [vmem:[%s1499_s1 + $0x20] sm:$0xff]   ;;  %v1242_v23 = vld [vmem:[%s1498_s0 + $0x30] sm:$0xff]   ;;  %v1239_v24 = vld [vmem:[%s1499_s1 + $0x28] sm:$0xff]  }
   0x9   :  { %v1238_v21 = vld [vmem:[%s1499_s1 + $0x60] sm:$0xff]   ;;  %v1240_v25 = vld [vmem:[%s1499_s1 + $0x68] sm:$0xff]   ;;  %v1243_v26 = vld [vmem:[%s1498_s0 + $0x78] sm:$0xff]  }
   0xa   :  { %1115 = vmatmul.mubr.msk.bf16.vlgmr.msra.gmra.mrb[0].mxu1 %vm61_vm0, %v1223_v6  ;;  %1147 = vmatmul.mubr.msk.bf16.vlgmr.msra.gmra.mrb[0].mxu0 %vm61_vm0, %v1224_v7  ;;  %v1244_v27 = vld [vmem:[%s1498_s0 + $0x38] sm:$0xff]   ;;  %v1245_v28 = vld [vmem:[%s1499_s1 + $0x30] sm:$0xff]   ;;  %v1249_v30 = vld [vmem:[%s1498_s0 + $0x80] sm:$0xff]  }
   0xb   :  { %1151 = vmatpush3.bf16.msra.mxu0 %v1225_v8  ;;  %1119 = vmatpush3.bf16.msra.mxu1 %v1226_v9  ;;  %v1246_v29 = vld [vmem:[%s1499_s1 + $0x70] sm:$0xff]   ;;  %v1247_v31 = vld [vmem:[%s1499_s1 + $0x38] sm:$0xff]   ;;  %v1251_v33 = vld [vmem:[%s1499_s1 + $0x80] sm:$0xff]   ;;  %v1261_v8 = vmov 0  }
   0xc   :  { %1152 = vmatprep.subr.bf16.mxu0 %v1227_v10  ;;  %1120 = vmatprep.subr.bf16.mxu1 %v1228_v11  ;;  %v1248_v32 = vld [vmem:[%s1499_s1 + $0x78] sm:$0xff]   ;;  %v1250_v34 = vld [vmem:[%s1498_s0 + $0x88] sm:$0xff]  }
   0xd   :  { %1122 = vmatprep.mubr.msk.bf16.mxu1 %vm61_vm0, %v1229_v12  ;;  %1154 = vmatprep.mubr.msk.bf16.mxu0 %vm61_vm0, %v1230_v13  ;;  %v1252_v35 = vld [vmem:[%s1499_s1 + $0x88] sm:$0xff]  }
   0xe   :  { %1215 = vset.pattern.permute.xlu0 %v1261_v8  ;;  %1216 = vset.pattern.permute.xlu1 %v1261_v8 }
   0xf   :  { %1153 = vmatpush3.bf16.msra.mxu0 %v1227_v10  ;;  %1121 = vmatpush3.bf16.msra.mxu1 %v1228_v11 }
  0x10   :  { %1158 = vmatprep.subr.bf16.mxu0 %v1233_v15  ;;  %1126 = vmatprep.subr.bf16.mxu1 %v1234_v16 }
  0x16   :  { %1123 = vmatmul.mubr.msk.bf16.vlgmr.msra.gmra.mrb[0].mxu1 %vm61_vm0, %v1231_v14  ;;  %1155 = vmatmul.mubr.msk.bf16.vlgmr.msra.gmra.mrb[0].mxu0 %vm61_vm0, %v1232_v17  ;;  %v872_v17 = vld [vmem:[%s1500_s2] sm:$0xff] }
  0x17   :  { %1127 = vmatpush3.bf16.msra.mxu1 %v1234_v16  ;;  %1159 = vmatpush3.bf16.msra.mxu0 %v1233_v15 }
  0x18   :  { %1128 = vmatprep.subr.bf16.mxu1 %v1236_v19  ;;  %1160 = vmatprep.subr.bf16.mxu0 %v1235_v18 }
  0x19   :  { %1130 = vmatprep.mubr.msk.bf16.mxu1 %vm61_vm0, %v1237_v20  ;;  %1162 = vmatprep.mubr.msk.bf16.mxu0 %vm61_vm0, %v1238_v21  ;;  %v874_v21 = vld [vmem:[%s1500_s2 + $0x10] sm:$0xff] }
  0x1b   :  { %1129 = vmatpush3.bf16.msra.mxu1 %v1236_v19  ;;  %1161 = vmatpush3.bf16.msra.mxu0 %v1235_v18 }
  0x1c   :  { %1134 = vmatprep.subr.bf16.mxu1 %v1242_v23  ;;  %1166 = vmatprep.subr.bf16.mxu0 %v1241_v22 }
  0x22   :  { %1131 = vmatmul.mubr.msk.bf16.vlgmr.msra.gmra.mrb[0].mxu1 %vm61_vm0, %v1239_v24  ;;  %1163 = vmatmul.mubr.msk.bf16.vlgmr.msra.gmra.mrb[0].mxu0 %vm61_vm0, %v1240_v25 }
  0x23   :  { %1135 = vmatpush3.bf16.msra.mxu1 %v1242_v23  ;;  %1167 = vmatpush3.bf16.msra.mxu0 %v1241_v22 }
  0x24   :  { %1136 = vmatprep.subr.bf16.mxu1 %v1244_v27  ;;  %1168 = vmatprep.subr.bf16.mxu0 %v1243_v26 }
  0x25   :  { %1138 = vmatprep.mubr.msk.bf16.mxu1 %vm61_vm0, %v1245_v28  ;;  %1170 = vmatprep.mubr.msk.bf16.mxu0 %vm61_vm0, %v1246_v29  ;;  %v913_v28 = vld [vmem:[%s1501_s3 + $0x8] sm:$0xff]  ;;  %v914_v29 = vld [vmem:[%s1501_s3 + $0x10] sm:$0xff] }
  0x27   :  { %1137 = vmatpush3.bf16.msra.mxu1 %v1244_v27  ;;  %1169 = vmatpush3.bf16.msra.mxu0 %v1243_v26  ;;  %v912_v27 = vld [vmem:[%s1501_s3] sm:$0xff] }
  0x28   :  { %1174 = vmatprep.subr.bf16.mxu0 %v1249_v30 }
  0x2e   :  { %1139 = vmatmul.mubr.msk.bf16.vlgmr.msra.gmra.mrb[0].mxu1 %vm61_vm0, %v1247_v31  ;;  %1171 = vmatmul.mubr.msk.bf16.vlgmr.msra.gmra.mrb[0].mxu0 %vm61_vm0, %v1248_v32  ;;  %v875_v31 = vld [vmem:[%s1500_s2 + $0x18] sm:$0xff] }
  0x2f   :  { %1175 = vmatpush3.bf16.msra.mxu0 %v1249_v30  ;;  %1178 = vmatprep.mubr.msk.bf16.mxu0 %vm61_vm0, %v1251_v33 }
  0x30   :  { %1176 = vmatprep.subr.bf16.mxu0 %v1250_v34 }
  0x33   :  { %1177 = vmatpush3.bf16.msra.mxu0 %v1250_v34  ;;  %v873_v34 = vld [vmem:[%s1500_s2 + $0x8] sm:$0xff] }
  0x3a   :  { %1179 = vmatmul.mubr.msk.bf16.vlgmr.msra.gmra.mrb[0].mxu0 %vm61_vm0, %v1252_v35 }
 0x101   :  { %v1140_v36 = vpop.f32.mrb[0].mxu1 }
 0x102   :  { %v357_v37 = vpop.f32.mrb[1].mxu1 }
 0x103   :  { %v1141_v38 = vpop.f32.mrb[2].mxu1 }
 0x104   :  { %v360_v39 = vpop.f32.mrb[3].mxu1 }
 0x10d   :  { %v1180_v40 = vpop.f32.mrb[0].mxu0 }
 0x10e   :  { %v1182_v41 = vadd.f32 %v1180_v40, %v1140_v36  ;;  %v812_v42 = vpop.f32.mrb[1].mxu0  ;;  %v915_v36 = vld [vmem:[%s1501_s3 + $0x18] sm:$0xff]  ;;  %v940_v40 = vld [vmem:[%s1502_s4] sm:$0xff] }
 0x10f   :  { %v1183_v43 = vadd.f32 %v812_v42, %v357_v37  ;;  %v1181_v44 = vpop.f32.mrb[2].mxu0 }
 0x110   :  { %v1184_v45 = vadd.f32 %v1181_v44, %v1141_v38  ;;  %v815_v46 = vpop.f32.mrb[3].mxu0  ;;  %v837_v47 = vsel %vm61_vm0, %v1182_v41, 0.0 }
 0x111   :  { %v1185_v48 = vadd.f32 %v815_v46, %v360_v39  ;;  %838 = vadd.xlane.f32.xlu1 %v837_v47  ;;  %v831_v49 = vsel %vm61_vm0, %v1183_v43, 0.0  ;;  %v942_v46 = vld [vmem:[%s1502_s4 + $0x10] sm:$0xff] }
 0x112   :  { %832 = vadd.xlane.f32.xlu0 %v831_v49  ;;  %v840_v50 = vsel %vm61_vm0, %v1184_v45, 0.0 }
 0x113   :  { %v834_v51 = vsel %vm61_vm0, %v1185_v48, 0.0 }
 0x115   :  { %841 = vadd.xlane.f32.xlu1 %v840_v50 }
 0x116   :  { %835 = vadd.xlane.f32.xlu0 %v834_v51 }
 0x19e   :  { %v839_v52 = vpop.xlane.xlu1 %838 }
 0x19f   :  { %v846_v53 = vmul.f32 0.03125, %v839_v52  ;;  %v833_v54 = vpop.xlane.xlu0 %832 }
 0x1a0   :  { %v844_v55 = vmul.f32 0.03125, %v833_v54 }
 0x1a1   :  { %v1422_v56 = vsub.f32 %v1182_v41, %v846_v53  ;;  %v941_v53 = vld [vmem:[%s1502_s4 + $0x8] sm:$0xff] }
 0x1a2   :  { %v1424_v57 = vsub.f32 %v1183_v43, %v844_v55  ;;  %v842_v58 = vpop.xlane.xlu1 %841 }
 0x1a3   :  { %v847_v59 = vmul.f32 0.03125, %v842_v58  ;;  %v836_v60 = vpop.xlane.xlu0 %835  ;;  %v854_v2 = vmul.f32 %v1422_v56, %v1422_v56 }
 0x1a4   :  { %v845_v61 = vmul.f32 0.03125, %v836_v60  ;;  %v852_v62 = vmul.f32 %v1424_v57, %v1424_v57 }
 0x1a5   :  { %v1428_v63 = vsub.f32 %v1184_v45, %v847_v59  ;;  %v862_v4 = vsel %vm61_vm0, %v854_v2, 0.0 }
 0x1a6   :  { %v1430_v0 = vsub.f32 %v1185_v48, %v845_v61  ;;  %v856_v1 = vsel %vm61_vm0, %v852_v62, 0.0 }
 0x1a7   :  { %857 = vadd.xlane.f32.xlu0 %v856_v1  ;;  %v855_v6 = vmul.f32 %v1428_v63, %v1428_v63 }
 0x1a8   :  { %v853_v3 = vmul.f32 %v1430_v0, %v1430_v0 }
 0x1a9   :  { %v865_v7 = vsel %vm61_vm0, %v855_v6, 0.0 }
 0x1aa   :  { %v859_v5 = vsel %vm61_vm0, %v853_v3, 0.0 }
 0x1ab   :  { %863 = vadd.xlane.f32.xlu0 %v862_v4  ;;  %860 = vadd.xlane.f32.xlu1 %v859_v5 }
 0x1af   :  { %866 = vadd.xlane.f32.xlu1 %v865_v7 }
 0x234   :  { %v858_v9 = vpop.xlane.xlu0 %857 }
 0x235   :  { %v868_v10 = vmul.f32 0.03125, %v858_v9 }
 0x237   :  { %v876_v11 = vadd.f32 1e-05, %v868_v10 }
 0x238   :  { %v864_v12 = vpop.xlane.xlu0 %863  ;;  %v861_v14 = vpop.xlane.xlu1 %860 }
 0x239   :  { %1253 = vrsqrt.f32 %v876_v11  ;;  %v870_v13 = vmul.f32 0.03125, %v864_v12  ;;  %v869_v23 = vmul.f32 0.03125, %v861_v14 }
 0x23b   :  { %v878_v15 = vadd.f32 1e-05, %v870_v13  ;;  %v877_v26 = vadd.f32 1e-05, %v869_v23 }
 0x23c   :  { %v867_v16 = vpop.xlane.xlu1 %866 }
 0x23d   :  { %1255 = vrsqrt.f32 %v878_v15  ;;  %v871_v19 = vmul.f32 0.03125, %v867_v16 }
 0x23f   :  { %v879_v24 = vadd.f32 1e-05, %v871_v19 }
 0x241   :  { %1257 = vrsqrt.f32 %v879_v24 }
 0x242   :  { %1259 = vrsqrt.f32 %v877_v26 }
 0x243   :  { %v1254_v18 = vpop.eup %1253 }
 0x244   :  { %v884_v20 = vmul.f32 %v1254_v18, %v872_v17 }
 0x246   :  { %890 = vperm.xlu0 %1215, %v884_v20  }
 0x247   :  { %v1256_v22 = vpop.eup %1255 }
 0x248   :  { %v886_v25 = vmul.f32 %v1256_v22, %v874_v21 }
 0x24a   :  { %900 = vperm.xlu1 %1216, %v886_v25  }
 0x24b   :  { %v1258_v30 = vpop.eup %1257 }
 0x24c   :  { %v887_v32 = vmul.f32 %v1258_v30, %v875_v31  ;;  %v1260_v33 = vpop.eup %1259 }
 0x24d   :  { %v885_v35 = vmul.f32 %v1260_v33, %v873_v34 }
 0x24e   :  { %918 = vperm.xlu1 %1216, %v912_v27  }
 0x252   :  { %923 = vperm.xlu1 %1216, %v913_v28  }
 0x256   :  { %928 = vperm.xlu1 %1216, %v914_v29  }
 0x25a   :  { %905 = vperm.xlu1 %1216, %v887_v32  }
 0x25e   :  { %895 = vperm.xlu1 %1216, %v885_v35  }
 0x262   :  { %933 = vperm.xlu1 %1216, %v915_v36  }
 0x2c5   :  { %v891_v37 = vpop.permute.xlu0 %890 }
 0x2c6   :  { %v908_v39 = vmul.f32 %v891_v37, %v1424_v57 }
 0x2c9   :  { %v901_v38 = vpop.permute.xlu1 %900 }
 0x2ca   :  { %v910_v45 = vmul.f32 %v901_v38, %v1422_v56  ;;  %v943_v56 = vld [vmem:[%s1502_s4 + $0x18] sm:$0xff] }
 0x2cd   :  { %v919_v41 = vpop.permute.xlu1 %918 }
 0x2ce   :  { %v936_v42 = vadd.f32 %v919_v41, %v908_v39 }
 0x2d0   :  { %v944_v43 = vadd.f32 %v940_v40, %v936_v42 }
 0x2d1   :  { %v924_v44 = vpop.permute.xlu1 %923 }
 0x2d2   :  { %948 = vst.msk [vmem:[%s1503_s5] sm:$0xff] %vm61_vm0, %v944_v43 }
 0x2d5   :  { %v929_v47 = vpop.permute.xlu1 %928 }
 0x2d6   :  { %v938_v48 = vadd.f32 %v929_v47, %v910_v45 }
 0x2d8   :  { %v946_v49 = vadd.f32 %v942_v46, %v938_v48 }
 0x2d9   :  { %v906_v50 = vpop.permute.xlu1 %905 }
 0x2da   :  { %950 = vst.msk [vmem:[%s1503_s5 + $0x10] sm:$0xff] %vm61_vm0, %v946_v49  ;;  %v911_v54 = vmul.f32 %v906_v50, %v1428_v63 }
 0x2dd   :  { %v896_v51 = vpop.permute.xlu1 %895 }
 0x2de   :  { %v909_v52 = vmul.f32 %v896_v51, %v1430_v0 }
 0x2e0   :  { %v937_v55 = vadd.f32 %v924_v44, %v909_v52 }
 0x2e1   :  { %v934_v57 = vpop.permute.xlu1 %933 }
 0x2e2   :  { %v945_v58 = vadd.f32 %v941_v53, %v937_v55  ;;  %v939_v59 = vadd.f32 %v934_v57, %v911_v54 }
 0x2e4   :  { %949 = vst.msk [vmem:[%s1503_s5 + $0x8] sm:$0xff] %vm61_vm0, %v945_v58  ;;  %v947_v60 = vadd.f32 %v943_v56, %v939_v59 }
 0x2e6   :  { %951 = vst.msk [vmem:[%s1503_s5 + $0x18] sm:$0xff] %vm61_vm0, %v947_v60 }

// kernel: resnet_generator_forward.13
= control target key start
LH: loop header
LB: loop body
LE: loop exit
PB: predicated region body
PF: predicated region fallthrough
CT: control target
= control target key end

     0   :  { %vm58_vm0 = vcmask 261120   ;;  %s1474_s0 = inlined_call_operand.vmem [shape: bf16[9,32,32], index: 0, kind: input, shape index: {}]   ;;  %s1475_s1 = inlined_call_operand.vmem [shape: bf16[9,32,32], index: 1, kind: input, shape index: {}]   ;;  %s1476_s2 = inlined_call_operand.vmem [shape: f32[32,1], index: 2, kind: input, shape index: {}]   ;;  %s1477_s3 = inlined_call_operand.vmem [shape: f32[32,1], index: 3, kind: input, shape index: {}]   ;;  %s1478_s4 = inlined_call_operand.vmem [shape: f32[32,32], index: 4, kind: output, shape index: {}]  }
   0x1   :  { %v1210_v0 = vld [vmem:[%s1474_s0 + $0x10] sm:$0xff]   ;;  %v1211_v1 = vld [vmem:[%s1474_s0 + $0x40] sm:$0xff]   ;;  %v1212_v2 = vld [vmem:[%s1474_s0 + $0x18] sm:$0xff]  }
   0x2   :  { %1103 = vmatprep.subr.bf16.mxu1 %v1210_v0  ;;  %1135 = vmatprep.subr.bf16.mxu0 %v1211_v1  ;;  %v1213_v3 = vld [vmem:[%s1474_s0 + $0x48] sm:$0xff]   ;;  %v1214_v4 = vld [vmem:[%s1475_s1 + $0x10] sm:$0xff]   ;;  %v1215_v5 = vld [vmem:[%s1475_s1 + $0x40] sm:$0xff]  }
   0x3   :  { %1104 = vmatpush3.bf16.msra.mxu1 %v1210_v0  ;;  %1136 = vmatpush3.bf16.msra.mxu0 %v1211_v1  ;;  %v1216_v6 = vld [vmem:[%s1475_s1 + $0x18] sm:$0xff]   ;;  %v1217_v7 = vld [vmem:[%s1475_s1 + $0x48] sm:$0xff]   ;;  %v1218_v8 = vld [vmem:[%s1474_s0 + $0x50] sm:$0xff]  }
   0x4   :  { %1105 = vmatprep.subr.bf16.mxu1 %v1212_v2  ;;  %1137 = vmatprep.subr.bf16.mxu0 %v1213_v3  ;;  %v1219_v9 = vld [vmem:[%s1474_s0] sm:$0xff]   ;;  %v1220_v10 = vld [vmem:[%s1474_s0 + $0x58] sm:$0xff]   ;;  %v1221_v11 = vld [vmem:[%s1474_s0 + $0x8] sm:$0xff]  }
   0x5   :  { %1107 = vmatprep.mubr.msk.bf16.mxu1 %vm58_vm0, %v1214_v4  ;;  %1139 = vmatprep.mubr.msk.bf16.mxu0 %vm58_vm0, %v1215_v5  ;;  %v1222_v12 = vld [vmem:[%s1475_s1] sm:$0xff]   ;;  %v1223_v13 = vld [vmem:[%s1475_s1 + $0x50] sm:$0xff]   ;;  %v1224_v14 = vld [vmem:[%s1475_s1 + $0x8] sm:$0xff]  }
   0x6   :  { %v1226_v15 = vld [vmem:[%s1474_s0 + $0x60] sm:$0xff]   ;;  %v1225_v17 = vld [vmem:[%s1475_s1 + $0x58] sm:$0xff]   ;;  %v1228_v18 = vld [vmem:[%s1474_s0 + $0x68] sm:$0xff]  }
   0x7   :  { %1106 = vmatpush3.bf16.msra.mxu1 %v1212_v2  ;;  %1138 = vmatpush3.bf16.msra.mxu0 %v1213_v3  ;;  %v1227_v16 = vld [vmem:[%s1474_s0 + $0x20] sm:$0xff]   ;;  %v1229_v19 = vld [vmem:[%s1474_s0 + $0x28] sm:$0xff]   ;;  %v1234_v22 = vld [vmem:[%s1474_s0 + $0x70] sm:$0xff]  }
   0x8   :  { %1143 = vmatprep.subr.bf16.mxu0 %v1218_v8  ;;  %1111 = vmatprep.subr.bf16.mxu1 %v1219_v9  ;;  %v1230_v20 = vld [vmem:[%s1475_s1 + $0x20] sm:$0xff]   ;;  %v1235_v23 = vld [vmem:[%s1474_s0 + $0x30] sm:$0xff]   ;;  %v1232_v24 = vld [vmem:[%s1475_s1 + $0x28] sm:$0xff]  }
   0x9   :  { %v1231_v21 = vld [vmem:[%s1475_s1 + $0x60] sm:$0xff]   ;;  %v1233_v25 = vld [vmem:[%s1475_s1 + $0x68] sm:$0xff]   ;;  %v1236_v26 = vld [vmem:[%s1474_s0 + $0x78] sm:$0xff]  }
   0xa   :  { %1108 = vmatmul.mubr.msk.bf16.vlgmr.msra.gmra.mrb[0].mxu1 %vm58_vm0, %v1216_v6  ;;  %1140 = vmatmul.mubr.msk.bf16.vlgmr.msra.gmra.mrb[0].mxu0 %vm58_vm0, %v1217_v7  ;;  %v1237_v27 = vld [vmem:[%s1474_s0 + $0x38] sm:$0xff]   ;;  %v1238_v28 = vld [vmem:[%s1475_s1 + $0x30] sm:$0xff]   ;;  %v1242_v30 = vld [vmem:[%s1474_s0 + $0x80] sm:$0xff]  }
   0xb   :  { %1144 = vmatpush3.bf16.msra.mxu0 %v1218_v8  ;;  %1112 = vmatpush3.bf16.msra.mxu1 %v1219_v9  ;;  %v1239_v29 = vld [vmem:[%s1475_s1 + $0x70] sm:$0xff]   ;;  %v1240_v31 = vld [vmem:[%s1475_s1 + $0x38] sm:$0xff]   ;;  %v1244_v33 = vld [vmem:[%s1475_s1 + $0x80] sm:$0xff]   ;;  %v1254_v8 = vmov 0  }
   0xc   :  { %1145 = vmatprep.subr.bf16.mxu0 %v1220_v10  ;;  %1113 = vmatprep.subr.bf16.mxu1 %v1221_v11  ;;  %v1241_v32 = vld [vmem:[%s1475_s1 + $0x78] sm:$0xff]   ;;  %v1243_v34 = vld [vmem:[%s1474_s0 + $0x88] sm:$0xff]  }
   0xd   :  { %1115 = vmatprep.mubr.msk.bf16.mxu1 %vm58_vm0, %v1222_v12  ;;  %1147 = vmatprep.mubr.msk.bf16.mxu0 %vm58_vm0, %v1223_v13  ;;  %v1245_v35 = vld [vmem:[%s1475_s1 + $0x88] sm:$0xff]  }
   0xe   :  { %1208 = vset.pattern.permute.xlu0 %v1254_v8  ;;  %1209 = vset.pattern.permute.xlu1 %v1254_v8 }
   0xf   :  { %1146 = vmatpush3.bf16.msra.mxu0 %v1220_v10  ;;  %1114 = vmatpush3.bf16.msra.mxu1 %v1221_v11 }
  0x10   :  { %1151 = vmatprep.subr.bf16.mxu0 %v1226_v15  ;;  %1119 = vmatprep.subr.bf16.mxu1 %v1227_v16 }
  0x16   :  { %1116 = vmatmul.mubr.msk.bf16.vlgmr.msra.gmra.mrb[0].mxu1 %vm58_vm0, %v1224_v14  ;;  %1148 = vmatmul.mubr.msk.bf16.vlgmr.msra.gmra.mrb[0].mxu0 %vm58_vm0, %v1225_v17  ;;  %v869_v17 = vld [vmem:[%s1476_s2] sm:$0xff] }
  0x17   :  { %1120 = vmatpush3.bf16.msra.mxu1 %v1227_v16  ;;  %1152 = vmatpush3.bf16.msra.mxu0 %v1226_v15 }
  0x18   :  { %1121 = vmatprep.subr.bf16.mxu1 %v1229_v19  ;;  %1153 = vmatprep.subr.bf16.mxu0 %v1228_v18 }
  0x19   :  { %1123 = vmatprep.mubr.msk.bf16.mxu1 %vm58_vm0, %v1230_v20  ;;  %1155 = vmatprep.mubr.msk.bf16.mxu0 %vm58_vm0, %v1231_v21  ;;  %v871_v21 = vld [vmem:[%s1476_s2 + $0x10] sm:$0xff] }
  0x1b   :  { %1122 = vmatpush3.bf16.msra.mxu1 %v1229_v19  ;;  %1154 = vmatpush3.bf16.msra.mxu0 %v1228_v18 }
  0x1c   :  { %1127 = vmatprep.subr.bf16.mxu1 %v1235_v23  ;;  %1159 = vmatprep.subr.bf16.mxu0 %v1234_v22 }
  0x22   :  { %1124 = vmatmul.mubr.msk.bf16.vlgmr.msra.gmra.mrb[0].mxu1 %vm58_vm0, %v1232_v24  ;;  %1156 = vmatmul.mubr.msk.bf16.vlgmr.msra.gmra.mrb[0].mxu0 %vm58_vm0, %v1233_v25 }
  0x23   :  { %1128 = vmatpush3.bf16.msra.mxu1 %v1235_v23  ;;  %1160 = vmatpush3.bf16.msra.mxu0 %v1234_v22 }
  0x24   :  { %1129 = vmatprep.subr.bf16.mxu1 %v1237_v27  ;;  %1161 = vmatprep.subr.bf16.mxu0 %v1236_v26 }
  0x25   :  { %1131 = vmatprep.mubr.msk.bf16.mxu1 %vm58_vm0, %v1238_v28  ;;  %1163 = vmatprep.mubr.msk.bf16.mxu0 %vm58_vm0, %v1239_v29  ;;  %v910_v28 = vld [vmem:[%s1477_s3 + $0x8] sm:$0xff]  ;;  %v911_v29 = vld [vmem:[%s1477_s3 + $0x10] sm:$0xff] }
  0x27   :  { %1130 = vmatpush3.bf16.msra.mxu1 %v1237_v27  ;;  %1162 = vmatpush3.bf16.msra.mxu0 %v1236_v26  ;;  %v909_v27 = vld [vmem:[%s1477_s3] sm:$0xff] }
  0x28   :  { %1167 = vmatprep.subr.bf16.mxu0 %v1242_v30 }
  0x2e   :  { %1132 = vmatmul.mubr.msk.bf16.vlgmr.msra.gmra.mrb[0].mxu1 %vm58_vm0, %v1240_v31  ;;  %1164 = vmatmul.mubr.msk.bf16.vlgmr.msra.gmra.mrb[0].mxu0 %vm58_vm0, %v1241_v32  ;;  %v872_v31 = vld [vmem:[%s1476_s2 + $0x18] sm:$0xff] }
  0x2f   :  { %1168 = vmatpush3.bf16.msra.mxu0 %v1242_v30  ;;  %1171 = vmatprep.mubr.msk.bf16.mxu0 %vm58_vm0, %v1244_v33 }
  0x30   :  { %1169 = vmatprep.subr.bf16.mxu0 %v1243_v34 }
  0x33   :  { %1170 = vmatpush3.bf16.msra.mxu0 %v1243_v34  ;;  %v870_v34 = vld [vmem:[%s1476_s2 + $0x8] sm:$0xff] }
  0x3a   :  { %1172 = vmatmul.mubr.msk.bf16.vlgmr.msra.gmra.mrb[0].mxu0 %vm58_vm0, %v1245_v35 }
 0x101   :  { %v1133_v36 = vpop.f32.mrb[0].mxu1 }
 0x102   :  { %v354_v37 = vpop.f32.mrb[1].mxu1 }
 0x103   :  { %v1134_v38 = vpop.f32.mrb[2].mxu1 }
 0x104   :  { %v357_v39 = vpop.f32.mrb[3].mxu1 }
 0x10d   :  { %v1173_v40 = vpop.f32.mrb[0].mxu0 }
 0x10e   :  { %v1175_v41 = vadd.f32 %v1173_v40, %v1133_v36  ;;  %v809_v42 = vpop.f32.mrb[1].mxu0  ;;  %v912_v36 = vld [vmem:[%s1477_s3 + $0x18] sm:$0xff] }
 0x10f   :  { %v1176_v43 = vadd.f32 %v809_v42, %v354_v37  ;;  %v1174_v44 = vpop.f32.mrb[2].mxu0 }
 0x110   :  { %v1177_v45 = vadd.f32 %v1174_v44, %v1134_v38  ;;  %v812_v46 = vpop.f32.mrb[3].mxu0  ;;  %v834_v47 = vsel %vm58_vm0, %v1175_v41, 0.0 }
 0x111   :  { %v1178_v48 = vadd.f32 %v812_v46, %v357_v39  ;;  %835 = vadd.xlane.f32.xlu1 %v834_v47  ;;  %v828_v49 = vsel %vm58_vm0, %v1176_v43, 0.0 }
 0x112   :  { %829 = vadd.xlane.f32.xlu0 %v828_v49  ;;  %v837_v50 = vsel %vm58_vm0, %v1177_v45, 0.0 }
 0x113   :  { %v831_v51 = vsel %vm58_vm0, %v1178_v48, 0.0 }
 0x115   :  { %838 = vadd.xlane.f32.xlu1 %v837_v50 }
 0x116   :  { %832 = vadd.xlane.f32.xlu0 %v831_v51 }
 0x19e   :  { %v836_v52 = vpop.xlane.xlu1 %835 }
 0x19f   :  { %v843_v53 = vmul.f32 0.03125, %v836_v52  ;;  %v830_v54 = vpop.xlane.xlu0 %829 }
 0x1a0   :  { %v841_v55 = vmul.f32 0.03125, %v830_v54 }
 0x1a1   :  { %v1410_v56 = vsub.f32 %v1175_v41, %v843_v53 }
 0x1a2   :  { %v1412_v57 = vsub.f32 %v1176_v43, %v841_v55  ;;  %v839_v58 = vpop.xlane.xlu1 %838 }
 0x1a3   :  { %v844_v59 = vmul.f32 0.03125, %v839_v58  ;;  %v833_v60 = vpop.xlane.xlu0 %832  ;;  %v851_v2 = vmul.f32 %v1410_v56, %v1410_v56 }
 0x1a4   :  { %v842_v61 = vmul.f32 0.03125, %v833_v60  ;;  %v849_v62 = vmul.f32 %v1412_v57, %v1412_v57 }
 0x1a5   :  { %v1416_v63 = vsub.f32 %v1177_v45, %v844_v59  ;;  %v859_v4 = vsel %vm58_vm0, %v851_v2, 0.0 }
 0x1a6   :  { %v1418_v0 = vsub.f32 %v1178_v48, %v842_v61  ;;  %v853_v1 = vsel %vm58_vm0, %v849_v62, 0.0 }
 0x1a7   :  { %854 = vadd.xlane.f32.xlu0 %v853_v1  ;;  %v852_v6 = vmul.f32 %v1416_v63, %v1416_v63 }
 0x1a8   :  { %v850_v3 = vmul.f32 %v1418_v0, %v1418_v0 }
 0x1a9   :  { %v862_v7 = vsel %vm58_vm0, %v852_v6, 0.0 }
 0x1aa   :  { %v856_v5 = vsel %vm58_vm0, %v850_v3, 0.0 }
 0x1ab   :  { %860 = vadd.xlane.f32.xlu0 %v859_v4  ;;  %857 = vadd.xlane.f32.xlu1 %v856_v5 }
 0x1af   :  { %863 = vadd.xlane.f32.xlu1 %v862_v7 }
 0x234   :  { %v855_v9 = vpop.xlane.xlu0 %854 }
 0x235   :  { %v865_v10 = vmul.f32 0.03125, %v855_v9 }
 0x237   :  { %v873_v11 = vadd.f32 1e-05, %v865_v10 }
 0x238   :  { %v861_v12 = vpop.xlane.xlu0 %860  ;;  %v858_v14 = vpop.xlane.xlu1 %857 }
 0x239   :  { %1246 = vrsqrt.f32 %v873_v11  ;;  %v867_v13 = vmul.f32 0.03125, %v861_v12  ;;  %v866_v23 = vmul.f32 0.03125, %v858_v14 }
 0x23b   :  { %v875_v15 = vadd.f32 1e-05, %v867_v13  ;;  %v874_v26 = vadd.f32 1e-05, %v866_v23 }
 0x23c   :  { %v864_v16 = vpop.xlane.xlu1 %863 }
 0x23d   :  { %1248 = vrsqrt.f32 %v875_v15  ;;  %v868_v19 = vmul.f32 0.03125, %v864_v16 }
 0x23f   :  { %v876_v24 = vadd.f32 1e-05, %v868_v19 }
 0x241   :  { %1250 = vrsqrt.f32 %v876_v24 }
 0x242   :  { %1252 = vrsqrt.f32 %v874_v26 }
 0x243   :  { %v1247_v18 = vpop.eup %1246 }
 0x244   :  { %v881_v20 = vmul.f32 %v1247_v18, %v869_v17 }
 0x246   :  { %887 = vperm.xlu0 %1208, %v881_v20  }
 0x247   :  { %v1249_v22 = vpop.eup %1248 }
 0x248   :  { %v883_v25 = vmul.f32 %v1249_v22, %v871_v21 }
 0x24a   :  { %897 = vperm.xlu1 %1209, %v883_v25  }
 0x24b   :  { %v1251_v30 = vpop.eup %1250 }
 0x24c   :  { %v884_v32 = vmul.f32 %v1251_v30, %v872_v31  ;;  %v1253_v33 = vpop.eup %1252 }
 0x24d   :  { %v882_v35 = vmul.f32 %v1253_v33, %v870_v34 }
 0x24e   :  { %915 = vperm.xlu1 %1209, %v909_v27  }
 0x252   :  { %920 = vperm.xlu1 %1209, %v910_v28  }
 0x256   :  { %925 = vperm.xlu1 %1209, %v911_v29  }
 0x25a   :  { %902 = vperm.xlu1 %1209, %v884_v32  }
 0x25e   :  { %892 = vperm.xlu1 %1209, %v882_v35  }
 0x262   :  { %930 = vperm.xlu1 %1209, %v912_v36  }
 0x2c5   :  { %v888_v37 = vpop.permute.xlu0 %887 }
 0x2c6   :  { %v905_v39 = vmul.f32 %v888_v37, %v1412_v57 }
 0x2c9   :  { %v898_v38 = vpop.permute.xlu1 %897 }
 0x2ca   :  { %v907_v44 = vmul.f32 %v898_v38, %v1410_v56 }
 0x2cd   :  { %v916_v40 = vpop.permute.xlu1 %915 }
 0x2ce   :  { %v933_v41 = vadd.f32 %v916_v40, %v905_v39 }
 0x2d0   :  { %v937_v42 = vmax.f32 %v933_v41, 0.0 }
 0x2d1   :  { %v921_v43 = vpop.permute.xlu1 %920 }
 0x2d2   :  { %941 = vst.msk [vmem:[%s1478_s4] sm:$0xff] %vm58_vm0, %v937_v42 }
 0x2d5   :  { %v926_v45 = vpop.permute.xlu1 %925 }
 0x2d6   :  { %v935_v46 = vadd.f32 %v926_v45, %v907_v44 }
 0x2d8   :  { %v939_v47 = vmax.f32 %v935_v46, 0.0 }
 0x2d9   :  { %v903_v48 = vpop.permute.xlu1 %902 }
 0x2da   :  { %943 = vst.msk [vmem:[%s1478_s4 + $0x10] sm:$0xff] %vm58_vm0, %v939_v47  ;;  %v908_v51 = vmul.f32 %v903_v48, %v1416_v63 }
 0x2dd   :  { %v893_v49 = vpop.permute.xlu1 %892 }
 0x2de   :  { %v906_v50 = vmul.f32 %v893_v49, %v1418_v0 }
 0x2e0   :  { %v934_v52 = vadd.f32 %v921_v43, %v906_v50 }
 0x2e1   :  { %v931_v53 = vpop.permute.xlu1 %930 }
 0x2e2   :  { %v938_v54 = vmax.f32 %v934_v52, 0.0  ;;  %v936_v55 = vadd.f32 %v931_v53, %v908_v51 }
 0x2e4   :  { %942 = vst.msk [vmem:[%s1478_s4 + $0x8] sm:$0xff] %vm58_vm0, %v938_v54  ;;  %v940_v56 = vmax.f32 %v936_v55, 0.0 }
 0x2e6   :  { %944 = vst.msk [vmem:[%s1478_s4 + $0x18] sm:$0xff] %vm58_vm0, %v940_v56 }

// kernel: resnet_generator_forward.17
= control target key start
LH: loop header
LB: loop body
LE: loop exit
PB: predicated region body
PF: predicated region fallthrough
CT: control target
= control target key end

     0   :  { %v892_v0 = vmov 0.0   ;;  %vm893_vm0 = vmmov 0   ;;  %vm42_vm1 = vcmask 261120   ;;  %s1116_s0 = inlined_call_operand.vmem [shape: bf16[4,32,32], index: 0, kind: input, shape index: {}]   ;;  %s1117_s1 = inlined_call_operand.vmem [shape: bf16[9,16,32], index: 1, kind: input, shape index: {}]   ;;  %s1118_s3 = inlined_call_operand.vmem [shape: f32[16,1], index: 3, kind: input, shape index: {}]   ;;  %s1119_s2 = inlined_call_operand.vmem [shape: f32[16,1], index: 2, kind: input, shape index: {}]   ;;  %s1120_s4 = inlined_call_operand.vmem [shape: f32[4,16,32], index: 4, kind: output, shape index: {}]  }
   0x1   :  { %776 = vmatprep.subr.bf16.mxu0 %v892_v0  ;;  %792 = vmatprep.subr.bf16.mxu1 %v892_v0  ;;  %v925_v1 = vld [vmem:[%s1116_s0] sm:$0xff]   ;;  %v872_v2 = vld [vmem:[%s1116_s0 + $0x10] sm:$0xff]   ;;  %v873_v3 = vld [vmem:[%s1116_s0 + $0x8] sm:$0xff]  }
   0x2   :  { %780 = vmatprep.mubr.msk.bf16.mxu0 %vm893_vm0, %v892_v0  ;;  %796 = vmatprep.mubr.msk.bf16.mxu1 %vm893_vm0, %v892_v0  ;;  %v874_v4 = vld [vmem:[%s1116_s0 + $0x18] sm:$0xff]   ;;  %v875_v5 = vld [vmem:[%s1117_s1 + $0x20] sm:$0xff]   ;;  %v878_v8 = vld [vmem:[%s1116_s0 + $0x28] sm:$0xff]  }
   0x3   :  { %777 = vmatpush3.bf16.msra.mxu0 %v925_v1  ;;  %793 = vmatpush3.bf16.msra.mxu1 %v872_v2  ;;  %v876_v6 = vld [vmem:[%s1117_s1 + $0x18] sm:$0xff]   ;;  %v877_v7 = vld [vmem:[%s1116_s0 + $0x20] sm:$0xff]   ;;  %v879_v9 = vld [vmem:[%s1117_s1 + $0x28] sm:$0xff]  }
   0x4   :  { %778 = vmatprep.subr.bf16.mxu0 %v892_v0  ;;  %794 = vmatprep.subr.bf16.mxu1 %v892_v0  ;;  %v880_v10 = vld [vmem:[%s1117_s1 + $0x10] sm:$0xff]   ;;  %v882_v12 = vld [vmem:[%s1116_s0 + $0x38] sm:$0xff]   ;;  %v884_v14 = vld [vmem:[%s1117_s1] sm:$0xff]  }
   0x5   :  { %v881_v11 = vld [vmem:[%s1116_s0 + $0x30] sm:$0xff]   ;;  %v883_v13 = vld [vmem:[%s1117_s1 + $0x38] sm:$0xff]   ;;  %v885_v15 = vld [vmem:[%s1117_s1 + $0x8] sm:$0xff]  }
   0x6   :  { %v886_v16 = vld [vmem:[%s1117_s1 + $0x30] sm:$0xff]   ;;  %v887_v17 = vld [vmem:[%s1117_s1 + $0x40] sm:$0xff]  }
   0x7   :  { %779 = vmatpush3.bf16.msra.mxu0 %v873_v3  ;;  %795 = vmatpush3.bf16.msra.mxu1 %v874_v4 }
   0x8   :  { %784 = vmatprep.subr.bf16.mxu0 %v892_v0  ;;  %816 = vmatprep.subr.bf16.mxu1 %v892_v0 }
   0xa   :  { %781 = vmatmul.mubr.msk.bf16.vlgmr.msra.gmra.mrb[0].mxu0 %vm42_vm1, %v875_v5  ;;  %797 = vmatmul.mubr.msk.bf16.vlgmr.msra.gmra.mrb[0].mxu1 %vm42_vm1, %v876_v6 }
   0xb   :  { %785 = vmatpush3.bf16.msra.mxu0 %v925_v1  ;;  %817 = vmatpush3.bf16.msra.mxu1 %v877_v7 }
   0xc   :  { %786 = vmatprep.subr.bf16.mxu0 %v892_v0  ;;  %818 = vmatprep.subr.bf16.mxu1 %v892_v0 }
   0xd   :  { %788 = vmatprep.mubr.msk.bf16.mxu0 %vm893_vm0, %v892_v0  ;;  %820 = vmatprep.mubr.msk.bf16.mxu1 %vm893_vm0, %v892_v0 }
   0xf   :  { %787 = vmatpush3.bf16.msra.mxu0 %v873_v3  ;;  %819 = vmatpush3.bf16.msra.mxu1 %v878_v8 }
  0x10   :  { %800 = vmatprep.subr.bf16.mxu0 %v892_v0  ;;  %824 = vmatprep.subr.bf16.mxu1 %v892_v0 }
  0x12   :  { %789 = vmatmul.mubr.msk.bf16.vlgmr.msra.gmra.mrb[4].mxu0 %vm42_vm1, %v879_v9  ;;  %821 = vmatmul.mubr.msk.bf16.vlgmr.msra.gmra.mrb[4].mxu1 %vm42_vm1, %v880_v10 }
  0x13   :  { %801 = vmatpush3.bf16.msra.mxu0 %v925_v1  ;;  %825 = vmatpush3.bf16.msra.mxu1 %v881_v11 }
  0x14   :  { %802 = vmatprep.subr.bf16.mxu0 %v892_v0  ;;  %826 = vmatprep.subr.bf16.mxu1 %v892_v0 }
  0x15   :  { %804 = vmatprep.mubr.msk.bf16.mxu0 %vm893_vm0, %v892_v0  ;;  %828 = vmatprep.mubr.msk.bf16.mxu1 %vm893_vm0, %v892_v0 }
  0x17   :  { %803 = vmatpush3.bf16.msra.mxu0 %v873_v3  ;;  %827 = vmatpush3.bf16.msra.mxu1 %v882_v12  ;;  %v894_v12 = vmov 0  }
  0x18   :  { %808 = vmatprep.subr.bf16.mxu0 %v892_v0  ;;  %832 = vmatprep.subr.bf16.mxu1 %v892_v0 }
  0x19   :  { %869 = vset.pattern.permute.xlu0 %v894_v12  ;;  %870 = vset.pattern.permute.xlu1 %v894_v12 }
  0x1a   :  { %805 = vmatmul.mubr.msk.bf16.vlgmr.msra.gmra.mrb[8].mxu0 %vm42_vm1, %v883_v13  ;;  %v628_v13 = vld [vmem:[%s1118_s3] sm:$0xff] }
  0x1b   :  { %809 = vmatpush3.bf16.msra.mxu0 %v877_v7  ;;  %812 = vmatprep.mubr.msk.bf16.mxu0 %vm893_vm0, %v892_v0 }
  0x1c   :  { %810 = vmatprep.subr.bf16.mxu0 %v892_v0 }
  0x1e   :  { %829 = vmatmul.mubr.msk.bf16.vlgmr.msra.gmra.mrb[4].mxu1 %vm42_vm1, %v884_v14 }
  0x1f   :  { %811 = vmatpush3.bf16.msra.mxu0 %v878_v8  ;;  %833 = vmatpush3.bf16.msra.mxu1 %v872_v2 }
  0x20   :  { %836 = vmatprep.mubr.msk.bf16.mxu1 %vm893_vm0, %v892_v0  ;;  %834 = vmatprep.subr.bf16.mxu1 %v892_v0 }
  0x23   :  { %835 = vmatpush3.bf16.msra.mxu1 %v874_v4 }
  0x24   :  { %840 = vmatprep.subr.bf16.mxu1 %v892_v0 }
  0x26   :  { %813 = vmatmul.mubr.msk.bf16.vlgmr.msra.gmra.mrb[8].mxu0 %vm42_vm1, %v885_v15 }
  0x2a   :  { %837 = vmatmul.mubr.msk.bf16.vlgmr.msra.gmra.mrb[4].mxu1 %vm42_vm1, %v886_v16 }
  0x2b   :  { %841 = vmatpush3.bf16.msra.mxu1 %v925_v1  ;;  %844 = vmatprep.mubr.msk.bf16.mxu1 %vm893_vm0, %v892_v0 }
  0x2c   :  { %842 = vmatprep.subr.bf16.mxu1 %v892_v0 }
  0x2f   :  { %843 = vmatpush3.bf16.msra.mxu1 %v873_v3 }
  0x36   :  { %845 = vmatmul.mubr.msk.bf16.vlgmr.msra.gmra.mrb[4].mxu1 %vm42_vm1, %v887_v17 }
  0xdd   :  { %v80_v18 = vpop.f32.mrb[0].mxu0  ;;  %v201_v19 = vpop.f32.mrb[0].mxu1 }
  0xde   :  { %v782_v20 = vpop.f32.mrb[1].mxu0  ;;  %v798_v21 = vpop.f32.mrb[1].mxu1 }
  0xdf   :  { %v83_v22 = vpop.f32.mrb[2].mxu0  ;;  %v204_v23 = vpop.f32.mrb[2].mxu1 }
  0xe0   :  { %v783_v24 = vpop.f32.mrb[3].mxu0  ;;  %v799_v25 = vpop.f32.mrb[3].mxu1 }
  0xe5   :  { %v140_v26 = vpop.f32.mrb[4].mxu0 }
  0xe6   :  { %v202_v27 = vadd.f32 %v201_v19, %v140_v26  ;;  %v790_v28 = vpop.f32.mrb[5].mxu0 }
  0xe7   :  { %v143_v29 = vpop.f32.mrb[6].mxu0 }
  0xe8   :  { %v205_v30 = vadd.f32 %v204_v23, %v143_v29  ;;  %v791_v31 = vpop.f32.mrb[7].mxu0  ;;  %v557_v32 = vadd.f32 %v202_v27, %v80_v18 }
  0xea   :  { %v558_v34 = vadd.f32 %v205_v30, %v83_v22 }
  0xf9   :  { %v322_v33 = vpop.f32.mrb[8].mxu0 }
  0xfa   :  { %v559_v35 = vadd.f32 %v557_v32, %v322_v33  ;;  %v814_v36 = vpop.f32.mrb[9].mxu0  ;;  %v620_v32 = vld [vmem:[%s1119_s2] sm:$0xff] }
  0xfb   :  { %v325_v37 = vpop.f32.mrb[10].mxu0 }
  0xfc   :  { %v560_v38 = vadd.f32 %v558_v34, %v325_v37  ;;  %v815_v39 = vpop.f32.mrb[11].mxu0 }
 0x109   :  { %v548_v40 = vpop.f32.mrb[4].mxu1 }
 0x10a   :  { %v846_v41 = vpop.f32.mrb[5].mxu1  ;;  %v561_v42 = vadd.f32 %v559_v35, %v548_v40  ;;  %v621_v35 = vld [vmem:[%s1119_s2 + $0x8] sm:$0xff] }
 0x10b   :  { %v551_v43 = vpop.f32.mrb[6].mxu1 }
 0x10c   :  { %v562_v44 = vadd.f32 %v560_v38, %v551_v43  ;;  %v847_v45 = vpop.f32.mrb[7].mxu1  ;;  %v563_v46 = vsel %vm42_vm1, %v561_v42, 0.0  ;;  %v629_v38 = vld [vmem:[%s1118_s3 + $0x8] sm:$0xff] }
 0x10d   :  { %564 = vadd.xlane.f32.xlu0 %v563_v46 }
 0x10e   :  { %v566_v47 = vsel %vm42_vm1, %v562_v44, 0.0 }
 0x111   :  { %567 = vadd.xlane.f32.xlu0 %v566_v47 }
 0x19a   :  { %v565_v48 = vpop.xlane.xlu0 %564 }
 0x19b   :  { %v570_v49 = vmul.f32 0.0078125, %v565_v48 }
 0x19d   :  { %v1024_v50 = vsub.f32 %v80_v18, %v570_v49  ;;  %v1026_v51 = vsub.f32 %v202_v27, %v570_v49  ;;  %v1028_v52 = vsub.f32 %v322_v33, %v570_v49  ;;  %v1034_v57 = vsub.f32 %v548_v40, %v570_v49 }
 0x19e   :  { %v568_v53 = vpop.xlane.xlu0 %567 }
 0x19f   :  { %v571_v54 = vmul.f32 0.0078125, %v568_v53  ;;  %v580_v55 = vmul.f32 %v1024_v50, %v1024_v50  ;;  %v588_v56 = vmul.f32 %v1026_v51, %v1026_v51  ;;  %v598_v60 = vmul.f32 %v1028_v52, %v1028_v52 }
 0x1a0   :  { %v608_v0 = vmul.f32 %v1034_v57, %v1034_v57 }
 0x1a1   :  { %v582_v58 = vsel %vm42_vm1, %v580_v55, 0.0  ;;  %v590_v59 = vsel %vm42_vm1, %v588_v56, 0.0  ;;  %v1040_v61 = vsub.f32 %v83_v22, %v571_v54  ;;  %v1042_v62 = vsub.f32 %v205_v30, %v571_v54 }
 0x1a2   :  { %583 = vadd.xlane.f32.xlu1 %v582_v58  ;;  %591 = vadd.xlane.f32.xlu0 %v590_v59  ;;  %v600_v1 = vsel %vm42_vm1, %v598_v60, 0.0  ;;  %v1052_v4 = vsub.f32 %v325_v37, %v571_v54  ;;  %v610_v5 = vsel %vm42_vm1, %v608_v0, 0.0  ;;  %v1058_v8 = vsub.f32 %v551_v43, %v571_v54 }
 0x1a3   :  { %v581_v63 = vmul.f32 %v1040_v61, %v1040_v61  ;;  %v589_v3 = vmul.f32 %v1042_v62, %v1042_v62 }
 0x1a4   :  { %v599_v7 = vmul.f32 %v1052_v4, %v1052_v4  ;;  %v609_v10 = vmul.f32 %v1058_v8, %v1058_v8 }
 0x1a5   :  { %v585_v2 = vsel %vm42_vm1, %v581_v63, 0.0  ;;  %v593_v6 = vsel %vm42_vm1, %v589_v3, 0.0 }
 0x1a6   :  { %601 = vadd.xlane.f32.xlu0 %v600_v1  ;;  %586 = vadd.xlane.f32.xlu1 %v585_v2  ;;  %v603_v9 = vsel %vm42_vm1, %v599_v7, 0.0  ;;  %v613_v11 = vsel %vm42_vm1, %v609_v10, 0.0 }
 0x1aa   :  { %611 = vadd.xlane.f32.xlu0 %v610_v5  ;;  %594 = vadd.xlane.f32.xlu1 %v593_v6 }
 0x1ae   :  { %604 = vadd.xlane.f32.xlu1 %v603_v9 }
 0x1b2   :  { %614 = vadd.xlane.f32.xlu1 %v613_v11 }
 0x1c3   :  { %644 = vperm.xlu1 %870, %v628_v13  }
 0x22f   :  { %v584_v14 = vpop.xlane.xlu1 %583  ;;  %v592_v15 = vpop.xlane.xlu0 %591 }
 0x230   :  { %v596_v18 = vadd.f32 %v592_v15, %v584_v14 }
 0x233   :  { %v587_v16 = vpop.xlane.xlu1 %586  ;;  %v602_v17 = vpop.xlane.xlu0 %601 }
 0x234   :  { %v606_v19 = vadd.f32 %v602_v17, %v596_v18 }
 0x237   :  { %v595_v20 = vpop.xlane.xlu1 %594  ;;  %v612_v21 = vpop.xlane.xlu0 %611 }
 0x238   :  { %v616_v22 = vadd.f32 %v612_v21, %v606_v19  ;;  %v597_v25 = vadd.f32 %v595_v20, %v587_v16 }
 0x23a   :  { %v618_v23 = vmul.f32 0.0078125, %v616_v22 }
 0x23b   :  { %v605_v24 = vpop.xlane.xlu1 %604 }
 0x23c   :  { %v622_v26 = vadd.f32 1e-05, %v618_v23  ;;  %v607_v27 = vadd.f32 %v605_v24, %v597_v25 }
 0x23e   :  { %888 = vrsqrt.f32 %v622_v26 }
 0x23f   :  { %v615_v28 = vpop.xlane.xlu1 %614 }
 0x240   :  { %v617_v29 = vadd.f32 %v615_v28, %v607_v27 }
 0x242   :  { %v619_v30 = vmul.f32 0.0078125, %v617_v29 }
 0x243   :  { %v645_v40 = vpop.permute.xlu1 %644 }
 0x244   :  { %v623_v31 = vadd.f32 1e-05, %v619_v30 }
 0x246   :  { %890 = vrsqrt.f32 %v623_v31 }
 0x248   :  { %v889_v33 = vpop.eup %888 }
 0x249   :  { %v626_v34 = vmul.f32 %v889_v33, %v620_v32 }
 0x24b   :  { %632 = vperm.xlu0 %869, %v626_v34  }
 0x250   :  { %v891_v36 = vpop.eup %890 }
 0x251   :  { %v627_v37 = vmul.f32 %v891_v36, %v621_v35 }
 0x253   :  { %637 = vperm.xlu1 %870, %v627_v37  }
 0x257   :  { %649 = vperm.xlu1 %870, %v629_v38  }
 0x2ca   :  { %v633_v39 = vpop.permute.xlu0 %632 }
 0x2cb   :  { %v640_v41 = vmul.f32 %v633_v39, %v1024_v50  ;;  %v658_v42 = vmul.f32 %v633_v39, %v1026_v51  ;;  %v667_v43 = vmul.f32 %v633_v39, %v1028_v52  ;;  %v676_v44 = vmul.f32 %v633_v39, %v1034_v57 }
 0x2cd   :  { %v652_v45 = vadd.f32 %v645_v40, %v640_v41  ;;  %v660_v46 = vadd.f32 %v658_v42, %v645_v40  ;;  %v669_v47 = vadd.f32 %v667_v43, %v645_v40  ;;  %v678_v48 = vadd.f32 %v676_v44, %v645_v40 }
 0x2cf   :  { %v654_v49 = vmax.f32 %v652_v45, 0.0  ;;  %v662_v53 = vmax.f32 %v660_v46, 0.0  ;;  %v671_v54 = vmax.f32 %v669_v47, 0.0  ;;  %v680_v55 = vmax.f32 %v678_v48, 0.0 }
 0x2d1   :  { %656 = vst.msk [vmem:[%s1120_s4] sm:$0xff] %vm42_vm1, %v654_v49  ;;  %743 = vst.msk [vmem:[%s1120_s4 + $0x10] sm:$0xff] %vm42_vm1, %v662_v53 }
 0x2d2   :  { %745 = vst.msk [vmem:[%s1120_s4 + $0x20] sm:$0xff] %vm42_vm1, %v671_v54  ;;  %747 = vst.msk [vmem:[%s1120_s4 + $0x30] sm:$0xff] %vm42_vm1, %v680_v55  ;;  %v638_v50 = vpop.permute.xlu1 %637 }
 0x2d3   :  { %v641_v51 = vmul.f32 %v638_v50, %v1040_v61  ;;  %v659_v52 = vmul.f32 %v638_v50, %v1042_v62  ;;  %v668_v56 = vmul.f32 %v638_v50, %v1052_v4  ;;  %v677_v57 = vmul.f32 %v638_v50, %v1058_v8 }
 0x2d6   :  { %v650_v58 = vpop.permute.xlu1 %649 }
 0x2d7   :  { %v653_v59 = vadd.f32 %v650_v58, %v641_v51  ;;  %v661_v60 = vadd.f32 %v659_v52, %v650_v58  ;;  %v670_v63 = vadd.f32 %v668_v56, %v650_v58  ;;  %v679_v0 = vadd.f32 %v677_v57, %v650_v58 }
 0x2d9   :  { %v655_v1 = vmax.f32 %v653_v59, 0.0  ;;  %v663_v2 = vmax.f32 %v661_v60, 0.0  ;;  %v672_v3 = vmax.f32 %v670_v63, 0.0  ;;  %v681_v5 = vmax.f32 %v679_v0, 0.0 }
 0x2db   :  { %657 = vst.msk [vmem:[%s1120_s4 + $0x8] sm:$0xff] %vm42_vm1, %v655_v1  ;;  %744 = vst.msk [vmem:[%s1120_s4 + $0x18] sm:$0xff] %vm42_vm1, %v663_v2 }
 0x2dc   :  { %746 = vst.msk [vmem:[%s1120_s4 + $0x28] sm:$0xff] %vm42_vm1, %v672_v3  ;;  %748 = vst.msk [vmem:[%s1120_s4 + $0x38] sm:$0xff] %vm42_vm1, %v681_v5 }

// kernel: resnet_generator_forward.18
= control target key start
LH: loop header
LB: loop body
LE: loop exit
PB: predicated region body
PF: predicated region fallthrough
CT: control target
= control target key end

     0   :  { %v655_v0 = vmov 0.0   ;;  %vm656_vm0 = vmmov 0   ;;  %vm28_vm1 = vcmask 130048   ;;  %v657_v48 = vmov 0   ;;  %s758_s0 = inlined_call_operand.vmem [shape: bf16[4,16,128], index: 0, kind: input, shape index: {}]   ;;  %s759_s1 = inlined_call_operand.vmem [shape: bf16[9,8,16], index: 1, kind: input, shape index: {}]   ;;  %s760_s3 = inlined_call_operand.vmem [shape: f32[8,1], index: 3, kind: input, shape index: {}]   ;;  %s761_s2 = inlined_call_operand.vmem [shape: f32[8,1], index: 2, kind: input, shape index: {}]   ;;  %s762_s4 = inlined_call_operand.vmem [shape: f32[4,8,128], index: 4, kind: output, shape index: {}]  }
   0x1   :  { %573 = vmatprep.subr.bf16.mxu0 %v655_v0  ;;  %585 = vmatprep.subr.bf16.mxu1 %v655_v0  ;;  %v649_v1 = vld [vmem:[%s758_s0] sm:$0xff]   ;;  %v650_v2 = vld [vmem:[%s758_s0 + $0x8] sm:$0xff]   ;;  %v525_v3 = vld [vmem:[%s759_s1 + $0x10] sm:$0xf] }
   0x2   :  { %575 = vmatprep.mubr.msk.bf16.mxu0 %vm656_vm0, %v655_v0  ;;  %587 = vmatprep.mubr.msk.bf16.mxu1 %vm656_vm0, %v655_v0  ;;  %v528_v4 = vld [vmem:[%s759_s1 + $0xc] sm:$0xf]  ;;  %v651_v5 = vld [vmem:[%s758_s0 + $0x10] sm:$0xff]   ;;  %v544_v7 = vld [vmem:[%s759_s1 + $0x8] sm:$0xf] }
   0x3   :  { %574 = vmatpush3.bf16.msra.mxu0 %v649_v1  ;;  %586 = vmatpush3.bf16.msra.mxu1 %v650_v2  ;;  %v531_v6 = vld [vmem:[%s759_s1 + $0x14] sm:$0xf]  ;;  %v652_v8 = vld [vmem:[%s758_s0 + $0x18] sm:$0xff]   ;;  %v270_v10 = vld [vmem:[%s759_s1] sm:$0xf] }
   0x4   :  { %579 = vmatprep.subr.bf16.mxu0 %v655_v0  ;;  %603 = vmatprep.subr.bf16.mxu1 %v655_v0  ;;  %v538_v9 = vld [vmem:[%s759_s1 + $0x1c] sm:$0xf]  ;;  %v535_v11 = vld [vmem:[%s759_s1 + $0x4] sm:$0xf]  ;;  %v548_v12 = vld [vmem:[%s759_s1 + $0x18] sm:$0xf] }
   0x5   :  { %v550_v13 = vld [vmem:[%s759_s1 + $0x20] sm:$0xf]  ;;  %647 = vset.pattern.permute.xlu1 %v657_v48  ;;  %648 = vset.pattern.permute.xlu0 %v657_v48 }
   0x6   :  { %576 = vmatmul.mubr.msk.bf16.vlgmr.msra.gmra.mrb[0].mxu0 %vm28_vm1, %v525_v3  ;;  %588 = vmatmul.mubr.msk.bf16.vlgmr.msra.gmra.mrb[0].mxu1 %vm28_vm1, %v528_v4  ;;  %v491_v49 = vld [vmem:[%s760_s3] sm:$0xff] }
   0x7   :  { %580 = vmatpush3.bf16.msra.mxu0 %v649_v1  ;;  %604 = vmatpush3.bf16.msra.mxu1 %v651_v5  ;;  %v487_v59 = vld [vmem:[%s761_s2] sm:$0xff] }
   0x8   :  { %581 = vmatprep.mubr.msk.bf16.mxu0 %vm656_vm0, %v655_v0  ;;  %605 = vmatprep.mubr.msk.bf16.mxu1 %vm656_vm0, %v655_v0 }
   0x9   :  { %609 = vmatprep.subr.bf16.mxu1 %v655_v0  ;;  %591 = vmatprep.subr.bf16.mxu0 %v655_v0 }
   0xe   :  { %582 = vmatmul.mubr.msk.bf16.vlgmr.msra.gmra.mrb[4].mxu0 %vm28_vm1, %v531_v6  ;;  %606 = vmatmul.mubr.msk.bf16.vlgmr.msra.gmra.mrb[4].mxu1 %vm28_vm1, %v544_v7 }
   0xf   :  { %592 = vmatpush3.bf16.msra.mxu0 %v649_v1  ;;  %610 = vmatpush3.bf16.msra.mxu1 %v652_v8 }
  0x10   :  { %593 = vmatprep.mubr.msk.bf16.mxu0 %vm656_vm0, %v655_v0  ;;  %611 = vmatprep.mubr.msk.bf16.mxu1 %vm656_vm0, %v655_v0 }
  0x11   :  { %615 = vmatprep.subr.bf16.mxu1 %v655_v0  ;;  %597 = vmatprep.subr.bf16.mxu0 %v655_v0 }
  0x16   :  { %594 = vmatmul.mubr.msk.bf16.vlgmr.msra.gmra.mrb[8].mxu0 %vm28_vm1, %v538_v9 }
  0x17   :  { %598 = vmatpush3.bf16.msra.mxu0 %v651_v5  ;;  %599 = vmatprep.mubr.msk.bf16.mxu0 %vm656_vm0, %v655_v0 }
  0x1a   :  { %612 = vmatmul.mubr.msk.bf16.vlgmr.msra.gmra.mrb[4].mxu1 %vm28_vm1, %v270_v10 }
  0x1b   :  { %616 = vmatpush3.bf16.msra.mxu1 %v650_v2  ;;  %617 = vmatprep.mubr.msk.bf16.mxu1 %vm656_vm0, %v655_v0 }
  0x1c   :  { %621 = vmatprep.subr.bf16.mxu1 %v655_v0 }
  0x22   :  { %600 = vmatmul.mubr.msk.bf16.vlgmr.msra.gmra.mrb[8].mxu0 %vm28_vm1, %v535_v11 }
  0x26   :  { %618 = vmatmul.mubr.msk.bf16.vlgmr.msra.gmra.mrb[4].mxu1 %vm28_vm1, %v548_v12 }
  0x27   :  { %622 = vmatpush3.bf16.msra.mxu1 %v649_v1  ;;  %623 = vmatprep.mubr.msk.bf16.mxu1 %vm656_vm0, %v655_v0 }
  0x32   :  { %624 = vmatmul.mubr.msk.bf16.vlgmr.msra.gmra.mrb[4].mxu1 %vm28_vm1, %v550_v13 }
  0xd9   :  { %v66_v14 = vpop.f32.mrb[0].mxu0  ;;  %v165_v15 = vpop.f32.mrb[0].mxu1 }
  0xda   :  { %v577_v16 = vpop.f32.mrb[1].mxu0  ;;  %v589_v17 = vpop.f32.mrb[1].mxu1 }
  0xdb   :  { %v69_v18 = vpop.f32.mrb[2].mxu0  ;;  %v168_v19 = vpop.f32.mrb[2].mxu1 }
  0xdc   :  { %v578_v20 = vpop.f32.mrb[3].mxu0  ;;  %v590_v21 = vpop.f32.mrb[3].mxu1 }
  0xe1   :  { %v116_v22 = vpop.f32.mrb[4].mxu0 }
  0xe2   :  { %v166_v23 = vadd.f32 %v165_v15, %v116_v22  ;;  %v583_v24 = vpop.f32.mrb[5].mxu0 }
  0xe3   :  { %v119_v25 = vpop.f32.mrb[6].mxu0 }
  0xe4   :  { %v584_v26 = vpop.f32.mrb[7].mxu0  ;;  %v460_v27 = vadd.f32 %v166_v23, %v66_v14 }
  0xf5   :  { %v264_v28 = vpop.f32.mrb[8].mxu0 }
  0xf6   :  { %v461_v29 = vadd.f32 %v460_v27, %v264_v28  ;;  %v601_v30 = vpop.f32.mrb[9].mxu0 }
  0xf7   :  { %v267_v31 = vpop.f32.mrb[10].mxu0 }
  0xf8   :  { %v602_v32 = vpop.f32.mrb[11].mxu0 }
 0x105   :  { %v453_v33 = vpop.f32.mrb[4].mxu1 }
 0x106   :  { %v625_v34 = vpop.f32.mrb[5].mxu1  ;;  %v462_v35 = vadd.f32 %v461_v29, %v453_v33 }
 0x107   :  { %v456_v36 = vpop.f32.mrb[6].mxu1 }
 0x108   :  { %v626_v37 = vpop.f32.mrb[7].mxu1  ;;  %463 = vadd.xlane.f32.xlu0 %v462_v35 }
 0x195   :  { %v464_v38 = vpop.xlane.xlu0 %463 }
 0x196   :  { %v466_v39 = vmul.f32 0.001953125, %v464_v38 }
 0x198   :  { %v468_v40 = vsub.f32 %v166_v23, %v466_v39  ;;  %v467_v41 = vsub.f32 %v66_v14, %v466_v39  ;;  %v469_v44 = vsub.f32 %v264_v28, %v466_v39  ;;  %v470_v45 = vsub.f32 %v453_v33, %v466_v39 }
 0x19a   :  { %v474_v42 = vmul.f32 %v468_v40, %v468_v40  ;;  %v471_v43 = vmul.f32 %v467_v41, %v467_v41  ;;  %v478_v46 = vmul.f32 %v469_v44, %v469_v44  ;;  %v482_v47 = vmul.f32 %v470_v45, %v470_v45 }
 0x19c   :  { %475 = vadd.xlane.f32.xlu1 %v474_v42  ;;  %472 = vadd.xlane.f32.xlu0 %v471_v43 }
 0x1a0   :  { %479 = vadd.xlane.f32.xlu1 %v478_v46  ;;  %483 = vadd.xlane.f32.xlu0 %v482_v47 }
 0x1b6   :  { %500 = vperm.xlu0 %648, %v491_v49  }
 0x229   :  { %v476_v50 = vpop.xlane.xlu1 %475  ;;  %v473_v51 = vpop.xlane.xlu0 %472 }
 0x22a   :  { %v477_v52 = vadd.f32 %v476_v50, %v473_v51 }
 0x22d   :  { %v480_v53 = vpop.xlane.xlu1 %479  ;;  %v484_v55 = vpop.xlane.xlu0 %483 }
 0x22e   :  { %v481_v54 = vadd.f32 %v480_v53, %v477_v52 }
 0x230   :  { %v485_v56 = vadd.f32 %v484_v55, %v481_v54 }
 0x232   :  { %v486_v57 = vmul.f32 0.001953125, %v485_v56 }
 0x234   :  { %v488_v58 = vadd.f32 1e-05, %v486_v57 }
 0x235   :  { %v501_v63 = vpop.permute.xlu0 %500 }
 0x236   :  { %653 = vrsqrt.f32 %v488_v58 }
 0x240   :  { %v654_v60 = vpop.eup %653 }
 0x241   :  { %v490_v61 = vmul.f32 %v654_v60, %v487_v59 }
 0x243   :  { %494 = vperm.xlu1 %647, %v490_v61  }
 0x2c2   :  { %v495_v62 = vpop.permute.xlu1 %494 }
 0x2c3   :  { %v497_v0 = vmul.f32 %v495_v62, %v467_v41  ;;  %v506_v1 = vmul.f32 %v495_v62, %v468_v40  ;;  %v511_v2 = vmul.f32 %v495_v62, %v469_v44  ;;  %v516_v3 = vmul.f32 %v495_v62, %v470_v45 }
 0x2c5   :  { %v503_v4 = vadd.f32 %v501_v63, %v497_v0  ;;  %v507_v5 = vadd.f32 %v506_v1, %v501_v63  ;;  %v512_v6 = vadd.f32 %v511_v2, %v501_v63  ;;  %v517_v7 = vadd.f32 %v516_v3, %v501_v63 }
 0x2c7   :  { %v504_v8 = vmax.f32 %v503_v4, 0.0  ;;  %v508_v9 = vmax.f32 %v507_v5, 0.0  ;;  %v513_v10 = vmax.f32 %v512_v6, 0.0  ;;  %v518_v11 = vmax.f32 %v517_v7, 0.0 }
 0x2c9   :  { %505 = vst [vmem:[%s762_s4] sm:$0xff] %v504_v8  ;;  %552 = vst [vmem:[%s762_s4 + $0x8] sm:$0xff] %v508_v9 }
 0x2ca   :  { %553 = vst [vmem:[%s762_s4 + $0x10] sm:$0xff] %v513_v10  ;;  %554 = vst [vmem:[%s762_s4 + $0x18] sm:$0xff] %v518_v11 }

// kernel: resnet_generator_forward.19
= control target key start
LH: loop header
LB: loop body
LE: loop exit
PB: predicated region body
PF: predicated region fallthrough
CT: control target
= control target key end

     0   :  { %vm37_vm0 = vcmask 1043456   ;;  %v6461_v2 = vmov 0   ;;  %vm33_vm1 = vcmask 64512   ;;  %s7325_s0 = inlined_call_operand.vmem [shape: bf16[49,8,512], index: 0, kind: input, shape index: {}]   ;;  %s7326_s1 = inlined_call_operand.vmem [shape: bf16[49,3,8], index: 1, kind: input, shape index: {}]   ;;  %s7327_s2 = inlined_call_operand.vmem [shape: f32[3,1], index: 2, kind: input, shape index: {}]   ;;  %s7328_s3 = inlined_call_operand.vmem [shape: f32[3,512], index: 3, kind: output, shape index: {}]  }
   0x1   :  { %v5720_v0 = vld [vmem:[%s7325_s0 + $0x10] sm:$0xff]  ;;  %v5721_v1 = vld [vmem:[%s7325_s0 + $0x18] sm:$0xff]  ;;  %82 = vmatprep.mubr.bf16.mxu0 %v6461_v2  ;;  %123 = vmatprep.mubr.bf16.mxu1 %v6461_v2  ;;  %v16_v7 = vld [vmem:[%s7325_s0] sm:$0xff] }
   0x2   :  { %v5723_v3 = vcombine.high %v5720_v0, %v5720_v0  ;;  %v5725_v4 = vcombine.high %v5721_v1, %v5721_v1  ;;  %v5722_v5 = vcombine.low %v5720_v0, %v5720_v0  ;;  %v5724_v6 = vcombine.low %v5721_v1, %v5721_v1  ;;  %v17_v8 = vld [vmem:[%s7325_s0 + $0x8] sm:$0xff]  ;;  %6256 = vset.pattern.permute.xlu0 %v6461_v2  ;;  %v5739_v15 = vld [vmem:[%s7325_s0 + $0x20] sm:$0xff]  ;;  %v5750_v24 = vld [vmem:[%s7325_s0 + $0x30] sm:$0xff] }
   0x3   :  { %v5731_v9 = vcombine.high %v16_v7, %v16_v7  ;;  %v5733_v10 = vcombine.high %v17_v8, %v17_v8  ;;  %v5730_v11 = vcombine.low %v16_v7, %v16_v7  ;;  %v5732_v12 = vcombine.low %v17_v8, %v17_v8  ;;  %v5740_v16 = vld [vmem:[%s7325_s0 + $0x28] sm:$0xff]  ;;  %v5719_v17 = vld [vmem:[%s7326_s1 + $0x2] sm:$0x3]  ;;  %v5751_v25 = vld [vmem:[%s7325_s0 + $0x38] sm:$0xff] }
   0x4   :  { %5726 = vmatprep.subr.msk.bf16.mxu0 %vm37_vm0, %v5723_v3  ;;  %5728 = vmatprep.subr.msk.bf16.mxu1 %vm37_vm0, %v5725_v4  ;;  %v39_v13 = vsel %vm37_vm0, %v5722_v5, 0  ;;  %v45_v14 = vsel %vm37_vm0, %v5724_v6, 0  ;;  %v5742_v20 = vcombine.high %v5739_v15, %v5739_v15  ;;  %v5744_v21 = vcombine.high %v5740_v16, %v5740_v16  ;;  %v15_v26 = vld [vmem:[%s7326_s1] sm:$0x3]  ;;  %v5762_v34 = vld [vmem:[%s7325_s0 + $0x48] sm:$0xff]  ;;  %v5772_v42 = vld [vmem:[%s7325_s0 + $0x50] sm:$0xff] }
   0x5   :  { %51 = vmatpush1.bf16.msra.mxu0 %v39_v13  ;;  %92 = vmatpush1.bf16.msra.mxu1 %v45_v14  ;;  %v146_v18 = vsel %vm37_vm0, %v5730_v11, 0  ;;  %v152_v19 = vsel %vm37_vm0, %v5732_v12, 0  ;;  %v5741_v22 = vcombine.low %v5739_v15, %v5739_v15  ;;  %v5743_v23 = vcombine.low %v5740_v16, %v5740_v16  ;;  %v5761_v33 = vld [vmem:[%s7325_s0 + $0x40] sm:$0xff]  ;;  %v5773_v43 = vld [vmem:[%s7325_s0 + $0x58] sm:$0xff]  ;;  %v5784_v52 = vld [vmem:[%s7325_s0 + $0x68] sm:$0xff] }
   0x6   :  { %5734 = vmatprep.subr.msk.bf16.mxu0 %vm37_vm0, %v5731_v9  ;;  %5736 = vmatprep.subr.msk.bf16.mxu1 %vm37_vm0, %v5733_v10  ;;  %v5753_v29 = vcombine.high %v5750_v24, %v5750_v24  ;;  %v5755_v30 = vcombine.high %v5751_v25, %v5751_v25  ;;  %v5752_v31 = vcombine.low %v5750_v24, %v5750_v24  ;;  %v5738_v35 = vld [vmem:[%s7326_s1 + $0x4] sm:$0x3]  ;;  %v5749_v44 = vld [vmem:[%s7326_s1 + $0x6] sm:$0x3]  ;;  %v5760_v53 = vld [vmem:[%s7326_s1 + $0x8] sm:$0x3] }
   0x7   :  { %v258_v27 = vsel %vm37_vm0, %v5741_v22, 0  ;;  %v264_v28 = vsel %vm37_vm0, %v5743_v23, 0  ;;  %v5754_v32 = vcombine.low %v5751_v25, %v5751_v25  ;;  %v5764_v38 = vcombine.high %v5761_v33, %v5761_v33  ;;  %v5783_v51 = vld [vmem:[%s7325_s0 + $0x60] sm:$0xff]  ;;  %v5794_v60 = vld [vmem:[%s7325_s0 + $0x70] sm:$0xff]  ;;  %v5795_v61 = vld [vmem:[%s7325_s0 + $0x78] sm:$0xff] }
   0x8   :  { %5727 = vmatmul.mubr.msk.bf16.vlgmr.msra.gmra.mrb[0].mxu0 %vm33_vm1, %v5719_v17  ;;  %5729 = vmatmul.mubr.msk.bf16.vlgmr.msra.gmra.mrb[0].mxu1 %vm33_vm1, %v5719_v17  ;;  %v374_v36 = vsel %vm37_vm0, %v5752_v31, 0  ;;  %v5766_v39 = vcombine.high %v5762_v34, %v5762_v34  ;;  %v5763_v40 = vcombine.low %v5761_v33, %v5761_v33  ;;  %v5765_v41 = vcombine.low %v5762_v34, %v5762_v34  ;;  %v5771_v62 = vld [vmem:[%s7326_s1 + $0xa] sm:$0x3]  ;;  %v5805_v6 = vld [vmem:[%s7325_s0 + $0x80] sm:$0xff]  ;;  %v5782_v8 = vld [vmem:[%s7326_s1 + $0xc] sm:$0x3] }
   0x9   :  { %158 = vmatpush1.bf16.msra.mxu0 %v146_v18  ;;  %199 = vmatpush1.bf16.msra.mxu1 %v152_v19  ;;  %v380_v37 = vsel %vm37_vm0, %v5754_v32, 0  ;;  %v5775_v47 = vcombine.high %v5772_v42, %v5772_v42  ;;  %v5777_v48 = vcombine.high %v5773_v43, %v5773_v43  ;;  %v5774_v49 = vcombine.low %v5772_v42, %v5772_v42  ;;  %v5806_v7 = vld [vmem:[%s7325_s0 + $0x88] sm:$0xff]  ;;  %v5816_v15 = vld [vmem:[%s7325_s0 + $0x90] sm:$0xff]  ;;  %v5817_v16 = vld [vmem:[%s7325_s0 + $0x98] sm:$0xff] }
   0xa   :  { %189 = vmatprep.mubr.bf16.mxu0 %v6461_v2  ;;  %230 = vmatprep.mubr.bf16.mxu1 %v6461_v2  ;;  %v490_v45 = vsel %vm37_vm0, %v5763_v40, 0  ;;  %v496_v46 = vsel %vm37_vm0, %v5765_v41, 0  ;;  %v5776_v50 = vcombine.low %v5773_v43, %v5773_v43  ;;  %v5786_v56 = vcombine.high %v5783_v51, %v5783_v51  ;;  %v5793_v17 = vld [vmem:[%s7326_s1 + $0xe] sm:$0x3]  ;;  %v5827_v24 = vld [vmem:[%s7325_s0 + $0xa0] sm:$0xff]  ;;  %v5838_v33 = vld [vmem:[%s7325_s0 + $0xb0] sm:$0xff] }
   0xb   :  { %5745 = vmatprep.subr.msk.bf16.mxu0 %vm37_vm0, %v5742_v20  ;;  %5747 = vmatprep.subr.msk.bf16.mxu1 %vm37_vm0, %v5744_v21  ;;  %v606_v54 = vsel %vm37_vm0, %v5774_v49, 0  ;;  %v5788_v57 = vcombine.high %v5784_v52, %v5784_v52  ;;  %v5785_v58 = vcombine.low %v5783_v51, %v5783_v51  ;;  %v5787_v59 = vcombine.low %v5784_v52, %v5784_v52  ;;  %v5828_v25 = vld [vmem:[%s7325_s0 + $0xa8] sm:$0xff]  ;;  %v5839_v34 = vld [vmem:[%s7325_s0 + $0xb8] sm:$0xff]  ;;  %v5849_v42 = vld [vmem:[%s7325_s0 + $0xc0] sm:$0xff] }
   0xc   :  { %v612_v55 = vsel %vm37_vm0, %v5776_v50, 0  ;;  %v5797_v1 = vcombine.high %v5794_v60, %v5794_v60  ;;  %v5799_v3 = vcombine.high %v5795_v61, %v5795_v61  ;;  %v5796_v4 = vcombine.low %v5794_v60, %v5794_v60  ;;  %v5850_v43 = vld [vmem:[%s7325_s0 + $0xc8] sm:$0xff]  ;;  %v5860_v51 = vld [vmem:[%s7325_s0 + $0xd0] sm:$0xff]  ;;  %v5861_v52 = vld [vmem:[%s7325_s0 + $0xd8] sm:$0xff] }
   0xd   :  { %v722_v63 = vsel %vm37_vm0, %v5785_v58, 0  ;;  %v728_v0 = vsel %vm37_vm0, %v5787_v59, 0  ;;  %v5798_v5 = vcombine.low %v5795_v61, %v5795_v61  ;;  %v5808_v11 = vcombine.high %v5805_v6, %v5805_v6  ;;  %v5871_v60 = vld [vmem:[%s7325_s0 + $0xe0] sm:$0xff]  ;;  %v5872_v61 = vld [vmem:[%s7325_s0 + $0xe8] sm:$0xff] }
   0xe   :  { %v838_v9 = vsel %vm37_vm0, %v5796_v4, 0  ;;  %v5810_v12 = vcombine.high %v5806_v7, %v5806_v7  ;;  %v5807_v13 = vcombine.low %v5805_v6, %v5805_v6  ;;  %v5809_v14 = vcombine.low %v5806_v7, %v5806_v7  ;;  %v5882_v6 = vld [vmem:[%s7325_s0 + $0xf0] sm:$0xff]  ;;  %v5883_v7 = vld [vmem:[%s7325_s0 + $0xf8] sm:$0xff] }
   0xf   :  { %v844_v10 = vsel %vm37_vm0, %v5798_v5, 0  ;;  %v5819_v20 = vcombine.high %v5816_v15, %v5816_v15  ;;  %v5821_v21 = vcombine.high %v5817_v16, %v5817_v16  ;;  %v5818_v22 = vcombine.low %v5816_v15, %v5816_v15  ;;  %v5893_v15 = vld [vmem:[%s7325_s0 + $0x100] sm:$0xff] }
  0x10   :  { %5735 = vmatmul.mubr.msk.bf16.vlgmr.msra.gmra.mrb[4].mxu0 %vm33_vm1, %v15_v26  ;;  %5737 = vmatmul.mubr.msk.bf16.vlgmr.msra.gmra.mrb[4].mxu1 %vm33_vm1, %v15_v26  ;;  %v954_v18 = vsel %vm37_vm0, %v5807_v13, 0  ;;  %v960_v19 = vsel %vm37_vm0, %v5809_v14, 0  ;;  %v5820_v23 = vcombine.low %v5817_v16, %v5817_v16  ;;  %v5804_v26 = vld [vmem:[%s7326_s1 + $0x10] sm:$0x3]  ;;  %v5829_v31 = vcombine.low %v5827_v24, %v5827_v24  ;;  %v5894_v16 = vld [vmem:[%s7325_s0 + $0x108] sm:$0xff] }
  0x11   :  { %270 = vmatpush1.bf16.msra.mxu0 %v258_v27  ;;  %311 = vmatpush1.bf16.msra.mxu1 %v264_v28  ;;  %v1070_v27 = vsel %vm37_vm0, %v5818_v22, 0  ;;  %v5831_v32 = vcombine.low %v5828_v25, %v5828_v25  ;;  %v5840_v40 = vcombine.low %v5838_v33, %v5838_v33  ;;  %v5842_v41 = vcombine.low %v5839_v34, %v5839_v34 }
  0x12   :  { %301 = vmatprep.mubr.bf16.mxu0 %v6461_v2  ;;  %342 = vmatprep.mubr.bf16.mxu1 %v6461_v2  ;;  %v1076_v28 = vsel %vm37_vm0, %v5820_v23, 0  ;;  %v5851_v49 = vcombine.low %v5849_v42, %v5849_v42  ;;  %v5853_v50 = vcombine.low %v5850_v43, %v5850_v43  ;;  %v5862_v58 = vcombine.low %v5860_v51, %v5860_v51 }
  0x13   :  { %5756 = vmatprep.subr.msk.bf16.mxu0 %vm37_vm0, %v5753_v29  ;;  %5758 = vmatprep.subr.msk.bf16.mxu1 %vm37_vm0, %v5755_v30  ;;  %v5830_v29 = vcombine.high %v5827_v24, %v5827_v24  ;;  %v5832_v30 = vcombine.high %v5828_v25, %v5828_v25  ;;  %v5864_v59 = vcombine.low %v5861_v52, %v5861_v52  ;;  %v5904_v24 = vld [vmem:[%s7325_s0 + $0x110] sm:$0xff]  ;;  %v5905_v25 = vld [vmem:[%s7325_s0 + $0x118] sm:$0xff] }
  0x14   :  { %v5873_v4 = vcombine.low %v5871_v60, %v5871_v60  ;;  %v5875_v5 = vcombine.low %v5872_v61, %v5872_v61  ;;  %v5884_v13 = vcombine.low %v5882_v6, %v5882_v6  ;;  %v5886_v14 = vcombine.low %v5883_v7, %v5883_v7 }
  0x15   :  { %v5895_v22 = vcombine.low %v5893_v15, %v5893_v15  ;;  %v5897_v23 = vcombine.low %v5894_v16, %v5894_v16 }
  0x18   :  { %5746 = vmatmul.mubr.msk.bf16.vlgmr.msra.gmra.mrb[8].mxu0 %vm33_vm1, %v5738_v35  ;;  %5748 = vmatmul.mubr.msk.bf16.vlgmr.msra.gmra.mrb[8].mxu1 %vm33_vm1, %v5738_v35  ;;  %v5815_v35 = vld [vmem:[%s7326_s1 + $0x12] sm:$0x3] }
  0x19   :  { %386 = vmatpush1.bf16.msra.mxu0 %v374_v36  ;;  %427 = vmatpush1.bf16.msra.mxu1 %v380_v37  ;;  %v1186_v36 = vsel %vm37_vm0, %v5829_v31, 0  ;;  %v1192_v37 = vsel %vm37_vm0, %v5831_v32, 0  ;;  %v5906_v31 = vcombine.low %v5904_v24, %v5904_v24  ;;  %v5908_v32 = vcombine.low %v5905_v25, %v5905_v25 }
  0x1a   :  { %417 = vmatprep.mubr.bf16.mxu0 %v6461_v2  ;;  %458 = vmatprep.mubr.bf16.mxu1 %v6461_v2 }
  0x1b   :  { %5767 = vmatprep.subr.msk.bf16.mxu0 %vm37_vm0, %v5764_v38  ;;  %5769 = vmatprep.subr.msk.bf16.mxu1 %vm37_vm0, %v5766_v39  ;;  %v5841_v38 = vcombine.high %v5838_v33, %v5838_v33  ;;  %v5843_v39 = vcombine.high %v5839_v34, %v5839_v34  ;;  %v5915_v33 = vld [vmem:[%s7325_s0 + $0x120] sm:$0xff]  ;;  %v5916_v34 = vld [vmem:[%s7325_s0 + $0x128] sm:$0xff] }
  0x20   :  { %5757 = vmatmul.mubr.msk.bf16.vlgmr.msra.gmra.mrb[12].mxu0 %vm33_vm1, %v5749_v44  ;;  %5759 = vmatmul.mubr.msk.bf16.vlgmr.msra.gmra.mrb[12].mxu1 %vm33_vm1, %v5749_v44  ;;  %v5826_v44 = vld [vmem:[%s7326_s1 + $0x14] sm:$0x3] }
  0x21   :  { %502 = vmatpush1.bf16.msra.mxu0 %v490_v45  ;;  %543 = vmatpush1.bf16.msra.mxu1 %v496_v46  ;;  %v1302_v45 = vsel %vm37_vm0, %v5840_v40, 0  ;;  %v1308_v46 = vsel %vm37_vm0, %v5842_v41, 0  ;;  %v5917_v40 = vcombine.low %v5915_v33, %v5915_v33  ;;  %v5919_v41 = vcombine.low %v5916_v34, %v5916_v34 }
  0x22   :  { %533 = vmatprep.mubr.bf16.mxu0 %v6461_v2  ;;  %574 = vmatprep.mubr.bf16.mxu1 %v6461_v2 }
  0x23   :  { %5778 = vmatprep.subr.msk.bf16.mxu0 %vm37_vm0, %v5775_v47  ;;  %5780 = vmatprep.subr.msk.bf16.mxu1 %vm37_vm0, %v5777_v48  ;;  %v5852_v47 = vcombine.high %v5849_v42, %v5849_v42  ;;  %v5854_v48 = vcombine.high %v5850_v43, %v5850_v43  ;;  %v5926_v42 = vld [vmem:[%s7325_s0 + $0x130] sm:$0xff]  ;;  %v5927_v43 = vld [vmem:[%s7325_s0 + $0x138] sm:$0xff] }
  0x28   :  { %5768 = vmatmul.mubr.msk.bf16.vlgmr.msra.gmra.mrb[16].mxu0 %vm33_vm1, %v5760_v53  ;;  %5770 = vmatmul.mubr.msk.bf16.vlgmr.msra.gmra.mrb[16].mxu1 %vm33_vm1, %v5760_v53  ;;  %v5837_v53 = vld [vmem:[%s7326_s1 + $0x16] sm:$0x3] }
  0x29   :  { %618 = vmatpush1.bf16.msra.mxu0 %v606_v54  ;;  %659 = vmatpush1.bf16.msra.mxu1 %v612_v55  ;;  %v1418_v54 = vsel %vm37_vm0, %v5851_v49, 0  ;;  %v1424_v55 = vsel %vm37_vm0, %v5853_v50, 0  ;;  %v5928_v49 = vcombine.low %v5926_v42, %v5926_v42  ;;  %v5930_v50 = vcombine.low %v5927_v43, %v5927_v43 }
  0x2a   :  { %649 = vmatprep.mubr.bf16.mxu0 %v6461_v2  ;;  %690 = vmatprep.mubr.bf16.mxu1 %v6461_v2 }
  0x2b   :  { %5789 = vmatprep.subr.msk.bf16.mxu0 %vm37_vm0, %v5786_v56  ;;  %5791 = vmatprep.subr.msk.bf16.mxu1 %vm37_vm0, %v5788_v57  ;;  %v5863_v56 = vcombine.high %v5860_v51, %v5860_v51  ;;  %v5865_v57 = vcombine.high %v5861_v52, %v5861_v52  ;;  %v5937_v51 = vld [vmem:[%s7325_s0 + $0x140] sm:$0xff]  ;;  %v5938_v52 = vld [vmem:[%s7325_s0 + $0x148] sm:$0xff] }
  0x30   :  { %5779 = vmatmul.mubr.msk.bf16.vlgmr.msra.gmra.mrb[20].mxu0 %vm33_vm1, %v5771_v62  ;;  %5781 = vmatmul.mubr.msk.bf16.vlgmr.msra.gmra.mrb[20].mxu1 %vm33_vm1, %v5771_v62  ;;  %v5848_v62 = vld [vmem:[%s7326_s1 + $0x18] sm:$0x3] }
  0x31   :  { %734 = vmatpush1.bf16.msra.mxu0 %v722_v63  ;;  %775 = vmatpush1.bf16.msra.mxu1 %v728_v0  ;;  %v1534_v63 = vsel %vm37_vm0, %v5862_v58, 0  ;;  %v1540_v0 = vsel %vm37_vm0, %v5864_v59, 0  ;;  %v5939_v58 = vcombine.low %v5937_v51, %v5937_v51  ;;  %v5941_v59 = vcombine.low %v5938_v52, %v5938_v52 }
  0x32   :  { %765 = vmatprep.mubr.bf16.mxu0 %v6461_v2  ;;  %806 = vmatprep.mubr.bf16.mxu1 %v6461_v2 }
  0x33   :  { %5800 = vmatprep.subr.msk.bf16.mxu0 %vm37_vm0, %v5797_v1  ;;  %5802 = vmatprep.subr.msk.bf16.mxu1 %vm37_vm0, %v5799_v3  ;;  %v5874_v1 = vcombine.high %v5871_v60, %v5871_v60  ;;  %v5876_v3 = vcombine.high %v5872_v61, %v5872_v61  ;;  %v5948_v60 = vld [vmem:[%s7325_s0 + $0x150] sm:$0xff]  ;;  %v5949_v61 = vld [vmem:[%s7325_s0 + $0x158] sm:$0xff] }
  0x38   :  { %5790 = vmatmul.mubr.msk.bf16.vlgmr.msra.gmra.mrb[24].mxu0 %vm33_vm1, %v5782_v8  ;;  %5792 = vmatmul.mubr.msk.bf16.vlgmr.msra.gmra.mrb[24].mxu1 %vm33_vm1, %v5782_v8  ;;  %v5859_v8 = vld [vmem:[%s7326_s1 + $0x1a] sm:$0x3] }
  0x39   :  { %850 = vmatpush1.bf16.msra.mxu0 %v838_v9  ;;  %891 = vmatpush1.bf16.msra.mxu1 %v844_v10  ;;  %v1650_v9 = vsel %vm37_vm0, %v5873_v4, 0  ;;  %v1656_v10 = vsel %vm37_vm0, %v5875_v5, 0  ;;  %v5950_v4 = vcombine.low %v5948_v60, %v5948_v60  ;;  %v5952_v5 = vcombine.low %v5949_v61, %v5949_v61 }
  0x3a   :  { %881 = vmatprep.mubr.bf16.mxu0 %v6461_v2  ;;  %922 = vmatprep.mubr.bf16.mxu1 %v6461_v2 }
  0x3b   :  { %5811 = vmatprep.subr.msk.bf16.mxu0 %vm37_vm0, %v5808_v11  ;;  %5813 = vmatprep.subr.msk.bf16.mxu1 %vm37_vm0, %v5810_v12  ;;  %v5885_v11 = vcombine.high %v5882_v6, %v5882_v6  ;;  %v5887_v12 = vcombine.high %v5883_v7, %v5883_v7  ;;  %v5959_v6 = vld [vmem:[%s7325_s0 + $0x160] sm:$0xff]  ;;  %v5960_v7 = vld [vmem:[%s7325_s0 + $0x168] sm:$0xff] }
  0x40   :  { %5801 = vmatmul.mubr.msk.bf16.vlgmr.msra.gmra.mrb[28].mxu0 %vm33_vm1, %v5793_v17  ;;  %5803 = vmatmul.mubr.msk.bf16.vlgmr.msra.gmra.mrb[28].mxu1 %vm33_vm1, %v5793_v17  ;;  %v5870_v17 = vld [vmem:[%s7326_s1 + $0x1c] sm:$0x3] }
  0x41   :  { %966 = vmatpush1.bf16.msra.mxu0 %v954_v18  ;;  %1007 = vmatpush1.bf16.msra.mxu1 %v960_v19  ;;  %v1766_v18 = vsel %vm37_vm0, %v5884_v13, 0  ;;  %v1772_v19 = vsel %vm37_vm0, %v5886_v14, 0  ;;  %v5961_v13 = vcombine.low %v5959_v6, %v5959_v6  ;;  %v5963_v14 = vcombine.low %v5960_v7, %v5960_v7 }
  0x42   :  { %997 = vmatprep.mubr.bf16.mxu0 %v6461_v2  ;;  %1038 = vmatprep.mubr.bf16.mxu1 %v6461_v2 }
  0x43   :  { %5822 = vmatprep.subr.msk.bf16.mxu0 %vm37_vm0, %v5819_v20  ;;  %5824 = vmatprep.subr.msk.bf16.mxu1 %vm37_vm0, %v5821_v21  ;;  %v5896_v20 = vcombine.high %v5893_v15, %v5893_v15  ;;  %v5898_v21 = vcombine.high %v5894_v16, %v5894_v16  ;;  %v5970_v15 = vld [vmem:[%s7325_s0 + $0x170] sm:$0xff]  ;;  %v5971_v16 = vld [vmem:[%s7325_s0 + $0x178] sm:$0xff] }
  0x48   :  { %5812 = vmatmul.mubr.msk.bf16.vlgmr.msra.gmra.mrb[32].mxu0 %vm33_vm1, %v5804_v26  ;;  %5814 = vmatmul.mubr.msk.bf16.vlgmr.msra.gmra.mrb[32].mxu1 %vm33_vm1, %v5804_v26  ;;  %v5881_v26 = vld [vmem:[%s7326_s1 + $0x1e] sm:$0x3] }
  0x49   :  { %1082 = vmatpush1.bf16.msra.mxu0 %v1070_v27  ;;  %1123 = vmatpush1.bf16.msra.mxu1 %v1076_v28  ;;  %v1882_v27 = vsel %vm37_vm0, %v5895_v22, 0  ;;  %v1888_v28 = vsel %vm37_vm0, %v5897_v23, 0  ;;  %v5972_v22 = vcombine.low %v5970_v15, %v5970_v15  ;;  %v5974_v23 = vcombine.low %v5971_v16, %v5971_v16 }
  0x4a   :  { %1113 = vmatprep.mubr.bf16.mxu0 %v6461_v2  ;;  %1154 = vmatprep.mubr.bf16.mxu1 %v6461_v2 }
  0x4b   :  { %5833 = vmatprep.subr.msk.bf16.mxu0 %vm37_vm0, %v5830_v29  ;;  %5835 = vmatprep.subr.msk.bf16.mxu1 %vm37_vm0, %v5832_v30  ;;  %v5907_v29 = vcombine.high %v5904_v24, %v5904_v24  ;;  %v5909_v30 = vcombine.high %v5905_v25, %v5905_v25  ;;  %v5981_v24 = vld [vmem:[%s7325_s0 + $0x180] sm:$0xff]  ;;  %v5982_v25 = vld [vmem:[%s7325_s0 + $0x188] sm:$0xff] }
  0x50   :  { %5823 = vmatmul.mubr.msk.bf16.vlgmr.msra.gmra.mrb[36].mxu0 %vm33_vm1, %v5815_v35  ;;  %5825 = vmatmul.mubr.msk.bf16.vlgmr.msra.gmra.mrb[36].mxu1 %vm33_vm1, %v5815_v35  ;;  %v5892_v35 = vld [vmem:[%s7326_s1 + $0x20] sm:$0x3] }
  0x51   :  { %1198 = vmatpush1.bf16.msra.mxu0 %v1186_v36  ;;  %1239 = vmatpush1.bf16.msra.mxu1 %v1192_v37  ;;  %v1998_v36 = vsel %vm37_vm0, %v5906_v31, 0  ;;  %v2004_v37 = vsel %vm37_vm0, %v5908_v32, 0  ;;  %v5983_v31 = vcombine.low %v5981_v24, %v5981_v24  ;;  %v5985_v32 = vcombine.low %v5982_v25, %v5982_v25 }
  0x52   :  { %1229 = vmatprep.mubr.bf16.mxu0 %v6461_v2  ;;  %1270 = vmatprep.mubr.bf16.mxu1 %v6461_v2 }
  0x53   :  { %5844 = vmatprep.subr.msk.bf16.mxu0 %vm37_vm0, %v5841_v38  ;;  %5846 = vmatprep.subr.msk.bf16.mxu1 %vm37_vm0, %v5843_v39  ;;  %v5918_v38 = vcombine.high %v5915_v33, %v5915_v33  ;;  %v5920_v39 = vcombine.high %v5916_v34, %v5916_v34  ;;  %v5992_v33 = vld [vmem:[%s7325_s0 + $0x190] sm:$0xff]  ;;  %v5993_v34 = vld [vmem:[%s7325_s0 + $0x198] sm:$0xff] }
  0x58   :  { %5834 = vmatmul.mubr.msk.bf16.vlgmr.msra.gmra.mrb[40].mxu0 %vm33_vm1, %v5826_v44  ;;  %5836 = vmatmul.mubr.msk.bf16.vlgmr.msra.gmra.mrb[40].mxu1 %vm33_vm1, %v5826_v44  ;;  %v5903_v44 = vld [vmem:[%s7326_s1 + $0x22] sm:$0x3] }
  0x59   :  { %1314 = vmatpush1.bf16.msra.mxu0 %v1302_v45  ;;  %1355 = vmatpush1.bf16.msra.mxu1 %v1308_v46  ;;  %v2114_v45 = vsel %vm37_vm0, %v5917_v40, 0  ;;  %v2120_v46 = vsel %vm37_vm0, %v5919_v41, 0  ;;  %v5994_v40 = vcombine.low %v5992_v33, %v5992_v33  ;;  %v5996_v41 = vcombine.low %v5993_v34, %v5993_v34 }
  0x5a   :  { %1345 = vmatprep.mubr.bf16.mxu0 %v6461_v2  ;;  %1386 = vmatprep.mubr.bf16.mxu1 %v6461_v2 }
  0x5b   :  { %5855 = vmatprep.subr.msk.bf16.mxu0 %vm37_vm0, %v5852_v47  ;;  %5857 = vmatprep.subr.msk.bf16.mxu1 %vm37_vm0, %v5854_v48  ;;  %v5929_v47 = vcombine.high %v5926_v42, %v5926_v42  ;;  %v5931_v48 = vcombine.high %v5927_v43, %v5927_v43  ;;  %v6003_v42 = vld [vmem:[%s7325_s0 + $0x1a0] sm:$0xff]  ;;  %v6004_v43 = vld [vmem:[%s7325_s0 + $0x1a8] sm:$0xff] }
  0x60   :  { %5845 = vmatmul.mubr.msk.bf16.vlgmr.msra.gmra.mrb[44].mxu0 %vm33_vm1, %v5837_v53  ;;  %5847 = vmatmul.mubr.msk.bf16.vlgmr.msra.gmra.mrb[44].mxu1 %vm33_vm1, %v5837_v53  ;;  %v5914_v53 = vld [vmem:[%s7326_s1 + $0x24] sm:$0x3] }
  0x61   :  { %1430 = vmatpush1.bf16.msra.mxu0 %v1418_v54  ;;  %1471 = vmatpush1.bf16.msra.mxu1 %v1424_v55  ;;  %v2230_v54 = vsel %vm37_vm0, %v5928_v49, 0  ;;  %v2236_v55 = vsel %vm37_vm0, %v5930_v50, 0  ;;  %v6005_v49 = vcombine.low %v6003_v42, %v6003_v42  ;;  %v6007_v50 = vcombine.low %v6004_v43, %v6004_v43 }
  0x62   :  { %1461 = vmatprep.mubr.bf16.mxu0 %v6461_v2  ;;  %1502 = vmatprep.mubr.bf16.mxu1 %v6461_v2 }
  0x63   :  { %5866 = vmatprep.subr.msk.bf16.mxu0 %vm37_vm0, %v5863_v56  ;;  %5868 = vmatprep.subr.msk.bf16.mxu1 %vm37_vm0, %v5865_v57  ;;  %v5940_v56 = vcombine.high %v5937_v51, %v5937_v51  ;;  %v5942_v57 = vcombine.high %v5938_v52, %v5938_v52  ;;  %v6014_v51 = vld [vmem:[%s7325_s0 + $0x1b0] sm:$0xff]  ;;  %v6015_v52 = vld [vmem:[%s7325_s0 + $0x1b8] sm:$0xff] }
  0x68   :  { %5856 = vmatmul.mubr.msk.bf16.vlgmr.msra.gmra.mrb[48].mxu0 %vm33_vm1, %v5848_v62  ;;  %5858 = vmatmul.mubr.msk.bf16.vlgmr.msra.gmra.mrb[48].mxu1 %vm33_vm1, %v5848_v62  ;;  %v5925_v62 = vld [vmem:[%s7326_s1 + $0x26] sm:$0x3] }
  0x69   :  { %1546 = vmatpush1.bf16.msra.mxu0 %v1534_v63  ;;  %1587 = vmatpush1.bf16.msra.mxu1 %v1540_v0  ;;  %v2346_v63 = vsel %vm37_vm0, %v5939_v58, 0  ;;  %v2352_v0 = vsel %vm37_vm0, %v5941_v59, 0  ;;  %v6016_v58 = vcombine.low %v6014_v51, %v6014_v51  ;;  %v6018_v59 = vcombine.low %v6015_v52, %v6015_v52 }
  0x6a   :  { %1577 = vmatprep.mubr.bf16.mxu0 %v6461_v2  ;;  %1618 = vmatprep.mubr.bf16.mxu1 %v6461_v2 }
  0x6b   :  { %5877 = vmatprep.subr.msk.bf16.mxu0 %vm37_vm0, %v5874_v1  ;;  %5879 = vmatprep.subr.msk.bf16.mxu1 %vm37_vm0, %v5876_v3  ;;  %v5951_v1 = vcombine.high %v5948_v60, %v5948_v60  ;;  %v5953_v3 = vcombine.high %v5949_v61, %v5949_v61  ;;  %v6025_v60 = vld [vmem:[%s7325_s0 + $0x1c0] sm:$0xff]  ;;  %v6026_v61 = vld [vmem:[%s7325_s0 + $0x1c8] sm:$0xff] }
  0x70   :  { %5867 = vmatmul.mubr.msk.bf16.vlgmr.msra.gmra.mrb[52].mxu0 %vm33_vm1, %v5859_v8  ;;  %5869 = vmatmul.mubr.msk.bf16.vlgmr.msra.gmra.mrb[52].mxu1 %vm33_vm1, %v5859_v8  ;;  %v5936_v8 = vld [vmem:[%s7326_s1 + $0x28] sm:$0x3] }
  0x71   :  { %1662 = vmatpush1.bf16.msra.mxu0 %v1650_v9  ;;  %1703 = vmatpush1.bf16.msra.mxu1 %v1656_v10  ;;  %v2462_v9 = vsel %vm37_vm0, %v5950_v4, 0  ;;  %v2468_v10 = vsel %vm37_vm0, %v5952_v5, 0  ;;  %v6027_v4 = vcombine.low %v6025_v60, %v6025_v60  ;;  %v6029_v5 = vcombine.low %v6026_v61, %v6026_v61 }
  0x72   :  { %1693 = vmatprep.mubr.bf16.mxu0 %v6461_v2  ;;  %1734 = vmatprep.mubr.bf16.mxu1 %v6461_v2 }
  0x73   :  { %5888 = vmatprep.subr.msk.bf16.mxu0 %vm37_vm0, %v5885_v11  ;;  %5890 = vmatprep.subr.msk.bf16.mxu1 %vm37_vm0, %v5887_v12  ;;  %v5962_v11 = vcombine.high %v5959_v6, %v5959_v6  ;;  %v5964_v12 = vcombine.high %v5960_v7, %v5960_v7 }
  0x78   :  { %5878 = vmatmul.mubr.msk.bf16.vlgmr.msra.gmra.mrb[56].mxu0 %vm33_vm1, %v5870_v17  ;;  %5880 = vmatmul.mubr.msk.bf16.vlgmr.msra.gmra.mrb[56].mxu1 %vm33_vm1, %v5870_v17  ;;  %v5947_v17 = vld [vmem:[%s7326_s1 + $0x2a] sm:$0x3] }
  0x79   :  { %1778 = vmatpush1.bf16.msra.mxu0 %v1766_v18  ;;  %1819 = vmatpush1.bf16.msra.mxu1 %v1772_v19  ;;  %v2578_v18 = vsel %vm37_vm0, %v5961_v13, 0  ;;  %v2584_v19 = vsel %vm37_vm0, %v5963_v14, 0  ;;  %v6013_v14 = vld [vmem:[%s7326_s1 + $0x36] sm:$0x3] }
  0x7a   :  { %1809 = vmatprep.mubr.bf16.mxu0 %v6461_v2  ;;  %1850 = vmatprep.mubr.bf16.mxu1 %v6461_v2 }
  0x7b   :  { %5899 = vmatprep.subr.msk.bf16.mxu0 %vm37_vm0, %v5896_v20  ;;  %5901 = vmatprep.subr.msk.bf16.mxu1 %vm37_vm0, %v5898_v21  ;;  %v5973_v20 = vcombine.high %v5970_v15, %v5970_v15  ;;  %v5975_v21 = vcombine.high %v5971_v16, %v5971_v16 }
  0x80   :  { %5889 = vmatmul.mubr.msk.bf16.vlgmr.msra.gmra.mrb[60].mxu0 %vm33_vm1, %v5881_v26  ;;  %5891 = vmatmul.mubr.msk.bf16.vlgmr.msra.gmra.mrb[60].mxu1 %vm33_vm1, %v5881_v26  ;;  %v5958_v26 = vld [vmem:[%s7326_s1 + $0x2c] sm:$0x3] }
  0x81   :  { %1894 = vmatpush1.bf16.msra.mxu0 %v1882_v27  ;;  %1935 = vmatpush1.bf16.msra.mxu1 %v1888_v28  ;;  %v2694_v27 = vsel %vm37_vm0, %v5972_v22, 0  ;;  %v2700_v28 = vsel %vm37_vm0, %v5974_v23, 0 }
  0x82   :  { %1925 = vmatprep.mubr.bf16.mxu0 %v6461_v2  ;;  %1966 = vmatprep.mubr.bf16.mxu1 %v6461_v2 }
  0x83   :  { %5910 = vmatprep.subr.msk.bf16.mxu0 %vm37_vm0, %v5907_v29  ;;  %5912 = vmatprep.subr.msk.bf16.mxu1 %vm37_vm0, %v5909_v30  ;;  %v5984_v29 = vcombine.high %v5981_v24, %v5981_v24  ;;  %v5986_v30 = vcombine.high %v5982_v25, %v5982_v25 }
  0x88   :  { %5900 = vmatmul.mubr.msk.bf16.vlgmr.msra.gmra.mrb[64].mxu0 %vm33_vm1, %v5892_v35  ;;  %5902 = vmatmul.mubr.msk.bf16.vlgmr.msra.gmra.mrb[64].mxu1 %vm33_vm1, %v5892_v35  ;;  %v5969_v35 = vld [vmem:[%s7326_s1 + $0x2e] sm:$0x3] }
  0x89   :  { %2010 = vmatpush1.bf16.msra.mxu0 %v1998_v36  ;;  %2051 = vmatpush1.bf16.msra.mxu1 %v2004_v37  ;;  %v2810_v36 = vsel %vm37_vm0, %v5983_v31, 0  ;;  %v2816_v37 = vsel %vm37_vm0, %v5985_v32, 0 }
  0x8a   :  { %2041 = vmatprep.mubr.bf16.mxu0 %v6461_v2  ;;  %2082 = vmatprep.mubr.bf16.mxu1 %v6461_v2 }
  0x8b   :  { %5921 = vmatprep.subr.msk.bf16.mxu0 %vm37_vm0, %v5918_v38  ;;  %5923 = vmatprep.subr.msk.bf16.mxu1 %vm37_vm0, %v5920_v39  ;;  %v5995_v38 = vcombine.high %v5992_v33, %v5992_v33  ;;  %v5997_v39 = vcombine.high %v5993_v34, %v5993_v34 }
  0x90   :  { %5911 = vmatmul.mubr.msk.bf16.vlgmr.msra.gmra.mrb[68].mxu0 %vm33_vm1, %v5903_v44  ;;  %5913 = vmatmul.mubr.msk.bf16.vlgmr.msra.gmra.mrb[68].mxu1 %vm33_vm1, %v5903_v44  ;;  %v5980_v44 = vld [vmem:[%s7326_s1 + $0x30] sm:$0x3] }
  0x91   :  { %2126 = vmatpush1.bf16.msra.mxu0 %v2114_v45  ;;  %2167 = vmatpush1.bf16.msra.mxu1 %v2120_v46  ;;  %v2926_v45 = vsel %vm37_vm0, %v5994_v40, 0  ;;  %v2932_v46 = vsel %vm37_vm0, %v5996_v41, 0 }
  0x92   :  { %2157 = vmatprep.mubr.bf16.mxu0 %v6461_v2  ;;  %2198 = vmatprep.mubr.bf16.mxu1 %v6461_v2 }
  0x93   :  { %5932 = vmatprep.subr.msk.bf16.mxu0 %vm37_vm0, %v5929_v47  ;;  %5934 = vmatprep.subr.msk.bf16.mxu1 %vm37_vm0, %v5931_v48  ;;  %v6006_v47 = vcombine.high %v6003_v42, %v6003_v42  ;;  %v6008_v48 = vcombine.high %v6004_v43, %v6004_v43 }
  0x98   :  { %5922 = vmatmul.mubr.msk.bf16.vlgmr.msra.gmra.mrb[72].mxu0 %vm33_vm1, %v5914_v53  ;;  %5924 = vmatmul.mubr.msk.bf16.vlgmr.msra.gmra.mrb[72].mxu1 %vm33_vm1, %v5914_v53  ;;  %v5991_v53 = vld [vmem:[%s7326_s1 + $0x32] sm:$0x3] }
  0x99   :  { %2242 = vmatpush1.bf16.msra.mxu0 %v2230_v54  ;;  %2283 = vmatpush1.bf16.msra.mxu1 %v2236_v55  ;;  %v3042_v54 = vsel %vm37_vm0, %v6005_v49, 0  ;;  %v3048_v55 = vsel %vm37_vm0, %v6007_v50, 0  ;;  %v6058_v50 = vld [vmem:[%s7325_s0 + $0x1f0] sm:$0xff] }
  0x9a   :  { %2273 = vmatprep.mubr.bf16.mxu0 %v6461_v2  ;;  %2314 = vmatprep.mubr.bf16.mxu1 %v6461_v2 }
  0x9b   :  { %5943 = vmatprep.subr.msk.bf16.mxu0 %vm37_vm0, %v5940_v56  ;;  %5945 = vmatprep.subr.msk.bf16.mxu1 %vm37_vm0, %v5942_v57  ;;  %v6017_v56 = vcombine.high %v6014_v51, %v6014_v51  ;;  %v6019_v57 = vcombine.high %v6015_v52, %v6015_v52  ;;  %v6059_v51 = vld [vmem:[%s7325_s0 + $0x1f8] sm:$0xff] }
  0xa0   :  { %5933 = vmatmul.mubr.msk.bf16.vlgmr.msra.gmra.mrb[76].mxu0 %vm33_vm1, %v5925_v62  ;;  %5935 = vmatmul.mubr.msk.bf16.vlgmr.msra.gmra.mrb[76].mxu1 %vm33_vm1, %v5925_v62  ;;  %v6002_v62 = vld [vmem:[%s7326_s1 + $0x34] sm:$0x3] }
  0xa1   :  { %2358 = vmatpush1.bf16.msra.mxu0 %v2346_v63  ;;  %2399 = vmatpush1.bf16.msra.mxu1 %v2352_v0  ;;  %v3158_v63 = vsel %vm37_vm0, %v6016_v58, 0  ;;  %v3164_v0 = vsel %vm37_vm0, %v6018_v59, 0 }
  0xa2   :  { %2389 = vmatprep.mubr.bf16.mxu0 %v6461_v2  ;;  %2430 = vmatprep.mubr.bf16.mxu1 %v6461_v2 }
  0xa3   :  { %5954 = vmatprep.subr.msk.bf16.mxu0 %vm37_vm0, %v5951_v1  ;;  %5956 = vmatprep.subr.msk.bf16.mxu1 %vm37_vm0, %v5953_v3  ;;  %v6028_v1 = vcombine.high %v6025_v60, %v6025_v60  ;;  %v6030_v3 = vcombine.high %v6026_v61, %v6026_v61  ;;  %v6061_v61 = vcombine.high %v6058_v50, %v6058_v50 }
  0xa8   :  { %5944 = vmatmul.mubr.msk.bf16.vlgmr.msra.gmra.mrb[80].mxu0 %vm33_vm1, %v5936_v8  ;;  %5946 = vmatmul.mubr.msk.bf16.vlgmr.msra.gmra.mrb[80].mxu1 %vm33_vm1, %v5936_v8 }
  0xa9   :  { %2474 = vmatpush1.bf16.msra.mxu0 %v2462_v9  ;;  %2515 = vmatpush1.bf16.msra.mxu1 %v2468_v10  ;;  %v6036_v10 = vld [vmem:[%s7325_s0 + $0x1d0] sm:$0xff] }
  0xaa   :  { %2505 = vmatprep.mubr.bf16.mxu0 %v6461_v2  ;;  %2546 = vmatprep.mubr.bf16.mxu1 %v6461_v2 }
  0xab   :  { %5965 = vmatprep.subr.msk.bf16.mxu0 %vm37_vm0, %v5962_v11  ;;  %5967 = vmatprep.subr.msk.bf16.mxu1 %vm37_vm0, %v5964_v12  ;;  %v6037_v11 = vld [vmem:[%s7325_s0 + $0x1d8] sm:$0xff] }
  0xac   :  { %v6040_v22 = vcombine.low %v6037_v11, %v6037_v11 }
  0xb0   :  { %5955 = vmatmul.mubr.msk.bf16.vlgmr.msra.gmra.mrb[84].mxu0 %vm33_vm1, %v5947_v17  ;;  %5957 = vmatmul.mubr.msk.bf16.vlgmr.msra.gmra.mrb[84].mxu1 %vm33_vm1, %v5947_v17  ;;  %v3274_v17 = vsel %vm37_vm0, %v6027_v4, 0 }
  0xb1   :  { %2590 = vmatpush1.bf16.msra.mxu0 %v2578_v18  ;;  %2631 = vmatpush1.bf16.msra.mxu1 %v2584_v19  ;;  %v3280_v18 = vsel %vm37_vm0, %v6029_v5, 0  ;;  %v6039_v19 = vcombine.high %v6036_v10, %v6036_v10 }
  0xb2   :  { %2621 = vmatprep.mubr.bf16.mxu0 %v6461_v2  ;;  %2662 = vmatprep.mubr.bf16.mxu1 %v6461_v2 }
  0xb3   :  { %5976 = vmatprep.subr.msk.bf16.mxu0 %vm37_vm0, %v5973_v20  ;;  %5978 = vmatprep.subr.msk.bf16.mxu1 %vm37_vm0, %v5975_v21  ;;  %v6041_v20 = vcombine.high %v6037_v11, %v6037_v11  ;;  %v6038_v21 = vcombine.low %v6036_v10, %v6036_v10 }
  0xb8   :  { %5966 = vmatmul.mubr.msk.bf16.vlgmr.msra.gmra.mrb[88].mxu0 %vm33_vm1, %v5958_v26  ;;  %5968 = vmatmul.mubr.msk.bf16.vlgmr.msra.gmra.mrb[88].mxu1 %vm33_vm1, %v5958_v26 }
  0xb9   :  { %2706 = vmatpush1.bf16.msra.mxu0 %v2694_v27  ;;  %2747 = vmatpush1.bf16.msra.mxu1 %v2700_v28 }
  0xba   :  { %2737 = vmatprep.mubr.bf16.mxu0 %v6461_v2  ;;  %2778 = vmatprep.mubr.bf16.mxu1 %v6461_v2 }
  0xbb   :  { %5987 = vmatprep.subr.msk.bf16.mxu0 %vm37_vm0, %v5984_v29  ;;  %5989 = vmatprep.subr.msk.bf16.mxu1 %vm37_vm0, %v5986_v30  ;;  %v6047_v29 = vld [vmem:[%s7325_s0 + $0x1e0] sm:$0xff]  ;;  %v6048_v30 = vld [vmem:[%s7325_s0 + $0x1e8] sm:$0xff] }
  0xbc   :  { %v6050_v40 = vcombine.high %v6047_v29, %v6047_v29  ;;  %v6052_v41 = vcombine.high %v6048_v30, %v6048_v30  ;;  %v6049_v42 = vcombine.low %v6047_v29, %v6047_v29  ;;  %v6051_v43 = vcombine.low %v6048_v30, %v6048_v30  ;;  %v6080_v29 = vld [vmem:[%s7325_s0 + $0x210] sm:$0xff]  ;;  %v6081_v30 = vld [vmem:[%s7325_s0 + $0x218] sm:$0xff] }
  0xbe   :  { %v3506_v59 = vsel %vm37_vm0, %v6049_v42, 0  ;;  %v3512_v60 = vsel %vm37_vm0, %v6051_v43, 0  ;;  %v6082_v42 = vcombine.low %v6080_v29, %v6080_v29  ;;  %v6084_v43 = vcombine.low %v6081_v30, %v6081_v30 }
  0xc0   :  { %5977 = vmatmul.mubr.msk.bf16.vlgmr.msra.gmra.mrb[92].mxu0 %vm33_vm1, %v5969_v35  ;;  %5979 = vmatmul.mubr.msk.bf16.vlgmr.msra.gmra.mrb[92].mxu1 %vm33_vm1, %v5969_v35  ;;  %v6024_v35 = vld [vmem:[%s7326_s1 + $0x38] sm:$0x3] }
  0xc1   :  { %2822 = vmatpush1.bf16.msra.mxu0 %v2810_v36  ;;  %2863 = vmatpush1.bf16.msra.mxu1 %v2816_v37 }
  0xc2   :  { %2853 = vmatprep.mubr.bf16.mxu0 %v6461_v2  ;;  %2894 = vmatprep.mubr.bf16.mxu1 %v6461_v2 }
  0xc3   :  { %5998 = vmatprep.subr.msk.bf16.mxu0 %vm37_vm0, %v5995_v38  ;;  %6000 = vmatprep.subr.msk.bf16.mxu1 %vm37_vm0, %v5997_v39  ;;  %v3390_v38 = vsel %vm37_vm0, %v6038_v21, 0  ;;  %v3396_v39 = vsel %vm37_vm0, %v6040_v22, 0 }
  0xc8   :  { %5988 = vmatmul.mubr.msk.bf16.vlgmr.msra.gmra.mrb[96].mxu0 %vm33_vm1, %v5980_v44  ;;  %5990 = vmatmul.mubr.msk.bf16.vlgmr.msra.gmra.mrb[96].mxu1 %vm33_vm1, %v5980_v44 }
  0xc9   :  { %2938 = vmatpush1.bf16.msra.mxu0 %v2926_v45  ;;  %2979 = vmatpush1.bf16.msra.mxu1 %v2932_v46 }
  0xca   :  { %2969 = vmatprep.mubr.bf16.mxu0 %v6461_v2  ;;  %3010 = vmatprep.mubr.bf16.mxu1 %v6461_v2 }
  0xcb   :  { %6009 = vmatprep.subr.msk.bf16.mxu0 %vm37_vm0, %v6006_v47  ;;  %6011 = vmatprep.subr.msk.bf16.mxu1 %vm37_vm0, %v6008_v48 }
  0xd0   :  { %5999 = vmatmul.mubr.msk.bf16.vlgmr.msra.gmra.mrb[100].mxu0 %vm33_vm1, %v5991_v53  ;;  %6001 = vmatmul.mubr.msk.bf16.vlgmr.msra.gmra.mrb[100].mxu1 %vm33_vm1, %v5991_v53 }
  0xd1   :  { %3054 = vmatpush1.bf16.msra.mxu0 %v3042_v54  ;;  %3095 = vmatpush1.bf16.msra.mxu1 %v3048_v55 }
  0xd2   :  { %3085 = vmatprep.mubr.bf16.mxu0 %v6461_v2  ;;  %3126 = vmatprep.mubr.bf16.mxu1 %v6461_v2 }
  0xd3   :  { %6020 = vmatprep.subr.msk.bf16.mxu0 %vm37_vm0, %v6017_v56  ;;  %6022 = vmatprep.subr.msk.bf16.mxu1 %vm37_vm0, %v6019_v57  ;;  %v6035_v56 = vld [vmem:[%s7326_s1 + $0x3a] sm:$0x3] }
  0xd8   :  { %6010 = vmatmul.mubr.msk.bf16.vlgmr.msra.gmra.mrb[104].mxu0 %vm33_vm1, %v6002_v62  ;;  %6012 = vmatmul.mubr.msk.bf16.vlgmr.msra.gmra.mrb[104].mxu1 %vm33_vm1, %v6002_v62  ;;  %v6063_v62 = vcombine.high %v6059_v51, %v6059_v51 }
  0xd9   :  { %3170 = vmatpush1.bf16.msra.mxu0 %v3158_v63  ;;  %3211 = vmatpush1.bf16.msra.mxu1 %v3164_v0  ;;  %v6060_v63 = vcombine.low %v6058_v50, %v6058_v50  ;;  %v6062_v0 = vcombine.low %v6059_v51, %v6059_v51  ;;  %v6091_v50 = vld [vmem:[%s7325_s0 + $0x220] sm:$0xff]  ;;  %v6092_v51 = vld [vmem:[%s7325_s0 + $0x228] sm:$0xff] }
  0xda   :  { %3201 = vmatprep.mubr.bf16.mxu0 %v6461_v2  ;;  %3242 = vmatprep.mubr.bf16.mxu1 %v6461_v2 }
  0xdb   :  { %v84_v6 = vpop.f32.mrb[0].mxu0  ;;  %v125_v7 = vpop.f32.mrb[0].mxu1  ;;  %6031 = vmatprep.subr.msk.bf16.mxu0 %vm37_vm0, %v6028_v1  ;;  %6033 = vmatprep.subr.msk.bf16.mxu1 %vm37_vm0, %v6030_v3 }
  0xdc   :  { %v86_v8 = vpop.f32.mrb[1].mxu0  ;;  %v127_v9 = vpop.f32.mrb[1].mxu1 }
  0xdd   :  { %v88_v12 = vpop.f32.mrb[2].mxu0  ;;  %v129_v13 = vpop.f32.mrb[2].mxu1 }
  0xde   :  { %v89_v15 = vpop.f32.mrb[3].mxu0  ;;  %v130_v16 = vpop.f32.mrb[3].mxu1 }
  0xe0   :  { %6021 = vmatmul.mubr.msk.bf16.vlgmr.msra.gmra.mrb[108].mxu0 %vm33_vm1, %v6013_v14  ;;  %6023 = vmatmul.mubr.msk.bf16.vlgmr.msra.gmra.mrb[108].mxu1 %vm33_vm1, %v6013_v14  ;;  %v6046_v14 = vld [vmem:[%s7326_s1 + $0x3c] sm:$0x3] }
  0xe1   :  { %3286 = vmatpush1.bf16.msra.mxu0 %v3274_v17  ;;  %3327 = vmatpush1.bf16.msra.mxu1 %v3280_v18  ;;  %v3622_v17 = vsel %vm37_vm0, %v6060_v63, 0  ;;  %v3628_v18 = vsel %vm37_vm0, %v6062_v0, 0  ;;  %v6093_v63 = vcombine.low %v6091_v50, %v6091_v50  ;;  %v6095_v0 = vcombine.low %v6092_v51, %v6092_v51 }
  0xe2   :  { %3317 = vmatprep.mubr.bf16.mxu0 %v6461_v2  ;;  %3358 = vmatprep.mubr.bf16.mxu1 %v6461_v2 }
  0xe3   :  { %v191_v23 = vpop.f32.mrb[4].mxu0  ;;  %v232_v24 = vpop.f32.mrb[4].mxu1  ;;  %6042 = vmatprep.subr.msk.bf16.mxu0 %vm37_vm0, %v6039_v19  ;;  %6044 = vmatprep.subr.msk.bf16.mxu1 %vm37_vm0, %v6041_v20 }
  0xe4   :  { %v192_v25 = vadd.f32 %v191_v23, %v84_v6  ;;  %v233_v26 = vadd.f32 %v232_v24, %v125_v7  ;;  %v193_v27 = vpop.f32.mrb[5].mxu0  ;;  %v234_v28 = vpop.f32.mrb[5].mxu1 }
  0xe5   :  { %v194_v31 = vadd.f32 %v193_v27, %v86_v8  ;;  %v235_v32 = vadd.f32 %v234_v28, %v127_v9  ;;  %v195_v33 = vpop.f32.mrb[6].mxu0  ;;  %v236_v34 = vpop.f32.mrb[6].mxu1  ;;  %v6069_v8 = vld [vmem:[%s7325_s0 + $0x200] sm:$0xff]  ;;  %v6070_v9 = vld [vmem:[%s7325_s0 + $0x208] sm:$0xff] }
  0xe6   :  { %v196_v36 = vpop.f32.mrb[7].mxu0  ;;  %v237_v37 = vpop.f32.mrb[7].mxu1  ;;  %v6072_v19 = vcombine.high %v6069_v8, %v6069_v8  ;;  %v6074_v20 = vcombine.high %v6070_v9, %v6070_v9  ;;  %v6071_v21 = vcombine.low %v6069_v8, %v6069_v8  ;;  %v6073_v22 = vcombine.low %v6070_v9, %v6070_v9  ;;  %v6102_v8 = vld [vmem:[%s7325_s0 + $0x230] sm:$0xff]  ;;  %v6103_v9 = vld [vmem:[%s7325_s0 + $0x238] sm:$0xff] }
  0xe8   :  { %6032 = vmatmul.mubr.msk.bf16.vlgmr.msra.gmra.mrb[112].mxu0 %vm33_vm1, %v6024_v35  ;;  %6034 = vmatmul.mubr.msk.bf16.vlgmr.msra.gmra.mrb[112].mxu1 %vm33_vm1, %v6024_v35  ;;  %v6057_v35 = vld [vmem:[%s7326_s1 + $0x3e] sm:$0x3] }
  0xe9   :  { %3402 = vmatpush1.bf16.msra.mxu0 %v3390_v38  ;;  %3443 = vmatpush1.bf16.msra.mxu1 %v3396_v39  ;;  %v3738_v38 = vsel %vm37_vm0, %v6071_v21, 0  ;;  %v3744_v39 = vsel %vm37_vm0, %v6073_v22, 0  ;;  %v6104_v21 = vcombine.low %v6102_v8, %v6102_v8  ;;  %v6106_v22 = vcombine.low %v6103_v9, %v6103_v9 }
  0xea   :  { %3433 = vmatprep.mubr.bf16.mxu0 %v6461_v2  ;;  %3474 = vmatprep.mubr.bf16.mxu1 %v6461_v2 }
  0xeb   :  { %v303_v44 = vpop.f32.mrb[8].mxu0  ;;  %v344_v45 = vpop.f32.mrb[8].mxu1  ;;  %6053 = vmatprep.subr.msk.bf16.mxu0 %vm37_vm0, %v6050_v40  ;;  %6055 = vmatprep.subr.msk.bf16.mxu1 %vm37_vm0, %v6052_v41  ;;  %v6083_v40 = vcombine.high %v6080_v29, %v6080_v29  ;;  %v6085_v41 = vcombine.high %v6081_v30, %v6081_v30  ;;  %v6113_v29 = vld [vmem:[%s7325_s0 + $0x240] sm:$0xff]  ;;  %v6114_v30 = vld [vmem:[%s7325_s0 + $0x248] sm:$0xff] }
  0xec   :  { %v351_v46 = vadd.f32 %v303_v44, %v192_v25  ;;  %v353_v47 = vadd.f32 %v344_v45, %v233_v26  ;;  %v305_v48 = vpop.f32.mrb[9].mxu0  ;;  %v346_v49 = vpop.f32.mrb[9].mxu1 }
  0xed   :  { %v352_v52 = vadd.f32 %v305_v48, %v194_v31  ;;  %v354_v53 = vadd.f32 %v346_v49, %v235_v32  ;;  %v307_v54 = vpop.f32.mrb[10].mxu0  ;;  %v348_v55 = vpop.f32.mrb[10].mxu1 }
  0xee   :  { %v308_v57 = vpop.f32.mrb[11].mxu0  ;;  %v349_v58 = vpop.f32.mrb[11].mxu1 }
  0xf0   :  { %6043 = vmatmul.mubr.msk.bf16.vlgmr.msra.gmra.mrb[116].mxu0 %vm33_vm1, %v6035_v56  ;;  %6045 = vmatmul.mubr.msk.bf16.vlgmr.msra.gmra.mrb[116].mxu1 %vm33_vm1, %v6035_v56  ;;  %v6068_v56 = vld [vmem:[%s7326_s1 + $0x40] sm:$0x3] }
  0xf1   :  { %3518 = vmatpush1.bf16.msra.mxu0 %v3506_v59  ;;  %3559 = vmatpush1.bf16.msra.mxu1 %v3512_v60  ;;  %v3854_v59 = vsel %vm37_vm0, %v6082_v42, 0  ;;  %v3860_v60 = vsel %vm37_vm0, %v6084_v43, 0  ;;  %v6115_v42 = vcombine.low %v6113_v29, %v6113_v29  ;;  %v6117_v43 = vcombine.low %v6114_v30, %v6114_v30 }
  0xf2   :  { %3549 = vmatprep.mubr.bf16.mxu0 %v6461_v2  ;;  %3590 = vmatprep.mubr.bf16.mxu1 %v6461_v2 }
  0xf3   :  { %v419_v1 = vpop.f32.mrb[12].mxu0  ;;  %v460_v3 = vpop.f32.mrb[12].mxu1  ;;  %6064 = vmatprep.subr.msk.bf16.mxu0 %vm37_vm0, %v6061_v61  ;;  %6066 = vmatprep.subr.msk.bf16.mxu1 %vm37_vm0, %v6063_v62  ;;  %v6094_v61 = vcombine.high %v6091_v50, %v6091_v50  ;;  %v6096_v62 = vcombine.high %v6092_v51, %v6092_v51  ;;  %v6124_v50 = vld [vmem:[%s7325_s0 + $0x250] sm:$0xff]  ;;  %v6125_v51 = vld [vmem:[%s7325_s0 + $0x258] sm:$0xff] }
  0xf4   :  { %v467_v4 = vadd.f32 %v419_v1, %v351_v46  ;;  %v469_v5 = vadd.f32 %v460_v3, %v353_v47  ;;  %v421_v6 = vpop.f32.mrb[13].mxu0  ;;  %v462_v7 = vpop.f32.mrb[13].mxu1 }
  0xf5   :  { %v468_v10 = vadd.f32 %v421_v6, %v352_v52  ;;  %v470_v11 = vadd.f32 %v462_v7, %v354_v53  ;;  %v423_v12 = vpop.f32.mrb[14].mxu0  ;;  %v464_v13 = vpop.f32.mrb[14].mxu1 }
  0xf6   :  { %v424_v15 = vpop.f32.mrb[15].mxu0  ;;  %v465_v16 = vpop.f32.mrb[15].mxu1 }
  0xf8   :  { %6054 = vmatmul.mubr.msk.bf16.vlgmr.msra.gmra.mrb[120].mxu0 %vm33_vm1, %v6046_v14  ;;  %6056 = vmatmul.mubr.msk.bf16.vlgmr.msra.gmra.mrb[120].mxu1 %vm33_vm1, %v6046_v14  ;;  %v6079_v14 = vld [vmem:[%s7326_s1 + $0x42] sm:$0x3] }
  0xf9   :  { %3634 = vmatpush1.bf16.msra.mxu0 %v3622_v17  ;;  %3675 = vmatpush1.bf16.msra.mxu1 %v3628_v18  ;;  %v3970_v17 = vsel %vm37_vm0, %v6093_v63, 0  ;;  %v3976_v18 = vsel %vm37_vm0, %v6095_v0, 0  ;;  %v6126_v63 = vcombine.low %v6124_v50, %v6124_v50  ;;  %v6128_v0 = vcombine.low %v6125_v51, %v6125_v51 }
  0xfa   :  { %3665 = vmatprep.mubr.bf16.mxu0 %v6461_v2  ;;  %3706 = vmatprep.mubr.bf16.mxu1 %v6461_v2 }
  0xfb   :  { %v535_v23 = vpop.f32.mrb[16].mxu0  ;;  %v576_v24 = vpop.f32.mrb[16].mxu1  ;;  %6075 = vmatprep.subr.msk.bf16.mxu0 %vm37_vm0, %v6072_v19  ;;  %6077 = vmatprep.subr.msk.bf16.mxu1 %vm37_vm0, %v6074_v20  ;;  %v6105_v19 = vcombine.high %v6102_v8, %v6102_v8  ;;  %v6107_v20 = vcombine.high %v6103_v9, %v6103_v9  ;;  %v6135_v8 = vld [vmem:[%s7325_s0 + $0x260] sm:$0xff]  ;;  %v6136_v9 = vld [vmem:[%s7325_s0 + $0x268] sm:$0xff] }
  0xfc   :  { %v583_v25 = vadd.f32 %v535_v23, %v467_v4  ;;  %v585_v26 = vadd.f32 %v576_v24, %v469_v5  ;;  %v537_v27 = vpop.f32.mrb[17].mxu0  ;;  %v578_v28 = vpop.f32.mrb[17].mxu1 }
  0xfd   :  { %v584_v31 = vadd.f32 %v537_v27, %v468_v10  ;;  %v586_v32 = vadd.f32 %v578_v28, %v470_v11  ;;  %v539_v33 = vpop.f32.mrb[18].mxu0  ;;  %v580_v34 = vpop.f32.mrb[18].mxu1 }
  0xfe   :  { %v540_v36 = vpop.f32.mrb[19].mxu0  ;;  %v581_v37 = vpop.f32.mrb[19].mxu1 }
 0x100   :  { %6065 = vmatmul.mubr.msk.bf16.vlgmr.msra.gmra.mrb[124].mxu0 %vm33_vm1, %v6057_v35  ;;  %6067 = vmatmul.mubr.msk.bf16.vlgmr.msra.gmra.mrb[124].mxu1 %vm33_vm1, %v6057_v35  ;;  %v6090_v35 = vld [vmem:[%s7326_s1 + $0x44] sm:$0x3] }
 0x101   :  { %3750 = vmatpush1.bf16.msra.mxu0 %v3738_v38  ;;  %3791 = vmatpush1.bf16.msra.mxu1 %v3744_v39  ;;  %v4086_v38 = vsel %vm37_vm0, %v6104_v21, 0  ;;  %v4092_v39 = vsel %vm37_vm0, %v6106_v22, 0  ;;  %v6137_v21 = vcombine.low %v6135_v8, %v6135_v8  ;;  %v6139_v22 = vcombine.low %v6136_v9, %v6136_v9 }
 0x102   :  { %3781 = vmatprep.mubr.bf16.mxu0 %v6461_v2  ;;  %3822 = vmatprep.mubr.bf16.mxu1 %v6461_v2 }
 0x103   :  { %v651_v44 = vpop.f32.mrb[20].mxu0  ;;  %v692_v45 = vpop.f32.mrb[20].mxu1  ;;  %6086 = vmatprep.subr.msk.bf16.mxu0 %vm37_vm0, %v6083_v40  ;;  %6088 = vmatprep.subr.msk.bf16.mxu1 %vm37_vm0, %v6085_v41  ;;  %v6116_v40 = vcombine.high %v6113_v29, %v6113_v29  ;;  %v6118_v41 = vcombine.high %v6114_v30, %v6114_v30  ;;  %v6146_v29 = vld [vmem:[%s7325_s0 + $0x270] sm:$0xff]  ;;  %v6147_v30 = vld [vmem:[%s7325_s0 + $0x278] sm:$0xff] }
 0x104   :  { %v699_v46 = vadd.f32 %v651_v44, %v583_v25  ;;  %v701_v47 = vadd.f32 %v692_v45, %v585_v26  ;;  %v653_v48 = vpop.f32.mrb[21].mxu0  ;;  %v694_v49 = vpop.f32.mrb[21].mxu1 }
 0x105   :  { %v700_v52 = vadd.f32 %v653_v48, %v584_v31  ;;  %v702_v53 = vadd.f32 %v694_v49, %v586_v32  ;;  %v655_v54 = vpop.f32.mrb[22].mxu0  ;;  %v696_v55 = vpop.f32.mrb[22].mxu1 }
 0x106   :  { %v656_v57 = vpop.f32.mrb[23].mxu0  ;;  %v697_v58 = vpop.f32.mrb[23].mxu1 }
 0x108   :  { %6076 = vmatmul.mubr.msk.bf16.vlgmr.msra.gmra.mrb[128].mxu0 %vm33_vm1, %v6068_v56  ;;  %6078 = vmatmul.mubr.msk.bf16.vlgmr.msra.gmra.mrb[128].mxu1 %vm33_vm1, %v6068_v56  ;;  %v6101_v56 = vld [vmem:[%s7326_s1 + $0x46] sm:$0x3] }
 0x109   :  { %3866 = vmatpush1.bf16.msra.mxu0 %v3854_v59  ;;  %3907 = vmatpush1.bf16.msra.mxu1 %v3860_v60  ;;  %v4202_v59 = vsel %vm37_vm0, %v6115_v42, 0  ;;  %v4208_v60 = vsel %vm37_vm0, %v6117_v43, 0  ;;  %v6148_v42 = vcombine.low %v6146_v29, %v6146_v29  ;;  %v6150_v43 = vcombine.low %v6147_v30, %v6147_v30 }
 0x10a   :  { %3897 = vmatprep.mubr.bf16.mxu0 %v6461_v2  ;;  %3938 = vmatprep.mubr.bf16.mxu1 %v6461_v2 }
 0x10b   :  { %v767_v1 = vpop.f32.mrb[24].mxu0  ;;  %v808_v3 = vpop.f32.mrb[24].mxu1  ;;  %6097 = vmatprep.subr.msk.bf16.mxu0 %vm37_vm0, %v6094_v61  ;;  %6099 = vmatprep.subr.msk.bf16.mxu1 %vm37_vm0, %v6096_v62  ;;  %v6127_v61 = vcombine.high %v6124_v50, %v6124_v50  ;;  %v6129_v62 = vcombine.high %v6125_v51, %v6125_v51  ;;  %v6157_v50 = vld [vmem:[%s7325_s0 + $0x280] sm:$0xff]  ;;  %v6158_v51 = vld [vmem:[%s7325_s0 + $0x288] sm:$0xff] }
 0x10c   :  { %v815_v4 = vadd.f32 %v767_v1, %v699_v46  ;;  %v817_v5 = vadd.f32 %v808_v3, %v701_v47  ;;  %v769_v6 = vpop.f32.mrb[25].mxu0  ;;  %v810_v7 = vpop.f32.mrb[25].mxu1 }
 0x10d   :  { %v816_v10 = vadd.f32 %v769_v6, %v700_v52  ;;  %v818_v11 = vadd.f32 %v810_v7, %v702_v53  ;;  %v771_v12 = vpop.f32.mrb[26].mxu0  ;;  %v812_v13 = vpop.f32.mrb[26].mxu1 }
 0x10e   :  { %v772_v15 = vpop.f32.mrb[27].mxu0  ;;  %v813_v16 = vpop.f32.mrb[27].mxu1 }
 0x110   :  { %6087 = vmatmul.mubr.msk.bf16.vlgmr.msra.gmra.mrb[132].mxu0 %vm33_vm1, %v6079_v14  ;;  %6089 = vmatmul.mubr.msk.bf16.vlgmr.msra.gmra.mrb[132].mxu1 %vm33_vm1, %v6079_v14  ;;  %v6112_v14 = vld [vmem:[%s7326_s1 + $0x48] sm:$0x3] }
 0x111   :  { %3982 = vmatpush1.bf16.msra.mxu0 %v3970_v17  ;;  %4023 = vmatpush1.bf16.msra.mxu1 %v3976_v18  ;;  %v4318_v17 = vsel %vm37_vm0, %v6126_v63, 0  ;;  %v4324_v18 = vsel %vm37_vm0, %v6128_v0, 0  ;;  %v6159_v63 = vcombine.low %v6157_v50, %v6157_v50  ;;  %v6161_v0 = vcombine.low %v6158_v51, %v6158_v51 }
 0x112   :  { %4013 = vmatprep.mubr.bf16.mxu0 %v6461_v2  ;;  %4054 = vmatprep.mubr.bf16.mxu1 %v6461_v2 }
 0x113   :  { %v883_v23 = vpop.f32.mrb[28].mxu0  ;;  %v924_v24 = vpop.f32.mrb[28].mxu1  ;;  %6108 = vmatprep.subr.msk.bf16.mxu0 %vm37_vm0, %v6105_v19  ;;  %6110 = vmatprep.subr.msk.bf16.mxu1 %vm37_vm0, %v6107_v20  ;;  %v6138_v19 = vcombine.high %v6135_v8, %v6135_v8  ;;  %v6140_v20 = vcombine.high %v6136_v9, %v6136_v9  ;;  %v6168_v8 = vld [vmem:[%s7325_s0 + $0x290] sm:$0xff]  ;;  %v6169_v9 = vld [vmem:[%s7325_s0 + $0x298] sm:$0xff] }
 0x114   :  { %v931_v25 = vadd.f32 %v883_v23, %v815_v4  ;;  %v933_v26 = vadd.f32 %v924_v24, %v817_v5  ;;  %v885_v27 = vpop.f32.mrb[29].mxu0  ;;  %v926_v28 = vpop.f32.mrb[29].mxu1 }
 0x115   :  { %v932_v31 = vadd.f32 %v885_v27, %v816_v10  ;;  %v934_v32 = vadd.f32 %v926_v28, %v818_v11  ;;  %v887_v33 = vpop.f32.mrb[30].mxu0  ;;  %v928_v34 = vpop.f32.mrb[30].mxu1 }
 0x116   :  { %v888_v36 = vpop.f32.mrb[31].mxu0  ;;  %v929_v37 = vpop.f32.mrb[31].mxu1 }
 0x118   :  { %6098 = vmatmul.mubr.msk.bf16.vlgmr.msra.gmra.mrb[136].mxu0 %vm33_vm1, %v6090_v35  ;;  %6100 = vmatmul.mubr.msk.bf16.vlgmr.msra.gmra.mrb[136].mxu1 %vm33_vm1, %v6090_v35  ;;  %v6123_v35 = vld [vmem:[%s7326_s1 + $0x4a] sm:$0x3] }
 0x119   :  { %4098 = vmatpush1.bf16.msra.mxu0 %v4086_v38  ;;  %4139 = vmatpush1.bf16.msra.mxu1 %v4092_v39  ;;  %v4434_v38 = vsel %vm37_vm0, %v6137_v21, 0  ;;  %v4440_v39 = vsel %vm37_vm0, %v6139_v22, 0  ;;  %v6170_v21 = vcombine.low %v6168_v8, %v6168_v8  ;;  %v6172_v22 = vcombine.low %v6169_v9, %v6169_v9 }
 0x11a   :  { %4129 = vmatprep.mubr.bf16.mxu0 %v6461_v2  ;;  %4170 = vmatprep.mubr.bf16.mxu1 %v6461_v2 }
 0x11b   :  { %v999_v44 = vpop.f32.mrb[32].mxu0  ;;  %v1040_v45 = vpop.f32.mrb[32].mxu1  ;;  %6119 = vmatprep.subr.msk.bf16.mxu0 %vm37_vm0, %v6116_v40  ;;  %6121 = vmatprep.subr.msk.bf16.mxu1 %vm37_vm0, %v6118_v41  ;;  %v6149_v40 = vcombine.high %v6146_v29, %v6146_v29  ;;  %v6151_v41 = vcombine.high %v6147_v30, %v6147_v30  ;;  %v6179_v29 = vld [vmem:[%s7325_s0 + $0x2a0] sm:$0xff]  ;;  %v6180_v30 = vld [vmem:[%s7325_s0 + $0x2a8] sm:$0xff] }
 0x11c   :  { %v1047_v46 = vadd.f32 %v999_v44, %v931_v25  ;;  %v1049_v47 = vadd.f32 %v1040_v45, %v933_v26  ;;  %v1001_v48 = vpop.f32.mrb[33].mxu0  ;;  %v1042_v49 = vpop.f32.mrb[33].mxu1 }
 0x11d   :  { %v1048_v52 = vadd.f32 %v1001_v48, %v932_v31  ;;  %v1050_v53 = vadd.f32 %v1042_v49, %v934_v32  ;;  %v1003_v54 = vpop.f32.mrb[34].mxu0  ;;  %v1044_v55 = vpop.f32.mrb[34].mxu1 }
 0x11e   :  { %v1004_v57 = vpop.f32.mrb[35].mxu0  ;;  %v1045_v58 = vpop.f32.mrb[35].mxu1 }
 0x120   :  { %6109 = vmatmul.mubr.msk.bf16.vlgmr.msra.gmra.mrb[140].mxu0 %vm33_vm1, %v6101_v56  ;;  %6111 = vmatmul.mubr.msk.bf16.vlgmr.msra.gmra.mrb[140].mxu1 %vm33_vm1, %v6101_v56  ;;  %v6134_v56 = vld [vmem:[%s7326_s1 + $0x4c] sm:$0x3] }
 0x121   :  { %4214 = vmatpush1.bf16.msra.mxu0 %v4202_v59  ;;  %4255 = vmatpush1.bf16.msra.mxu1 %v4208_v60  ;;  %v4550_v59 = vsel %vm37_vm0, %v6148_v42, 0  ;;  %v4556_v60 = vsel %vm37_vm0, %v6150_v43, 0  ;;  %v6181_v42 = vcombine.low %v6179_v29, %v6179_v29  ;;  %v6183_v43 = vcombine.low %v6180_v30, %v6180_v30 }
 0x122   :  { %4245 = vmatprep.mubr.bf16.mxu0 %v6461_v2  ;;  %4286 = vmatprep.mubr.bf16.mxu1 %v6461_v2 }
 0x123   :  { %v1115_v1 = vpop.f32.mrb[36].mxu0  ;;  %v1156_v3 = vpop.f32.mrb[36].mxu1  ;;  %6130 = vmatprep.subr.msk.bf16.mxu0 %vm37_vm0, %v6127_v61  ;;  %6132 = vmatprep.subr.msk.bf16.mxu1 %vm37_vm0, %v6129_v62  ;;  %v6160_v61 = vcombine.high %v6157_v50, %v6157_v50  ;;  %v6162_v62 = vcombine.high %v6158_v51, %v6158_v51  ;;  %v6190_v50 = vld [vmem:[%s7325_s0 + $0x2b0] sm:$0xff]  ;;  %v6191_v51 = vld [vmem:[%s7325_s0 + $0x2b8] sm:$0xff] }
 0x124   :  { %v1163_v4 = vadd.f32 %v1115_v1, %v1047_v46  ;;  %v1165_v5 = vadd.f32 %v1156_v3, %v1049_v47  ;;  %v1117_v6 = vpop.f32.mrb[37].mxu0  ;;  %v1158_v7 = vpop.f32.mrb[37].mxu1 }
 0x125   :  { %v1164_v10 = vadd.f32 %v1117_v6, %v1048_v52  ;;  %v1166_v11 = vadd.f32 %v1158_v7, %v1050_v53  ;;  %v1119_v12 = vpop.f32.mrb[38].mxu0  ;;  %v1160_v13 = vpop.f32.mrb[38].mxu1 }
 0x126   :  { %v1120_v15 = vpop.f32.mrb[39].mxu0  ;;  %v1161_v16 = vpop.f32.mrb[39].mxu1 }
 0x128   :  { %6120 = vmatmul.mubr.msk.bf16.vlgmr.msra.gmra.mrb[144].mxu0 %vm33_vm1, %v6112_v14  ;;  %6122 = vmatmul.mubr.msk.bf16.vlgmr.msra.gmra.mrb[144].mxu1 %vm33_vm1, %v6112_v14  ;;  %v6145_v14 = vld [vmem:[%s7326_s1 + $0x4e] sm:$0x3] }
 0x129   :  { %4330 = vmatpush1.bf16.msra.mxu0 %v4318_v17  ;;  %4371 = vmatpush1.bf16.msra.mxu1 %v4324_v18  ;;  %v4666_v17 = vsel %vm37_vm0, %v6159_v63, 0  ;;  %v4672_v18 = vsel %vm37_vm0, %v6161_v0, 0  ;;  %v6192_v63 = vcombine.low %v6190_v50, %v6190_v50  ;;  %v6194_v0 = vcombine.low %v6191_v51, %v6191_v51 }
 0x12a   :  { %4361 = vmatprep.mubr.bf16.mxu0 %v6461_v2  ;;  %4402 = vmatprep.mubr.bf16.mxu1 %v6461_v2 }
 0x12b   :  { %v1231_v23 = vpop.f32.mrb[40].mxu0  ;;  %v1272_v24 = vpop.f32.mrb[40].mxu1  ;;  %6141 = vmatprep.subr.msk.bf16.mxu0 %vm37_vm0, %v6138_v19  ;;  %6143 = vmatprep.subr.msk.bf16.mxu1 %vm37_vm0, %v6140_v20  ;;  %v6171_v19 = vcombine.high %v6168_v8, %v6168_v8  ;;  %v6173_v20 = vcombine.high %v6169_v9, %v6169_v9  ;;  %v6201_v8 = vld [vmem:[%s7325_s0 + $0x2c0] sm:$0xff]  ;;  %v6202_v9 = vld [vmem:[%s7325_s0 + $0x2c8] sm:$0xff] }
 0x12c   :  { %v1279_v25 = vadd.f32 %v1231_v23, %v1163_v4  ;;  %v1281_v26 = vadd.f32 %v1272_v24, %v1165_v5  ;;  %v1233_v27 = vpop.f32.mrb[41].mxu0  ;;  %v1274_v28 = vpop.f32.mrb[41].mxu1 }
 0x12d   :  { %v1280_v31 = vadd.f32 %v1233_v27, %v1164_v10  ;;  %v1282_v32 = vadd.f32 %v1274_v28, %v1166_v11  ;;  %v1235_v33 = vpop.f32.mrb[42].mxu0  ;;  %v1276_v34 = vpop.f32.mrb[42].mxu1 }
 0x12e   :  { %v1236_v36 = vpop.f32.mrb[43].mxu0  ;;  %v1277_v37 = vpop.f32.mrb[43].mxu1 }
 0x130   :  { %6131 = vmatmul.mubr.msk.bf16.vlgmr.msra.gmra.mrb[148].mxu0 %vm33_vm1, %v6123_v35  ;;  %6133 = vmatmul.mubr.msk.bf16.vlgmr.msra.gmra.mrb[148].mxu1 %vm33_vm1, %v6123_v35  ;;  %v6156_v35 = vld [vmem:[%s7326_s1 + $0x50] sm:$0x3] }
 0x131   :  { %4446 = vmatpush1.bf16.msra.mxu0 %v4434_v38  ;;  %4487 = vmatpush1.bf16.msra.mxu1 %v4440_v39  ;;  %v4782_v38 = vsel %vm37_vm0, %v6170_v21, 0  ;;  %v4788_v39 = vsel %vm37_vm0, %v6172_v22, 0  ;;  %v6203_v21 = vcombine.low %v6201_v8, %v6201_v8  ;;  %v6205_v22 = vcombine.low %v6202_v9, %v6202_v9 }
 0x132   :  { %4477 = vmatprep.mubr.bf16.mxu0 %v6461_v2  ;;  %4518 = vmatprep.mubr.bf16.mxu1 %v6461_v2 }
 0x133   :  { %v1347_v44 = vpop.f32.mrb[44].mxu0  ;;  %v1388_v45 = vpop.f32.mrb[44].mxu1  ;;  %6152 = vmatprep.subr.msk.bf16.mxu0 %vm37_vm0, %v6149_v40  ;;  %6154 = vmatprep.subr.msk.bf16.mxu1 %vm37_vm0, %v6151_v41  ;;  %v6182_v40 = vcombine.high %v6179_v29, %v6179_v29  ;;  %v6184_v41 = vcombine.high %v6180_v30, %v6180_v30  ;;  %v6212_v29 = vld [vmem:[%s7325_s0 + $0x2d0] sm:$0xff]  ;;  %v6213_v30 = vld [vmem:[%s7325_s0 + $0x2d8] sm:$0xff] }
 0x134   :  { %v1395_v46 = vadd.f32 %v1347_v44, %v1279_v25  ;;  %v1397_v47 = vadd.f32 %v1388_v45, %v1281_v26  ;;  %v1349_v48 = vpop.f32.mrb[45].mxu0  ;;  %v1390_v49 = vpop.f32.mrb[45].mxu1 }
 0x135   :  { %v1396_v52 = vadd.f32 %v1349_v48, %v1280_v31  ;;  %v1398_v53 = vadd.f32 %v1390_v49, %v1282_v32  ;;  %v1351_v54 = vpop.f32.mrb[46].mxu0  ;;  %v1392_v55 = vpop.f32.mrb[46].mxu1 }
 0x136   :  { %v1352_v57 = vpop.f32.mrb[47].mxu0  ;;  %v1393_v58 = vpop.f32.mrb[47].mxu1 }
 0x138   :  { %6142 = vmatmul.mubr.msk.bf16.vlgmr.msra.gmra.mrb[152].mxu0 %vm33_vm1, %v6134_v56  ;;  %6144 = vmatmul.mubr.msk.bf16.vlgmr.msra.gmra.mrb[152].mxu1 %vm33_vm1, %v6134_v56  ;;  %v6167_v56 = vld [vmem:[%s7326_s1 + $0x52] sm:$0x3] }
 0x139   :  { %4562 = vmatpush1.bf16.msra.mxu0 %v4550_v59  ;;  %4603 = vmatpush1.bf16.msra.mxu1 %v4556_v60  ;;  %v4898_v59 = vsel %vm37_vm0, %v6181_v42, 0  ;;  %v4904_v60 = vsel %vm37_vm0, %v6183_v43, 0  ;;  %v6217_v42 = vcombine.high %v6213_v30, %v6213_v30  ;;  %v6214_v43 = vcombine.low %v6212_v29, %v6212_v29 }
 0x13a   :  { %4593 = vmatprep.mubr.bf16.mxu0 %v6461_v2  ;;  %4634 = vmatprep.mubr.bf16.mxu1 %v6461_v2 }
 0x13b   :  { %v1463_v1 = vpop.f32.mrb[48].mxu0  ;;  %v1504_v3 = vpop.f32.mrb[48].mxu1  ;;  %6163 = vmatprep.subr.msk.bf16.mxu0 %vm37_vm0, %v6160_v61  ;;  %6165 = vmatprep.subr.msk.bf16.mxu1 %vm37_vm0, %v6162_v62  ;;  %v6193_v61 = vcombine.high %v6190_v50, %v6190_v50  ;;  %v6195_v62 = vcombine.high %v6191_v51, %v6191_v51  ;;  %v6223_v51 = vld [vmem:[%s7325_s0 + $0x2e0] sm:$0xff] }
 0x13c   :  { %v1511_v4 = vadd.f32 %v1463_v1, %v1395_v46  ;;  %v1513_v5 = vadd.f32 %v1504_v3, %v1397_v47  ;;  %v1465_v6 = vpop.f32.mrb[49].mxu0  ;;  %v1506_v7 = vpop.f32.mrb[49].mxu1 }
 0x13d   :  { %v1512_v10 = vadd.f32 %v1465_v6, %v1396_v52  ;;  %v1514_v11 = vadd.f32 %v1506_v7, %v1398_v53  ;;  %v1467_v12 = vpop.f32.mrb[50].mxu0  ;;  %v1508_v13 = vpop.f32.mrb[50].mxu1 }
 0x13e   :  { %v1468_v15 = vpop.f32.mrb[51].mxu0  ;;  %v1509_v16 = vpop.f32.mrb[51].mxu1 }
 0x140   :  { %6153 = vmatmul.mubr.msk.bf16.vlgmr.msra.gmra.mrb[156].mxu0 %vm33_vm1, %v6145_v14  ;;  %6155 = vmatmul.mubr.msk.bf16.vlgmr.msra.gmra.mrb[156].mxu1 %vm33_vm1, %v6145_v14  ;;  %v6178_v14 = vld [vmem:[%s7326_s1 + $0x54] sm:$0x3] }
 0x141   :  { %4678 = vmatpush1.bf16.msra.mxu0 %v4666_v17  ;;  %4719 = vmatpush1.bf16.msra.mxu1 %v4672_v18  ;;  %v5014_v17 = vsel %vm37_vm0, %v6192_v63, 0  ;;  %v5020_v18 = vsel %vm37_vm0, %v6194_v0, 0  ;;  %v6225_v0 = vcombine.low %v6223_v51, %v6223_v51 }
 0x142   :  { %4709 = vmatprep.mubr.bf16.mxu0 %v6461_v2  ;;  %4750 = vmatprep.mubr.bf16.mxu1 %v6461_v2 }
 0x143   :  { %v1579_v23 = vpop.f32.mrb[52].mxu0  ;;  %v1620_v24 = vpop.f32.mrb[52].mxu1  ;;  %6174 = vmatprep.subr.msk.bf16.mxu0 %vm37_vm0, %v6171_v19  ;;  %6176 = vmatprep.subr.msk.bf16.mxu1 %vm37_vm0, %v6173_v20  ;;  %v6204_v19 = vcombine.high %v6201_v8, %v6201_v8  ;;  %v6206_v20 = vcombine.high %v6202_v9, %v6202_v9  ;;  %v6234_v9 = vld [vmem:[%s7325_s0 + $0x2f0] sm:$0xff] }
 0x144   :  { %v1627_v25 = vadd.f32 %v1579_v23, %v1511_v4  ;;  %v1629_v26 = vadd.f32 %v1620_v24, %v1513_v5  ;;  %v1581_v27 = vpop.f32.mrb[53].mxu0  ;;  %v1622_v28 = vpop.f32.mrb[53].mxu1 }
 0x145   :  { %v1628_v31 = vadd.f32 %v1581_v27, %v1512_v10  ;;  %v1630_v32 = vadd.f32 %v1622_v28, %v1514_v11  ;;  %v1583_v33 = vpop.f32.mrb[54].mxu0  ;;  %v1624_v34 = vpop.f32.mrb[54].mxu1 }
 0x146   :  { %v1584_v36 = vpop.f32.mrb[55].mxu0  ;;  %v1625_v37 = vpop.f32.mrb[55].mxu1 }
 0x147   :  { %v5691_v36 = vld [vmem:[%s7327_s2] sm:$0x7] }
 0x148   :  { %6164 = vmatmul.mubr.msk.bf16.vlgmr.msra.gmra.mrb[160].mxu0 %vm33_vm1, %v6156_v35  ;;  %6166 = vmatmul.mubr.msk.bf16.vlgmr.msra.gmra.mrb[160].mxu1 %vm33_vm1, %v6156_v35  ;;  %v6189_v35 = vld [vmem:[%s7326_s1 + $0x56] sm:$0x3] }
 0x149   :  { %4794 = vmatpush1.bf16.msra.mxu0 %v4782_v38  ;;  %4835 = vmatpush1.bf16.msra.mxu1 %v4788_v39  ;;  %v5130_v39 = vsel %vm37_vm0, %v6203_v21, 0 }
 0x14a   :  { %4825 = vmatprep.mubr.bf16.mxu0 %v6461_v2  ;;  %4866 = vmatprep.mubr.bf16.mxu1 %v6461_v2 }
 0x14b   :  { %v1695_v44 = vpop.f32.mrb[56].mxu0  ;;  %v1736_v45 = vpop.f32.mrb[56].mxu1  ;;  %6185 = vmatprep.subr.msk.bf16.mxu0 %vm37_vm0, %v6182_v40  ;;  %6187 = vmatprep.subr.msk.bf16.mxu1 %vm37_vm0, %v6184_v41  ;;  %v5136_v40 = vsel %vm37_vm0, %v6205_v22, 0  ;;  %v6215_v41 = vcombine.high %v6212_v29, %v6212_v29  ;;  %v6236_v22 = vcombine.low %v6234_v9, %v6234_v9 }
 0x14c   :  { %v1743_v46 = vadd.f32 %v1695_v44, %v1627_v25  ;;  %v1745_v47 = vadd.f32 %v1736_v45, %v1629_v26  ;;  %v1697_v48 = vpop.f32.mrb[57].mxu0  ;;  %v1738_v49 = vpop.f32.mrb[57].mxu1  ;;  %5694 = vperm.xlu0 %6256, %v5691_v36   ;;  %v6216_v44 = vcombine.low %v6213_v30, %v6213_v30  ;;  %v6245_v30 = vld [vmem:[%s7325_s0 + $0x300] sm:$0xff]  ;;  %v6222_v36 = vld [vmem:[%s7326_s1 + $0x5c] sm:$0x3] }
 0x14d   :  { %v1744_v52 = vadd.f32 %v1697_v48, %v1628_v31  ;;  %v1746_v53 = vadd.f32 %v1738_v49, %v1630_v32  ;;  %v1699_v54 = vpop.f32.mrb[58].mxu0  ;;  %v1740_v55 = vpop.f32.mrb[58].mxu1 }
 0x14e   :  { %v1700_v57 = vpop.f32.mrb[59].mxu0  ;;  %v1741_v58 = vpop.f32.mrb[59].mxu1 }
 0x14f   :  { %v6200_v57 = vld [vmem:[%s7326_s1 + $0x58] sm:$0x3] }
 0x150   :  { %6175 = vmatmul.mubr.msk.bf16.vlgmr.msra.gmra.mrb[164].mxu0 %vm33_vm1, %v6167_v56  ;;  %6177 = vmatmul.mubr.msk.bf16.vlgmr.msra.gmra.mrb[164].mxu1 %vm33_vm1, %v6167_v56 }
 0x151   :  { %4910 = vmatpush1.bf16.msra.mxu0 %v4898_v59  ;;  %4951 = vmatpush1.bf16.msra.mxu1 %v4904_v60  ;;  %v5246_v60 = vsel %vm37_vm0, %v6214_v43, 0  ;;  %v6247_v43 = vcombine.low %v6245_v30, %v6245_v30 }
 0x152   :  { %4941 = vmatprep.mubr.bf16.mxu0 %v6461_v2  ;;  %4982 = vmatprep.mubr.bf16.mxu1 %v6461_v2 }
 0x153   :  { %v1811_v1 = vpop.f32.mrb[60].mxu0  ;;  %v1852_v3 = vpop.f32.mrb[60].mxu1  ;;  %6196 = vmatprep.subr.msk.bf16.mxu0 %vm37_vm0, %v6193_v61  ;;  %6198 = vmatprep.subr.msk.bf16.mxu1 %vm37_vm0, %v6195_v62  ;;  %v5252_v61 = vsel %vm37_vm0, %v6216_v44, 0  ;;  %v6226_v62 = vcombine.high %v6223_v51, %v6223_v51 }
 0x154   :  { %v1859_v4 = vadd.f32 %v1811_v1, %v1743_v46  ;;  %v1861_v5 = vadd.f32 %v1852_v3, %v1745_v47  ;;  %v1813_v6 = vpop.f32.mrb[61].mxu0  ;;  %v1854_v7 = vpop.f32.mrb[61].mxu1 }
 0x155   :  { %v1860_v10 = vadd.f32 %v1813_v6, %v1744_v52  ;;  %v1862_v11 = vadd.f32 %v1854_v7, %v1746_v53  ;;  %v1815_v12 = vpop.f32.mrb[62].mxu0  ;;  %v1856_v13 = vpop.f32.mrb[62].mxu1  ;;  %v6224_v52 = vld [vmem:[%s7325_s0 + $0x2e8] sm:$0xff] }
 0x156   :  { %v1816_v15 = vpop.f32.mrb[63].mxu0  ;;  %v1857_v16 = vpop.f32.mrb[63].mxu1  ;;  %v6228_v63 = vcombine.high %v6224_v52, %v6224_v52  ;;  %v6227_v1 = vcombine.low %v6224_v52, %v6224_v52 }
 0x157   :  { %v6211_v15 = vld [vmem:[%s7326_s1 + $0x5a] sm:$0x3] }
 0x158   :  { %6186 = vmatmul.mubr.msk.bf16.vlgmr.msra.gmra.mrb[168].mxu0 %vm33_vm1, %v6178_v14  ;;  %6188 = vmatmul.mubr.msk.bf16.vlgmr.msra.gmra.mrb[168].mxu1 %vm33_vm1, %v6178_v14 }
 0x159   :  { %5026 = vmatpush1.bf16.msra.mxu0 %v5014_v17  ;;  %5067 = vmatpush1.bf16.msra.mxu1 %v5020_v18  ;;  %v5362_v18 = vsel %vm37_vm0, %v6225_v0, 0 }
 0x15a   :  { %5057 = vmatprep.mubr.bf16.mxu0 %v6461_v2  ;;  %5098 = vmatprep.mubr.bf16.mxu1 %v6461_v2 }
 0x15b   :  { %v1927_v23 = vpop.f32.mrb[64].mxu0  ;;  %v1968_v24 = vpop.f32.mrb[64].mxu1  ;;  %6207 = vmatprep.subr.msk.bf16.mxu0 %vm37_vm0, %v6204_v19  ;;  %6209 = vmatprep.subr.msk.bf16.mxu1 %vm37_vm0, %v6206_v20  ;;  %v5368_v19 = vsel %vm37_vm0, %v6227_v1, 0  ;;  %v6237_v20 = vcombine.high %v6234_v9, %v6234_v9 }
 0x15c   :  { %v1975_v25 = vadd.f32 %v1927_v23, %v1859_v4  ;;  %v1977_v26 = vadd.f32 %v1968_v24, %v1861_v5  ;;  %v1929_v27 = vpop.f32.mrb[65].mxu0  ;;  %v1970_v28 = vpop.f32.mrb[65].mxu1 }
 0x15d   :  { %v1976_v31 = vadd.f32 %v1929_v27, %v1860_v10  ;;  %v1978_v32 = vadd.f32 %v1970_v28, %v1862_v11  ;;  %v1931_v33 = vpop.f32.mrb[66].mxu0  ;;  %v1972_v34 = vpop.f32.mrb[66].mxu1  ;;  %v6235_v10 = vld [vmem:[%s7325_s0 + $0x2f8] sm:$0xff] }
 0x15e   :  { %v1932_v37 = vpop.f32.mrb[67].mxu0  ;;  %v1973_v38 = vpop.f32.mrb[67].mxu1  ;;  %v6239_v21 = vcombine.high %v6235_v10, %v6235_v10  ;;  %v6238_v23 = vcombine.low %v6235_v10, %v6235_v10 }
 0x160   :  { %6197 = vmatmul.mubr.msk.bf16.vlgmr.msra.gmra.mrb[172].mxu0 %vm33_vm1, %v6189_v35  ;;  %6199 = vmatmul.mubr.msk.bf16.vlgmr.msra.gmra.mrb[172].mxu1 %vm33_vm1, %v6189_v35 }
 0x161   :  { %5142 = vmatpush1.bf16.msra.mxu0 %v5130_v39  ;;  %5183 = vmatpush1.bf16.msra.mxu1 %v5136_v40  ;;  %v5478_v39 = vsel %vm37_vm0, %v6236_v22, 0  ;;  %v5484_v40 = vsel %vm37_vm0, %v6238_v23, 0 }
 0x162   :  { %5173 = vmatprep.mubr.bf16.mxu0 %v6461_v2  ;;  %5214 = vmatprep.mubr.bf16.mxu1 %v6461_v2 }
 0x163   :  { %v2043_v45 = vpop.f32.mrb[68].mxu0  ;;  %v2084_v46 = vpop.f32.mrb[68].mxu1  ;;  %6218 = vmatprep.subr.msk.bf16.mxu0 %vm37_vm0, %v6215_v41  ;;  %6220 = vmatprep.subr.msk.bf16.mxu1 %vm37_vm0, %v6217_v42  ;;  %v6248_v41 = vcombine.high %v6245_v30, %v6245_v30 }
 0x164   :  { %v2091_v47 = vadd.f32 %v2043_v45, %v1975_v25  ;;  %v2093_v48 = vadd.f32 %v2084_v46, %v1977_v26  ;;  %v2045_v49 = vpop.f32.mrb[69].mxu0  ;;  %v2086_v50 = vpop.f32.mrb[69].mxu1 }
 0x165   :  { %v2092_v53 = vadd.f32 %v2045_v49, %v1976_v31  ;;  %v2094_v54 = vadd.f32 %v2086_v50, %v1978_v32  ;;  %v2047_v55 = vpop.f32.mrb[70].mxu0  ;;  %v2088_v56 = vpop.f32.mrb[70].mxu1  ;;  %v6246_v31 = vld [vmem:[%s7325_s0 + $0x308] sm:$0xff] }
 0x166   :  { %v2048_v58 = vpop.f32.mrb[71].mxu0  ;;  %v2089_v59 = vpop.f32.mrb[71].mxu1  ;;  %v6250_v42 = vcombine.high %v6246_v31, %v6246_v31  ;;  %v6249_v44 = vcombine.low %v6246_v31, %v6246_v31  ;;  %v6233_v55 = vld [vmem:[%s7326_s1 + $0x5e] sm:$0x3] }
 0x167   :  { %v5594_v58 = vsel %vm37_vm0, %v6247_v43, 0 }
 0x168   :  { %6208 = vmatmul.mubr.msk.bf16.vlgmr.msra.gmra.mrb[176].mxu0 %vm33_vm1, %v6200_v57  ;;  %6210 = vmatmul.mubr.msk.bf16.vlgmr.msra.gmra.mrb[176].mxu1 %vm33_vm1, %v6200_v57  ;;  %v5600_v59 = vsel %vm37_vm0, %v6249_v44, 0 }
 0x169   :  { %5258 = vmatpush1.bf16.msra.mxu0 %v5246_v60  ;;  %5299 = vmatpush1.bf16.msra.mxu1 %v5252_v61 }
 0x16a   :  { %5289 = vmatprep.mubr.bf16.mxu0 %v6461_v2  ;;  %5330 = vmatprep.mubr.bf16.mxu1 %v6461_v2 }
 0x16b   :  { %v2159_v3 = vpop.f32.mrb[72].mxu0  ;;  %v2200_v4 = vpop.f32.mrb[72].mxu1  ;;  %6229 = vmatprep.subr.msk.bf16.mxu0 %vm37_vm0, %v6226_v62  ;;  %6231 = vmatprep.subr.msk.bf16.mxu1 %vm37_vm0, %v6228_v63 }
 0x16c   :  { %v2207_v5 = vadd.f32 %v2159_v3, %v2091_v47  ;;  %v2209_v6 = vadd.f32 %v2200_v4, %v2093_v48  ;;  %v2161_v7 = vpop.f32.mrb[73].mxu0  ;;  %v2202_v8 = vpop.f32.mrb[73].mxu1 }
 0x16d   :  { %v2208_v11 = vadd.f32 %v2161_v7, %v2092_v53  ;;  %v2210_v12 = vadd.f32 %v2202_v8, %v2094_v54  ;;  %v2163_v13 = vpop.f32.mrb[74].mxu0  ;;  %v2204_v14 = vpop.f32.mrb[74].mxu1  ;;  %v6244_v7 = vld [vmem:[%s7326_s1 + $0x60] sm:$0x3] }
 0x16e   :  { %v2164_v16 = vpop.f32.mrb[75].mxu0  ;;  %v2205_v17 = vpop.f32.mrb[75].mxu1 }
 0x170   :  { %6219 = vmatmul.mubr.msk.bf16.vlgmr.msra.gmra.mrb[180].mxu0 %vm33_vm1, %v6211_v15  ;;  %6221 = vmatmul.mubr.msk.bf16.vlgmr.msra.gmra.mrb[180].mxu1 %vm33_vm1, %v6211_v15 }
 0x171   :  { %5374 = vmatpush1.bf16.msra.mxu0 %v5362_v18  ;;  %5415 = vmatpush1.bf16.msra.mxu1 %v5368_v19 }
 0x172   :  { %5405 = vmatprep.mubr.bf16.mxu0 %v6461_v2  ;;  %5446 = vmatprep.mubr.bf16.mxu1 %v6461_v2 }
 0x173   :  { %v2275_v24 = vpop.f32.mrb[76].mxu0  ;;  %v2316_v25 = vpop.f32.mrb[76].mxu1  ;;  %6240 = vmatprep.subr.msk.bf16.mxu0 %vm37_vm0, %v6237_v20  ;;  %6242 = vmatprep.subr.msk.bf16.mxu1 %vm37_vm0, %v6239_v21 }
 0x174   :  { %v2323_v26 = vadd.f32 %v2275_v24, %v2207_v5  ;;  %v2325_v27 = vadd.f32 %v2316_v25, %v2209_v6  ;;  %v2277_v28 = vpop.f32.mrb[77].mxu0  ;;  %v2318_v29 = vpop.f32.mrb[77].mxu1 }
 0x175   :  { %v2324_v32 = vadd.f32 %v2277_v28, %v2208_v11  ;;  %v2326_v33 = vadd.f32 %v2318_v29, %v2210_v12  ;;  %v2279_v34 = vpop.f32.mrb[78].mxu0  ;;  %v2320_v35 = vpop.f32.mrb[78].mxu1 }
 0x176   :  { %v2280_v37 = vpop.f32.mrb[79].mxu0  ;;  %v2321_v38 = vpop.f32.mrb[79].mxu1 }
 0x178   :  { %6230 = vmatmul.mubr.msk.bf16.vlgmr.msra.gmra.mrb[184].mxu0 %vm33_vm1, %v6222_v36  ;;  %6232 = vmatmul.mubr.msk.bf16.vlgmr.msra.gmra.mrb[184].mxu1 %vm33_vm1, %v6222_v36 }
 0x179   :  { %5490 = vmatpush1.bf16.msra.mxu0 %v5478_v39  ;;  %5531 = vmatpush1.bf16.msra.mxu1 %v5484_v40 }
 0x17a   :  { %5521 = vmatprep.mubr.bf16.mxu0 %v6461_v2  ;;  %5562 = vmatprep.mubr.bf16.mxu1 %v6461_v2 }
 0x17b   :  { %v2391_v45 = vpop.f32.mrb[80].mxu0  ;;  %v2432_v46 = vpop.f32.mrb[80].mxu1  ;;  %6251 = vmatprep.subr.msk.bf16.mxu0 %vm37_vm0, %v6248_v41  ;;  %6253 = vmatprep.subr.msk.bf16.mxu1 %vm37_vm0, %v6250_v42 }
 0x17c   :  { %v2439_v47 = vadd.f32 %v2391_v45, %v2323_v26  ;;  %v2441_v48 = vadd.f32 %v2432_v46, %v2325_v27  ;;  %v2393_v49 = vpop.f32.mrb[81].mxu0  ;;  %v2434_v50 = vpop.f32.mrb[81].mxu1 }
 0x17d   :  { %v2440_v51 = vadd.f32 %v2393_v49, %v2324_v32  ;;  %v2442_v52 = vadd.f32 %v2434_v50, %v2326_v33  ;;  %v2395_v53 = vpop.f32.mrb[82].mxu0  ;;  %v2436_v54 = vpop.f32.mrb[82].mxu1 }
 0x17e   :  { %v2396_v56 = vpop.f32.mrb[83].mxu0  ;;  %v2437_v57 = vpop.f32.mrb[83].mxu1 }
 0x180   :  { %6241 = vmatmul.mubr.msk.bf16.vlgmr.msra.gmra.mrb[188].mxu0 %vm33_vm1, %v6233_v55  ;;  %6243 = vmatmul.mubr.msk.bf16.vlgmr.msra.gmra.mrb[188].mxu1 %vm33_vm1, %v6233_v55 }
 0x181   :  { %5606 = vmatpush1.bf16.msra.mxu0 %v5594_v58  ;;  %5647 = vmatpush1.bf16.msra.mxu1 %v5600_v59 }
 0x182   :  { %5637 = vmatprep.mubr.bf16.mxu0 %v6461_v2  ;;  %5678 = vmatprep.mubr.bf16.mxu1 %v6461_v2 }
 0x183   :  { %v2507_v60 = vpop.f32.mrb[84].mxu0  ;;  %v2548_v61 = vpop.f32.mrb[84].mxu1 }
 0x184   :  { %v2555_v62 = vadd.f32 %v2507_v60, %v2439_v47  ;;  %v2557_v63 = vadd.f32 %v2548_v61, %v2441_v48  ;;  %v2509_v0 = vpop.f32.mrb[85].mxu0  ;;  %v2550_v1 = vpop.f32.mrb[85].mxu1 }
 0x185   :  { %v2556_v3 = vadd.f32 %v2509_v0, %v2440_v51  ;;  %v2558_v4 = vadd.f32 %v2550_v1, %v2442_v52  ;;  %v2511_v5 = vpop.f32.mrb[86].mxu0  ;;  %v2552_v6 = vpop.f32.mrb[86].mxu1 }
 0x186   :  { %v2512_v8 = vpop.f32.mrb[87].mxu0  ;;  %v2553_v9 = vpop.f32.mrb[87].mxu1 }
 0x188   :  { %6252 = vmatmul.mubr.msk.bf16.vlgmr.msra.gmra.mrb[192].mxu0 %vm33_vm1, %v6244_v7  ;;  %6254 = vmatmul.mubr.msk.bf16.vlgmr.msra.gmra.mrb[192].mxu1 %vm33_vm1, %v6244_v7 }
 0x18b   :  { %v2623_v2 = vpop.f32.mrb[88].mxu0  ;;  %v2664_v10 = vpop.f32.mrb[88].mxu1 }
 0x18c   :  { %v2671_v11 = vadd.f32 %v2623_v2, %v2555_v62  ;;  %v2673_v12 = vadd.f32 %v2664_v10, %v2557_v63  ;;  %v2625_v13 = vpop.f32.mrb[89].mxu0  ;;  %v2666_v14 = vpop.f32.mrb[89].mxu1 }
 0x18d   :  { %v2672_v15 = vadd.f32 %v2625_v13, %v2556_v3  ;;  %v2674_v16 = vadd.f32 %v2666_v14, %v2558_v4  ;;  %v2627_v17 = vpop.f32.mrb[90].mxu0  ;;  %v2668_v18 = vpop.f32.mrb[90].mxu1 }
 0x18e   :  { %v2628_v19 = vpop.f32.mrb[91].mxu0  ;;  %v2669_v20 = vpop.f32.mrb[91].mxu1 }
 0x193   :  { %v2739_v21 = vpop.f32.mrb[92].mxu0  ;;  %v2780_v22 = vpop.f32.mrb[92].mxu1 }
 0x194   :  { %v2787_v23 = vadd.f32 %v2739_v21, %v2671_v11  ;;  %v2789_v24 = vadd.f32 %v2780_v22, %v2673_v12  ;;  %v2741_v25 = vpop.f32.mrb[93].mxu0  ;;  %v2782_v26 = vpop.f32.mrb[93].mxu1 }
 0x195   :  { %v2788_v27 = vadd.f32 %v2741_v25, %v2672_v15  ;;  %v2790_v28 = vadd.f32 %v2782_v26, %v2674_v16  ;;  %v2743_v29 = vpop.f32.mrb[94].mxu0  ;;  %v2784_v30 = vpop.f32.mrb[94].mxu1 }
 0x196   :  { %v2744_v31 = vpop.f32.mrb[95].mxu0  ;;  %v2785_v32 = vpop.f32.mrb[95].mxu1 }
 0x19b   :  { %v2855_v33 = vpop.f32.mrb[96].mxu0  ;;  %v2896_v34 = vpop.f32.mrb[96].mxu1 }
 0x19c   :  { %v2903_v35 = vadd.f32 %v2855_v33, %v2787_v23  ;;  %v2905_v36 = vadd.f32 %v2896_v34, %v2789_v24  ;;  %v2857_v37 = vpop.f32.mrb[97].mxu0  ;;  %v2898_v38 = vpop.f32.mrb[97].mxu1 }
 0x19d   :  { %v2904_v39 = vadd.f32 %v2857_v37, %v2788_v27  ;;  %v2906_v40 = vadd.f32 %v2898_v38, %v2790_v28  ;;  %v2859_v41 = vpop.f32.mrb[98].mxu0  ;;  %v2900_v42 = vpop.f32.mrb[98].mxu1 }
 0x19e   :  { %v2860_v43 = vpop.f32.mrb[99].mxu0  ;;  %v2901_v44 = vpop.f32.mrb[99].mxu1 }
 0x1a3   :  { %v2971_v45 = vpop.f32.mrb[100].mxu0  ;;  %v3012_v46 = vpop.f32.mrb[100].mxu1 }
 0x1a4   :  { %v3019_v47 = vadd.f32 %v2971_v45, %v2903_v35  ;;  %v3021_v48 = vadd.f32 %v3012_v46, %v2905_v36  ;;  %v2973_v49 = vpop.f32.mrb[101].mxu0  ;;  %v3014_v50 = vpop.f32.mrb[101].mxu1 }
 0x1a5   :  { %v3020_v51 = vadd.f32 %v2973_v49, %v2904_v39  ;;  %v3022_v52 = vadd.f32 %v3014_v50, %v2906_v40  ;;  %v2975_v53 = vpop.f32.mrb[102].mxu0  ;;  %v3016_v54 = vpop.f32.mrb[102].mxu1 }
 0x1a6   :  { %v2976_v55 = vpop.f32.mrb[103].mxu0  ;;  %v3017_v56 = vpop.f32.mrb[103].mxu1 }
 0x1ab   :  { %v3087_v57 = vpop.f32.mrb[104].mxu0  ;;  %v3128_v58 = vpop.f32.mrb[104].mxu1 }
 0x1ac   :  { %v3135_v59 = vadd.f32 %v3087_v57, %v3019_v47  ;;  %v3137_v60 = vadd.f32 %v3128_v58, %v3021_v48  ;;  %v3089_v61 = vpop.f32.mrb[105].mxu0  ;;  %v3130_v62 = vpop.f32.mrb[105].mxu1 }
 0x1ad   :  { %v3136_v63 = vadd.f32 %v3089_v61, %v3020_v51  ;;  %v3138_v0 = vadd.f32 %v3130_v62, %v3022_v52  ;;  %v3091_v1 = vpop.f32.mrb[106].mxu0  ;;  %v3132_v3 = vpop.f32.mrb[106].mxu1 }
 0x1ae   :  { %v3092_v4 = vpop.f32.mrb[107].mxu0  ;;  %v3133_v5 = vpop.f32.mrb[107].mxu1 }
 0x1b3   :  { %v3203_v6 = vpop.f32.mrb[108].mxu0  ;;  %v3244_v7 = vpop.f32.mrb[108].mxu1 }
 0x1b4   :  { %v3251_v8 = vadd.f32 %v3203_v6, %v3135_v59  ;;  %v3253_v9 = vadd.f32 %v3244_v7, %v3137_v60  ;;  %v3205_v2 = vpop.f32.mrb[109].mxu0  ;;  %v3246_v10 = vpop.f32.mrb[109].mxu1 }
 0x1b5   :  { %v3252_v11 = vadd.f32 %v3205_v2, %v3136_v63  ;;  %v3254_v12 = vadd.f32 %v3246_v10, %v3138_v0  ;;  %v3207_v13 = vpop.f32.mrb[110].mxu0  ;;  %v3248_v14 = vpop.f32.mrb[110].mxu1 }
 0x1b6   :  { %v3208_v15 = vpop.f32.mrb[111].mxu0  ;;  %v3249_v16 = vpop.f32.mrb[111].mxu1 }
 0x1bb   :  { %v3319_v17 = vpop.f32.mrb[112].mxu0  ;;  %v3360_v18 = vpop.f32.mrb[112].mxu1 }
 0x1bc   :  { %v3367_v19 = vadd.f32 %v3319_v17, %v3251_v8  ;;  %v3369_v20 = vadd.f32 %v3360_v18, %v3253_v9  ;;  %v3321_v21 = vpop.f32.mrb[113].mxu0  ;;  %v3362_v22 = vpop.f32.mrb[113].mxu1 }
 0x1bd   :  { %v3368_v23 = vadd.f32 %v3321_v21, %v3252_v11  ;;  %v3370_v24 = vadd.f32 %v3362_v22, %v3254_v12  ;;  %v3323_v25 = vpop.f32.mrb[114].mxu0  ;;  %v3364_v26 = vpop.f32.mrb[114].mxu1 }
 0x1be   :  { %v3324_v27 = vpop.f32.mrb[115].mxu0  ;;  %v3365_v28 = vpop.f32.mrb[115].mxu1 }
 0x1c3   :  { %v3435_v29 = vpop.f32.mrb[116].mxu0  ;;  %v3476_v30 = vpop.f32.mrb[116].mxu1 }
 0x1c4   :  { %v3483_v31 = vadd.f32 %v3435_v29, %v3367_v19  ;;  %v3485_v32 = vadd.f32 %v3476_v30, %v3369_v20  ;;  %v3437_v33 = vpop.f32.mrb[117].mxu0  ;;  %v3478_v34 = vpop.f32.mrb[117].mxu1 }
 0x1c5   :  { %v3484_v35 = vadd.f32 %v3437_v33, %v3368_v23  ;;  %v3486_v36 = vadd.f32 %v3478_v34, %v3370_v24  ;;  %v3439_v37 = vpop.f32.mrb[118].mxu0  ;;  %v3480_v38 = vpop.f32.mrb[118].mxu1 }
 0x1c6   :  { %v3440_v39 = vpop.f32.mrb[119].mxu0  ;;  %v3481_v40 = vpop.f32.mrb[119].mxu1 }
 0x1cb   :  { %v3551_v41 = vpop.f32.mrb[120].mxu0  ;;  %v3592_v42 = vpop.f32.mrb[120].mxu1 }
 0x1cc   :  { %v3599_v43 = vadd.f32 %v3551_v41, %v3483_v31  ;;  %v3601_v44 = vadd.f32 %v3592_v42, %v3485_v32  ;;  %v3553_v45 = vpop.f32.mrb[121].mxu0  ;;  %v3594_v46 = vpop.f32.mrb[121].mxu1 }
 0x1cd   :  { %v3600_v47 = vadd.f32 %v3553_v45, %v3484_v35  ;;  %v3602_v48 = vadd.f32 %v3594_v46, %v3486_v36  ;;  %v3555_v49 = vpop.f32.mrb[122].mxu0  ;;  %v3596_v50 = vpop.f32.mrb[122].mxu1 }
 0x1ce   :  { %v3556_v51 = vpop.f32.mrb[123].mxu0  ;;  %v3597_v52 = vpop.f32.mrb[123].mxu1 }
 0x1d3   :  { %v3667_v53 = vpop.f32.mrb[124].mxu0  ;;  %v3708_v54 = vpop.f32.mrb[124].mxu1 }
 0x1d4   :  { %v3715_v55 = vadd.f32 %v3667_v53, %v3599_v43  ;;  %v3717_v56 = vadd.f32 %v3708_v54, %v3601_v44  ;;  %v3669_v57 = vpop.f32.mrb[125].mxu0  ;;  %v3710_v58 = vpop.f32.mrb[125].mxu1 }
 0x1d5   :  { %v3716_v59 = vadd.f32 %v3669_v57, %v3600_v47  ;;  %v3718_v60 = vadd.f32 %v3710_v58, %v3602_v48  ;;  %v3671_v61 = vpop.f32.mrb[126].mxu0  ;;  %v3712_v62 = vpop.f32.mrb[126].mxu1 }
 0x1d6   :  { %v3672_v63 = vpop.f32.mrb[127].mxu0  ;;  %v3713_v0 = vpop.f32.mrb[127].mxu1 }
 0x1db   :  { %v3783_v1 = vpop.f32.mrb[128].mxu0  ;;  %v3824_v3 = vpop.f32.mrb[128].mxu1 }
 0x1dc   :  { %v3831_v4 = vadd.f32 %v3783_v1, %v3715_v55  ;;  %v3833_v5 = vadd.f32 %v3824_v3, %v3717_v56  ;;  %v3785_v6 = vpop.f32.mrb[129].mxu0  ;;  %v3826_v7 = vpop.f32.mrb[129].mxu1 }
 0x1dd   :  { %v3832_v8 = vadd.f32 %v3785_v6, %v3716_v59  ;;  %v3834_v9 = vadd.f32 %v3826_v7, %v3718_v60  ;;  %v3787_v2 = vpop.f32.mrb[130].mxu0  ;;  %v3828_v10 = vpop.f32.mrb[130].mxu1 }
 0x1de   :  { %v3788_v11 = vpop.f32.mrb[131].mxu0  ;;  %v3829_v12 = vpop.f32.mrb[131].mxu1 }
 0x1e3   :  { %v3899_v13 = vpop.f32.mrb[132].mxu0  ;;  %v3940_v14 = vpop.f32.mrb[132].mxu1 }
 0x1e4   :  { %v3947_v15 = vadd.f32 %v3899_v13, %v3831_v4  ;;  %v3949_v16 = vadd.f32 %v3940_v14, %v3833_v5  ;;  %v3901_v17 = vpop.f32.mrb[133].mxu0  ;;  %v3942_v18 = vpop.f32.mrb[133].mxu1 }
 0x1e5   :  { %v3948_v19 = vadd.f32 %v3901_v17, %v3832_v8  ;;  %v3950_v20 = vadd.f32 %v3942_v18, %v3834_v9  ;;  %v3903_v21 = vpop.f32.mrb[134].mxu0  ;;  %v3944_v22 = vpop.f32.mrb[134].mxu1 }
 0x1e6   :  { %v3904_v23 = vpop.f32.mrb[135].mxu0  ;;  %v3945_v24 = vpop.f32.mrb[135].mxu1 }
 0x1eb   :  { %v4015_v25 = vpop.f32.mrb[136].mxu0  ;;  %v4056_v26 = vpop.f32.mrb[136].mxu1 }
 0x1ec   :  { %v4063_v27 = vadd.f32 %v4015_v25, %v3947_v15  ;;  %v4065_v28 = vadd.f32 %v4056_v26, %v3949_v16  ;;  %v4017_v29 = vpop.f32.mrb[137].mxu0  ;;  %v4058_v30 = vpop.f32.mrb[137].mxu1 }
 0x1ed   :  { %v4064_v31 = vadd.f32 %v4017_v29, %v3948_v19  ;;  %v4066_v32 = vadd.f32 %v4058_v30, %v3950_v20  ;;  %v4019_v33 = vpop.f32.mrb[138].mxu0  ;;  %v4060_v34 = vpop.f32.mrb[138].mxu1 }
 0x1ee   :  { %v4020_v35 = vpop.f32.mrb[139].mxu0  ;;  %v4061_v36 = vpop.f32.mrb[139].mxu1 }
 0x1f3   :  { %v4131_v37 = vpop.f32.mrb[140].mxu0  ;;  %v4172_v38 = vpop.f32.mrb[140].mxu1 }
 0x1f4   :  { %v4179_v39 = vadd.f32 %v4131_v37, %v4063_v27  ;;  %v4181_v40 = vadd.f32 %v4172_v38, %v4065_v28  ;;  %v4133_v41 = vpop.f32.mrb[141].mxu0  ;;  %v4174_v42 = vpop.f32.mrb[141].mxu1 }
 0x1f5   :  { %v4180_v43 = vadd.f32 %v4133_v41, %v4064_v31  ;;  %v4182_v44 = vadd.f32 %v4174_v42, %v4066_v32  ;;  %v4135_v45 = vpop.f32.mrb[142].mxu0  ;;  %v4176_v46 = vpop.f32.mrb[142].mxu1 }
 0x1f6   :  { %v4136_v47 = vpop.f32.mrb[143].mxu0  ;;  %v4177_v48 = vpop.f32.mrb[143].mxu1 }
 0x1fb   :  { %v4247_v49 = vpop.f32.mrb[144].mxu0  ;;  %v4288_v50 = vpop.f32.mrb[144].mxu1 }
 0x1fc   :  { %v4295_v51 = vadd.f32 %v4247_v49, %v4179_v39  ;;  %v4297_v52 = vadd.f32 %v4288_v50, %v4181_v40  ;;  %v4249_v53 = vpop.f32.mrb[145].mxu0  ;;  %v4290_v54 = vpop.f32.mrb[145].mxu1 }
 0x1fd   :  { %v4296_v55 = vadd.f32 %v4249_v53, %v4180_v43  ;;  %v4298_v56 = vadd.f32 %v4290_v54, %v4182_v44  ;;  %v4251_v57 = vpop.f32.mrb[146].mxu0  ;;  %v4292_v58 = vpop.f32.mrb[146].mxu1 }
 0x1fe   :  { %v4252_v59 = vpop.f32.mrb[147].mxu0  ;;  %v4293_v60 = vpop.f32.mrb[147].mxu1 }
 0x203   :  { %v4363_v61 = vpop.f32.mrb[148].mxu0  ;;  %v4404_v62 = vpop.f32.mrb[148].mxu1 }
 0x204   :  { %v4411_v63 = vadd.f32 %v4363_v61, %v4295_v51  ;;  %v4413_v0 = vadd.f32 %v4404_v62, %v4297_v52  ;;  %v4365_v1 = vpop.f32.mrb[149].mxu0  ;;  %v4406_v3 = vpop.f32.mrb[149].mxu1 }
 0x205   :  { %v4412_v4 = vadd.f32 %v4365_v1, %v4296_v55  ;;  %v4414_v5 = vadd.f32 %v4406_v3, %v4298_v56  ;;  %v4367_v6 = vpop.f32.mrb[150].mxu0  ;;  %v4408_v7 = vpop.f32.mrb[150].mxu1 }
 0x206   :  { %v4368_v8 = vpop.f32.mrb[151].mxu0  ;;  %v4409_v9 = vpop.f32.mrb[151].mxu1 }
 0x20b   :  { %v4479_v2 = vpop.f32.mrb[152].mxu0  ;;  %v4520_v10 = vpop.f32.mrb[152].mxu1 }
 0x20c   :  { %v4527_v11 = vadd.f32 %v4479_v2, %v4411_v63  ;;  %v4529_v12 = vadd.f32 %v4520_v10, %v4413_v0  ;;  %v4481_v13 = vpop.f32.mrb[153].mxu0  ;;  %v4522_v14 = vpop.f32.mrb[153].mxu1 }
 0x20d   :  { %v4528_v15 = vadd.f32 %v4481_v13, %v4412_v4  ;;  %v4530_v16 = vadd.f32 %v4522_v14, %v4414_v5  ;;  %v4483_v17 = vpop.f32.mrb[154].mxu0  ;;  %v4524_v18 = vpop.f32.mrb[154].mxu1 }
 0x20e   :  { %v4484_v19 = vpop.f32.mrb[155].mxu0  ;;  %v4525_v20 = vpop.f32.mrb[155].mxu1 }
 0x213   :  { %v4595_v21 = vpop.f32.mrb[156].mxu0  ;;  %v4636_v22 = vpop.f32.mrb[156].mxu1 }
 0x214   :  { %v4643_v23 = vadd.f32 %v4595_v21, %v4527_v11  ;;  %v4645_v24 = vadd.f32 %v4636_v22, %v4529_v12  ;;  %v4597_v25 = vpop.f32.mrb[157].mxu0  ;;  %v4638_v26 = vpop.f32.mrb[157].mxu1 }
 0x215   :  { %v4644_v27 = vadd.f32 %v4597_v25, %v4528_v15  ;;  %v4646_v28 = vadd.f32 %v4638_v26, %v4530_v16  ;;  %v4599_v29 = vpop.f32.mrb[158].mxu0  ;;  %v4640_v30 = vpop.f32.mrb[158].mxu1 }
 0x216   :  { %v4600_v31 = vpop.f32.mrb[159].mxu0  ;;  %v4641_v32 = vpop.f32.mrb[159].mxu1 }
 0x21b   :  { %v4711_v33 = vpop.f32.mrb[160].mxu0  ;;  %v4752_v34 = vpop.f32.mrb[160].mxu1 }
 0x21c   :  { %v4759_v35 = vadd.f32 %v4711_v33, %v4643_v23  ;;  %v4761_v36 = vadd.f32 %v4752_v34, %v4645_v24  ;;  %v4713_v37 = vpop.f32.mrb[161].mxu0  ;;  %v4754_v38 = vpop.f32.mrb[161].mxu1 }
 0x21d   :  { %v4760_v39 = vadd.f32 %v4713_v37, %v4644_v27  ;;  %v4762_v40 = vadd.f32 %v4754_v38, %v4646_v28  ;;  %v4715_v41 = vpop.f32.mrb[162].mxu0  ;;  %v4756_v42 = vpop.f32.mrb[162].mxu1 }
 0x21e   :  { %v4716_v43 = vpop.f32.mrb[163].mxu0  ;;  %v4757_v44 = vpop.f32.mrb[163].mxu1 }
 0x223   :  { %v4827_v45 = vpop.f32.mrb[164].mxu0  ;;  %v4868_v46 = vpop.f32.mrb[164].mxu1 }
 0x224   :  { %v4875_v47 = vadd.f32 %v4827_v45, %v4759_v35  ;;  %v4877_v48 = vadd.f32 %v4868_v46, %v4761_v36  ;;  %v4829_v49 = vpop.f32.mrb[165].mxu0  ;;  %v4870_v50 = vpop.f32.mrb[165].mxu1 }
 0x225   :  { %v4876_v51 = vadd.f32 %v4829_v49, %v4760_v39  ;;  %v4878_v52 = vadd.f32 %v4870_v50, %v4762_v40  ;;  %v4831_v53 = vpop.f32.mrb[166].mxu0  ;;  %v4872_v54 = vpop.f32.mrb[166].mxu1 }
 0x226   :  { %v4832_v55 = vpop.f32.mrb[167].mxu0  ;;  %v4873_v56 = vpop.f32.mrb[167].mxu1 }
 0x22b   :  { %v4943_v57 = vpop.f32.mrb[168].mxu0  ;;  %v4984_v58 = vpop.f32.mrb[168].mxu1 }
 0x22c   :  { %v4991_v59 = vadd.f32 %v4943_v57, %v4875_v47  ;;  %v4993_v60 = vadd.f32 %v4984_v58, %v4877_v48  ;;  %v4945_v61 = vpop.f32.mrb[169].mxu0  ;;  %v4986_v62 = vpop.f32.mrb[169].mxu1 }
 0x22d   :  { %v4992_v63 = vadd.f32 %v4945_v61, %v4876_v51  ;;  %v4994_v0 = vadd.f32 %v4986_v62, %v4878_v52  ;;  %v4947_v1 = vpop.f32.mrb[170].mxu0  ;;  %v4988_v3 = vpop.f32.mrb[170].mxu1 }
 0x22e   :  { %v4948_v4 = vpop.f32.mrb[171].mxu0  ;;  %v4989_v5 = vpop.f32.mrb[171].mxu1 }
 0x22f   :  { %v5695_v1 = vpop.permute.xlu0 %5694 }
 0x233   :  { %v5059_v6 = vpop.f32.mrb[172].mxu0  ;;  %v5100_v7 = vpop.f32.mrb[172].mxu1 }
 0x234   :  { %v5107_v8 = vadd.f32 %v5059_v6, %v4991_v59  ;;  %v5109_v9 = vadd.f32 %v5100_v7, %v4993_v60  ;;  %v5061_v2 = vpop.f32.mrb[173].mxu0  ;;  %v5102_v10 = vpop.f32.mrb[173].mxu1 }
 0x235   :  { %v5108_v11 = vadd.f32 %v5061_v2, %v4992_v63  ;;  %v5110_v12 = vadd.f32 %v5102_v10, %v4994_v0  ;;  %v5063_v13 = vpop.f32.mrb[174].mxu0  ;;  %v5104_v14 = vpop.f32.mrb[174].mxu1 }
 0x236   :  { %v5064_v15 = vpop.f32.mrb[175].mxu0  ;;  %v5105_v16 = vpop.f32.mrb[175].mxu1 }
 0x23b   :  { %v5175_v17 = vpop.f32.mrb[176].mxu0  ;;  %v5216_v18 = vpop.f32.mrb[176].mxu1 }
 0x23c   :  { %v5223_v19 = vadd.f32 %v5175_v17, %v5107_v8  ;;  %v5225_v20 = vadd.f32 %v5216_v18, %v5109_v9  ;;  %v5177_v21 = vpop.f32.mrb[177].mxu0  ;;  %v5218_v22 = vpop.f32.mrb[177].mxu1 }
 0x23d   :  { %v5224_v23 = vadd.f32 %v5177_v21, %v5108_v11  ;;  %v5226_v24 = vadd.f32 %v5218_v22, %v5110_v12  ;;  %v5179_v25 = vpop.f32.mrb[178].mxu0  ;;  %v5220_v26 = vpop.f32.mrb[178].mxu1 }
 0x23e   :  { %v5180_v27 = vpop.f32.mrb[179].mxu0  ;;  %v5221_v28 = vpop.f32.mrb[179].mxu1 }
 0x243   :  { %v5291_v29 = vpop.f32.mrb[180].mxu0  ;;  %v5332_v30 = vpop.f32.mrb[180].mxu1 }
 0x244   :  { %v5339_v31 = vadd.f32 %v5291_v29, %v5223_v19  ;;  %v5341_v32 = vadd.f32 %v5332_v30, %v5225_v20  ;;  %v5293_v33 = vpop.f32.mrb[181].mxu0  ;;  %v5334_v34 = vpop.f32.mrb[181].mxu1 }
 0x245   :  { %v5340_v35 = vadd.f32 %v5293_v33, %v5224_v23  ;;  %v5342_v36 = vadd.f32 %v5334_v34, %v5226_v24  ;;  %v5295_v37 = vpop.f32.mrb[182].mxu0  ;;  %v5336_v38 = vpop.f32.mrb[182].mxu1 }
 0x246   :  { %v5296_v39 = vpop.f32.mrb[183].mxu0  ;;  %v5337_v40 = vpop.f32.mrb[183].mxu1 }
 0x24b   :  { %v5407_v41 = vpop.f32.mrb[184].mxu0  ;;  %v5448_v42 = vpop.f32.mrb[184].mxu1 }
 0x24c   :  { %v5455_v43 = vadd.f32 %v5407_v41, %v5339_v31  ;;  %v5457_v44 = vadd.f32 %v5448_v42, %v5341_v32  ;;  %v5409_v45 = vpop.f32.mrb[185].mxu0  ;;  %v5450_v46 = vpop.f32.mrb[185].mxu1 }
 0x24d   :  { %v5456_v47 = vadd.f32 %v5409_v45, %v5340_v35  ;;  %v5458_v48 = vadd.f32 %v5450_v46, %v5342_v36  ;;  %v5411_v49 = vpop.f32.mrb[186].mxu0  ;;  %v5452_v50 = vpop.f32.mrb[186].mxu1 }
 0x24e   :  { %v5412_v51 = vpop.f32.mrb[187].mxu0  ;;  %v5453_v52 = vpop.f32.mrb[187].mxu1 }
 0x253   :  { %v5523_v53 = vpop.f32.mrb[188].mxu0  ;;  %v5564_v54 = vpop.f32.mrb[188].mxu1 }
 0x254   :  { %v5571_v55 = vadd.f32 %v5523_v53, %v5455_v43  ;;  %v5573_v56 = vadd.f32 %v5564_v54, %v5457_v44  ;;  %v5525_v57 = vpop.f32.mrb[189].mxu0  ;;  %v5566_v58 = vpop.f32.mrb[189].mxu1 }
 0x255   :  { %v5572_v59 = vadd.f32 %v5525_v57, %v5456_v47  ;;  %v5574_v60 = vadd.f32 %v5566_v58, %v5458_v48  ;;  %v5527_v61 = vpop.f32.mrb[190].mxu0  ;;  %v5568_v62 = vpop.f32.mrb[190].mxu1 }
 0x256   :  { %v5528_v63 = vpop.f32.mrb[191].mxu0  ;;  %v5569_v0 = vpop.f32.mrb[191].mxu1 }
 0x25b   :  { %v5639_v3 = vpop.f32.mrb[192].mxu0  ;;  %v5680_v4 = vpop.f32.mrb[192].mxu1 }
 0x25c   :  { %v5687_v5 = vadd.f32 %v5639_v3, %v5571_v55  ;;  %v5689_v6 = vadd.f32 %v5680_v4, %v5573_v56  ;;  %v5641_v7 = vpop.f32.mrb[193].mxu0  ;;  %v5682_v8 = vpop.f32.mrb[193].mxu1 }
 0x25d   :  { %v5688_v9 = vadd.f32 %v5641_v7, %v5572_v59  ;;  %v5690_v2 = vadd.f32 %v5682_v8, %v5574_v60  ;;  %v5643_v10 = vpop.f32.mrb[194].mxu0  ;;  %v5684_v11 = vpop.f32.mrb[194].mxu1 }
 0x25e   :  { %v5697_v12 = vadd.f32 %v5695_v1, %v5687_v5  ;;  %v5699_v13 = vadd.f32 %v5695_v1, %v5689_v6  ;;  %v5644_v14 = vpop.f32.mrb[195].mxu0  ;;  %v5685_v15 = vpop.f32.mrb[195].mxu1 }
 0x25f   :  { %v5698_v16 = vadd.f32 %v5695_v1, %v5688_v9  ;;  %v5700_v17 = vadd.f32 %v5695_v1, %v5690_v2 }
 0x260   :  { %6453 = vtanh.f32 %v5697_v12 }
 0x261   :  { %6455 = vtanh.f32 %v5698_v16 }
 0x262   :  { %6457 = vtanh.f32 %v5699_v13 }
 0x263   :  { %6459 = vtanh.f32 %v5700_v17 }
 0x26a   :  { %v6454_v18 = vpop.eup %6453 }
 0x26b   :  { %v6456_v19 = vpop.eup %6455 }
 0x26c   :  { %v6458_v20 = vpop.eup %6457  ;;  %v5709_v21 = vcombine.low %v6454_v18, %v6456_v19 }
 0x26d   :  { %v6460_v22 = vpop.eup %6459 }
 0x26e   :  { %v5710_v23 = vcombine.low %v6458_v20, %v6460_v22  ;;  %5713 = vst [vmem:[%s7328_s3] sm:$0x77] %v5709_v21 }
 0x270   :  { %5714 = vst [vmem:[%s7328_s3 + $0x8] sm:$0x77] %v5710_v23 }

</bundles_post_ra>
